<compile_context>
chip_gen: v7x
topology: tpu7x:2x2x1
jax: 0.10.0
libtpu: 0.0.40
codegen_flags: <defaults>
</compile_context>

<pallas_src>
import functools

import jax
import jax.numpy as jnp
from jax import lax
from jax.experimental import pallas as pl
from jax.experimental.pallas import tpu as pltpu

BN_EPS = 1e-5
LEAKY_SLOPE = 0.01
MXU_DTYPE = jnp.bfloat16      # MXU operands + padded-halo scratch
ACT_DTYPE = jnp.bfloat16      # intermediate activations y1 / y2 in HBM


@functools.lru_cache(maxsize=None)
def _vmem_limit_bytes():
    """~Half of physical VMEM per generation: 64 MiB on v5e/v6e (128 MiB phys),
    32 MiB on v7x (64 MiB phys). Falls back to 32 MiB if the query fails."""
    try:
        cap = int(pltpu.get_tpu_info().vmem_capacity_bytes)
    except Exception:
        return 32 * 1024 * 1024
    return max(32 * 1024 * 1024, min(96 * 1024 * 1024, cap // 2))


def _compiler_params(n_grid_axes):
    return pltpu.CompilerParams(
        dimension_semantics=("parallel",) * n_grid_axes,
        vmem_limit_bytes=_vmem_limit_bytes(),
    )


def _pick_row_tile(h, w, cout, max_m=2048):
    """Conv row tile: multiple of 8, divides h, keeps M = th*w <= max_m so the
    MXU matmul stays well fed while the im2col buffer stays small. Falls back
    to th = h (a full-extent block is always BlockSpec-legal)."""
    best = None
    if (w * cout) % 128 == 0:   # lane-dense (th, w*cout) output block needs this
        for th in range(8, h, 8):
            if h % th == 0 and th * w <= max_m:
                best = th
    return best if best is not None else h


def _pick_elem_tile(total, target=512):
    """Largest multiple-of-8 divisor of `total` that is <= target (else total)."""
    best = None
    for t in range(8, min(total, target) + 1, 8):
        if total % t == 0:
            best = t
    return best if best is not None else total


# -----------------------------------------------------------------------------
# Kernel 1: 3x3 conv (pad=1) on one row block of one image, with the previous
#           stage's BN + LeakyReLU optionally fused into its prologue, plus
#           per-(image, row-block) BN partial statistics (sum, sumsq).
# -----------------------------------------------------------------------------
def _conv_stats_kernel(x_ref, scale_ref, shift_ref, w_ref, y_ref, stats_ref,
                       xpad_ref, *, th, h, w, cin, cout, prenorm_act):
    # x_ref:     (1, h, w, cin)        whole image resident in VMEM (index_map is
    #                                  constant along the row axis -> no re-DMA per j)
    # scale/shift_ref: (1, cin) f32    BN scale/shift of the *previous* stage
    # w_ref:     (9*cin, cout) bf16    3x3 taps folded into one K = 9*cin contraction
    # y_ref:     (1, th, w*cout) bf16  lane-dense conv output block (pre-BN)
    # stats_ref: (1, 1, 2, cout) f32   per-(image,row-block) [sum, sumsq]
    # xpad_ref:  (th+2, w+2, cin) bf16 zero-halo padded row slab (VMEM scratch)
    j = pl.program_id(1)
    nb = pl.num_programs(1)
    r0 = pl.multiple_of(j * th, th)

    def act_in(v):
        v = v.astype(jnp.float32)
        if prenorm_act:           # previous stage's BN + LeakyReLU fused here (f32)
            v = v * scale_ref[...] + shift_ref[...]
            v = jnp.where(v > 0, v, LEAKY_SLOPE * v)
        return v.astype(MXU_DTYPE)

    # Zero only the left/right halo columns (tiny) every step -- megacore-safe,
    # avoids re-zeroing the whole scratch.
    zcol = jnp.zeros((th + 2, 1, cin), MXU_DTYPE)
    xpad_ref[:, 0:1, :] = zcol
    xpad_ref[:, w + 1:w + 2, :] = zcol

    # Row slab [r0-1, r0+th+1); out-of-image halo rows are masked to zero
    # (padding applies to the *activation*, so mask AFTER the fused prenorm).
    mid = x_ref[0, pl.ds(r0, th)]                            # (th, w, cin)
    top = x_ref[0, pl.ds(jnp.maximum(r0 - 1, 0), 1)]         # (1,  w, cin)
    bot = x_ref[0, pl.ds(jnp.minimum(r0 + th, h - 1), 1)]    # (1,  w, cin)
    zrow = jnp.zeros((1, w, cin), MXU_DTYPE)
    xpad_ref[1:th + 1, 1:w + 1, :] = act_in(mid)
    xpad_ref[0:1, 1:w + 1, :] = jnp.where(j > 0, act_in(top), zrow)
    xpad_ref[th + 1:th + 2, 1:w + 1, :] = jnp.where(j < nb - 1, act_in(bot), zrow)

    # im2col in bf16: ONE MXU matmul with K = 9*cin, f32 accumulation.
    # TODO(synk): on v7x, benchmark 9 accumulating K=cin matmuls instead (MRB
    # accumulates in place and the (th*w, 9*cin) patches buffer disappears).
    cols = []
    for kh in range(3):
        for kw in range(3):
            cols.append(xpad_ref[kh:kh + th, kw:kw + w, :].reshape(th * w, cin))
    patches = jnp.concatenate(cols, axis=-1)                 # (th*w, 9*cin) bf16
    acc = jnp.dot(patches, w_ref[...],
                  preferred_element_type=jnp.float32)        # (th*w, cout) f32

    # BN partials from the exact f32 accumulator (folded across the grid in JAX).
    stats_ref[0, 0, 0:1, :] = jnp.sum(acc, axis=0, keepdims=True)
    stats_ref[0, 0, 1:2, :] = jnp.sum(acc * acc, axis=0, keepdims=True)

    # Lane-dense store: pack (th*w, cout) -> (th, w*cout) channel-minor, spelled
    # as slice + lane-concat (guaranteed to lower; equivalent to
    # acc.reshape(th, w*cout) on Mosaic versions with general reshape support).
    acc3 = acc.astype(y_ref.dtype).reshape(th, w, cout)
    y_ref[0] = jnp.concatenate([acc3[:, x, :] for x in range(w)], axis=-1)


# -----------------------------------------------------------------------------
# Kernel 2: lane-dense BN (precomputed per-channel scale/shift tiled across W)
#           + LeakyReLU. Pure elementwise on (rows, W*C) tiles.
# -----------------------------------------------------------------------------
def _bn_act_kernel(y_ref, scale_ref, shift_ref, o_ref):
    # y_ref: (tr, w*c) bf16 ; scale/shift: (1, w*c) f32 ; o_ref: (tr, w*c) f32
    z = y_ref[...].astype(jnp.float32) * scale_ref[...] + shift_ref[...]
    o_ref[...] = jnp.where(z > 0, z, LEAKY_SLOPE * z)


# -----------------------------------------------------------------------------
# Wrappers
# -----------------------------------------------------------------------------
def _conv_stage(x_nhwc, scale_prev, shift_prev, w_flat, *, cout, prenorm_act):
    n, h, w, cin = x_nhwc.shape
    th = _pick_row_tile(h, w, cout)
    nb = h // th
    kernel = functools.partial(_conv_stats_kernel, th=th, h=h, w=w, cin=cin,
                               cout=cout, prenorm_act=prenorm_act)
    flops = 2 * n * h * w * 9 * cin * cout + 8 * n * h * w * cin
    bytes_accessed = (x_nhwc.size * x_nhwc.dtype.itemsize
                      + 2 * n * h * w * cout            # bf16 y
                      + 4 * n * nb * 2 * cout
                      + 2 * w_flat.size + 4 * 2 * cin)
    # TODO(synk): for very large H, switch the image input to memory_space=pl.ANY
    # with a manually double-buffered halo DMA so the whole image never has to be
    # resident in VMEM (only the row slab).
    y, stats = pl.pallas_call(
        kernel,
        grid=(n, nb),
        in_specs=[
            pl.BlockSpec((1, h, w, cin), lambda i, j: (i, 0, 0, 0)),
            pl.BlockSpec((1, cin), lambda i, j: (0, 0)),
            pl.BlockSpec((1, cin), lambda i, j: (0, 0)),
            pl.BlockSpec((9 * cin, cout), lambda i, j: (0, 0)),
        ],
        out_specs=(
            pl.BlockSpec((1, th, w * cout), lambda i, j: (i, j, 0)),
            pl.BlockSpec((1, 1, 2, cout), lambda i, j: (i, j, 0, 0)),
        ),
        out_shape=(
            jax.ShapeDtypeStruct((n, h, w * cout), ACT_DTYPE),   # lane-dense, bf16
            jax.ShapeDtypeStruct((n, nb, 2, cout), jnp.float32),
        ),
        scratch_shapes=[pltpu.VMEM((th + 2, w + 2, cin), MXU_DTYPE)],
        compiler_params=_compiler_params(2),
        cost_estimate=pl.CostEstimate(flops=flops, transcendentals=0,
                                      bytes_accessed=bytes_accessed),
    )(x_nhwc, scale_prev, shift_prev, w_flat)
    return y, stats


def _bn_scale_shift(stats, gamma, beta, count):
    """Fold per-(image,row-block) (sum, sumsq) partials into per-channel BN
    scale = gamma*rsqrt(var+eps) and shift = beta - mean*scale."""
    s = jnp.sum(stats[..., 0, :], axis=(0, 1))
    ss = jnp.sum(stats[..., 1, :], axis=(0, 1))
    mean = s / count
    # TODO(synk): E[x^2]-mean^2 can cancel at production scale; switch to a centered
    # second pass (or Welford accumulation) if divergence vs PyTorch is observed.
    var = jnp.maximum(ss / count - mean * mean, 0.0)
    scale = gamma * lax.rsqrt(var + BN_EPS)
    shift = beta - mean * scale
    return scale, shift


def _bn_act(y_rows, scale, shift, *, w, c):
    """Final BN + LeakyReLU over the lane-dense (n, h, w*c) activation."""
    n, h, wc = y_rows.shape
    total = n * h
    tr = _pick_elem_tile(total)                       # large row tile (up to 512)
    y_flat = y_rows.reshape(total, wc)                # metadata-only in HBM
    scale_row = jnp.tile(scale, w).reshape(1, wc)     # channel-minor lane layout
    shift_row = jnp.tile(shift, w).reshape(1, wc)
    out = pl.pallas_call(
        _bn_act_kernel,
        grid=(total // tr,),
        in_specs=[
            pl.BlockSpec((tr, wc), lambda r: (r, 0)),
            pl.BlockSpec((1, wc), lambda r: (0, 0)),
            pl.BlockSpec((1, wc), lambda r: (0, 0)),
        ],
        out_specs=pl.BlockSpec((tr, wc), lambda r: (r, 0)),
        out_shape=jax.ShapeDtypeStruct((total, wc), jnp.float32),
        compiler_params=_compiler_params(1),
        cost_estimate=pl.CostEstimate(flops=4 * total * wc, transcendentals=0,
                                      bytes_accessed=6 * total * wc + 8 * wc),
    )(y_flat, scale_row, shift_row)
    return out.reshape(n, h, w, c)


def double_conv_forward(x_nchw, w1_hwio, b1, gamma1, beta1,
                        w2_hwio, b2, gamma2, beta2):
    """(conv3x3 pad=1 -> BN(batch stats) -> LeakyReLU(0.01)) x 2, NCHW in/out.

    The conv biases b1/b2 are accepted for API parity with nn.Conv2d but unused:
    training-mode BatchNorm subtracts the per-channel batch mean, which exactly
    cancels any per-channel constant added by the convolution.
    """
    del b1, b2
    n, cin, h, w = x_nchw.shape
    c = w1_hwio.shape[-1]
    count = n * h * w

    # TODO(synk): fold the NCHW<->NHWC boundary transposes into the conv / BN
    # kernels at production sizes (only worthwhile when W >= 128).
    x_nhwc = jnp.transpose(x_nchw, (0, 2, 3, 1))
    w1_flat = w1_hwio.reshape(9 * cin, c).astype(MXU_DTYPE)
    w2_flat = w2_hwio.reshape(9 * c, c).astype(MXU_DTYPE)

    one = jnp.ones((1, cin), jnp.float32)
    zero = jnp.zeros((1, cin), jnp.float32)

    # Stage 1: conv1 + per-block BN partial stats (y1 stored lane-dense, bf16).
    y1, st1 = _conv_stage(x_nhwc, one, zero, w1_flat, cout=c, prenorm_act=False)
    scale1, shift1 = _bn_scale_shift(st1, gamma1, beta1, count)

    # Stage 2: conv2 with BN1 + LeakyReLU1 fused into its prologue.
    y1_nhwc = y1.reshape(n, h, w, c)                  # metadata-only in HBM
    y2, st2 = _conv_stage(y1_nhwc, scale1[None, :], shift1[None, :], w2_flat,
                          cout=c, prenorm_act=True)
    scale2, shift2 = _bn_scale_shift(st2, gamma2, beta2, count)

    # Final BN2 + LeakyReLU2, lane-dense elementwise with large row tiles.
    out_nhwc = _bn_act(y2, scale2, shift2, w=w, c=c)

    return jnp.transpose(out_nhwc, (0, 3, 1, 2))


# -----------------------------------------------------------------------------
# Pure-JAX reference (PyTorch-faithful forward), for verification.
# -----------------------------------------------------------------------------
def _reference(x_nchw, w1, b1, g1, be1, w2, b2, g2, be2,
               conv_dtype=jnp.float32):
    """conv_dtype=float32 -> exact PyTorch f32 semantics; conv_dtype=bfloat16 ->
    conv operands rounded to bf16 like the kernel's MXU inputs."""
    def conv_bn_leaky(x, w_hwio, b, g, be):
        w_oihw = jnp.transpose(w_hwio, (3, 2, 0, 1))
        y = lax.conv_general_dilated(
            x.astype(conv_dtype).astype(jnp.float32),
            w_oihw.astype(conv_dtype).astype(jnp.float32),
            window_strides=(1, 1), padding=((1, 1), (1, 1)),
            dimension_numbers=("NCHW", "OIHW", "NCHW"),
            precision=lax.Precision.HIGHEST)
        y = y + b[None, :, None, None]
        mean = jnp.mean(y, axis=(0, 2, 3), keepdims=True)
        var = jnp.mean((y - mean) ** 2, axis=(0, 2, 3), keepdims=True)
        y = (g[None, :, None, None] * (y - mean) * lax.rsqrt(var + BN_EPS)
             + be[None, :, None, None])
        return jnp.where(y > 0, y, LEAKY_SLOPE * y)
    h1 = conv_bn_leaky(x_nchw, w1, b1, g1, be1)
    return conv_bn_leaky(h1, w2, b2, g2, be2)


if __name__ == "__main__":
    key = jax.random.PRNGKey(0)
    ks = jax.random.split(key, 9)
    n, cin, c, h, w = 2, 4, 8, 16, 16   # small double_conv block

    x = jax.random.normal(ks[0], (n, cin, h, w), jnp.float32)
    w1 = 0.3 * jax.random.normal(ks[1], (3, 3, cin, c), jnp.float32)
    b1 = 0.1 * jax.random.normal(ks[2], (c,), jnp.float32)
    g1 = 1.0 + 0.1 * jax.random.normal(ks[3], (c,), jnp.float32)
    be1 = 0.1 * jax.random.normal(ks[4], (c,), jnp.float32)
    w2 = 0.2 * jax.random.normal(ks[5], (3, 3, c, c), jnp.float32)
    b2 = 0.1 * jax.random.normal(ks[6], (c,), jnp.float32)
    g2 = 1.0 + 0.1 * jax.random.normal(ks[7], (c,), jnp.float32)
    be2 = 0.1 * jax.random.normal(ks[8], (c,), jnp.float32)

    fwd = jax.jit(double_conv_forward)
    out = jax.block_until_ready(fwd(x, w1, b1, g1, be1, w2, b2, g2, be2))
    assert out.shape == (n, c, h, w)

    # Tight check: reference with conv operands rounded to bf16 like the kernel's
    # MXU inputs (the kernel additionally keeps bf16 intermediates in HBM, hence
    # slightly relaxed tolerances vs a pure bf16-operand reference).
    ref_bf16 = _reference(x, w1, b1, g1, be1, w2, b2, g2, be2,
                          conv_dtype=MXU_DTYPE)
    assert jnp.allclose(out, ref_bf16, rtol=3e-2, atol=4e-2), \
        "mismatch vs bf16-operand reference"

    # Loose check: pure-f32 PyTorch-faithful reference (bounds bf16 drift).
    ref_f32 = _reference(x, w1, b1, g1, be1, w2, b2, g2, be2,
                         conv_dtype=jnp.float32)
    assert jnp.allclose(out, ref_f32, rtol=8e-2, atol=8e-2), \
        "mismatch vs f32 reference"

    print("KERNEL_OK")
</pallas_src>

<mosaic_0001>
module attributes {stable_mosaic.version = 11 : i64} {
  func.func @_conv_stats_kernel(%arg0: i32, %arg1: i32, %arg2: memref<1x16x16x4xf32, #tpu.memory_space<vmem>>, %arg3: memref<1x4xf32, #tpu.memory_space<vmem>>, %arg4: memref<1x4xf32, #tpu.memory_space<vmem>>, %arg5: memref<36x8xbf16, #tpu.memory_space<vmem>>, %arg6: memref<1x8x128xbf16, #tpu.memory_space<vmem>>, %arg7: memref<1x1x2x8xf32, #tpu.memory_space<vmem>>, %arg8: memref<10x18x4xbf16, #tpu.memory_space<vmem>>) attributes {dimension_semantics = [#tpu.dimension_semantics<parallel>, #tpu.dimension_semantics<parallel>], iteration_bounds = array<i64: 2, 2>, scalar_prefetch = 0 : i64, scratch_operands = 1 : i64, tpu.core_type = #tpu.core_type<tc>, window_params = [{transform_indices = @transform_0, window_bounds = array<i64: 1, 16, 16, 4>}, {pipeline_mode = #tpu.pipeline_mode<synchronous>, transform_indices = @transform_1, window_bounds = array<i64: 1, 4>}, {pipeline_mode = #tpu.pipeline_mode<synchronous>, transform_indices = @transform_2, window_bounds = array<i64: 1, 4>}, {pipeline_mode = #tpu.pipeline_mode<synchronous>, transform_indices = @transform_3, window_bounds = array<i64: 36, 8>}, {transform_indices = @transform_4, window_bounds = array<i64: 1, 8, 128>}, {transform_indices = @transform_5, window_bounds = array<i64: 1, 1, 2, 8>}]} {
    %c8_i32 = arith.constant 8 : i32
    %0 = arith.muli %arg1, %c8_i32 : i32
    %1 = tpu.assume_multiple %0, 8 : i32
    %cst = arith.constant 0.000000e+00 : bf16
    %2 = vector.broadcast %cst : bf16 to vector<10x1x4xbf16>
    %c0 = arith.constant 0 : index
    %c0_0 = arith.constant 0 : index
    %c0_1 = arith.constant 0 : index
    %3 = vector.load %arg8[%c0, %c0_0, %c0_1] : memref<10x18x4xbf16, #tpu.memory_space<vmem>>, vector<10x1x4xbf16>
    tpu.vector_store %arg8[%c0, %c0_0, %c0_1], %2 {strides = array<i32>} : memref<10x18x4xbf16, #tpu.memory_space<vmem>>, vector<10x1x4xbf16>,
    %c0_2 = arith.constant 0 : index
    %c17 = arith.constant 17 : index
    %c0_3 = arith.constant 0 : index
    %4 = vector.load %arg8[%c0_2, %c17, %c0_3] : memref<10x18x4xbf16, #tpu.memory_space<vmem>>, vector<10x1x4xbf16>
    tpu.vector_store %arg8[%c0_2, %c17, %c0_3], %2 {strides = array<i32>} : memref<10x18x4xbf16, #tpu.memory_space<vmem>>, vector<10x1x4xbf16>,
    %c0_4 = arith.constant 0 : index
    %5 = arith.index_cast %1 : i32 to index
    %c0_5 = arith.constant 0 : index
    %c0_6 = arith.constant 0 : index
    %6 = vector.load %arg2[%c0_4, %5, %c0_5, %c0_6] : memref<1x16x16x4xf32, #tpu.memory_space<vmem>>, vector<1x8x16x4xf32>
    %7 = vector.shape_cast %6 : vector<1x8x16x4xf32> to vector<8x16x4xf32>
    %c1_i32 = arith.constant 1 : i32
    %8 = arith.subi %1, %c1_i32 : i32
    %c0_i32 = arith.constant 0 : i32
    %9 = arith.maxsi %8, %c0_i32 : i32
    %c0_7 = arith.constant 0 : index
    %10 = arith.index_cast %9 : i32 to index
    %c0_8 = arith.constant 0 : index
    %c0_9 = arith.constant 0 : index
    %11 = vector.load %arg2[%c0_7, %10, %c0_8, %c0_9] : memref<1x16x16x4xf32, #tpu.memory_space<vmem>>, vector<1x1x16x4xf32>
    %12 = vector.shape_cast %11 : vector<1x1x16x4xf32> to vector<1x16x4xf32>
    %c8_i32_10 = arith.constant 8 : i32
    %13 = arith.addi %1, %c8_i32_10 : i32
    %c15_i32 = arith.constant 15 : i32
    %14 = arith.minsi %13, %c15_i32 : i32
    %c0_11 = arith.constant 0 : index
    %15 = arith.index_cast %14 : i32 to index
    %c0_12 = arith.constant 0 : index
    %c0_13 = arith.constant 0 : index
    %16 = vector.load %arg2[%c0_11, %15, %c0_12, %c0_13] : memref<1x16x16x4xf32, #tpu.memory_space<vmem>>, vector<1x1x16x4xf32>
    %17 = vector.shape_cast %16 : vector<1x1x16x4xf32> to vector<1x16x4xf32>
    %cst_14 = arith.constant 0.000000e+00 : bf16
    %18 = vector.broadcast %cst_14 : bf16 to vector<1x16x4xbf16>
    %19 = arith.truncf %7 : vector<8x16x4xf32> to vector<8x16x4xbf16>
    %c1 = arith.constant 1 : index
    %c1_15 = arith.constant 1 : index
    %c0_16 = arith.constant 0 : index
    %20 = vector.load %arg8[%c1, %c1_15, %c0_16] : memref<10x18x4xbf16, #tpu.memory_space<vmem>>, vector<8x16x4xbf16>
    tpu.vector_store %arg8[%c1, %c1_15, %c0_16], %19 {strides = array<i32>} : memref<10x18x4xbf16, #tpu.memory_space<vmem>>, vector<8x16x4xbf16>,
    %c0_i32_17 = arith.constant 0 : i32
    %21 = arith.cmpi sgt, %arg1, %c0_i32_17 : i32
    %22 = arith.truncf %12 : vector<1x16x4xf32> to vector<1x16x4xbf16>
    %23 = arith.select %21, %22, %18 : vector<1x16x4xbf16>
    %c0_18 = arith.constant 0 : index
    %c1_19 = arith.constant 1 : index
    %c0_20 = arith.constant 0 : index
    %24 = vector.load %arg8[%c0_18, %c1_19, %c0_20] : memref<10x18x4xbf16, #tpu.memory_space<vmem>>, vector<1x16x4xbf16>
    tpu.vector_store %arg8[%c0_18, %c1_19, %c0_20], %23 {strides = array<i32>} : memref<10x18x4xbf16, #tpu.memory_space<vmem>>, vector<1x16x4xbf16>,
    %c1_i32_21 = arith.constant 1 : i32
    %25 = arith.cmpi slt, %arg1, %c1_i32_21 : i32
    %26 = arith.truncf %17 : vector<1x16x4xf32> to vector<1x16x4xbf16>
    %27 = arith.select %25, %26, %18 : vector<1x16x4xbf16>
    %c9 = arith.constant 9 : index
    %c1_22 = arith.constant 1 : index
    %c0_23 = arith.constant 0 : index
    %28 = vector.load %arg8[%c9, %c1_22, %c0_23] : memref<10x18x4xbf16, #tpu.memory_space<vmem>>, vector<1x16x4xbf16>
    tpu.vector_store %arg8[%c9, %c1_22, %c0_23], %27 {strides = array<i32>} : memref<10x18x4xbf16, #tpu.memory_space<vmem>>, vector<1x16x4xbf16>,
    %c0_24 = arith.constant 0 : index
    %c0_25 = arith.constant 0 : index
    %c0_26 = arith.constant 0 : index
    %29 = vector.load %arg8[%c0_24, %c0_25, %c0_26] : memref<10x18x4xbf16, #tpu.memory_space<vmem>>, vector<8x16x4xbf16>
    %30 = vector.shape_cast %29 : vector<8x16x4xbf16> to vector<128x4xbf16>
    %c0_27 = arith.constant 0 : index
    %c1_28 = arith.constant 1 : index
    %c0_29 = arith.constant 0 : index
    %31 = vector.load %arg8[%c0_27, %c1_28, %c0_29] : memref<10x18x4xbf16, #tpu.memory_space<vmem>>, vector<8x16x4xbf16>
    %32 = vector.shape_cast %31 : vector<8x16x4xbf16> to vector<128x4xbf16>
    %c0_30 = arith.constant 0 : index
    %c2 = arith.constant 2 : index
    %c0_31 = arith.constant 0 : index
    %33 = vector.load %arg8[%c0_30, %c2, %c0_31] : memref<10x18x4xbf16, #tpu.memory_space<vmem>>, vector<8x16x4xbf16>
    %34 = vector.shape_cast %33 : vector<8x16x4xbf16> to vector<128x4xbf16>
    %c1_32 = arith.constant 1 : index
    %c0_33 = arith.constant 0 : index
    %c0_34 = arith.constant 0 : index
    %35 = vector.load %arg8[%c1_32, %c0_33, %c0_34] : memref<10x18x4xbf16, #tpu.memory_space<vmem>>, vector<8x16x4xbf16>
    %36 = vector.shape_cast %35 : vector<8x16x4xbf16> to vector<128x4xbf16>
    %c1_35 = arith.constant 1 : index
    %c1_36 = arith.constant 1 : index
    %c0_37 = arith.constant 0 : index
    %37 = vector.load %arg8[%c1_35, %c1_36, %c0_37] : memref<10x18x4xbf16, #tpu.memory_space<vmem>>, vector<8x16x4xbf16>
    %38 = vector.shape_cast %37 : vector<8x16x4xbf16> to vector<128x4xbf16>
    %c1_38 = arith.constant 1 : index
    %c2_39 = arith.constant 2 : index
    %c0_40 = arith.constant 0 : index
    %39 = vector.load %arg8[%c1_38, %c2_39, %c0_40] : memref<10x18x4xbf16, #tpu.memory_space<vmem>>, vector<8x16x4xbf16>
    %40 = vector.shape_cast %39 : vector<8x16x4xbf16> to vector<128x4xbf16>
    %c2_41 = arith.constant 2 : index
    %c0_42 = arith.constant 0 : index
    %c0_43 = arith.constant 0 : index
    %41 = vector.load %arg8[%c2_41, %c0_42, %c0_43] : memref<10x18x4xbf16, #tpu.memory_space<vmem>>, vector<8x16x4xbf16>
    %42 = vector.shape_cast %41 : vector<8x16x4xbf16> to vector<128x4xbf16>
    %c2_44 = arith.constant 2 : index
    %c1_45 = arith.constant 1 : index
    %c0_46 = arith.constant 0 : index
    %43 = vector.load %arg8[%c2_44, %c1_45, %c0_46] : memref<10x18x4xbf16, #tpu.memory_space<vmem>>, vector<8x16x4xbf16>
    %44 = vector.shape_cast %43 : vector<8x16x4xbf16> to vector<128x4xbf16>
    %c2_47 = arith.constant 2 : index
    %c2_48 = arith.constant 2 : index
    %c0_49 = arith.constant 0 : index
    %45 = vector.load %arg8[%c2_47, %c2_48, %c0_49] : memref<10x18x4xbf16, #tpu.memory_space<vmem>>, vector<8x16x4xbf16>
    %46 = vector.shape_cast %45 : vector<8x16x4xbf16> to vector<128x4xbf16>
    %47 = tpu.concatenate %30, %32, %34, %36, %38, %40, %42, %44, %46 in 1 : vector<128x4xbf16>, vector<128x4xbf16>, vector<128x4xbf16>, vector<128x4xbf16>, vector<128x4xbf16>, vector<128x4xbf16>, vector<128x4xbf16>, vector<128x4xbf16>, vector<128x4xbf16> -> vector<128x36xbf16>
    %c0_50 = arith.constant 0 : index
    %c0_51 = arith.constant 0 : index
    %48 = vector.load %arg5[%c0_50, %c0_51] : memref<36x8xbf16, #tpu.memory_space<vmem>>, vector<36x8xbf16>
    %cst_52 = arith.constant dense<0.000000e+00> : vector<128x8xf32>
    %49 = tpu.matmul %47, %48, %cst_52 {dimension_numbers = #tpu.dot_dimension_numbers<[1], [0], [0], [1], [0, 0, 1, 1], [], []>} : vector<128x36xbf16>, vector<36x8xbf16>, vector<128x8xf32> -> vector<128x8xf32>
    %cst_53 = arith.constant dense<0.000000e+00> : vector<8xf32>
    %50 = vector.multi_reduction <add>, %49, %cst_53 [0] : vector<128x8xf32> to vector<8xf32>
    %51 = vector.shape_cast %50 : vector<8xf32> to vector<1x8xf32>
    %c0_54 = arith.constant 0 : index
    %c0_55 = arith.constant 0 : index
    %c0_56 = arith.constant 0 : index
    %c0_57 = arith.constant 0 : index
    %52 = vector.load %arg7[%c0_54, %c0_55, %c0_56, %c0_57] : memref<1x1x2x8xf32, #tpu.memory_space<vmem>>, vector<1x1x1x8xf32>
    %53 = vector.shape_cast %52 : vector<1x1x1x8xf32> to vector<1x8xf32>
    %54 = vector.shape_cast %51 : vector<1x8xf32> to vector<1x1x1x8xf32>
    tpu.vector_store %arg7[%c0_54, %c0_55, %c0_56, %c0_57], %54 {strides = array<i32>} : memref<1x1x2x8xf32, #tpu.memory_space<vmem>>, vector<1x1x1x8xf32>,
    %55 = arith.mulf %49, %49 : vector<128x8xf32>
    %cst_58 = arith.constant dense<0.000000e+00> : vector<8xf32>
    %56 = vector.multi_reduction <add>, %55, %cst_58 [0] : vector<128x8xf32> to vector<8xf32>
    %57 = vector.shape_cast %56 : vector<8xf32> to vector<1x8xf32>
    %c0_59 = arith.constant 0 : index
    %c0_60 = arith.constant 0 : index
    %c1_61 = arith.constant 1 : index
    %c0_62 = arith.constant 0 : index
    %58 = vector.load %arg7[%c0_59, %c0_60, %c1_61, %c0_62] : memref<1x1x2x8xf32, #tpu.memory_space<vmem>>, vector<1x1x1x8xf32>
    %59 = vector.shape_cast %58 : vector<1x1x1x8xf32> to vector<1x8xf32>
    %60 = vector.shape_cast %57 : vector<1x8xf32> to vector<1x1x1x8xf32>
    tpu.vector_store %arg7[%c0_59, %c0_60, %c1_61, %c0_62], %60 {strides = array<i32>} : memref<1x1x2x8xf32, #tpu.memory_space<vmem>>, vector<1x1x1x8xf32>,
    %61 = arith.truncf %49 : vector<128x8xf32> to vector<128x8xbf16>
    %62 = vector.shape_cast %61 : vector<128x8xbf16> to vector<8x16x8xbf16>
    %63 = vector.extract_strided_slice %62 {offsets = [0, 0, 0], sizes = [8, 1, 8], strides = [1, 1, 1]} : vector<8x16x8xbf16> to vector<8x1x8xbf16>
    %64 = vector.shape_cast %63 : vector<8x1x8xbf16> to vector<8x8xbf16>
    %65 = vector.extract_strided_slice %62 {offsets = [0, 1, 0], sizes = [8, 1, 8], strides = [1, 1, 1]} : vector<8x16x8xbf16> to vector<8x1x8xbf16>
    %66 = vector.shape_cast %65 : vector<8x1x8xbf16> to vector<8x8xbf16>
    %67 = vector.extract_strided_slice %62 {offsets = [0, 2, 0], sizes = [8, 1, 8], strides = [1, 1, 1]} : vector<8x16x8xbf16> to vector<8x1x8xbf16>
    %68 = vector.shape_cast %67 : vector<8x1x8xbf16> to vector<8x8xbf16>
    %69 = vector.extract_strided_slice %62 {offsets = [0, 3, 0], sizes = [8, 1, 8], strides = [1, 1, 1]} : vector<8x16x8xbf16> to vector<8x1x8xbf16>
    %70 = vector.shape_cast %69 : vector<8x1x8xbf16> to vector<8x8xbf16>
    %71 = vector.extract_strided_slice %62 {offsets = [0, 4, 0], sizes = [8, 1, 8], strides = [1, 1, 1]} : vector<8x16x8xbf16> to vector<8x1x8xbf16>
    %72 = vector.shape_cast %71 : vector<8x1x8xbf16> to vector<8x8xbf16>
    %73 = vector.extract_strided_slice %62 {offsets = [0, 5, 0], sizes = [8, 1, 8], strides = [1, 1, 1]} : vector<8x16x8xbf16> to vector<8x1x8xbf16>
    %74 = vector.shape_cast %73 : vector<8x1x8xbf16> to vector<8x8xbf16>
    %75 = vector.extract_strided_slice %62 {offsets = [0, 6, 0], sizes = [8, 1, 8], strides = [1, 1, 1]} : vector<8x16x8xbf16> to vector<8x1x8xbf16>
    %76 = vector.shape_cast %75 : vector<8x1x8xbf16> to vector<8x8xbf16>
    %77 = vector.extract_strided_slice %62 {offsets = [0, 7, 0], sizes = [8, 1, 8], strides = [1, 1, 1]} : vector<8x16x8xbf16> to vector<8x1x8xbf16>
    %78 = vector.shape_cast %77 : vector<8x1x8xbf16> to vector<8x8xbf16>
    %79 = vector.extract_strided_slice %62 {offsets = [0, 8, 0], sizes = [8, 1, 8], strides = [1, 1, 1]} : vector<8x16x8xbf16> to vector<8x1x8xbf16>
    %80 = vector.shape_cast %79 : vector<8x1x8xbf16> to vector<8x8xbf16>
    %81 = vector.extract_strided_slice %62 {offsets = [0, 9, 0], sizes = [8, 1, 8], strides = [1, 1, 1]} : vector<8x16x8xbf16> to vector<8x1x8xbf16>
    %82 = vector.shape_cast %81 : vector<8x1x8xbf16> to vector<8x8xbf16>
    %83 = vector.extract_strided_slice %62 {offsets = [0, 10, 0], sizes = [8, 1, 8], strides = [1, 1, 1]} : vector<8x16x8xbf16> to vector<8x1x8xbf16>
    %84 = vector.shape_cast %83 : vector<8x1x8xbf16> to vector<8x8xbf16>
    %85 = vector.extract_strided_slice %62 {offsets = [0, 11, 0], sizes = [8, 1, 8], strides = [1, 1, 1]} : vector<8x16x8xbf16> to vector<8x1x8xbf16>
    %86 = vector.shape_cast %85 : vector<8x1x8xbf16> to vector<8x8xbf16>
    %87 = vector.extract_strided_slice %62 {offsets = [0, 12, 0], sizes = [8, 1, 8], strides = [1, 1, 1]} : vector<8x16x8xbf16> to vector<8x1x8xbf16>
    %88 = vector.shape_cast %87 : vector<8x1x8xbf16> to vector<8x8xbf16>
    %89 = vector.extract_strided_slice %62 {offsets = [0, 13, 0], sizes = [8, 1, 8], strides = [1, 1, 1]} : vector<8x16x8xbf16> to vector<8x1x8xbf16>
    %90 = vector.shape_cast %89 : vector<8x1x8xbf16> to vector<8x8xbf16>
    %91 = vector.extract_strided_slice %62 {offsets = [0, 14, 0], sizes = [8, 1, 8], strides = [1, 1, 1]} : vector<8x16x8xbf16> to vector<8x1x8xbf16>
    %92 = vector.shape_cast %91 : vector<8x1x8xbf16> to vector<8x8xbf16>
    %93 = vector.extract_strided_slice %62 {offsets = [0, 15, 0], sizes = [8, 1, 8], strides = [1, 1, 1]} : vector<8x16x8xbf16> to vector<8x1x8xbf16>
    %94 = vector.shape_cast %93 : vector<8x1x8xbf16> to vector<8x8xbf16>
    %95 = tpu.concatenate %64, %66, %68, %70, %72, %74, %76, %78, %80, %82, %84, %86, %88, %90, %92, %94 in 1 : vector<8x8xbf16>, vector<8x8xbf16>, vector<8x8xbf16>, vector<8x8xbf16>, vector<8x8xbf16>, vector<8x8xbf16>, vector<8x8xbf16>, vector<8x8xbf16>, vector<8x8xbf16>, vector<8x8xbf16>, vector<8x8xbf16>, vector<8x8xbf16>, vector<8x8xbf16>, vector<8x8xbf16>, vector<8x8xbf16>, vector<8x8xbf16> -> vector<8x128xbf16>
    %c0_63 = arith.constant 0 : index
    %c0_64 = arith.constant 0 : index
    %c0_65 = arith.constant 0 : index
    %96 = vector.load %arg6[%c0_63, %c0_64, %c0_65] : memref<1x8x128xbf16, #tpu.memory_space<vmem>>, vector<1x8x128xbf16>
    %97 = vector.shape_cast %96 : vector<1x8x128xbf16> to vector<8x128xbf16>
    %98 = vector.shape_cast %95 : vector<8x128xbf16> to vector<1x8x128xbf16>
    tpu.vector_store %arg6[%c0_63, %c0_64, %c0_65], %98 {strides = array<i32>} : memref<1x8x128xbf16, #tpu.memory_space<vmem>>, vector<1x8x128xbf16>,
    return
  }
  func.func @transform_0(%arg0: i32, %arg1: i32) -> (i32, i32, i32, i32) {
    %c0_i32 = arith.constant 0 : i32
    %c0_i32_0 = arith.constant 0 : i32
    %c0_i32_1 = arith.constant 0 : i32
    %c0_i32_2 = arith.constant 0 : i32
    return %arg0, %c0_i32, %c0_i32_0, %c0_i32_1 : i32, i32, i32, i32
  }
  func.func @transform_1(%arg0: i32, %arg1: i32) -> (i32, i32) {
    %c0_i32 = arith.constant 0 : i32
    %c0_i32_0 = arith.constant 0 : i32
    %c0_i32_1 = arith.constant 0 : i32
    return %c0_i32, %c0_i32_0 : i32, i32
  }
  func.func @transform_2(%arg0: i32, %arg1: i32) -> (i32, i32) {
    %c0_i32 = arith.constant 0 : i32
    %c0_i32_0 = arith.constant 0 : i32
    %c0_i32_1 = arith.constant 0 : i32
    return %c0_i32, %c0_i32_0 : i32, i32
  }
  func.func @transform_3(%arg0: i32, %arg1: i32) -> (i32, i32) {
    %c0_i32 = arith.constant 0 : i32
    %c0_i32_0 = arith.constant 0 : i32
    %c0_i32_1 = arith.constant 0 : i32
    return %c0_i32, %c0_i32_0 : i32, i32
  }
  func.func @transform_4(%arg0: i32, %arg1: i32) -> (i32, i32, i32) {
    %c0_i32 = arith.constant 0 : i32
    %c0_i32_0 = arith.constant 0 : i32
    return %arg0, %arg1, %c0_i32 : i32, i32, i32
  }
  func.func @transform_5(%arg0: i32, %arg1: i32) -> (i32, i32, i32, i32) {
    %c0_i32 = arith.constant 0 : i32
    %c0_i32_0 = arith.constant 0 : i32
    %c0_i32_1 = arith.constant 0 : i32
    return %arg0, %arg1, %c0_i32, %c0_i32_0 : i32, i32, i32, i32
  }
}

module attributes {stable_mosaic.version = 11 : i64} {
  func.func @_bn_act_kernel(%arg0: i32, %arg1: memref<32x128xbf16, #tpu.memory_space<vmem>>, %arg2: memref<1x128xf32, #tpu.memory_space<vmem>>, %arg3: memref<1x128xf32, #tpu.memory_space<vmem>>, %arg4: memref<32x128xf32, #tpu.memory_space<vmem>>) attributes {dimension_semantics = [#tpu.dimension_semantics<parallel>], iteration_bounds = array<i64: 1>, scalar_prefetch = 0 : i64, scratch_operands = 0 : i64, tpu.core_type = #tpu.core_type<tc>, window_params = [{transform_indices = @transform_0, window_bounds = array<i64: 32, 128>}, {pipeline_mode = #tpu.pipeline_mode<synchronous>, transform_indices = @transform_1, window_bounds = array<i64: 1, 128>}, {pipeline_mode = #tpu.pipeline_mode<synchronous>, transform_indices = @transform_2, window_bounds = array<i64: 1, 128>}, {transform_indices = @transform_3, window_bounds = array<i64: 32, 128>}]} {
    %c0 = arith.constant 0 : index
    %c0_0 = arith.constant 0 : index
    %0 = vector.load %arg1[%c0, %c0_0] : memref<32x128xbf16, #tpu.memory_space<vmem>>, vector<32x128xbf16>
    %1 = arith.extf %0 : vector<32x128xbf16> to vector<32x128xf32>
    %c0_1 = arith.constant 0 : index
    %c0_2 = arith.constant 0 : index
    %2 = vector.load %arg2[%c0_1, %c0_2] : memref<1x128xf32, #tpu.memory_space<vmem>>, vector<1x128xf32>
    %3 = vector.broadcast %2 : vector<1x128xf32> to vector<32x128xf32>
    %4 = arith.mulf %1, %3 : vector<32x128xf32>
    %c0_3 = arith.constant 0 : index
    %c0_4 = arith.constant 0 : index
    %5 = vector.load %arg3[%c0_3, %c0_4] : memref<1x128xf32, #tpu.memory_space<vmem>>, vector<1x128xf32>
    %6 = vector.broadcast %5 : vector<1x128xf32> to vector<32x128xf32>
    %7 = arith.addf %4, %6 : vector<32x128xf32>
    %cst = arith.constant 0.000000e+00 : f32
    %8 = vector.broadcast %cst : f32 to vector<32x128xf32>
    %9 = arith.cmpf ogt, %7, %8 : vector<32x128xf32>
    %cst_5 = arith.constant 0.00999999977 : f32
    %10 = vector.broadcast %cst_5 : f32 to vector<32x128xf32>
    %11 = arith.mulf %10, %7 : vector<32x128xf32>
    %12 = arith.select %9, %7, %11 : vector<32x128xi1>, vector<32x128xf32>
    %c0_6 = arith.constant 0 : index
    %c0_7 = arith.constant 0 : index
    %13 = vector.load %arg4[%c0_6, %c0_7] : memref<32x128xf32, #tpu.memory_space<vmem>>, vector<32x128xf32>
    tpu.vector_store %arg4[%c0_6, %c0_7], %12 {strides = array<i32>} : memref<32x128xf32, #tpu.memory_space<vmem>>, vector<32x128xf32>,
    return
  }
  func.func @transform_0(%arg0: i32) -> (i32, i32) {
    %c0_i32 = arith.constant 0 : i32
    %c0_i32_0 = arith.constant 0 : i32
    return %arg0, %c0_i32 : i32, i32
  }
  func.func @transform_1(%arg0: i32) -> (i32, i32) {
    %c0_i32 = arith.constant 0 : i32
    %c0_i32_0 = arith.constant 0 : i32
    %c0_i32_1 = arith.constant 0 : i32
    return %c0_i32, %c0_i32_0 : i32, i32
  }
  func.func @transform_2(%arg0: i32) -> (i32, i32) {
    %c0_i32 = arith.constant 0 : i32
    %c0_i32_0 = arith.constant 0 : i32
    %c0_i32_1 = arith.constant 0 : i32
    return %c0_i32, %c0_i32_0 : i32, i32
  }
  func.func @transform_3(%arg0: i32) -> (i32, i32) {
    %c0_i32 = arith.constant 0 : i32
    %c0_i32_0 = arith.constant 0 : i32
    return %arg0, %c0_i32 : i32, i32
  }
}

module attributes {stable_mosaic.version = 11 : i64} {
  func.func @_conv_stats_kernel(%arg0: i32, %arg1: i32, %arg2: memref<1x16x16x8xbf16, #tpu.memory_space<vmem>>, %arg3: memref<1x8xf32, #tpu.memory_space<vmem>>, %arg4: memref<1x8xf32, #tpu.memory_space<vmem>>, %arg5: memref<72x8xbf16, #tpu.memory_space<vmem>>, %arg6: memref<1x8x128xbf16, #tpu.memory_space<vmem>>, %arg7: memref<1x1x2x8xf32, #tpu.memory_space<vmem>>, %arg8: memref<10x18x8xbf16, #tpu.memory_space<vmem>>) attributes {dimension_semantics = [#tpu.dimension_semantics<parallel>, #tpu.dimension_semantics<parallel>], iteration_bounds = array<i64: 2, 2>, scalar_prefetch = 0 : i64, scratch_operands = 1 : i64, tpu.core_type = #tpu.core_type<tc>, window_params = [{transform_indices = @transform_0, window_bounds = array<i64: 1, 16, 16, 8>}, {pipeline_mode = #tpu.pipeline_mode<synchronous>, transform_indices = @transform_1, window_bounds = array<i64: 1, 8>}, {pipeline_mode = #tpu.pipeline_mode<synchronous>, transform_indices = @transform_2, window_bounds = array<i64: 1, 8>}, {pipeline_mode = #tpu.pipeline_mode<synchronous>, transform_indices = @transform_3, window_bounds = array<i64: 72, 8>}, {transform_indices = @transform_4, window_bounds = array<i64: 1, 8, 128>}, {transform_indices = @transform_5, window_bounds = array<i64: 1, 1, 2, 8>}]} {
    %c8_i32 = arith.constant 8 : i32
    %0 = arith.muli %arg1, %c8_i32 : i32
    %1 = tpu.assume_multiple %0, 8 : i32
    %cst = arith.constant 0.000000e+00 : bf16
    %2 = vector.broadcast %cst : bf16 to vector<10x1x8xbf16>
    %c0 = arith.constant 0 : index
    %c0_0 = arith.constant 0 : index
    %c0_1 = arith.constant 0 : index
    %3 = vector.load %arg8[%c0, %c0_0, %c0_1] : memref<10x18x8xbf16, #tpu.memory_space<vmem>>, vector<10x1x8xbf16>
    tpu.vector_store %arg8[%c0, %c0_0, %c0_1], %2 {strides = array<i32>} : memref<10x18x8xbf16, #tpu.memory_space<vmem>>, vector<10x1x8xbf16>,
    %c0_2 = arith.constant 0 : index
    %c17 = arith.constant 17 : index
    %c0_3 = arith.constant 0 : index
    %4 = vector.load %arg8[%c0_2, %c17, %c0_3] : memref<10x18x8xbf16, #tpu.memory_space<vmem>>, vector<10x1x8xbf16>
    tpu.vector_store %arg8[%c0_2, %c17, %c0_3], %2 {strides = array<i32>} : memref<10x18x8xbf16, #tpu.memory_space<vmem>>, vector<10x1x8xbf16>,
    %c0_4 = arith.constant 0 : index
    %5 = arith.index_cast %1 : i32 to index
    %c0_5 = arith.constant 0 : index
    %c0_6 = arith.constant 0 : index
    %6 = vector.load %arg2[%c0_4, %5, %c0_5, %c0_6] : memref<1x16x16x8xbf16, #tpu.memory_space<vmem>>, vector<1x8x16x8xbf16>
    %7 = vector.shape_cast %6 : vector<1x8x16x8xbf16> to vector<8x16x8xbf16>
    %c1_i32 = arith.constant 1 : i32
    %8 = arith.subi %1, %c1_i32 : i32
    %c0_i32 = arith.constant 0 : i32
    %9 = arith.maxsi %8, %c0_i32 : i32
    %c0_7 = arith.constant 0 : index
    %10 = arith.index_cast %9 : i32 to index
    %c0_8 = arith.constant 0 : index
    %c0_9 = arith.constant 0 : index
    %11 = vector.load %arg2[%c0_7, %10, %c0_8, %c0_9] : memref<1x16x16x8xbf16, #tpu.memory_space<vmem>>, vector<1x1x16x8xbf16>
    %12 = vector.shape_cast %11 : vector<1x1x16x8xbf16> to vector<1x16x8xbf16>
    %c8_i32_10 = arith.constant 8 : i32
    %13 = arith.addi %1, %c8_i32_10 : i32
    %c15_i32 = arith.constant 15 : i32
    %14 = arith.minsi %13, %c15_i32 : i32
    %c0_11 = arith.constant 0 : index
    %15 = arith.index_cast %14 : i32 to index
    %c0_12 = arith.constant 0 : index
    %c0_13 = arith.constant 0 : index
    %16 = vector.load %arg2[%c0_11, %15, %c0_12, %c0_13] : memref<1x16x16x8xbf16, #tpu.memory_space<vmem>>, vector<1x1x16x8xbf16>
    %17 = vector.shape_cast %16 : vector<1x1x16x8xbf16> to vector<1x16x8xbf16>
    %cst_14 = arith.constant 0.000000e+00 : bf16
    %18 = vector.broadcast %cst_14 : bf16 to vector<1x16x8xbf16>
    %19 = arith.extf %7 : vector<8x16x8xbf16> to vector<8x16x8xf32>
    %c0_15 = arith.constant 0 : index
    %c0_16 = arith.constant 0 : index
    %20 = vector.load %arg3[%c0_15, %c0_16] : memref<1x8xf32, #tpu.memory_space<vmem>>, vector<1x8xf32>
    %21 = vector.shape_cast %20 : vector<1x8xf32> to vector<1x1x8xf32>
    %22 = vector.broadcast %21 : vector<1x1x8xf32> to vector<8x16x8xf32>
    %23 = arith.mulf %19, %22 : vector<8x16x8xf32>
    %c0_17 = arith.constant 0 : index
    %c0_18 = arith.constant 0 : index
    %24 = vector.load %arg4[%c0_17, %c0_18] : memref<1x8xf32, #tpu.memory_space<vmem>>, vector<1x8xf32>
    %25 = vector.shape_cast %24 : vector<1x8xf32> to vector<1x1x8xf32>
    %26 = vector.broadcast %25 : vector<1x1x8xf32> to vector<8x16x8xf32>
    %27 = arith.addf %23, %26 : vector<8x16x8xf32>
    %cst_19 = arith.constant 0.000000e+00 : f32
    %28 = vector.broadcast %cst_19 : f32 to vector<8x16x8xf32>
    %29 = arith.cmpf ogt, %27, %28 : vector<8x16x8xf32>
    %cst_20 = arith.constant 0.00999999977 : f32
    %30 = vector.broadcast %cst_20 : f32 to vector<8x16x8xf32>
    %31 = arith.mulf %30, %27 : vector<8x16x8xf32>
    %32 = arith.select %29, %27, %31 : vector<8x16x8xi1>, vector<8x16x8xf32>
    %33 = arith.truncf %32 : vector<8x16x8xf32> to vector<8x16x8xbf16>
    %c1 = arith.constant 1 : index
    %c1_21 = arith.constant 1 : index
    %c0_22 = arith.constant 0 : index
    %34 = vector.load %arg8[%c1, %c1_21, %c0_22] : memref<10x18x8xbf16, #tpu.memory_space<vmem>>, vector<8x16x8xbf16>
    tpu.vector_store %arg8[%c1, %c1_21, %c0_22], %33 {strides = array<i32>} : memref<10x18x8xbf16, #tpu.memory_space<vmem>>, vector<8x16x8xbf16>,
    %c0_i32_23 = arith.constant 0 : i32
    %35 = arith.cmpi sgt, %arg1, %c0_i32_23 : i32
    %36 = arith.extf %12 : vector<1x16x8xbf16> to vector<1x16x8xf32>
    %c0_24 = arith.constant 0 : index
    %c0_25 = arith.constant 0 : index
    %37 = vector.load %arg3[%c0_24, %c0_25] : memref<1x8xf32, #tpu.memory_space<vmem>>, vector<1x8xf32>
    %38 = vector.shape_cast %37 : vector<1x8xf32> to vector<1x1x8xf32>
    %39 = vector.broadcast %38 : vector<1x1x8xf32> to vector<1x16x8xf32>
    %40 = arith.mulf %36, %39 : vector<1x16x8xf32>
    %c0_26 = arith.constant 0 : index
    %c0_27 = arith.constant 0 : index
    %41 = vector.load %arg4[%c0_26, %c0_27] : memref<1x8xf32, #tpu.memory_space<vmem>>, vector<1x8xf32>
    %42 = vector.shape_cast %41 : vector<1x8xf32> to vector<1x1x8xf32>
    %43 = vector.broadcast %42 : vector<1x1x8xf32> to vector<1x16x8xf32>
    %44 = arith.addf %40, %43 : vector<1x16x8xf32>
    %cst_28 = arith.constant 0.000000e+00 : f32
    %45 = vector.broadcast %cst_28 : f32 to vector<1x16x8xf32>
    %46 = arith.cmpf ogt, %44, %45 : vector<1x16x8xf32>
    %cst_29 = arith.constant 0.00999999977 : f32
    %47 = vector.broadcast %cst_29 : f32 to vector<1x16x8xf32>
    %48 = arith.mulf %47, %44 : vector<1x16x8xf32>
    %49 = arith.select %46, %44, %48 : vector<1x16x8xi1>, vector<1x16x8xf32>
    %50 = arith.truncf %49 : vector<1x16x8xf32> to vector<1x16x8xbf16>
    %51 = arith.select %35, %50, %18 : vector<1x16x8xbf16>
    %c0_30 = arith.constant 0 : index
    %c1_31 = arith.constant 1 : index
    %c0_32 = arith.constant 0 : index
    %52 = vector.load %arg8[%c0_30, %c1_31, %c0_32] : memref<10x18x8xbf16, #tpu.memory_space<vmem>>, vector<1x16x8xbf16>
    tpu.vector_store %arg8[%c0_30, %c1_31, %c0_32], %51 {strides = array<i32>} : memref<10x18x8xbf16, #tpu.memory_space<vmem>>, vector<1x16x8xbf16>,
    %c1_i32_33 = arith.constant 1 : i32
    %53 = arith.cmpi slt, %arg1, %c1_i32_33 : i32
    %54 = arith.extf %17 : vector<1x16x8xbf16> to vector<1x16x8xf32>
    %c0_34 = arith.constant 0 : index
    %c0_35 = arith.constant 0 : index
    %55 = vector.load %arg3[%c0_34, %c0_35] : memref<1x8xf32, #tpu.memory_space<vmem>>, vector<1x8xf32>
    %56 = vector.shape_cast %55 : vector<1x8xf32> to vector<1x1x8xf32>
    %57 = vector.broadcast %56 : vector<1x1x8xf32> to vector<1x16x8xf32>
    %58 = arith.mulf %54, %57 : vector<1x16x8xf32>
    %c0_36 = arith.constant 0 : index
    %c0_37 = arith.constant 0 : index
    %59 = vector.load %arg4[%c0_36, %c0_37] : memref<1x8xf32, #tpu.memory_space<vmem>>, vector<1x8xf32>
    %60 = vector.shape_cast %59 : vector<1x8xf32> to vector<1x1x8xf32>
    %61 = vector.broadcast %60 : vector<1x1x8xf32> to vector<1x16x8xf32>
    %62 = arith.addf %58, %61 : vector<1x16x8xf32>
    %cst_38 = arith.constant 0.000000e+00 : f32
    %63 = vector.broadcast %cst_38 : f32 to vector<1x16x8xf32>
    %64 = arith.cmpf ogt, %62, %63 : vector<1x16x8xf32>
    %cst_39 = arith.constant 0.00999999977 : f32
    %65 = vector.broadcast %cst_39 : f32 to vector<1x16x8xf32>
    %66 = arith.mulf %65, %62 : vector<1x16x8xf32>
    %67 = arith.select %64, %62, %66 : vector<1x16x8xi1>, vector<1x16x8xf32>
    %68 = arith.truncf %67 : vector<1x16x8xf32> to vector<1x16x8xbf16>
    %69 = arith.select %53, %68, %18 : vector<1x16x8xbf16>
    %c9 = arith.constant 9 : index
    %c1_40 = arith.constant 1 : index
    %c0_41 = arith.constant 0 : index
    %70 = vector.load %arg8[%c9, %c1_40, %c0_41] : memref<10x18x8xbf16, #tpu.memory_space<vmem>>, vector<1x16x8xbf16>
    tpu.vector_store %arg8[%c9, %c1_40, %c0_41], %69 {strides = array<i32>} : memref<10x18x8xbf16, #tpu.memory_space<vmem>>, vector<1x16x8xbf16>,
    %c0_42 = arith.constant 0 : index
    %c0_43 = arith.constant 0 : index
    %c0_44 = arith.constant 0 : index
    %71 = vector.load %arg8[%c0_42, %c0_43, %c0_44] : memref<10x18x8xbf16, #tpu.memory_space<vmem>>, vector<8x16x8xbf16>
    %72 = vector.shape_cast %71 : vector<8x16x8xbf16> to vector<128x8xbf16>
    %c0_45 = arith.constant 0 : index
    %c1_46 = arith.constant 1 : index
    %c0_47 = arith.constant 0 : index
    %73 = vector.load %arg8[%c0_45, %c1_46, %c0_47] : memref<10x18x8xbf16, #tpu.memory_space<vmem>>, vector<8x16x8xbf16>
    %74 = vector.shape_cast %73 : vector<8x16x8xbf16> to vector<128x8xbf16>
    %c0_48 = arith.constant 0 : index
    %c2 = arith.constant 2 : index
    %c0_49 = arith.constant 0 : index
    %75 = vector.load %arg8[%c0_48, %c2, %c0_49] : memref<10x18x8xbf16, #tpu.memory_space<vmem>>, vector<8x16x8xbf16>
    %76 = vector.shape_cast %75 : vector<8x16x8xbf16> to vector<128x8xbf16>
    %c1_50 = arith.constant 1 : index
    %c0_51 = arith.constant 0 : index
    %c0_52 = arith.constant 0 : index
    %77 = vector.load %arg8[%c1_50, %c0_51, %c0_52] : memref<10x18x8xbf16, #tpu.memory_space<vmem>>, vector<8x16x8xbf16>
    %78 = vector.shape_cast %77 : vector<8x16x8xbf16> to vector<128x8xbf16>
    %c1_53 = arith.constant 1 : index
    %c1_54 = arith.constant 1 : index
    %c0_55 = arith.constant 0 : index
    %79 = vector.load %arg8[%c1_53, %c1_54, %c0_55] : memref<10x18x8xbf16, #tpu.memory_space<vmem>>, vector<8x16x8xbf16>
    %80 = vector.shape_cast %79 : vector<8x16x8xbf16> to vector<128x8xbf16>
    %c1_56 = arith.constant 1 : index
    %c2_57 = arith.constant 2 : index
    %c0_58 = arith.constant 0 : index
    %81 = vector.load %arg8[%c1_56, %c2_57, %c0_58] : memref<10x18x8xbf16, #tpu.memory_space<vmem>>, vector<8x16x8xbf16>
    %82 = vector.shape_cast %81 : vector<8x16x8xbf16> to vector<128x8xbf16>
    %c2_59 = arith.constant 2 : index
    %c0_60 = arith.constant 0 : index
    %c0_61 = arith.constant 0 : index
    %83 = vector.load %arg8[%c2_59, %c0_60, %c0_61] : memref<10x18x8xbf16, #tpu.memory_space<vmem>>, vector<8x16x8xbf16>
    %84 = vector.shape_cast %83 : vector<8x16x8xbf16> to vector<128x8xbf16>
    %c2_62 = arith.constant 2 : index
    %c1_63 = arith.constant 1 : index
    %c0_64 = arith.constant 0 : index
    %85 = vector.load %arg8[%c2_62, %c1_63, %c0_64] : memref<10x18x8xbf16, #tpu.memory_space<vmem>>, vector<8x16x8xbf16>
    %86 = vector.shape_cast %85 : vector<8x16x8xbf16> to vector<128x8xbf16>
    %c2_65 = arith.constant 2 : index
    %c2_66 = arith.constant 2 : index
    %c0_67 = arith.constant 0 : index
    %87 = vector.load %arg8[%c2_65, %c2_66, %c0_67] : memref<10x18x8xbf16, #tpu.memory_space<vmem>>, vector<8x16x8xbf16>
    %88 = vector.shape_cast %87 : vector<8x16x8xbf16> to vector<128x8xbf16>
    %89 = tpu.concatenate %72, %74, %76, %78, %80, %82, %84, %86, %88 in 1 : vector<128x8xbf16>, vector<128x8xbf16>, vector<128x8xbf16>, vector<128x8xbf16>, vector<128x8xbf16>, vector<128x8xbf16>, vector<128x8xbf16>, vector<128x8xbf16>, vector<128x8xbf16> -> vector<128x72xbf16>
    %c0_68 = arith.constant 0 : index
    %c0_69 = arith.constant 0 : index
    %90 = vector.load %arg5[%c0_68, %c0_69] : memref<72x8xbf16, #tpu.memory_space<vmem>>, vector<72x8xbf16>
    %cst_70 = arith.constant dense<0.000000e+00> : vector<128x8xf32>
    %91 = tpu.matmul %89, %90, %cst_70 {dimension_numbers = #tpu.dot_dimension_numbers<[1], [0], [0], [1], [0, 0, 1, 1], [], []>} : vector<128x72xbf16>, vector<72x8xbf16>, vector<128x8xf32> -> vector<128x8xf32>
    %cst_71 = arith.constant dense<0.000000e+00> : vector<8xf32>
    %92 = vector.multi_reduction <add>, %91, %cst_71 [0] : vector<128x8xf32> to vector<8xf32>
    %93 = vector.shape_cast %92 : vector<8xf32> to vector<1x8xf32>
    %c0_72 = arith.constant 0 : index
    %c0_73 = arith.constant 0 : index
    %c0_74 = arith.constant 0 : index
    %c0_75 = arith.constant 0 : index
    %94 = vector.load %arg7[%c0_72, %c0_73, %c0_74, %c0_75] : memref<1x1x2x8xf32, #tpu.memory_space<vmem>>, vector<1x1x1x8xf32>
    %95 = vector.shape_cast %94 : vector<1x1x1x8xf32> to vector<1x8xf32>
    %96 = vector.shape_cast %93 : vector<1x8xf32> to vector<1x1x1x8xf32>
    tpu.vector_store %arg7[%c0_72, %c0_73, %c0_74, %c0_75], %96 {strides = array<i32>} : memref<1x1x2x8xf32, #tpu.memory_space<vmem>>, vector<1x1x1x8xf32>,
    %97 = arith.mulf %91, %91 : vector<128x8xf32>
    %cst_76 = arith.constant dense<0.000000e+00> : vector<8xf32>
    %98 = vector.multi_reduction <add>, %97, %cst_76 [0] : vector<128x8xf32> to vector<8xf32>
    %99 = vector.shape_cast %98 : vector<8xf32> to vector<1x8xf32>
    %c0_77 = arith.constant 0 : index
    %c0_78 = arith.constant 0 : index
    %c1_79 = arith.constant 1 : index
    %c0_80 = arith.constant 0 : index
    %100 = vector.load %arg7[%c0_77, %c0_78, %c1_79, %c0_80] : memref<1x1x2x8xf32, #tpu.memory_space<vmem>>, vector<1x1x1x8xf32>
    %101 = vector.shape_cast %100 : vector<1x1x1x8xf32> to vector<1x8xf32>
    %102 = vector.shape_cast %99 : vector<1x8xf32> to vector<1x1x1x8xf32>
    tpu.vector_store %arg7[%c0_77, %c0_78, %c1_79, %c0_80], %102 {strides = array<i32>} : memref<1x1x2x8xf32, #tpu.memory_space<vmem>>, vector<1x1x1x8xf32>,
    %103 = arith.truncf %91 : vector<128x8xf32> to vector<128x8xbf16>
    %104 = vector.shape_cast %103 : vector<128x8xbf16> to vector<8x16x8xbf16>
    %105 = vector.extract_strided_slice %104 {offsets = [0, 0, 0], sizes = [8, 1, 8], strides = [1, 1, 1]} : vector<8x16x8xbf16> to vector<8x1x8xbf16>
    %106 = vector.shape_cast %105 : vector<8x1x8xbf16> to vector<8x8xbf16>
    %107 = vector.extract_strided_slice %104 {offsets = [0, 1, 0], sizes = [8, 1, 8], strides = [1, 1, 1]} : vector<8x16x8xbf16> to vector<8x1x8xbf16>
    %108 = vector.shape_cast %107 : vector<8x1x8xbf16> to vector<8x8xbf16>
    %109 = vector.extract_strided_slice %104 {offsets = [0, 2, 0], sizes = [8, 1, 8], strides = [1, 1, 1]} : vector<8x16x8xbf16> to vector<8x1x8xbf16>
    %110 = vector.shape_cast %109 : vector<8x1x8xbf16> to vector<8x8xbf16>
    %111 = vector.extract_strided_slice %104 {offsets = [0, 3, 0], sizes = [8, 1, 8], strides = [1, 1, 1]} : vector<8x16x8xbf16> to vector<8x1x8xbf16>
    %112 = vector.shape_cast %111 : vector<8x1x8xbf16> to vector<8x8xbf16>
    %113 = vector.extract_strided_slice %104 {offsets = [0, 4, 0], sizes = [8, 1, 8], strides = [1, 1, 1]} : vector<8x16x8xbf16> to vector<8x1x8xbf16>
    %114 = vector.shape_cast %113 : vector<8x1x8xbf16> to vector<8x8xbf16>
    %115 = vector.extract_strided_slice %104 {offsets = [0, 5, 0], sizes = [8, 1, 8], strides = [1, 1, 1]} : vector<8x16x8xbf16> to vector<8x1x8xbf16>
    %116 = vector.shape_cast %115 : vector<8x1x8xbf16> to vector<8x8xbf16>
    %117 = vector.extract_strided_slice %104 {offsets = [0, 6, 0], sizes = [8, 1, 8], strides = [1, 1, 1]} : vector<8x16x8xbf16> to vector<8x1x8xbf16>
    %118 = vector.shape_cast %117 : vector<8x1x8xbf16> to vector<8x8xbf16>
    %119 = vector.extract_strided_slice %104 {offsets = [0, 7, 0], sizes = [8, 1, 8], strides = [1, 1, 1]} : vector<8x16x8xbf16> to vector<8x1x8xbf16>
    %120 = vector.shape_cast %119 : vector<8x1x8xbf16> to vector<8x8xbf16>
    %121 = vector.extract_strided_slice %104 {offsets = [0, 8, 0], sizes = [8, 1, 8], strides = [1, 1, 1]} : vector<8x16x8xbf16> to vector<8x1x8xbf16>
    %122 = vector.shape_cast %121 : vector<8x1x8xbf16> to vector<8x8xbf16>
    %123 = vector.extract_strided_slice %104 {offsets = [0, 9, 0], sizes = [8, 1, 8], strides = [1, 1, 1]} : vector<8x16x8xbf16> to vector<8x1x8xbf16>
    %124 = vector.shape_cast %123 : vector<8x1x8xbf16> to vector<8x8xbf16>
    %125 = vector.extract_strided_slice %104 {offsets = [0, 10, 0], sizes = [8, 1, 8], strides = [1, 1, 1]} : vector<8x16x8xbf16> to vector<8x1x8xbf16>
    %126 = vector.shape_cast %125 : vector<8x1x8xbf16> to vector<8x8xbf16>
    %127 = vector.extract_strided_slice %104 {offsets = [0, 11, 0], sizes = [8, 1, 8], strides = [1, 1, 1]} : vector<8x16x8xbf16> to vector<8x1x8xbf16>
    %128 = vector.shape_cast %127 : vector<8x1x8xbf16> to vector<8x8xbf16>
    %129 = vector.extract_strided_slice %104 {offsets = [0, 12, 0], sizes = [8, 1, 8], strides = [1, 1, 1]} : vector<8x16x8xbf16> to vector<8x1x8xbf16>
    %130 = vector.shape_cast %129 : vector<8x1x8xbf16> to vector<8x8xbf16>
    %131 = vector.extract_strided_slice %104 {offsets = [0, 13, 0], sizes = [8, 1, 8], strides = [1, 1, 1]} : vector<8x16x8xbf16> to vector<8x1x8xbf16>
    %132 = vector.shape_cast %131 : vector<8x1x8xbf16> to vector<8x8xbf16>
    %133 = vector.extract_strided_slice %104 {offsets = [0, 14, 0], sizes = [8, 1, 8], strides = [1, 1, 1]} : vector<8x16x8xbf16> to vector<8x1x8xbf16>
    %134 = vector.shape_cast %133 : vector<8x1x8xbf16> to vector<8x8xbf16>
    %135 = vector.extract_strided_slice %104 {offsets = [0, 15, 0], sizes = [8, 1, 8], strides = [1, 1, 1]} : vector<8x16x8xbf16> to vector<8x1x8xbf16>
    %136 = vector.shape_cast %135 : vector<8x1x8xbf16> to vector<8x8xbf16>
    %137 = tpu.concatenate %106, %108, %110, %112, %114, %116, %118, %120, %122, %124, %126, %128, %130, %132, %134, %136 in 1 : vector<8x8xbf16>, vector<8x8xbf16>, vector<8x8xbf16>, vector<8x8xbf16>, vector<8x8xbf16>, vector<8x8xbf16>, vector<8x8xbf16>, vector<8x8xbf16>, vector<8x8xbf16>, vector<8x8xbf16>, vector<8x8xbf16>, vector<8x8xbf16>, vector<8x8xbf16>, vector<8x8xbf16>, vector<8x8xbf16>, vector<8x8xbf16> -> vector<8x128xbf16>
    %c0_81 = arith.constant 0 : index
    %c0_82 = arith.constant 0 : index
    %c0_83 = arith.constant 0 : index
    %138 = vector.load %arg6[%c0_81, %c0_82, %c0_83] : memref<1x8x128xbf16, #tpu.memory_space<vmem>>, vector<1x8x128xbf16>
    %139 = vector.shape_cast %138 : vector<1x8x128xbf16> to vector<8x128xbf16>
    %140 = vector.shape_cast %137 : vector<8x128xbf16> to vector<1x8x128xbf16>
    tpu.vector_store %arg6[%c0_81, %c0_82, %c0_83], %140 {strides = array<i32>} : memref<1x8x128xbf16, #tpu.memory_space<vmem>>, vector<1x8x128xbf16>,
    return
  }
  func.func @transform_0(%arg0: i32, %arg1: i32) -> (i32, i32, i32, i32) {
    %c0_i32 = arith.constant 0 : i32
    %c0_i32_0 = arith.constant 0 : i32
    %c0_i32_1 = arith.constant 0 : i32
    %c0_i32_2 = arith.constant 0 : i32
    return %arg0, %c0_i32, %c0_i32_0, %c0_i32_1 : i32, i32, i32, i32
  }
  func.func @transform_1(%arg0: i32, %arg1: i32) -> (i32, i32) {
    %c0_i32 = arith.constant 0 : i32
    %c0_i32_0 = arith.constant 0 : i32
    %c0_i32_1 = arith.constant 0 : i32
    return %c0_i32, %c0_i32_0 : i32, i32
  }
  func.func @transform_2(%arg0: i32, %arg1: i32) -> (i32, i32) {
    %c0_i32 = arith.constant 0 : i32
    %c0_i32_0 = arith.constant 0 : i32
    %c0_i32_1 = arith.constant 0 : i32
    return %c0_i32, %c0_i32_0 : i32, i32
  }
  func.func @transform_3(%arg0: i32, %arg1: i32) -> (i32, i32) {
    %c0_i32 = arith.constant 0 : i32
    %c0_i32_0 = arith.constant 0 : i32
    %c0_i32_1 = arith.constant 0 : i32
    return %c0_i32, %c0_i32_0 : i32, i32
  }
  func.func @transform_4(%arg0: i32, %arg1: i32) -> (i32, i32, i32) {
    %c0_i32 = arith.constant 0 : i32
    %c0_i32_0 = arith.constant 0 : i32
    return %arg0, %arg1, %c0_i32 : i32, i32, i32
  }
  func.func @transform_5(%arg0: i32, %arg1: i32) -> (i32, i32, i32, i32) {
    %c0_i32 = arith.constant 0 : i32
    %c0_i32_0 = arith.constant 0 : i32
    %c0_i32_1 = arith.constant 0 : i32
    return %arg0, %arg1, %c0_i32, %c0_i32_0 : i32, i32, i32, i32
  }
}

</mosaic_0001>

<bundles_post_ra>
// kernel: tile.13
= control target key start
LH: loop header
LB: loop body
LE: loop exit
PB: predicated region body
PF: predicated region fallthrough
CT: control target
= control target key end

     0   :  { %s28_s0 = inlined_call_operand.vmem [shape: f32[8], index: 0, kind: input, shape index: {}]   ;;  %s29_s1 = inlined_call_operand.vmem [shape: f32[16,8], index: 1, kind: output, shape index: {}]  }
   0x1   :  { %v4_v0 = vld [vmem:[%s28_s0] ss:$0 sm:$0xff] }
   0x2   :  { %5 = vst [vmem:[%s29_s1] sm:$0xff] %v4_v0  ;;  %8 = vst [vmem:[%s29_s1 + $0x8] sm:$0xff] %v4_v0 }

// kernel: tile.14
= control target key start
LH: loop header
LB: loop body
LE: loop exit
PB: predicated region body
PF: predicated region fallthrough
CT: control target
= control target key end

     0   :  { %s131_s10 = smov 120   ;;  %s132_s11 = smov 104   ;;  %vm3_vm0 = vcmask 64512   ;;  %vm9_vm1 = vcmask 1048512   ;;  %vm15_vm2 = vcmask 982912   ;;  %vm21_vm3 = vcmask 917312   ;;  %s207_s0 = inlined_call_operand.vmem [shape: f32[16,8], index: 0, kind: input, shape index: {}]   ;;  %s208_s1 = inlined_call_operand.vmem [shape: f32[1,128], index: 1, kind: output, shape index: {}]  }
   0x1   :  { %v101_v0 = vld [vmem:[%s207_s0 + $0xf] sm:$0x1]   ;;  %v103_v1 = vld [vmem:[%s207_s0 + $0xd] sm:$0x1]   ;;  %v102_v2 = vld [vmem:[%s207_s0 + $0xe] sm:$0x1]  }
   0x2   :  { %7 = vrot.lane.b32.xlu0 %v101_v0, %s131_s10  ;;  %19 = vrot.lane.b32.xlu1 %v103_v1, %s132_s11  ;;  %v104_v3 = vld [vmem:[%s207_s0 + $0xc] sm:$0x1]   ;;  %s133_s16 = smov 112   ;;  %s134_s17 = smov 96   ;;  %v105_v4 = vld [vmem:[%s207_s0 + $0xb] sm:$0x1]  }
   0x3   :  { %v106_v5 = vld [vmem:[%s207_s0 + $0xa] sm:$0x1]   ;;  %v2_v6 = vld [vmem:[%s207_s0] sm:$0x1]   ;;  %s135_s24 = smov 88   ;;  %s136_s25 = smov 80  }
   0x4   :  { %4 = vst.msk [vmem:[#allocation0] sm:$0x1] %vm3_vm0, %v2_v6   ;;  %v107_v7 = vld [vmem:[%s207_s0 + $0x9] sm:$0x1]   ;;  %v108_v8 = vld [vmem:[%s207_s0 + $0x8] sm:$0x1]  }
   0x5   :  { %s137_s30 = smov 72   ;;  %s138_s2 = smov 64   ;;  %v109_v9 = vld [vmem:[%s207_s0 + $0x7] sm:$0x1]   ;;  %v110_v10 = vld [vmem:[%s207_s0 + $0x6] sm:$0x1]  }
   0x6   :  { %13 = vrot.lane.b32.xlu0 %v102_v2, %s133_s16  ;;  %25 = vrot.lane.b32.xlu1 %v104_v3, %s134_s17  ;;  %s139_s7 = smov 56   ;;  %s140_s8 = smov 48   ;;  %v111_v11 = vld [vmem:[%s207_s0 + $0x5] sm:$0x1]   ;;  %v112_v12 = vld [vmem:[%s207_s0 + $0x4] sm:$0x1]  }
   0x7   :  { %s141_s13 = smov 40   ;;  %s142_s14 = smov 32   ;;  %v113_v13 = vld [vmem:[%s207_s0 + $0x3] sm:$0x1]   ;;  %v114_v14 = vld [vmem:[%s207_s0 + $0x2] sm:$0x1]  }
   0x8   :  { %s143_s19 = smov 24   ;;  %s144_s20 = smov 16   ;;  %v115_v15 = vld [vmem:[%s207_s0 + $0x1] sm:$0x1]   ;;  %vm27_vm4 = vcmask 851712   ;;  %vm33_vm5 = vcmask 786112  }
   0x9   :  { %s145_s0 = smov 8   ;;  %vm39_vm6 = vcmask 720512   ;;  %vm45_vm7 = vcmask 654912   ;;  %vm51_vm8 = vcmask 589312   ;;  %vm57_vm9 = vcmask 523712  }
   0xa   :  { %31 = vrot.lane.b32.xlu0 %v105_v4, %s135_s24  ;;  %37 = vrot.lane.b32.xlu1 %v106_v5, %s136_s25  ;;  %vm63_vm10 = vcmask 458112   ;;  %vm69_vm11 = vcmask 392512   ;;  %vm75_vm12 = vcmask 326912   ;;  %vm81_vm13 = vcmask 261312  }
   0xb   :  { %vm87_vm14 = vcmask 195712   ;;  %vm93_vm15 = vcmask 130112  }
   0xe   :  { %43 = vrot.lane.b32.xlu0 %v107_v7, %s137_s30  ;;  %49 = vrot.lane.b32.xlu1 %v108_v8, %s138_s2 }
  0x12   :  { %55 = vrot.lane.b32.xlu0 %v109_v9, %s139_s7  ;;  %61 = vrot.lane.b32.xlu1 %v110_v10, %s140_s8 }
  0x16   :  { %67 = vrot.lane.b32.xlu0 %v111_v11, %s141_s13  ;;  %73 = vrot.lane.b32.xlu1 %v112_v12, %s142_s14 }
  0x1a   :  { %79 = vrot.lane.b32.xlu0 %v113_v13, %s143_s19  ;;  %85 = vrot.lane.b32.xlu1 %v114_v14, %s144_s20 }
  0x1e   :  { %91 = vrot.lane.b32.xlu0 %v115_v15, %s145_s0 }
  0x74   :  { %v8_v16 = vpop.permute.xlu0 %7   ;;  %v20_v17 = vpop.permute.xlu1 %19  }
  0x75   :  { %10 = vst.msk [vmem:[#allocation0] sm:$0x1] %vm9_vm1, %v8_v16  }
  0x78   :  { %v14_v18 = vpop.permute.xlu0 %13   ;;  %v26_v19 = vpop.permute.xlu1 %25  }
  0x79   :  { %16 = vst.msk [vmem:[#allocation0] sm:$0x1] %vm15_vm2, %v14_v18  }
  0x7a   :  { %22 = vst.msk [vmem:[#allocation0] sm:$0x1] %vm21_vm3, %v20_v17  }
  0x7b   :  { %28 = vst.msk [vmem:[#allocation0] sm:$0x1] %vm27_vm4, %v26_v19  }
  0x7c   :  { %v32_v20 = vpop.permute.xlu0 %31   ;;  %v38_v21 = vpop.permute.xlu1 %37  }
  0x7d   :  { %34 = vst.msk [vmem:[#allocation0] sm:$0x1] %vm33_vm5, %v32_v20  }
  0x7e   :  { %40 = vst.msk [vmem:[#allocation0] sm:$0x1] %vm39_vm6, %v38_v21  }
  0x80   :  { %v44_v22 = vpop.permute.xlu0 %43   ;;  %v50_v23 = vpop.permute.xlu1 %49  }
  0x81   :  { %46 = vst.msk [vmem:[#allocation0] sm:$0x1] %vm45_vm7, %v44_v22  }
  0x82   :  { %52 = vst.msk [vmem:[#allocation0] sm:$0x1] %vm51_vm8, %v50_v23  }
  0x84   :  { %v56_v24 = vpop.permute.xlu0 %55   ;;  %v62_v25 = vpop.permute.xlu1 %61  }
  0x85   :  { %58 = vst.msk [vmem:[#allocation0] sm:$0x1] %vm57_vm9, %v56_v24  }
  0x86   :  { %64 = vst.msk [vmem:[#allocation0] sm:$0x1] %vm63_vm10, %v62_v25  }
  0x88   :  { %v68_v26 = vpop.permute.xlu0 %67   ;;  %v74_v27 = vpop.permute.xlu1 %73  }
  0x89   :  { %70 = vst.msk [vmem:[#allocation0] sm:$0x1] %vm69_vm11, %v68_v26  }
  0x8a   :  { %76 = vst.msk [vmem:[#allocation0] sm:$0x1] %vm75_vm12, %v74_v27  }
  0x8c   :  { %v80_v28 = vpop.permute.xlu0 %79   ;;  %v86_v29 = vpop.permute.xlu1 %85  }
  0x8d   :  { %82 = vst.msk [vmem:[#allocation0] sm:$0x1] %vm81_vm13, %v80_v28  }
  0x8e   :  { %88 = vst.msk [vmem:[#allocation0] sm:$0x1] %vm87_vm14, %v86_v29  }
  0x90   :  { %v92_v30 = vpop.permute.xlu0 %91  }
  0x91   :  { %94 = vst.msk [vmem:[#allocation0] sm:$0x1] %vm93_vm15, %v92_v30  }
  0x98   :  { %v98_v31 = vld [vmem:[#allocation0] sm:$0x1] }
  0x99   :  { %100 = vst [vmem:[%s208_s1] sm:$0x1] %v98_v31 }

// kernel: double_conv_forward.5
= control target key start
LH: loop header
LB: loop body
LE: loop exit
PB: predicated region body
PF: predicated region fallthrough
CT: control target
= control target key end

     0   :  { %s119_s0 = inlined_call_operand.vmem [shape: bf16[32,128], index: 0, kind: input, shape index: {}]   ;;  %s120_s1 = inlined_call_operand.vmem [shape: f32[1,128], index: 1, kind: input, shape index: {}]   ;;  %s121_s2 = inlined_call_operand.vmem [shape: f32[1,128], index: 2, kind: input, shape index: {}]   ;;  %s122_s3 = inlined_call_operand.vmem [shape: f32[32,128], index: 3, kind: output, shape index: {}]  }
   0x1   :  { %v67_v0 = vld [vmem:[%s119_s0] sm:$0xff]   ;;  %v74_v4 = vld [vmem:[%s119_s0 + $0x8] sm:$0xff]  }
   0x2   :  { %v64_v1 = vld [vmem:[%s120_s1] ss:$0 sm:$0xff]  ;;  %v68_v2 = vunpack.c.l.bf16 %v67_v0  ;;  %v69_v3 = vunpack.c.h.bf16 %v67_v0  ;;  %v72_v6 = vunpack.c.l.bf16 %v74_v4  ;;  %v73_v7 = vunpack.c.h.bf16 %v74_v4 }
   0x3   :  { %v65_v5 = vld [vmem:[%s121_s2] ss:$0 sm:$0xff] }
   0x4   :  { %v29_v8 = vmul.f32 %v68_v2, %v64_v1  ;;  %v30_v9 = vmul.f32 %v69_v3, %v64_v1  ;;  %v31_v10 = vmul.f32 %v72_v6, %v64_v1  ;;  %v32_v11 = vmul.f32 %v73_v7, %v64_v1 }
   0x6   :  { %v40_v12 = vadd.f32 %v65_v5, %v29_v8  ;;  %v41_v13 = vadd.f32 %v65_v5, %v30_v9  ;;  %v42_v14 = vadd.f32 %v65_v5, %v31_v10  ;;  %v43_v15 = vadd.f32 %v65_v5, %v32_v11 }
   0x8   :  { %vm44_vm0 = vcmp.gt.f32.partialorder %v40_v12, 0.0  ;;  %v48_v16 = vmul.f32 0.01, %v40_v12  ;;  %vm45_vm1 = vcmp.gt.f32.partialorder %v41_v13, 0.0  ;;  %v49_v17 = vmul.f32 0.01, %v41_v13 }
   0x9   :  { %vm46_vm2 = vcmp.gt.f32.partialorder %v42_v14, 0.0  ;;  %v50_v18 = vmul.f32 0.01, %v42_v14  ;;  %vm47_vm3 = vcmp.gt.f32.partialorder %v43_v15, 0.0  ;;  %v51_v19 = vmul.f32 0.01, %v43_v15 }
   0xa   :  { %v52_v20 = vsel %vm44_vm0, %v40_v12, %v48_v16  ;;  %v53_v21 = vsel %vm45_vm1, %v41_v13, %v49_v17 }
   0xb   :  { %56 = vst [vmem:[%s122_s3] sm:$0xff] %v52_v20  ;;  %57 = vst [vmem:[%s122_s3 + $0x8] sm:$0xff] %v53_v21  ;;  %v54_v22 = vsel %vm46_vm2, %v42_v14, %v50_v18  ;;  %v55_v23 = vsel %vm47_vm3, %v43_v15, %v51_v19 }
   0xc   :  { %58 = vst [vmem:[%s122_s3 + $0x10] sm:$0xff] %v54_v22  ;;  %59 = vst [vmem:[%s122_s3 + $0x18] sm:$0xff] %v55_v23 }

// kernel: double_conv_forward.3
= control target key start
LH: loop header
LB: loop body
LE: loop exit
PB: predicated region body
PF: predicated region fallthrough
CT: control target
= control target key end

     0   :  { %s3245_s18 = smov 0   ;;  %s3247_s19 = smov 0   ;;  %s4820_s0 = inlined_call_operand.vmem [shape: f32[2,16,16,4], index: 0, kind: input, shape index: {}]   ;;  %s4821_s1 = inlined_call_operand.vmem [shape: f32[1,4], index: 1, kind: input, shape index: {}]   ;;  %s4822_s2 = inlined_call_operand.vmem [shape: f32[1,4], index: 2, kind: input, shape index: {}]   ;;  %s4823_s3 = inlined_call_operand.vmem [shape: bf16[36,8], index: 3, kind: input, shape index: {}]   ;;  %s4824_s4 = inlined_call_operand.vmem [shape: bf16[2,16,128], index: 4, kind: output, shape index: {0}]   ;;  %s4825_s5 = inlined_call_operand.vmem [shape: f32[2,2,2,8], index: 5, kind: output, shape index: {1}]  }
   0x1   :  { %s3249_s20 = smov 0   ;;  %s3251_s21 = smov 0  }
   0x2   :  { %s3253_s1 = smov 0  }
   0x3 LB: > { %s25_s2 = sadd.s32 1, %s3186_s20  ;;  %s28_s22 = sadd.s32 1, %s3190_s21  ;;  %s3194_s1 = sphi %s3253_s1, %s16_s1   ;;  %s3190_s21 = sphi %s3251_s21, %s4866_s21   ;;  %s3186_s20 = sphi %s3249_s20, %s4865_s20   ;;  %s3182_s19 = sphi %s3247_s19, %s4864_s19   ;;  %s3178_s18 = sphi %s3245_s18, %s4863_s18  }
   0x4   : > { %p26_p0 = scmp.ge.s32.totalorder %s25_s2, 2  ;;  %p2864_p1 = scmp.ge.s32.totalorder %s3194_s1, 1 }
   0x5   : > { %p206_p2 = scmp.lt.s32.totalorder %s3194_s1, 5 }
   0x6   : > { %s4868_s2 = smov (%p26_p0, %s25_s2), 0  ;;  %s4870_s22 = smov (!%p26_p0, %s28_s22), %s3190_s21 }
   0x7   : > { %p207_p3 = pnand %p2864_p1, %p206_p2  ;;  %p30_p4 = scmp.ge.s32.totalorder %s4870_s22, 2 }
   0x8   : > { %p245_p5 = scmp.lt.s32.totalorder (!%p207_p3), %s3182_s19, 1  ;;  %vm268_vm0 = vcmask (!%p207_p3), 24576   ;;  %vm269_vm1 = vsmask.f32 (!%p207_p3), 256  ;;  %v277_v0 = vld [vmem:[#allocation2 + $0x18] sm:$0x1] (!%p207_p3) }
   0x9   : > { %s4872_s22 = smov (%p30_p4, %s4870_s22), 0  ;;  %210 = sbr.rel (%p207_p3) target bundleno = 727 (0x2d7), region = 36 }
   0xa   : > { %vm3278_vm2 = vmand (!%p207_p3), %vm268_vm0, %vm269_vm1  ;;  %vm301_vm3 = vsmask.f32 (!%p207_p3), 7938  ;;  %v274_v4 = vld [vmem:[#allocation2 + $0xc] sm:$0x1] (!%p207_p3)  ;;  %v280_v5 = vld [vmem:[#allocation2 + $0x24] sm:$0x1] (!%p207_p3) }
   0xb   : > { %v278_v2 = vsel (!%p207_p3), %vm3278_vm2, 0, %v277_v0  ;;  %vm3287_vm4 = vmand (!%p207_p3), %vm268_vm0, %vm301_vm3  ;;  %s3006_s23 = sshll.u32 (!%p207_p3), %s3178_s18, 7  ;;  %v275_v6 = vsel (!%p207_p3), %vm3278_vm2, 0, %v274_v4  ;;  %v281_v7 = vsel (!%p207_p3), %vm3278_vm2, 0, %v280_v5  ;;  %v286_v8 = vld [vmem:[#allocation2 + $0x3c] sm:$0x1] (!%p207_p3) }
   0xc   : > { %279 = vst [vmem:[#allocation2 + $0x18] sm:$0x1] (!%p207_p3), %v278_v2  ;;  %276 = vst [vmem:[#allocation2 + $0xc] sm:$0x1] (!%p207_p3), %v275_v6  ;;  %v287_v9 = vsel (!%p207_p3), %vm3278_vm2, 0, %v286_v8  ;;  %vm576_vm6 = vcmask (!%p207_p3), 27648  }
   0xd   : > { %282 = vst [vmem:[#allocation2 + $0x24] sm:$0x1] (!%p207_p3), %v281_v7  ;;  %v289_v10 = vld [vmem:[#allocation2 + $0x48] sm:$0x1] (!%p207_p3)  ;;  %v309_v11 = vld [vmem:[#allocation2 + $0x20] sm:$0x1] (!%p207_p3)  ;;  %vm3331_vm8 = vmand (!%p207_p3), %vm576_vm6, %vm301_vm3 }
   0xe   : > { %288 = vst [vmem:[#allocation2 + $0x3c] sm:$0x1] (!%p207_p3), %v287_v9  ;;  %v290_v12 = vsel (!%p207_p3), %vm3278_vm2, 0, %v289_v10  ;;  %v310_v13 = vsel (!%p207_p3), %vm3287_vm4, 0, %v309_v11  ;;  %v306_v14 = vld [vmem:[#allocation2 + $0x14] sm:$0x1] (!%p207_p3) }
   0xf   : > { %291 = vst [vmem:[#allocation2 + $0x48] sm:$0x1] (!%p207_p3), %v290_v12  ;;  %311 = vst [vmem:[#allocation2 + $0x20] sm:$0x1] (!%p207_p3), %v310_v13  ;;  %v318_v15 = vld [vmem:[#allocation2 + $0x44] sm:$0x1] (!%p207_p3) }
  0x10   : > { %s4874_s19 = smov (!%p245_p5, %s3182_s19), 1  ;;  %v307_v19 = vsel %vm3287_vm4, 0, %v306_v14  ;;  %v319_v20 = vsel %vm3287_vm4, 0, %v318_v15  ;;  %vm413_vm5 = vsmask.f32 4368  ;;  %s2871_s29 = sshll.u32 %s3178_s18, 3 }
  0x11   : > { %s3005_s24 = sshll.u32 %s4874_s19, 8  ;;  %308 = vst [vmem:[#allocation2 + $0x14] sm:$0x1] %v307_v19  ;;  %320 = vst [vmem:[#allocation2 + $0x44] sm:$0x1] %v319_v20  ;;  %s3338_s30 = sadd.s32 4294967295, %s2871_s29 }
  0x12   : > { %s3302_s27 = scalar_lea.vmem %s4820_s0, %s3005_s24  ;;  %vm3324_vm7 = vmor %vm269_vm1, %vm413_vm5  ;;  %p352_p6 = scmp.gt.s32.totalorder %s3338_s30, 0  ;;  %vm963_vm9 = vcmask 1042432   ;;  %vm964_vm10 = vcmask 1046532   ;;  %vm736_vm12 = vsmask.f32 3328  ;;  %vm2180_vm1 = vcmask 1041408  }
  0x13   : > { %s3309_s28 = scalar_lea.vmem %s3302_s27, %s3006_s23  ;;  %v586_v45 = vld [vmem:[#allocation2 + $0x18] sm:$0xf]  ;;  %v578_v54 = vld [vmem:[#allocation2 + $0xc] sm:$0xf]  ;;  %p635_p7 = scmp.gt.s32.totalorder %s3178_s18, 0  ;;  %vm3454_vm11 = vmor %vm963_vm9, %vm964_vm10  ;;  %vm2024_vm3 = vcmask 64512  }
  0x14   : > { %v337_v16 = vld [vmem:[%s3309_s28 + $0x10] sm:$0xff]  ;;  %v338_v17 = vld [vmem:[%s3309_s28 + $0x18] sm:$0xff]  ;;  %v335_v18 = vld [vmem:[%s3309_s28] sm:$0xff]  ;;  %s4876_s30 = smov (!%p352_p6, %s3338_s30), 0  ;;  %s3196_s9 = smov 12   ;;  %vm2058_vm5 = vcmask 130048  }
  0x15   : > { %v3009_v21 = vpack.c.bf16 %v337_v16, %v337_v16  ;;  %v3010_v22 = vpack.c.bf16 %v338_v17, %v338_v17  ;;  %v336_v23 = vld [vmem:[%s3309_s28 + $0x8] sm:$0xff]  ;;  %v3007_v24 = vpack.c.bf16 %v335_v18, %v335_v18  ;;  %v339_v25 = vld [vmem:[%s3309_s28 + $0x20] sm:$0xff]  ;;  %v345_v7 = vld [vmem:[%s3309_s28 + $0x50] sm:$0xff]  ;;  %s3366_s6 = scalar_select %p635_p7, 1, 0  ;;  %vm2126_vm9 = vcmask 261120  }
  0x16   : > { %v340_v26 = vld [vmem:[%s3309_s28 + $0x28] sm:$0xff]  ;;  %v3008_v27 = vpack.c.bf16 %v336_v23, %v336_v23  ;;  %v3011_v28 = vpack.c.bf16 %v339_v25, %v339_v25  ;;  %v343_v43 = vld [vmem:[%s3309_s28 + $0x40] sm:$0xff]  ;;  %v346_v8 = vld [vmem:[%s3309_s28 + $0x58] sm:$0xff]  ;;  %v3362_v20 = vpack.c.bf16 %v345_v7, %v345_v7  ;;  %s2874_s7 = sshll.u32 %s4876_s30, 4  ;;  %s3197_s10 = smov 24   ;;  %vm2163_vm10 = vcmask 293888  }
  0x17   : > { %v3012_v29 = vpack.c.bf16 %v340_v26, %v340_v26  ;;  %v433_v30 = vshrl.u32 %v3009_v21, 16  ;;  %v436_v31 = vshll.u32 %v3009_v21, 16  ;;  %v441_v32 = vshrl.u32 %v3010_v22, 16  ;;  %v344_v55 = vld [vmem:[%s3309_s28 + $0x48] sm:$0xff]  ;;  %v593_v4 = vld [vmem:[#allocation2 + $0x24] sm:$0xf]  ;;  %s355_s8 = scalar_lea.vmem %s3302_s27, %s2874_s7 }
  0x18   : > { %v444_v33 = vshll.u32 %v3010_v22, 16  ;;  %v416_v34 = vshrl.u32 %v3007_v24, 16  ;;  %v419_v35 = vshll.u32 %v3007_v24, 16  ;;  %v424_v36 = vshrl.u32 %v3008_v27, 16  ;;  %v590_v12 = vld [vmem:[#allocation2 + $0x20] sm:$0x1] }
  0x19   : > { %v427_v37 = vshll.u32 %v3008_v27, 16  ;;  %v435_v39 = vrot.slane %v433_v30, 7  ;;  %v443_v40 = vrot.slane %v441_v32, 7  ;;  %v450_v41 = vshrl.u32 %v3011_v28, 16  ;;  %v583_v13 = vld [vmem:[#allocation2 + $0x14] sm:$0x1] }
  0x1a   : > { %v453_v42 = vshll.u32 %v3011_v28, 16  ;;  %v418_v46 = vrot.slane %v416_v34, 7  ;;  %v426_v47 = vrot.slane %v424_v36, 7  ;;  %v458_v48 = vshrl.u32 %v3012_v29, 16  ;;  %v341_v26 = vld [vmem:[%s3309_s28 + $0x30] sm:$0xff]  ;;  %v342_v27 = vld [vmem:[%s3309_s28 + $0x38] sm:$0xff] }
  0x1b   : > { %v461_v49 = vshll.u32 %v3012_v29, 16  ;;  %v438_v50 = vor.u32 %v436_v31, %v435_v39  ;;  %v439_v51 = vrot.slane %v435_v39, 4  ;;  %v446_v52 = vor.u32 %v444_v33, %v443_v40  ;;  %v3390_v36 = vld [vmem:[%s355_s8] sm:$0xff]  ;;  %s3520_s11 = sadd.s32 8, %s2871_s29  ;;  %s3198_s12 = smov 8  }
  0x1c   : > { %v448_v53 = vrot.slane %v443_v40, 4  ;;  %v421_v56 = vor.u32 %v419_v35, %v418_v46  ;;  %v422_v57 = vrot.slane %v418_v46, 4  ;;  %v429_v58 = vor.u32 %v427_v37, %v426_v47  ;;  %v3392_v37 = vld [vmem:[%s355_s8 + $0x8] sm:$0xff]  ;;  %p359_p8 = scmp.lt.s32.totalorder %s3520_s11, 15  ;;  %s3199_s15 = smov 20  }
  0x1d   : > { %v431_v59 = vrot.slane %v426_v47, 4  ;;  %v447_v60 = vsel %vm3324_vm7, %v439_v51, %v446_v52  ;;  %v587_v61 = vsel %vm3331_vm8, %v438_v50, %v586_v45  ;;  %v452_v62 = vrot.slane %v450_v41, 7  ;;  %s3200_s16 = smov 4   ;;  %s3201_s17 = smov 16  }
  0x1e   : > { %v3344_v63 = vrot.slane %v458_v48, 7  ;;  %588 = vst [vmem:[#allocation2 + $0x18] sm:$0xf] %v587_v61  ;;  %589 = vst.msk [vmem:[#allocation2 + $0x1c] sm:$0xf] %vm576_vm6, %v447_v60  ;;  %v430_v0 = vsel %vm3324_vm7, %v422_v57, %v429_v58  ;;  %v579_v2 = vsel %vm3331_vm8, %v421_v56, %v578_v54  ;;  %v3015_v5 = vpack.c.bf16 %v343_v43, %v343_v43  ;;  %s4878_s11 = smov (!%p359_p8, %s3520_s11), 15 }
  0x1f   : > { %v3016_v6 = vpack.c.bf16 %v344_v55, %v344_v55  ;;  %580 = vst [vmem:[#allocation2 + $0xc] sm:$0xf] %v579_v2  ;;  %582 = vst.msk [vmem:[#allocation2 + $0x10] sm:$0xf] %vm576_vm6, %v430_v0  ;;  %v455_v9 = vor.u32 %v453_v42, %v452_v62  ;;  %v456_v10 = vrot.slane %v452_v62, 4  ;;  %v3364_v21 = vpack.c.bf16 %v346_v8, %v346_v8  ;;  %s2875_s13 = sshll.u32 %s4878_s11, 4 }
  0x20   : > { %v463_v11 = vor.u32 %v461_v49, %v3344_v63  ;;  %v484_v14 = vshrl.u32 %v3015_v5, 16  ;;  %v487_v15 = vshll.u32 %v3015_v5, 16  ;;  %v591_v24 = vsel %vm3278_vm2, %v448_v53, %v590_v12  ;;  %s3579_s14 = scalar_lea.vmem %s3302_s27, %s2875_s13  ;;  %s3202_s23 = smov 28  }
  0x21   : > { %v492_v16 = vshrl.u32 %v3016_v6, 16  ;;  %v495_v17 = vshll.u32 %v3016_v6, 16  ;;  %v594_v19 = vsel %vm3331_vm8, %v455_v9, %v593_v4  ;;  %v584_v25 = vsel %vm3278_vm2, %v431_v59, %v583_v13  ;;  %592 = vst [vmem:[#allocation2 + $0x20] sm:$0x1] %v591_v24  ;;  %s3203_s26 = smov 32   ;;  %p252_p9 = scmp.lt.s32.totalorder %s3178_s18, 1 }
  0x22   : > { %v464_v18 = vsel %vm3324_vm7, %v456_v10, %v463_v11  ;;  %595 = vst [vmem:[#allocation2 + $0x24] sm:$0xf] %v594_v19  ;;  %v3369_v22 = vrot.slane %v484_v14, 7  ;;  %v501_v29 = vshrl.u32 %v3362_v20, 16  ;;  %v504_v30 = vshll.u32 %v3362_v20, 16  ;;  %s2867_s7 = sshll.u32 %s4874_s19, 1 }
  0x23   : > { %596 = vst.msk [vmem:[#allocation2 + $0x28] sm:$0xf] %vm576_vm6, %v464_v18  ;;  %v3371_v23 = vrot.slane %v492_v16, 7  ;;  %v509_v31 = vshrl.u32 %v3364_v21, 16  ;;  %585 = vst [vmem:[#allocation2 + $0x14] sm:$0x1] %v584_v25  ;;  %v3397_v43 = vpack.c.bf16 %v341_v26, %v341_v26  ;;  %v3399_v45 = vpack.c.bf16 %v342_v27, %v342_v27 }
  0x24   : > { %v3385_v32 = vor.u32 %v487_v15, %v3369_v22  ;;  %v490_v33 = vrot.slane %v3369_v22, 4  ;;  %v512_v35 = vshll.u32 %v3364_v21, 16  ;;  %v636_v46 = vpack.c.bf16 %v3392_v37, %v3390_v36  ;;  %v607_v15 = vld [vmem:[#allocation2 + $0x3c] sm:$0xf]  ;;  %s4880_s18 = smov (!%p252_p9, %s3178_s18), 1  ;;  %s3206_s13 = smov 48  }
  0x25   : > { %v499_v34 = vrot.slane %v3371_v23, 4  ;;  %v1024_v39 = vld [vmem:[#allocation2 + $0x18] sm:$0xf]  ;;  %v3394_v40 = vld [vmem:[#allocation2 + $0x1c] sm:$0xf]  ;;  %v497_v42 = vor.u32 %v495_v17, %v3371_v23  ;;  %s4618_s19 = sadd.s32 %s2867_s7, %s4880_s18  ;;  %s3204_s18 = smov 80  }
  0x26   : > { %v1327_v41 = vld [vmem:[#allocation2 + $0x18] sm:$0xf]  ;;  %v1084_v48 = vshrl.u32 %v3394_v40, 16  ;;  %v2945_v49 = vcombine.low %v1024_v39, %v3394_v40  ;;  %v1071_v50 = vshrl.u32 %v1024_v39, 16  ;;  %v1022_v51 = vld [vmem:[#allocation2 + $0xc] sm:$0xf] }
  0x27   : > { %v1074_v52 = vshll.u32 %v1024_v39, 16  ;;  %v3406_v53 = vld [vmem:[#allocation2 + $0x10] sm:$0xf]  ;;  %v1047_v54 = vshrl.u32 %v1022_v51, 16  ;;  %v1050_v55 = vshll.u32 %v1022_v51, 16  ;;  %v1352_v56 = vshrl.u32 %v1327_v41, 16 }
  0x28   : > { %v3408_v57 = vrot.slane %v1084_v48, 4  ;;  %1777 = vrot.lane.b32.xlu1 %v2945_v49, %s3196_s9  ;;  %v1073_v58 = vrot.slane %v1071_v50, 4  ;;  %v1056_v59 = vshll.u32 %v3406_v53, 16  ;;  %v1060_v60 = vshrl.u32 %v3406_v53, 16  ;;  %v3413_v61 = vld [vmem:[#allocation2 + $0x1c] sm:$0xf] }
  0x29   : > { %v1076_v62 = vrot.slane %v1074_v52, 5  ;;  %v2944_v0 = vcombine.low %v1022_v51, %v3406_v53  ;;  %v1049_v2 = vrot.slane %v1047_v54, 4  ;;  %v1052_v4 = vrot.slane %v1050_v55, 5  ;;  %v1329_v5 = vld [vmem:[#allocation2 + $0x24] sm:$0xf]  ;;  %s2870_s8 = sshll.u32 %s4618_s19, 1 }
  0x2a   : > { %v3416_v6 = vrot.slane %v1060_v60, 4  ;;  %v3418_v7 = vrot.slane %v1352_v56, 4  ;;  %v1355_v8 = vshll.u32 %v1327_v41, 16  ;;  %v3421_v10 = vld [vmem:[#allocation2 + $0x28] sm:$0xf]  ;;  %v2968_v13 = vcombine.low %v1327_v41, %v3413_v61  ;;  %s4651_s11 = scalar_lea.vmem %s4825_s5, %s2870_s8  ;;  %s3212_s24 = smov 112  }
  0x2b   : > { %v1077_v11 = vor.u32 %v1076_v62, %v1073_v58  ;;  %1775 = vrot.lane.b32.xlu0 %v2944_v0, %s3196_s9  ;;  %v1053_v12 = vor.u32 %v1052_v4, %v1049_v2  ;;  %v1376_v14 = vshrl.u32 %v1329_v5, 16  ;;  %v3425_v16 = vld [vmem:[#allocation2 + $0x20] sm:$0x1]  ;;  %v1379_v18 = vshll.u32 %v1329_v5, 16  ;;  %v1239_v24 = vld [vmem:[#allocation2 + $0x18] sm:$0xe] }
  0x2c   : > { %v3427_v17 = vrot.slane %v1355_v8, 5  ;;  %v2969_v22 = vcombine.low %v1329_v5, %v3421_v10  ;;  %1903 = vrot.lane.b32.xlu1 %v2968_v13, %s3197_s10  ;;  %v498_v39 = vsel %vm3324_vm7, %v490_v33, %v497_v42  ;;  %v614_v41 = vld [vmem:[#allocation2 + $0x48] sm:$0xf]  ;;  %v3440_v48 = vld [vmem:[#allocation2 + $0x10] sm:$0xf]  ;;  %v608_v50 = vsel %vm3331_vm8, %v3385_v32, %v607_v15  ;;  %s3213_s25 = smov 104  }
  0x2d   : > { %v3431_v25 = vrot.slane %v1077_v11, 4  ;;  %v3433_v26 = vrot.slane %v1053_v12, 4  ;;  %v3436_v27 = vrot.slane %v1376_v14, 4  ;;  %v611_v49 = vld [vmem:[#allocation2 + $0x44] sm:$0x1]  ;;  %v503_v51 = vrot.slane %v501_v29, 7 }
  0x2e   : > { %610 = vst.msk [vmem:[#allocation2 + $0x40] sm:$0xf] %vm576_vm6, %v498_v39  ;;  %v3450_v52 = vrot.slane %v509_v31, 7  ;;  %v3458_v42 = vld [vmem:[#allocation2 + $0x14] sm:$0x1]  ;;  %v638_v55 = vstv %s3366_s6  ;;  %v2905_v32 = vrot.slane %v1239_v24, 9 }
  0x2f   : > { %v932_v54 = vld [vmem:[#allocation2 + $0xc] sm:$0xe]  ;;  %1905 = vrot.lane.b32.xlu0 %v2969_v22, %s3197_s10  ;;  %609 = vst [vmem:[#allocation2 + $0x3c] sm:$0xf] %v608_v50  ;;  %v1279_v29 = vrot.slane %v3394_v40, 5  ;;  %v1282_v56 = vrot.slane %v3425_v16, 5  ;;  %v506_v62 = vor.u32 %v504_v30, %v503_v51  ;;  %v612_v30 = vsel %vm3278_vm2, %v499_v34, %v611_v49 }
  0x30   : > { %v2897_v31 = vrot.slane %v932_v54, 9  ;;  %v283_v58 = vld [vmem:[#allocation2 + $0x30] sm:$0x1]  ;;  %v3464_v60 = vrot.slane %v1379_v18, 5  ;;  %v507_v0 = vrot.slane %v503_v51, 4  ;;  %v514_v2 = vor.u32 %v512_v35, %v3450_v52  ;;  %s2868_s27 = sshll.u32 %s4618_s19, 2 }
  0x31   : > { %v1238_v4 = vld [vmem:[#allocation2 + $0xc] sm:$0xe]  ;;  %v315_v5 = vld [vmem:[#allocation2 + $0x38] sm:$0x1]  ;;  %v3473_v8 = vsel %vm3454_vm11, %v2905_v32, %v1279_v29  ;;  %v1281_v11 = vrot.slane %v1279_v29, 4  ;;  %v975_v12 = vrot.slane %v3440_v48, 5  ;;  %v615_v21 = vsel %vm3331_vm8, %v506_v62, %v614_v41  ;;  %s257_s30 = scalar_lea.vmem %s4824_s4, %s2868_s27 }
  0x32   : > { %v978_v13 = vrot.slane %v3458_v42, 5  ;;  %v3477_v14 = vld [vmem:[#allocation2 + $0x14] sm:$0x1]  ;;  %v515_v20 = vsel %vm3324_vm7, %v507_v0, %v514_v2  ;;  %v2904_v35 = vrot.slane %v1238_v4, 9  ;;  %616 = vst [vmem:[#allocation2 + $0x48] sm:$0xf] %v615_v21 }
  0x33   : > { %617 = vst.msk [vmem:[#allocation2 + $0x4c] sm:$0xf] %vm576_vm6, %v515_v20  ;;  %v3490_v15 = vsel %vm3454_vm11, %v1281_v11, %v1282_v56  ;;  %v976_v18 = vsel %vm3454_vm11, %v2897_v31, %v975_v12  ;;  %v977_v22 = vrot.slane %v975_v12, 4  ;;  %613 = vst [vmem:[#allocation2 + $0x44] sm:$0x1] %v612_v30  ;;  %v1272_v24 = vrot.slane %v3406_v53, 5 }
  0x34   : > { %v1275_v39 = vrot.slane %v3477_v14, 5  ;;  %v284_v34 = vsel %vm3278_vm2, 0, %v283_v58  ;;  %v316_v41 = vsel %vm3287_vm4, 0, %v315_v5  ;;  %v2961_v50 = vcombine.low %v3473_v8, %v3490_v15  ;;  %v3142_v33 = vld [vmem:[#allocation2 + $0x10] sm:$0xf] }
  0x35   : > { %v3501_v49 = vld [vmem:[#allocation2 + $0x40] sm:$0xf]  ;;  %v979_v51 = vsel %vm3454_vm11, %v977_v22, %v978_v13  ;;  %v1274_v32 = vrot.slane %v1272_v24, 4  ;;  %285 = vst [vmem:[#allocation2 + $0x30] sm:$0x1] %v284_v34  ;;  %v467_v29 = vshrl.u32 %v3397_v43, 16  ;;  %v3514_v2 = vsel %vm3454_vm11, %v2904_v35, %v1272_v24 }
  0x36   : > { %v3507_v54 = vld [vmem:[#allocation2 + $0x40] sm:$0xf]  ;;  %317 = vst [vmem:[#allocation2 + $0x38] sm:$0x1] %v316_v41  ;;  %v1030_v56 = vld [vmem:[#allocation2 + $0x3c] sm:$0xf]  ;;  %v2937_v58 = vcombine.low %v976_v18, %v979_v51 }
  0x37   : > { %v936_v62 = vld [vmem:[#allocation2 + $0x3c] sm:$0xe]  ;;  %v1003_v0 = vrot.slane %v3507_v54, 5  ;;  %v1143_v4 = vshrl.u32 %v1030_v56, 16  ;;  %v1146_v5 = vshll.u32 %v1030_v56, 16  ;;  %v2948_v11 = vcombine.low %v1030_v56, %v3501_v49  ;;  %v347_v13 = vld [vmem:[%s3309_s28 + $0x60] sm:$0xff] }
  0x38   : > { %v2901_v12 = vrot.slane %v936_v62, 9  ;;  %v1276_v20 = vsel %vm3454_vm11, %v1274_v32, %v1275_v39  ;;  %v3524_v21 = vrot.slane %v467_v29, 7  ;;  %v470_v30 = vshll.u32 %v3397_v43, 16  ;;  %v348_v18 = vld [vmem:[%s3309_s28 + $0x68] sm:$0xff]  ;;  %v271_v62 = vld [vmem:[#allocation2] sm:$0x1] }
  0x39   : > { %vm737_vm13 = vsmask.f32 7440  ;;  %v3530_v22 = vrot.slane %v1143_v4, 4  ;;  %v3532_v24 = vrot.slane %v1146_v5, 5  ;;  %1783 = vrot.lane.b32.xlu1 %v2948_v11, %s3196_s9  ;;  %v1005_v39 = vrot.slane %v1003_v0, 4 }
  0x3a   : > { %v3537_v34 = vsel %vm3454_vm11, %v2901_v12, %v1003_v0  ;;  %v714_v41 = vld [vmem:[#allocation2 + $0xc] sm:$0xf]  ;;  %v3540_v43 = vld [vmem:[#allocation2 + $0x48] sm:$0xf]  ;;  %v3544_v32 = vld [vmem:[#allocation2 + $0x44] sm:$0x1]  ;;  %v2960_v29 = vcombine.low %v3514_v2, %v1276_v20  ;;  %v472_v56 = vor.u32 %v470_v30, %v3524_v21  ;;  %v3550_v4 = vpack.c.bf16 %v347_v13, %v347_v13 }
  0x3b   : > { %v3542_v51 = vld [vmem:[#allocation2 + $0x4c] sm:$0xf]  ;;  %v1167_v5 = vshrl.u32 %v3540_v43, 16  ;;  %v3556_v12 = vpack.c.bf16 %v348_v18, %v348_v18  ;;  %v1006_v20 = vrot.slane %v3544_v32, 5  ;;  %v475_v30 = vshrl.u32 %v3399_v45, 16  ;;  %vm3599_vm15 = vmor %vm736_vm12, %vm737_vm13 }
  0x3c   : > { %v2949_v11 = vcombine.low %v3540_v43, %v3542_v51  ;;  %v478_v13 = vshll.u32 %v3399_v45, 16  ;;  %v600_v23 = vld [vmem:[#allocation2 + $0x30] sm:$0xf]  ;;  %v473_v19 = vrot.slane %v3524_v21, 4  ;;  %v764_v2 = vshrl.u32 %v714_v41, 16 }
  0x3d   : > { %v3562_v28 = vrot.slane %v1167_v5, 4  ;;  %1729 = vrot.lane.b32.xlu1 %v2937_v58, %s3198_s12  ;;  %v601_v18 = vsel %vm3331_vm8, %v472_v56, %v600_v23  ;;  %v1007_v45 = vsel %vm3454_vm11, %v1005_v39, %v1006_v20  ;;  %v477_v5 = vrot.slane %v475_v30, 7  ;;  %v303_v0 = vld [vmem:[#allocation2 + $0x8] sm:$0x1]  ;;  %v604_v21 = vld [vmem:[#allocation2 + $0x38] sm:$0x1] }
  0x3e   : > { %1785 = vrot.lane.b32.xlu0 %v2949_v11, %s3196_s9  ;;  %602 = vst [vmem:[#allocation2 + $0x30] sm:$0xf] %v601_v18  ;;  %v767_v31 = vshll.u32 %v714_v41, 16  ;;  %v773_v11 = vshll.u32 %v3440_v48, 16  ;;  %v2941_v58 = vcombine.low %v3537_v34, %v1007_v45  ;;  %v766_v9 = vrot.slane %v764_v2, 4 }
  0x3f   : > { %v777_v23 = vshrl.u32 %v3440_v48, 16  ;;  %v783_v56 = vshll.u32 %v3458_v42, 16  ;;  %v480_v35 = vor.u32 %v478_v13, %v477_v5  ;;  %v482_v47 = vrot.slane %v477_v5, 4 }
  0x40   : > { %v769_v39 = vrot.slane %v767_v31, 5  ;;  %v775_v20 = vrot.slane %v773_v11, 5  ;;  %v272_v42 = vsel %vm3278_vm2, 0, %v271_v62  ;;  %v304_v41 = vsel %vm3287_vm4, 0, %v303_v0 }
  0x41   : > { %1855 = vrot.lane.b32.xlu1 %v2960_v29, %s3199_s15  ;;  %v779_v34 = vrot.slane %v777_v23, 4  ;;  %v785_v48 = vrot.slane %v783_v56, 5  ;;  %v481_v31 = vsel %vm3324_vm7, %v473_v19, %v480_v35  ;;  %v605_v2 = vsel %vm3278_vm2, %v482_v47, %v604_v21  ;;  %273 = vst [vmem:[#allocation2] sm:$0x1] %v272_v42  ;;  %305 = vst [vmem:[#allocation2 + $0x8] sm:$0x1] %v304_v41 }
  0x42   : > { %1857 = vrot.lane.b32.xlu0 %v2961_v50, %s3199_s15  ;;  %v770_v30 = vor.u32 %v769_v39, %v766_v9  ;;  %vm639_vm14 = vcmp.eq.s32.totalorder %v638_v55, 1  ;;  %603 = vst.msk [vmem:[#allocation2 + $0x34] sm:$0xf] %vm576_vm6, %v481_v31  ;;  %606 = vst [vmem:[#allocation2 + $0x38] sm:$0x1] %v605_v2  ;;  %v1058_v47 = vrot.slane %v1056_v59, 5 }
  0x43   : > { %v780_v15 = vor.u32 %v779_v34, %v775_v20  ;;  %v640_v19 = vsel %vm639_vm14, %v636_v46, 0  ;;  %v1066_v9 = vshll.u32 %v3477_v14, 16  ;;  %v4838_v29 = vshll.u32 %v3394_v40, 16 }
  0x44   : > { %v771_v55 = vrot.slane %v770_v30, 4  ;;  %v2892_v50 = vcombine.low %v640_v19, %v640_v19  ;;  %v2893_v35 = vcombine.high %v640_v19, %v640_v19  ;;  %v1059_v36 = vsel %vm3599_vm15, %v3433_v26, %v1058_v47 }
  0x45   : > { %v3611_v62 = vrot.slane %v4838_v29, 5  ;;  %v935_v0 = vld [vmem:[#allocation2 + $0x30] sm:$0xe]  ;;  %v781_v13 = vrot.slane %v780_v15, 4  ;;  %v1063_v37 = vor.u32 %v3416_v6, %v1058_v47  ;;  %v1068_v46 = vrot.slane %v1066_v9, 5 }
  0x46   : > { %1737 = vrot.lane.b32.xlu0 %v2941_v58, %s3198_s12  ;;  %v720_v53 = vld [vmem:[#allocation2 + $0x30] sm:$0xf]  ;;  %v2900_v59 = vrot.slane %v935_v0, 9  ;;  %v776_v14 = vsel %vm3599_vm15, %v771_v55, %v775_v20  ;;  %v647_v18 = vshrl.u32 %v2892_v50, 16  ;;  %v650_v40 = vshll.u32 %v2892_v50, 16 }
  0x47   : > { %v786_v45 = vsel %vm3599_vm15, %v781_v13, %v785_v48  ;;  %v655_v5 = vshrl.u32 %v2893_v35, 16  ;;  %v658_v11 = vshll.u32 %v2893_v35, 16  ;;  %v1064_v58 = vrot.slane %v1063_v37, 4 }
  0x48   : > { %v2929_v21 = vcombine.low %v776_v14, %v786_v45  ;;  %v649_v23 = vrot.slane %v647_v18, 7  ;;  %v836_v56 = vshrl.u32 %v720_v53, 16  ;;  %v839_v26 = vshll.u32 %v720_v53, 16  ;;  %v666_v6 = vld [vmem:[#allocation2] sm:$0xf] }
  0x49   : > { %v657_v39 = vrot.slane %v655_v5, 7  ;;  %v670_v34 = vld [vmem:[#allocation2 + $0x8] sm:$0x1]  ;;  %v1069_v42 = vsel %vm3599_vm15, %v1064_v58, %v1068_v46  ;;  %v1083_v20 = vsel %vm3599_vm15, %v3431_v25, %v3611_v62  ;;  %v1087_v48 = vor.u32 %v3408_v57, %v3611_v62  ;;  %v721_v41 = vld [vmem:[#allocation2 + $0x34] sm:$0xf] }
  0x4a   : > { %v732_v31 = vld [vmem:[#allocation2 + $0x38] sm:$0x1]  ;;  %1689 = vrot.lane.b32.xlu0 %v2929_v21, %s3200_s16  ;;  %v652_v2 = vor.u32 %v650_v40, %v649_v23  ;;  %v653_v30 = vrot.slane %v649_v23, 4  ;;  %v2952_v15 = vcombine.low %v1059_v36, %v1069_v42  ;;  %v838_v19 = vrot.slane %v836_v56, 4  ;;  %v3641_v18 = vld [vmem:[#allocation2 + $0x20] sm:$0x1] }
  0x4b   : > { %v996_v47 = vrot.slane %v721_v41, 5  ;;  %v999_v9 = vrot.slane %v732_v31, 5  ;;  %v660_v55 = vor.u32 %v658_v11, %v657_v39  ;;  %v662_v50 = vrot.slane %v657_v39, 4  ;;  %v722_v58 = vld [vmem:[#allocation2 + $0x3c] sm:$0xf] }
  0x4c   : > { %v667_v35 = vsel %vm3331_vm8, %v652_v2, %v666_v6  ;;  %v841_v25 = vrot.slane %v839_v26, 5  ;;  %v845_v29 = vshll.u32 %v721_v41, 16  ;;  %v849_v0 = vshrl.u32 %v721_v41, 16 }
  0x4d   : > { %v997_v57 = vsel %vm3454_vm11, %v2900_v59, %v996_v47  ;;  %v998_v62 = vrot.slane %v996_v47, 4  ;;  %v661_v13 = vsel %vm3324_vm7, %v653_v30, %v660_v55  ;;  %668 = vst [vmem:[#allocation2] sm:$0xf] %v667_v35  ;;  %v671_v36 = vsel %vm3278_vm2, %v662_v50, %v670_v34 }
  0x4e   : > { %669 = vst.msk [vmem:[#allocation2 + $0x4] sm:$0xf] %vm576_vm6, %v661_v13  ;;  %672 = vst [vmem:[#allocation2 + $0x8] sm:$0x1] %v671_v36  ;;  %1815 = vrot.lane.b32.xlu0 %v2952_v15, %s3201_s17  ;;  %v842_v37 = vor.u32 %v841_v25, %v838_v19  ;;  %v847_v46 = vrot.slane %v845_v29, 5  ;;  %v851_v53 = vrot.slane %v849_v0, 4  ;;  %v4839_v5 = vor.u32 %v3427_v17, %v3418_v7 }
  0x4f   : > { %v855_v14 = vshll.u32 %v732_v31, 16  ;;  %v1000_v59 = vsel %vm3454_vm11, %v998_v62, %v999_v9  ;;  %v1088_v40 = vrot.slane %v1087_v48, 4  ;;  %v1090_v45 = vshll.u32 %v3425_v16, 16 }
  0x50   : > { %v1359_v11 = vrot.slane %v4839_v5, 4  ;;  %v2940_v21 = vcombine.low %v997_v57, %v1000_v59  ;;  %v843_v23 = vrot.slane %v842_v37, 4  ;;  %v852_v56 = vor.u32 %v851_v53, %v847_v46 }
  0x51   : > { %v857_v26 = vrot.slane %v855_v14, 5  ;;  %v1092_v39 = vrot.slane %v1090_v45, 5  ;;  %v1361_v6 = vshll.u32 %v3413_v61, 16  ;;  %v4840_v34 = vshrl.u32 %v3413_v61, 16 }
  0x52   : > { %v1371_v41 = vshll.u32 %v3641_v18, 16  ;;  %v4841_v48 = vshll.u32 %v3540_v43, 16  ;;  %1735 = vrot.lane.b32.xlu1 %v2940_v21, %s3198_s12  ;;  %v853_v7 = vrot.slane %v852_v56, 4  ;;  %v860_v17 = vshrl.u32 %v722_v58, 16 }
  0x53   : > { %v1367_v42 = vrot.slane %v4840_v34, 4  ;;  %v863_v31 = vshll.u32 %v722_v58, 16  ;;  %v848_v2 = vsel %vm3599_vm15, %v843_v23, %v847_v46  ;;  %v1093_v30 = vsel %vm3599_vm15, %v1088_v40, %v1092_v39 }
  0x54   : > { %v3655_v16 = vrot.slane %v4841_v48, 5  ;;  %v1363_v15 = vrot.slane %v1361_v6, 5  ;;  %v869_v19 = vshll.u32 %v3507_v54, 16  ;;  %v931_v47 = vld [vmem:[#allocation2] sm:$0xe]  ;;  %v2953_v9 = vcombine.low %v1083_v20, %v1093_v30 }
  0x55   : > { %v1373_v55 = vrot.slane %v1371_v41, 5  ;;  %v862_v43 = vrot.slane %v860_v17, 4  ;;  %v865_v50 = vrot.slane %v863_v31, 5  ;;  %v3663_v35 = vld [vmem:[#allocation2 + $0x4] sm:$0xf]  ;;  %v2896_v29 = vrot.slane %v931_v47, 9 }
  0x56   : > { %v3665_v25 = vld [vmem:[#allocation2 + $0x8] sm:$0x1]  ;;  %v858_v0 = vsel %vm3599_vm15, %v853_v7, %v857_v26  ;;  %v1364_v57 = vsel %vm3599_vm15, %v1359_v11, %v1363_v15  ;;  %v1368_v62 = vor.u32 %v1367_v42, %v1363_v15  ;;  %v968_v13 = vrot.slane %v3663_v35, 5  ;;  %1817 = vrot.lane.b32.xlu0 %v2953_v9, %s3201_s17  ;;  %v3680_v11 = vld [vmem:[#allocation2 + $0x44] sm:$0x1] }
  0x57   : > { %v971_v36 = vrot.slane %v3665_v25, 5  ;;  %v866_v20 = vor.u32 %v865_v50, %v862_v43  ;;  %v871_v37 = vrot.slane %v869_v19, 5  ;;  %v873_v53 = vshrl.u32 %v3507_v54, 16  ;;  %v312_v26 = vld [vmem:[#allocation2 + $0x2c] sm:$0x1] }
  0x58   : > { %v1369_v46 = vrot.slane %v1368_v62, 4  ;;  %v879_v14 = vshll.u32 %v3544_v32, 16  ;;  %v1149_v59 = vor.u32 %v3532_v24, %v3530_v22  ;;  %v969_v40 = vsel %vm3454_vm11, %v2896_v29, %v968_v13  ;;  %v1543_v6 = vld [vmem:[#allocation2 + $0x18] sm:$0xe]  ;;  %v712_v34 = vld [vmem:[#allocation2] sm:$0xf] }
  0x59   : > { %v970_v45 = vrot.slane %v968_v13, 4  ;;  %v867_v5 = vrot.slane %v866_v20, 4  ;;  %v1152_v58 = vshll.u32 %v3501_v49, 16  ;;  %v2932_v21 = vcombine.low %v848_v2, %v858_v0 }
  0x5a   : > { %v1374_v23 = vsel %vm3599_vm15, %v1369_v46, %v1373_v55  ;;  %v875_v56 = vrot.slane %v873_v53, 4  ;;  %v881_v54 = vrot.slane %v879_v14, 5  ;;  %v1150_v24 = vrot.slane %v1149_v59, 4  ;;  %v321_v14 = vld [vmem:[#allocation2 + $0x50] sm:$0x1] }
  0x5b   : > { %v972_v32 = vsel %vm3454_vm11, %v970_v45, %v971_v36  ;;  %v2976_v22 = vcombine.low %v1364_v57, %v1374_v23  ;;  %v1154_v39 = vrot.slane %v1152_v58, 5  ;;  %v4842_v48 = vshrl.u32 %v3501_v49, 16 }
  0x5c   : > { %v2936_v42 = vcombine.low %v969_v40, %v972_v32  ;;  %v876_v41 = vor.u32 %v875_v56, %v871_v37  ;;  %v1162_v17 = vshll.u32 %v3680_v11, 16  ;;  %v872_v31 = vsel %vm3599_vm15, %v867_v5, %v871_v37  ;;  %v716_v32 = vld [vmem:[#allocation2 + $0x18] sm:$0xf] }
  0x5d   : > { %v1158_v7 = vrot.slane %v4842_v48, 4  ;;  %v313_v2 = vsel %vm3287_vm4, 0, %v312_v26  ;;  %v4843_v30 = vor.u32 %v3464_v60, %v3436_v27  ;;  %v1385_v19 = vshll.u32 %v3421_v10, 16 }
  0x5e   : > { %1727 = vrot.lane.b32.xlu1 %v2936_v42, %s3198_s12  ;;  %v877_v47 = vrot.slane %v876_v41, 4  ;;  %v1164_v55 = vrot.slane %v1162_v17, 5  ;;  %314 = vst [vmem:[#allocation2 + $0x2c] sm:$0x1] %v313_v2  ;;  %v4844_v43 = vshrl.u32 %v3421_v10, 16  ;;  %v1155_v29 = vsel %vm3599_vm15, %v1150_v24, %v1154_v39 }
  0x5f   : > { %v3697_v15 = vrot.slane %v4843_v30, 4  ;;  %v1159_v9 = vor.u32 %v1158_v7, %v1154_v39  ;;  %v3705_v0 = vrot.slane %v1385_v19, 5  ;;  %v2912_v57 = vrot.slane %v1543_v6, 9 }
  0x60   : > { %v1391_v50 = vrot.slane %v4844_v43, 4  ;;  %v1577_v27 = vrot.slane %v3413_v61, 5  ;;  %v882_v60 = vsel %vm3599_vm15, %v877_v47, %v881_v54  ;;  %v740_v13 = vshrl.u32 %v712_v34, 16 }
  0x61   : > { %v1160_v62 = vrot.slane %v1159_v9, 4  ;;  %v743_v36 = vshll.u32 %v712_v34, 16  ;;  %v2933_v20 = vcombine.low %v872_v31, %v882_v60  ;;  %v1388_v37 = vsel %vm3599_vm15, %v3697_v15, %v3705_v0  ;;  %v3743_v31 = vld [vmem:[#allocation2 + $0x20] sm:$0x1] }
  0x62   : > { %v1392_v46 = vor.u32 %v1391_v50, %v3705_v0  ;;  %v1580_v53 = vrot.slane %v3641_v18, 5  ;;  %1695 = vrot.lane.b32.xlu1 %v2932_v21, %s3200_s16  ;;  %v1579_v59 = vrot.slane %v1577_v27, 4  ;;  %v742_v40 = vrot.slane %v740_v13, 4 }
  0x63   : > { %v1165_v61 = vsel %vm3599_vm15, %v1160_v62, %v1164_v55  ;;  %v745_v45 = vrot.slane %v743_v36, 5  ;;  %1697 = vrot.lane.b32.xlu0 %v2933_v20, %s3200_s16  ;;  %v3722_v58 = vsel %vm3454_vm11, %v2912_v57, %v1577_v27  ;;  %v749_v23 = vshll.u32 %v3663_v35, 16  ;;  %v1544_v55 = vld [vmem:[#allocation2 + $0x24] sm:$0xe] }
  0x64   : > { %v2956_v5 = vcombine.low %v1155_v29, %v1165_v61  ;;  %v753_v18 = vshrl.u32 %v3663_v35, 16  ;;  %v3726_v56 = vrot.slane %v1392_v46, 4  ;;  %v759_v54 = vshll.u32 %v3665_v25, 16  ;;  %v3735_v35 = vld [vmem:[#allocation2 + $0x1c] sm:$0xf]  ;;  %v3139_v27 = vld [vmem:[%s4823_s3] sm:$0xff]  }
  0x65   : > { %v746_v21 = vor.u32 %v745_v45, %v742_v40  ;;  %v322_v26 = vsel %vm3287_vm4, 0, %v321_v14  ;;  %v597_v24 = vld [vmem:[#allocation2 + $0x2c] sm:$0x1]  ;;  %v1581_v39 = vsel %vm3454_vm11, %v1579_v59, %v1580_v53  ;;  %v751_v6 = vrot.slane %v749_v23, 5  ;;  %v1242_v61 = vld [vmem:[#allocation2 + $0x3c] sm:$0xe]  ;;  %3034 = vmatprep.subr.bf16.mxu0 %v3139_v27  ;;  %3056 = vmatprep.subr.bf16.mxu1 %v3139_v27 }
  0x66   : > { %v755_v34 = vrot.slane %v753_v18, 4  ;;  %323 = vst [vmem:[#allocation2 + $0x50] sm:$0x1] %v322_v26  ;;  %v1173_v42 = vor.u32 %v3655_v16, %v3562_v28  ;;  %1943 = vrot.lane.b32.xlu1 %v2976_v22, %s3202_s23  ;;  %v4845_v25 = vrot.slane %v3344_v63, 4  ;;  %v761_v7 = vrot.slane %v759_v54, 5  ;;  %3035 = vmatpush3.bf16.msra.mxu0 %v3139_v27 }
  0x67   : > { %v747_v48 = vrot.slane %v746_v21, 4  ;;  %v1176_v17 = vshll.u32 %v3542_v51, 16  ;;  %v4846_v28 = vshrl.u32 %v3542_v51, 16  ;;  %v788_v19 = vshrl.u32 %v716_v32, 16  ;;  %3059 = vmatpush3.bf16.msra.mxu1 %v3139_v27 }
  0x68   : > { %v598_v41 = vsel %vm3278_vm2, %v4845_v25, %v597_v24  ;;  %v756_v2 = vor.u32 %v755_v34, %v751_v6  ;;  %v3745_v30 = vrot.slane %v1173_v42, 4  ;;  %v791_v47 = vshll.u32 %v716_v32, 16  ;;  %v933_v32 = vld [vmem:[#allocation2 + $0x18] sm:$0xe] }
  0x69   : > { %599 = vst [vmem:[#allocation2 + $0x2c] sm:$0x1] %v598_v41  ;;  %v1182_v16 = vrot.slane %v4846_v28, 4  ;;  %v752_v63 = vsel %vm3599_vm15, %v747_v48, %v751_v6  ;;  %v3751_v22 = vrot.slane %v1176_v17, 5  ;;  %v797_v9 = vshll.u32 %v3735_v35, 16  ;;  %v3140_v28 = vld [vmem:[%s4823_s3 + $0x8] sm:$0xff]  }
  0x6a   : > { %v757_v43 = vrot.slane %v756_v2, 4  ;;  %v790_v50 = vrot.slane %v788_v19, 4  ;;  %v801_v29 = vshrl.u32 %v3735_v35, 16  ;;  %v807_v57 = vshll.u32 %v3743_v31, 16  ;;  %1823 = vrot.lane.b32.xlu1 %v2956_v5, %s3201_s17  ;;  %v718_v2 = vld [vmem:[#allocation2 + $0x24] sm:$0xf]  ;;  %3036 = vmatprep.subr.bf16.mxu0 %v3140_v28 }
  0x6b   : > { %v2984_v60 = vcombine.low %v3722_v58, %v1581_v39  ;;  %v1183_v62 = vor.u32 %v1182_v16, %v3751_v22  ;;  %v793_v13 = vrot.slane %v791_v47, 5  ;;  %v799_v36 = vrot.slane %v797_v9, 5  ;;  %v3797_v47 = vld [vmem:[#allocation2 + $0x28] sm:$0xf]  ;;  %3037 = vmatpush3.bf16.msra.mxu0 %v3140_v28  ;;  %3057 = vmatprep.subr.bf16.mxu1 %v3140_v28 }
  0x6c   : > { %v762_v20 = vsel %vm3599_vm15, %v757_v43, %v761_v7  ;;  %v1179_v46 = vsel %vm3599_vm15, %v3745_v30, %v3751_v22  ;;  %v803_v53 = vrot.slane %v801_v29, 4  ;;  %v2913_v14 = vrot.slane %v1544_v55, 9  ;;  %v3813_v29 = vld [vmem:[#allocation2 + $0x48] sm:$0xf]  ;;  %3060 = vmatpush3.bf16.msra.mxu1 %v3140_v28 }
  0x6d   : > { %v3768_v59 = vcombine.low %v752_v63, %v762_v20  ;;  %v618_v40 = vld [vmem:[#allocation2 + $0x50] sm:$0x1]  ;;  %v794_v45 = vor.u32 %v793_v13, %v790_v50  ;;  %v809_v5 = vrot.slane %v807_v57, 5  ;;  %v1584_v58 = vrot.slane %v3421_v10, 5 }
  0x6e   : > { %v4847_v23 = vrot.slane %v3450_v52, 4  ;;  %v3775_v21 = vrot.slane %v1183_v62, 4  ;;  %v804_v54 = vor.u32 %v803_v53, %v799_v36  ;;  %v1300_v26 = vrot.slane %v3501_v49, 5  ;;  %1983 = vrot.lane.b32.xlu1 %v2984_v60, %s3203_s26 }
  0x6f   : > { %v795_v39 = vrot.slane %v794_v45, 4  ;;  %v1586_v10 = vrot.slane %v1584_v58, 4  ;;  %v2908_v6 = vrot.slane %v1242_v61, 9  ;;  %v1303_v34 = vrot.slane %v3680_v11, 5 }
  0x70   : > { %v619_v18 = vsel %vm3278_vm2, %v4847_v23, %v618_v40  ;;  %v1344_v24 = vld [vmem:[#allocation2 + $0x2c] sm:$0x1]  ;;  %v805_v42 = vrot.slane %v804_v54, 4  ;;  %v3782_v25 = vsel %vm3454_vm11, %v2913_v14, %v1584_v58  ;;  %v1302_v48 = vrot.slane %v1300_v26, 4  ;;  %v1243_v58 = vld [vmem:[#allocation2 + $0x48] sm:$0xe] }
  0x71   : > { %620 = vst [vmem:[#allocation2 + $0x50] sm:$0x1] %v619_v18  ;;  %v1395_v52 = vshll.u32 %v1344_v24, 16  ;;  %v1587_v41 = vrot.slane %v1344_v24, 5  ;;  %v800_v49 = vsel %vm3599_vm15, %v795_v39, %v799_v36  ;;  %v2898_v7 = vrot.slane %v933_v32, 9 }
  0x72   : > { %v982_v17 = vrot.slane %v3735_v35, 5  ;;  %v810_v16 = vsel %vm3599_vm15, %v805_v42, %v809_v5  ;;  %v985_v63 = vrot.slane %v3743_v31, 5  ;;  %v3805_v55 = vsel %vm3454_vm11, %v2908_v6, %v1300_v26  ;;  %v3811_v50 = vld [vmem:[#allocation2 + $0x2c] sm:$0x1]  ;;  %v3843_v32 = vld [vmem:[#allocation2 + $0x24] sm:$0xf] }
  0x73   : > { %v1397_v11 = vrot.slane %v1395_v52, 5  ;;  %v3794_v19 = vsel %vm3454_vm11, %v1586_v10, %v1587_v41  ;;  %v3799_v9 = vcombine.low %v800_v49, %v810_v16  ;;  %v3809_v43 = vsel %vm3454_vm11, %v1302_v48, %v1303_v34  ;;  %v934_v16 = vld [vmem:[#allocation2 + $0x24] sm:$0xe] }
  0x74   : > { %v2985_v35 = vcombine.low %v3782_v25, %v3794_v19  ;;  %v3820_v57 = vsel %vm3454_vm11, %v2898_v7, %v982_v17  ;;  %v984_v27 = vrot.slane %v982_v17, 4  ;;  %v812_v60 = vshrl.u32 %v718_v2, 16  ;;  %v3852_v17 = vld [vmem:[#allocation2 + $0x28] sm:$0xf] }
  0x75   : > { %v1398_v31 = vsel %vm3599_vm15, %v3726_v56, %v1397_v11  ;;  %v815_v13 = vshll.u32 %v718_v2, 16  ;;  %v821_v36 = vshll.u32 %v3797_v47, 16  ;;  %v825_v20 = vshrl.u32 %v3797_v47, 16  ;;  %v3829_v56 = vld [vmem:[#allocation2 + $0x4c] sm:$0xf] }
  0x76   : > { %v2977_v62 = vcombine.low %v1388_v37, %v1398_v31  ;;  %v3833_v14 = vsel %vm3454_vm11, %v984_v27, %v985_v63  ;;  %v814_v61 = vrot.slane %v812_v60, 4  ;;  %v831_v40 = vshll.u32 %v3811_v50, 16  ;;  %v292_v60 = vld [vmem:[#allocation2 + $0x54] sm:$0x1] }
  0x77   : > { %v1448_v45 = vshrl.u32 %v3813_v29, 16  ;;  %v2964_v0 = vcombine.low %v3805_v55, %v3809_v43  ;;  %v817_v37 = vrot.slane %v815_v13, 5  ;;  %v823_v5 = vrot.slane %v821_v36, 5 }
  0x78   : > { %v1043_v53 = vld [vmem:[#allocation2 + $0x50] sm:$0x1]  ;;  %1945 = vrot.lane.b32.xlu0 %v2977_v62, %s3202_s23  ;;  %v2938_v23 = vcombine.low %v3820_v57, %v3833_v14  ;;  %v827_v18 = vrot.slane %v825_v20, 4  ;;  %v833_v54 = vrot.slane %v831_v40, 5  ;;  %v1451_v26 = vshll.u32 %v3813_v29, 16 }
  0x79   : > { %v1186_v15 = vshll.u32 %v1043_v53, 16  ;;  %v818_v39 = vor.u32 %v817_v37, %v814_v61  ;;  %v1450_v10 = vrot.slane %v1448_v45, 4  ;;  %v1461_v6 = vshrl.u32 %v3829_v56, 16  ;;  %v3879_v27 = vld [vmem:[#allocation2 + $0x50] sm:$0x1] }
  0x7a   : > { %v828_v34 = vor.u32 %v827_v18, %v823_v5  ;;  %v1453_v52 = vrot.slane %v1451_v26, 5  ;;  %v2909_v42 = vrot.slane %v1243_v58, 9  ;;  %v1307_v41 = vrot.slane %v3542_v51, 5 }
  0x7b   : > { %v1188_v24 = vrot.slane %v1186_v15, 5  ;;  %v819_v48 = vrot.slane %v818_v39, 4  ;;  %v1310_v7 = vrot.slane %v1043_v53, 5  ;;  %v1095_v2 = vshrl.u32 %v3843_v32, 16 }
  0x7c   : > { %1687 = vrot.lane.b32.xlu0 %v3768_v59, %s3200_s16  ;;  %v829_v51 = vrot.slane %v828_v34, 4  ;;  %v3862_v59 = vsel %vm3454_vm11, %v2909_v42, %v1307_v41  ;;  %v1309_v11 = vrot.slane %v1307_v41, 4  ;;  %v2972_v63 = vcombine.low %v3813_v29, %v3829_v56  ;;  %v3915_v42 = vld [vmem:[#allocation2 + $0x30] sm:$0xf] }
  0x7d   : > { %v1189_v49 = vsel %vm3599_vm15, %v3775_v21, %v1188_v24  ;;  %v824_v21 = vsel %vm3599_vm15, %v819_v48, %v823_v5  ;;  %v1097_v55 = vrot.slane %v1095_v2, 4  ;;  %v1098_v43 = vshll.u32 %v3843_v32, 16 }
  0x7e   : > { %v2957_v28 = vcombine.low %v1179_v46, %v1189_v49  ;;  %v834_v30 = vsel %vm3599_vm15, %v829_v51, %v833_v54  ;;  %v3874_v22 = vsel %vm3454_vm11, %v1309_v11, %v1310_v7  ;;  %v1108_v46 = vshrl.u32 %v3852_v17, 16 }
  0x7f   : > { %v2946_v31 = vcombine.low %v3843_v32, %v3852_v17  ;;  %v2931_v62 = vcombine.low %v824_v21, %v834_v30  ;;  %v2965_v13 = vcombine.low %v3862_v59, %v3874_v22  ;;  %v2899_v36 = vrot.slane %v934_v16, 9  ;;  %v3926_v59 = vld [vmem:[#allocation2 + $0x34] sm:$0xf]  ;;  %v1547_v16 = vld [vmem:[#allocation2 + $0x48] sm:$0xe] }
  0x80   : > { %1825 = vrot.lane.b32.xlu1 %v2957_v28, %s3201_s17  ;;  %1691 = vrot.lane.b32.xlu0 %v3799_v9, %s3200_s16  ;;  %v989_v20 = vrot.slane %v3797_v47, 5  ;;  %v992_v53 = vrot.slane %v3811_v50, 5  ;;  %v1454_v61 = vor.u32 %v1453_v52, %v1450_v10  ;;  %v1457_v40 = vshll.u32 %v3829_v56, 16 }
  0x81   : > { %v1463_v45 = vrot.slane %v1461_v6, 4  ;;  %v1100_v15 = vrot.slane %v1098_v43, 5  ;;  %v1467_v5 = vshll.u32 %v3879_v27, 16  ;;  %v293_v9 = vsel %vm3278_vm2, 0, %v292_v60 }
  0x82   : > { %v991_v37 = vrot.slane %v989_v20, 4  ;;  %v1455_v58 = vrot.slane %v1454_v61, 4  ;;  %v1459_v47 = vrot.slane %v1457_v40, 5  ;;  %294 = vst [vmem:[#allocation2 + $0x54] sm:$0x1] %v293_v9  ;;  %v518_v50 = vshrl.u32 %v3550_v4, 16 }
  0x83   : > { %v521_v18 = vshll.u32 %v3550_v4, 16  ;;  %v3900_v54 = vsel %vm3454_vm11, %v2899_v36, %v989_v20  ;;  %v526_v25 = vshrl.u32 %v3556_v12, 16  ;;  %v529_v19 = vshll.u32 %v3556_v12, 16 }
  0x84   : > { %1985 = vrot.lane.b32.xlu1 %v2985_v35, %s3203_s26  ;;  %1863 = vrot.lane.b32.xlu0 %v2964_v0, %s3199_s15  ;;  %v3904_v26 = vsel %vm3454_vm11, %v991_v37, %v992_v53  ;;  %v3908_v35 = vld [vmem:[#allocation2 + $0x2c] sm:$0x1]  ;;  %v1460_v24 = vsel %vm3599_vm15, %v1455_v58, %v1459_v47  ;;  %v1464_v4 = vor.u32 %v1463_v45, %v1459_v47  ;;  %v1469_v39 = vrot.slane %v1467_v5, 5  ;;  %v724_v53 = vld [vmem:[#allocation2 + $0x48] sm:$0xf] }
  0x85   : > { %v520_v0 = vrot.slane %v518_v50, 7  ;;  %v3912_v10 = vrot.slane %v526_v25, 7  ;;  %v1101_v6 = vor.u32 %v1100_v15, %v1097_v55  ;;  %v1104_v34 = vshll.u32 %v3852_v17, 16  ;;  %v3953_v58 = vld [vmem:[#allocation2 + $0x4c] sm:$0xf] }
  0x86   : > { %v1110_v52 = vrot.slane %v1108_v46, 4  ;;  %v1465_v12 = vrot.slane %v1464_v4, 4  ;;  %v1114_v48 = vshll.u32 %v3908_v35, 16  ;;  %v2939_v7 = vcombine.low %v3900_v54, %v3904_v26  ;;  %v324_v46 = vld [vmem:[#allocation2 + $0x5c] sm:$0x1] }
  0x87   : > { %v523_v41 = vor.u32 %v521_v18, %v520_v0  ;;  %v524_v49 = vrot.slane %v520_v0, 4  ;;  %v531_v2 = vor.u32 %v529_v19, %v3912_v10  ;;  %v1102_v28 = vrot.slane %v1101_v6, 4  ;;  %v3971_v19 = vld [vmem:[#allocation2 + $0x50] sm:$0x1] }
  0x88   : > { %1731 = vrot.lane.b32.xlu1 %v2938_v23, %s3198_s12  ;;  %1693 = vrot.lane.b32.xlu0 %v2931_v62, %s3200_s16  ;;  %v1106_v51 = vrot.slane %v1104_v34, 5  ;;  %v1470_v57 = vsel %vm3599_vm15, %v1465_v12, %v1469_v39  ;;  %v533_v14 = vrot.slane %v3912_v10, 4  ;;  %v1119_v23 = vshrl.u32 %v3915_v42, 16 }
  0x89   : > { %v1122_v11 = vshll.u32 %v3915_v42, 16  ;;  %v2980_v21 = vcombine.low %v1460_v24, %v1470_v57  ;;  %v532_v55 = vsel %vm3324_vm7, %v524_v49, %v531_v2  ;;  %v621_v43 = vld [vmem:[#allocation2 + $0x54] sm:$0xf]  ;;  %v1116_v22 = vrot.slane %v1114_v48, 5 }
  0x8a   : > { %v1111_v30 = vor.u32 %v1110_v52, %v1106_v51  ;;  %v622_v60 = vsel %vm3331_vm8, %v523_v41, %v621_v43  ;;  %624 = vst.msk [vmem:[#allocation2 + $0x58] sm:$0xf] %vm576_vm6, %v532_v55  ;;  %v1121_v62 = vrot.slane %v1119_v23, 4  ;;  %v1132_v20 = vshrl.u32 %v3926_v59, 16  ;;  %v1240_v55 = vld [vmem:[#allocation2 + $0x24] sm:$0xe] }
  0x8b   : > { %v1124_v36 = vrot.slane %v1122_v11, 5  ;;  %623 = vst [vmem:[#allocation2 + $0x54] sm:$0xf] %v622_v60  ;;  %v1107_v61 = vsel %vm3599_vm15, %v1102_v28, %v1106_v51  ;;  %v2916_v45 = vrot.slane %v1547_v16, 9  ;;  %v1605_v29 = vrot.slane %v3829_v56, 5 }
  0x8c   : > { %1911 = vrot.lane.b32.xlu1 %v2972_v63, %s3197_s10  ;;  %1865 = vrot.lane.b32.xlu0 %v2965_v13, %s3199_s15  ;;  %v1112_v40 = vrot.slane %v1111_v30, 4  ;;  %v3947_v63 = vld [vmem:[#allocation2 + $0x38] sm:$0x1]  ;;  %v1608_v15 = vrot.slane %v3879_v27, 5  ;;  %v325_v37 = vsel %vm3287_vm4, 0, %v324_v46  ;;  %v1128_v9 = vshll.u32 %v3926_v59, 16 }
  0x8d   : > { %v1125_v5 = vor.u32 %v1124_v36, %v1121_v62  ;;  %v3959_v47 = vsel %vm3454_vm11, %v2916_v45, %v1605_v29  ;;  %v1607_v56 = vrot.slane %v1605_v29, 4  ;;  %326 = vst [vmem:[#allocation2 + $0x5c] sm:$0x1] %v325_v37  ;;  %v1134_v50 = vrot.slane %v1132_v20, 4 }
  0x8e   : > { %v1117_v13 = vsel %vm3599_vm15, %v1112_v40, %v1116_v22  ;;  %v2947_v18 = vcombine.low %v3915_v42, %v3926_v59  ;;  %v1130_v54 = vrot.slane %v1128_v9, 5  ;;  %v1138_v26 = vshll.u32 %v3947_v63, 16  ;;  %v937_v9 = vld [vmem:[#allocation2 + $0x48] sm:$0xe] }
  0x8f   : > { %v2954_v27 = vcombine.low %v1107_v61, %v1117_v13  ;;  %v1609_v25 = vsel %vm3454_vm11, %v1607_v56, %v1608_v15  ;;  %v884_v24 = vshrl.u32 %v724_v53, 16  ;;  %v887_v4 = vshll.u32 %v724_v53, 16 }
  0x90   : > { %1779 = vrot.lane.b32.xlu1 %v2946_v31, %s3196_s9  ;;  %1733 = vrot.lane.b32.xlu0 %v2939_v7, %s3198_s12  ;;  %v893_v39 = vshll.u32 %v3953_v58, 16  ;;  %v2988_v32 = vcombine.low %v3959_v47, %v1609_v25  ;;  %v1126_v31 = vrot.slane %v1125_v5, 4  ;;  %v1135_v0 = vor.u32 %v1134_v50, %v1130_v54 }
  0x91   : > { %v1140_v6 = vrot.slane %v1138_v26, 5  ;;  %v1338_v34 = vld [vmem:[#allocation2 + $0x58] sm:$0xf]  ;;  %v886_v52 = vrot.slane %v884_v24, 4  ;;  %v889_v42 = vrot.slane %v887_v4, 5  ;;  %v897_v41 = vshrl.u32 %v3953_v58, 16 }
  0x92   : > { %v895_v12 = vrot.slane %v893_v39, 5  ;;  %v1337_v49 = vld [vmem:[#allocation2 + $0x54] sm:$0xf]  ;;  %v1485_v48 = vshrl.u32 %v1338_v34, 16  ;;  %v1481_v7 = vshll.u32 %v1338_v34, 16  ;;  %v1136_v2 = vrot.slane %v1135_v0, 4 }
  0x93   : > { %v903_v28 = vshll.u32 %v3971_v19, 16  ;;  %v1472_v51 = vshrl.u32 %v1337_v49, 16  ;;  %v1475_v57 = vshll.u32 %v1337_v49, 16  ;;  %v2973_v23 = vcombine.low %v1337_v49, %v1338_v34  ;;  %v1548_v16 = vld [vmem:[#allocation2 + $0x54] sm:$0xe] }
  0x94   : > { %1951 = vrot.lane.b32.xlu1 %v2980_v21, %s3202_s23  ;;  %v890_v11 = vor.u32 %v889_v42, %v886_v52  ;;  %v625_v43 = vld [vmem:[#allocation2 + $0x5c] sm:$0x1]  ;;  %v3978_v30 = vrot.slane %v1481_v7, 5  ;;  %v1487_v22 = vrot.slane %v1485_v48, 4  ;;  %v1131_v46 = vsel %vm3599_vm15, %v1126_v31, %v1130_v54  ;;  %v3997_v54 = vld [vmem:[#allocation2 + $0x54] sm:$0xf] }
  0x95   : > { %v899_v21 = vrot.slane %v897_v41, 4  ;;  %v1474_v60 = vrot.slane %v1472_v51, 4  ;;  %v1477_v62 = vrot.slane %v1475_v57, 5  ;;  %1913 = vrot.lane.b32.xlu0 %v2973_v23, %s3197_s10  ;;  %v626_v36 = vsel %vm3278_vm2, %v533_v14, %v625_v43  ;;  %v3999_v26 = vld [vmem:[#allocation2 + $0x58] sm:$0xf] }
  0x96   : > { %v1141_v20 = vsel %vm3599_vm15, %v1136_v2, %v1140_v6  ;;  %627 = vst [vmem:[#allocation2 + $0x5c] sm:$0x1] %v626_v36  ;;  %v1488_v53 = vor.u32 %v1487_v22, %v3978_v30  ;;  %v891_v61 = vrot.slane %v890_v11, 4  ;;  %v905_v45 = vrot.slane %v903_v28, 5  ;;  %v1331_v28 = vld [vmem:[#allocation2 + $0x30] sm:$0xf] }
  0x97   : > { %v900_v40 = vor.u32 %v899_v21, %v895_v12  ;;  %v1478_v29 = vor.u32 %v1477_v62, %v1474_v60  ;;  %v2917_v15 = vrot.slane %v1548_v16, 9  ;;  %v1612_v37 = vrot.slane %v1338_v34, 5  ;;  %v4032_v22 = vld [vmem:[#allocation2 + $0x34] sm:$0xf]  ;;  %v1241_v36 = vld [vmem:[#allocation2 + $0x30] sm:$0xe] }
  0x98   : > { %1819 = vrot.lane.b32.xlu1 %v2954_v27, %s3201_s17  ;;  %v2906_v5 = vrot.slane %v1240_v55, 9  ;;  %v2955_v10 = vcombine.low %v1131_v46, %v1141_v20  ;;  %v1286_v14 = vrot.slane %v3852_v17, 5  ;;  %v1489_v56 = vrot.slane %v1488_v53, 4 }
  0x99   : > { %v901_v13 = vrot.slane %v900_v40, 4  ;;  %1781 = vrot.lane.b32.xlu0 %v2947_v18, %s3196_s9  ;;  %v1479_v47 = vrot.slane %v1478_v29, 4  ;;  %v896_v50 = vsel %vm3599_vm15, %v891_v61, %v895_v12  ;;  %v1613_v27 = vsel %vm3454_vm11, %v2917_v15, %v1612_v37 }
  0x9a   : > { %v1614_v17 = vrot.slane %v1612_v37, 4  ;;  %v1289_v18 = vrot.slane %v3908_v35, 5  ;;  %v2902_v24 = vrot.slane %v937_v9, 9  ;;  %v4007_v4 = vsel %vm3454_vm11, %v2906_v5, %v1286_v14 }
  0x9b   : > { %v906_v25 = vsel %vm3599_vm15, %v901_v13, %v905_v45  ;;  %v1288_v39 = vrot.slane %v1286_v14, 4  ;;  %v1010_v31 = vrot.slane %v3953_v58, 5  ;;  %v1013_v0 = vrot.slane %v3971_v19, 5  ;;  %v4036_v45 = vld [vmem:[#allocation2 + $0x54] sm:$0xf] }
  0x9c   : > { %1991 = vrot.lane.b32.xlu1 %v2988_v32, %s3203_s26  ;;  %v1484_v32 = vsel %vm3599_vm15, %v1479_v47, %v3978_v30  ;;  %v908_v6 = vshrl.u32 %v3997_v54, 16  ;;  %v911_v34 = vshll.u32 %v3997_v54, 16  ;;  %v917_v35 = vshll.u32 %v3999_v26, 16 }
  0x9d   : > { %v1348_v52 = vld [vmem:[#allocation2 + $0x5c] sm:$0x1]  ;;  %v2934_v42 = vcombine.low %v896_v50, %v906_v25  ;;  %v1011_v12 = vsel %vm3454_vm11, %v2902_v24, %v1010_v31  ;;  %v1012_v41 = vrot.slane %v1010_v31, 4  ;;  %v921_v58 = vshrl.u32 %v3999_v26, 16  ;;  %v938_v25 = vld [vmem:[#allocation2 + $0x54] sm:$0xe] }
  0x9e   : > { %v4019_v49 = vld [vmem:[#allocation2 + $0x5c] sm:$0x1]  ;;  %v1491_v19 = vshll.u32 %v1348_v52, 16  ;;  %v1615_v48 = vrot.slane %v1348_v52, 5  ;;  %v910_v7 = vrot.slane %v908_v6, 4  ;;  %v913_v2 = vrot.slane %v911_v34, 5 }
  0x9f   : > { %v1014_v51 = vsel %vm3454_vm11, %v1012_v41, %v1013_v0  ;;  %v919_v57 = vrot.slane %v917_v35, 5  ;;  %v923_v23 = vrot.slane %v921_v58, 4  ;;  %v927_v11 = vshll.u32 %v4019_v49, 16  ;;  %v4061_v6 = vld [vmem:[#allocation2 + $0x3c] sm:$0xf] }
  0xa0   : > { %1821 = vrot.lane.b32.xlu1 %v2955_v10, %s3201_s17  ;;  %v1493_v16 = vrot.slane %v1491_v19, 5  ;;  %v1616_v55 = vsel %vm3454_vm11, %v1614_v17, %v1615_v48  ;;  %v4030_v43 = vsel %vm3454_vm11, %v1288_v39, %v1289_v18  ;;  %v914_v30 = vor.u32 %v913_v2, %v910_v7  ;;  %v4052_v39 = vld [vmem:[#allocation2 + $0x38] sm:$0x1]  ;;  %v4072_v48 = vld [vmem:[#allocation2 + $0x40] sm:$0xf] }
  0xa1   : > { %v2989_v46 = vcombine.low %v1613_v27, %v1616_v55  ;;  %v924_v21 = vor.u32 %v923_v23, %v919_v57  ;;  %v929_v60 = vrot.slane %v927_v11, 5  ;;  %v1400_v62 = vshrl.u32 %v1331_v28, 16  ;;  %v4082_v11 = vld [vmem:[#allocation2 + $0x5c] sm:$0x1] }
  0xa2   : > { %v1494_v20 = vsel %vm3599_vm15, %v1489_v56, %v1493_v16  ;;  %v2942_v53 = vcombine.low %v1011_v12, %v1014_v51  ;;  %v915_v61 = vrot.slane %v914_v30, 4  ;;  %v1403_v40 = vshll.u32 %v1331_v28, 16 }
  0xa3   : > { %v2981_v29 = vcombine.low %v1484_v32, %v1494_v20  ;;  %v925_v15 = vrot.slane %v924_v21, 4  ;;  %v1402_v37 = vrot.slane %v1400_v62, 4  ;;  %v1413_v5 = vshrl.u32 %v4032_v22, 16  ;;  %v349_v21 = vld [vmem:[%s3309_s28 + $0x70] sm:$0xff] }
  0xa4   : > { %1993 = vrot.lane.b32.xlu1 %v2989_v46, %s3203_s26  ;;  %v920_v9 = vsel %vm3599_vm15, %v915_v61, %v919_v57  ;;  %v1405_v10 = vrot.slane %v1403_v40, 5  ;;  %v2907_v13 = vrot.slane %v1241_v36, 9  ;;  %v1293_v14 = vrot.slane %v3926_v59, 5  ;;  %v295_v46 = vld [vmem:[#allocation2 + $0x60] sm:$0x1] }
  0xa5   : > { %1953 = vrot.lane.b32.xlu0 %v2981_v29, %s3202_s23  ;;  %v930_v47 = vsel %vm3599_vm15, %v925_v15, %v929_v60  ;;  %v1296_v56 = vrot.slane %v3947_v63, 5  ;;  %v1191_v50 = vshrl.u32 %v4036_v45, 16  ;;  %v1194_v27 = vshll.u32 %v4036_v45, 16  ;;  %v4059_v63 = vld [vmem:[#allocation2 + $0x58] sm:$0xf] }
  0xa6   : > { %v2962_v17 = vcombine.low %v4007_v4, %v4030_v43  ;;  %v2970_v18 = vcombine.low %v1331_v28, %v4032_v22  ;;  %v1295_v24 = vrot.slane %v1293_v14, 4  ;;  %v2935_v59 = vcombine.low %v920_v9, %v930_v47  ;;  %v350_v60 = vld [vmem:[%s3309_s28 + $0x78] sm:$0xff]  ;;  %v1545_v61 = vld [vmem:[#allocation2 + $0x30] sm:$0xe]  ;;  %s675_s28 = scalar_select %p252_p9, 1, 0 }
  0xa7   : > { %v4057_v31 = vsel %vm3454_vm11, %v2907_v13, %v1293_v14  ;;  %v1193_v0 = vrot.slane %v1191_v50, 4  ;;  %v1196_v32 = vrot.slane %v1194_v27, 5  ;;  %v2903_v34 = vrot.slane %v938_v25, 9 }
  0xa8   : > { %1739 = vrot.lane.b32.xlu1 %v2942_v53, %s3198_s12  ;;  %v4065_v4 = vsel %vm3454_vm11, %v1295_v24, %v1296_v56  ;;  %v1017_v35 = vrot.slane %v3999_v26, 5  ;;  %v1406_v52 = vor.u32 %v1405_v10, %v1402_v37  ;;  %v1020_v12 = vrot.slane %v4019_v49, 5  ;;  %v4104_v37 = vpop.permute.xlu1 %1777 }
  0xa9   : > { %1699 = vrot.lane.b32.xlu0 %v2934_v42, %s3200_s16  ;;  %v1409_v41 = vshll.u32 %v4032_v22, 16  ;;  %v1415_v58 = vrot.slane %v1413_v5, 4  ;;  %v1419_v19 = vshll.u32 %v4052_v39, 16  ;;  %v1204_v7 = vshrl.u32 %v4059_v63, 16 }
  0xaa   : > { %v1019_v2 = vrot.slane %v1017_v35, 4  ;;  %v1407_v28 = vrot.slane %v1406_v52, 4  ;;  %v1424_v51 = vshrl.u32 %v4061_v6, 16  ;;  %v2963_v42 = vcombine.low %v4057_v31, %v4065_v4  ;;  %v4117_v52 = vpop.permute.xlu0 %1775 }
  0xab   : > { %v2950_v49 = vcombine.low %v4036_v45, %v4059_v63  ;;  %v1411_v57 = vrot.slane %v1409_v41, 5  ;;  %v1427_v23 = vshll.u32 %v4061_v6, 16  ;;  %v4086_v16 = vsel %vm3454_vm11, %v2903_v34, %v1017_v35 }
  0xac   : > { %1907 = vrot.lane.b32.xlu1 %v2970_v18, %s3197_s10  ;;  %v1421_v55 = vrot.slane %v1419_v19, 5  ;;  %v1437_v43 = vshrl.u32 %v4072_v48, 16  ;;  %v1197_v30 = vor.u32 %v1196_v32, %v1193_v0  ;;  %v4094_v62 = vsel %vm3454_vm11, %v1019_v2, %v1020_v12  ;;  %v4125_v19 = vpop.permute.xlu1 %1903 }
  0xad   : > { %1859 = vrot.lane.b32.xlu0 %v2962_v17, %s3199_s15  ;;  %v1412_v36 = vsel %vm3599_vm15, %v1407_v28, %v1411_v57  ;;  %v1416_v20 = vor.u32 %v1415_v58, %v1411_v57  ;;  %v4098_v53 = vrot.slane %v1424_v51, 4  ;;  %v4100_v40 = vrot.slane %v1427_v23, 5  ;;  %v1244_v57 = vld [vmem:[#allocation2 + $0x54] sm:$0xe] }
  0xae   : > { %v1200_v45 = vshll.u32 %v4059_v63, 16  ;;  %v1206_v29 = vrot.slane %v1204_v7, 4  ;;  %v1210_v15 = vshll.u32 %v4082_v11, 16  ;;  %v296_v9 = vsel %vm3278_vm2, 0, %v295_v46 }
  0xaf   : > { %v1417_v5 = vrot.slane %v1416_v20, 4  ;;  %v3021_v10 = vpack.c.bf16 %v349_v21, %v349_v21  ;;  %v3022_v13 = vpack.c.bf16 %v350_v60, %v350_v60  ;;  %v1198_v14 = vrot.slane %v1197_v30, 4  ;;  %297 = vst [vmem:[#allocation2 + $0x60] sm:$0x1] %v296_v9  ;;  %v4162_v9 = vpop.permute.xlu0 %1905 }
  0xb0   : > { %1787 = vrot.lane.b32.xlu1 %v2950_v49, %s3196_s9  ;;  %v1202_v47 = vrot.slane %v1200_v45, 5  ;;  %v2914_v56 = vrot.slane %v1545_v61, 9  ;;  %v1591_v50 = vrot.slane %v4032_v22, 5  ;;  %v1212_v0 = vrot.slane %v1210_v15, 5  ;;  %v4131_v49 = vld [vmem:[#allocation2 + $0x44] sm:$0x1] }
  0xb1   : > { %1701 = vrot.lane.b32.xlu0 %v2935_v59, %s3200_s16  ;;  %v1422_v27 = vsel %vm3599_vm15, %v1417_v5, %v1421_v55  ;;  %v535_v25 = vshrl.u32 %v3021_v10, 16  ;;  %v538_v17 = vshll.u32 %v3021_v10, 16  ;;  %v543_v18 = vshrl.u32 %v3022_v13, 16  ;;  %v327_v55 = vld [vmem:[#allocation2 + $0x68] sm:$0x1]  ;;  %v363_v15 = vld [vmem:[%s3579_s14] sm:$0xff] }
  0xb2   : > { %v2978_v24 = vcombine.low %v1412_v36, %v1422_v27  ;;  %v1207_v31 = vor.u32 %v1206_v29, %v1202_v47  ;;  %v546_v32 = vshll.u32 %v3022_v13, 16  ;;  %v2943_v4 = vcombine.low %v4086_v16, %v4094_v62  ;;  %v364_v5 = vld [vmem:[%s3579_s14 + $0x8] sm:$0xff]  ;;  %s3207_s14 = smov 56   ;;  %s3209_s16 = smov 72  }
  0xb3   : > { %v537_v34 = vrot.slane %v535_v25, 7  ;;  %v4115_v35 = vrot.slane %v543_v18, 7  ;;  %v1593_v22 = vrot.slane %v1591_v50, 4  ;;  %v1203_v59 = vsel %vm3599_vm15, %v1198_v14, %v1202_v47  ;;  %v330_v14 = vld [vmem:[#allocation2 + $0x74] sm:$0x1]  ;;  %v4164_v47 = vpop.permute.xlu1 %1783 }
  0xb4   : > { %1947 = vrot.lane.b32.xlu1 %v2978_v24, %s3202_s23  ;;  %v1208_v12 = vrot.slane %v1207_v31, 4  ;;  %v1594_v41 = vrot.slane %v4052_v39, 5  ;;  %v1433_v58 = vshll.u32 %v4072_v48, 16  ;;  %v1592_v51 = vsel %vm3454_vm11, %v2914_v56, %v1591_v50 }
  0xb5   : > { %1861 = vrot.lane.b32.xlu0 %v2963_v42, %s3199_s15  ;;  %v540_v7 = vor.u32 %v538_v17, %v537_v34  ;;  %v541_v2 = vrot.slane %v537_v34, 4  ;;  %v548_v28 = vor.u32 %v546_v32, %v4115_v35  ;;  %v1430_v42 = vor.u32 %v4100_v40, %v4098_v53 }
  0xb6   : > { %v1213_v39 = vsel %vm3599_vm15, %v1208_v12, %v1212_v0  ;;  %v1595_v23 = vsel %vm3454_vm11, %v1593_v22, %v1594_v41  ;;  %v4139_v16 = vrot.slane %v1433_v58, 5  ;;  %v2971_v30 = vcombine.low %v4061_v6, %v4072_v48  ;;  %v628_v60 = vld [vmem:[#allocation2 + $0x60] sm:$0xf]  ;;  %v298_v6 = vld [vmem:[#allocation2 + $0x6c] sm:$0x1]  ;;  %v4184_v12 = vpop.permute.xlu0 %1785 }
  0xb7   : > { %v2958_v46 = vcombine.low %v1203_v59, %v1213_v39  ;;  %v549_v21 = vsel %vm3324_vm7, %v541_v2, %v548_v28  ;;  %v1439_v62 = vrot.slane %v1437_v43, 4  ;;  %v629_v36 = vsel %vm3331_vm8, %v540_v7, %v628_v60  ;;  %v4177_v0 = vld [vmem:[#allocation2 + $0x3c] sm:$0xe]  ;;  %v4186_v7 = vpop.permute.xlu1 %1729 }
  0xb8   : > { %631 = vst.msk [vmem:[#allocation2 + $0x64] sm:$0xf] %vm576_vm6, %v549_v21  ;;  %v2986_v20 = vcombine.low %v1592_v51, %v1595_v23  ;;  %v1443_v53 = vshll.u32 %v4131_v49, 16  ;;  %v2910_v61 = vrot.slane %v1244_v57, 9  ;;  %630 = vst [vmem:[#allocation2 + $0x60] sm:$0xf] %v629_v36  ;;  %v674_v27 = vpack.c.bf16 %v364_v5, %v363_v15 }
  0xb9   : > { %1741 = vrot.lane.b32.xlu0 %v2943_v4, %s3198_s12  ;;  %1827 = vrot.lane.b32.xlu1 %v2958_v46, %s3201_s17  ;;  %v1440_v43 = vor.u32 %v1439_v62, %v4139_v16  ;;  %v1314_v40 = vrot.slane %v4059_v63, 5  ;;  %v1317_v45 = vrot.slane %v4082_v11, 5  ;;  %v328_v29 = vsel %vm3287_vm4, 0, %v327_v55 }
  0xba   : > { %v1431_v10 = vrot.slane %v1430_v42, 4  ;;  %v1445_v13 = vrot.slane %v1443_v53, 5  ;;  %329 = vst [vmem:[#allocation2 + $0x68] sm:$0x1] %v328_v29  ;;  %v299_v11 = vsel %vm3278_vm2, 0, %v298_v6  ;;  %v676_v25 = vstv %s675_s28  ;;  %v4202_v5 = vpop.permute.xlu0 %1857 }
  0xbb   : > { %v1441_v56 = vrot.slane %v1440_v43, 4  ;;  %v1315_v50 = vsel %vm3454_vm11, %v2910_v61, %v1314_v40  ;;  %v1316_v63 = vrot.slane %v1314_v40, 4  ;;  %300 = vst [vmem:[#allocation2 + $0x6c] sm:$0x1] %v299_v11  ;;  %vm677_vm0 = vcmp.eq.s32.totalorder %v676_v25, 1 }
  0xbc   : > { %v331_v18 = vsel %vm3287_vm4, 0, %v330_v14  ;;  %v550_v24 = vrot.slane %v4115_v35, 4  ;;  %v678_v32 = vsel %vm677_vm0, %v674_v27, 0  ;;  %v1436_v34 = vsel %vm3599_vm15, %v1431_v10, %v4139_v16 }
  0xbd   : > { %1909 = vrot.lane.b32.xlu0 %v2971_v30, %s3197_s10  ;;  %1987 = vrot.lane.b32.xlu1 %v2986_v20, %s3203_s26  ;;  %v1318_v17 = vsel %vm3454_vm11, %v1316_v63, %v1317_v45  ;;  %332 = vst [vmem:[#allocation2 + $0x74] sm:$0x1] %v331_v18  ;;  %v1446_v22 = vsel %vm3599_vm15, %v1441_v56, %v1445_v13  ;;  %v2915_v39 = vrot.slane %v4177_v0, 9  ;;  %v1598_v61 = vrot.slane %v4072_v48, 5  ;;  %v4206_v63 = vpop.permute.xlu1 %1855 }
  0xbe   : > { %v2966_v31 = vcombine.low %v1315_v50, %v1318_v17  ;;  %v2894_v59 = vcombine.low %v678_v32, %v678_v32  ;;  %v2895_v35 = vcombine.high %v678_v32, %v678_v32  ;;  %v2979_v23 = vcombine.low %v1436_v34, %v1446_v22 }
  0xbf   : > { %v1037_v4 = vld [vmem:[#allocation2 + $0x64] sm:$0xf]  ;;  %v1036_v3 = vld [vmem:[#allocation2 + $0x60] sm:$0xf]  ;;  %v1601_v6 = vrot.slane %v4131_v49, 5  ;;  %vm2041_vm4 = vcmask 97280  }
  0xc0   : > { %v1228_v41 = vshrl.u32 %v1037_v4, 16  ;;  %v1224_v58 = vshll.u32 %v1037_v4, 16  ;;  %v1215_v2 = vshrl.u32 %v1036_v3, 16  ;;  %v1218_v28 = vshll.u32 %v1036_v3, 16  ;;  %v4194_v30 = vld [vmem:[#allocation2 + $0x60] sm:$0xf] }
  0xc1   : > { %v2951_v51 = vcombine.low %v1036_v3, %v1037_v4  ;;  %1867 = vrot.lane.b32.xlu1 %v2966_v31, %s3199_s15  ;;  %v632_v57 = vld [vmem:[#allocation2 + $0x68] sm:$0x1]  ;;  %v4196_v46 = vld [vmem:[#allocation2 + $0x64] sm:$0xf]  ;;  %v1245_v62 = vld [vmem:[#allocation2 + $0x60] sm:$0xe] }
  0xc2   : > { %v633_v42 = vsel %vm3278_vm2, %v550_v24, %v632_v57  ;;  %v4192_v16 = vrot.slane %v1224_v58, 5  ;;  %v1230_v55 = vrot.slane %v1228_v41, 4  ;;  %v1217_v21 = vrot.slane %v1215_v2, 4  ;;  %v705_v14 = vld [vmem:[#allocation2 + $0x6c] sm:$0xf] }
  0xc3   : > { %v1220_v60 = vrot.slane %v1218_v28, 5  ;;  %1789 = vrot.lane.b32.xlu0 %v2951_v51, %s3196_s9  ;;  %634 = vst [vmem:[#allocation2 + $0x68] sm:$0x1] %v633_v42  ;;  %v685_v36 = vshrl.u32 %v2894_v59, 16  ;;  %v688_v20 = vshll.u32 %v2894_v59, 16  ;;  %v1321_v53 = vrot.slane %v1037_v4, 5 }
  0xc4   : > { %v693_v43 = vshrl.u32 %v2895_v35, 16  ;;  %v696_v29 = vshll.u32 %v2895_v35, 16  ;;  %v1496_v15 = vshrl.u32 %v4194_v30, 16  ;;  %v2911_v10 = vrot.slane %v1245_v62, 9  ;;  %v709_v25 = vld [vmem:[#allocation2 + $0x74] sm:$0x1] }
  0xc5   : > { %v1221_v40 = vor.u32 %v1220_v60, %v1217_v21  ;;  %v687_v45 = vrot.slane %v685_v36, 7  ;;  %v1499_v56 = vshll.u32 %v4194_v30, 16  ;;  %v1509_v50 = vshrl.u32 %v4196_v46, 16 }
  0xc6   : > { %v695_v13 = vrot.slane %v693_v43, 7  ;;  %v1231_v49 = vor.u32 %v1230_v55, %v4192_v16  ;;  %v1498_v24 = vrot.slane %v1496_v15, 4  ;;  %v1323_v32 = vrot.slane %v1321_v53, 4  ;;  %v4227_v55 = vpop.permute.xlu1 %1735 }
  0xc7   : > { %1949 = vrot.lane.b32.xlu0 %v2979_v23, %s3202_s23  ;;  %v1222_v48 = vrot.slane %v1221_v40, 4  ;;  %v690_v11 = vor.u32 %v688_v20, %v687_v45  ;;  %v691_v27 = vrot.slane %v687_v45, 4  ;;  %v1501_v31 = vrot.slane %v1499_v56, 5  ;;  %v4222_v23 = vpop.permute.xlu0 %1737  ;;  %v1549_v40 = vld [vmem:[#allocation2 + $0x60] sm:$0xe] }
  0xc8   : > { %v698_v17 = vor.u32 %v696_v29, %v695_v13  ;;  %v700_v18 = vrot.slane %v695_v13, 4  ;;  %v1505_v34 = vshll.u32 %v4196_v46, 16  ;;  %v1511_v22 = vrot.slane %v1509_v50, 4 }
  0xc9   : > { %v706_v4 = vsel %vm3331_vm8, %v690_v11, %v705_v14  ;;  %v1322_v3 = vsel %vm3454_vm11, %v2911_v10, %v1321_v53  ;;  %v1600_v41 = vrot.slane %v1598_v61, 4  ;;  %v1232_v28 = vrot.slane %v1231_v49, 4 }
  0xca   : > { %v1045_v59 = vld [vmem:[#allocation2 + $0x68] sm:$0x1]  ;;  %v699_v58 = vsel %vm3324_vm7, %v691_v27, %v698_v17  ;;  %707 = vst [vmem:[#allocation2 + $0x6c] sm:$0xf] %v706_v4  ;;  %v710_v35 = vsel %vm3278_vm2, %v700_v18, %v709_v25  ;;  %v1507_v57 = vrot.slane %v1505_v34, 5  ;;  %v1227_v38 = vsel %vm3599_vm15, %v1222_v48, %v4192_v16 }
  0xcb   : > { %v4219_v2 = vld [vmem:[#allocation2 + $0x68] sm:$0x1]  ;;  %v1234_v44 = vshll.u32 %v1045_v59, 16  ;;  %v1324_v51 = vrot.slane %v1045_v59, 5  ;;  %708 = vst.msk [vmem:[#allocation2 + $0x70] sm:$0xf] %vm576_vm6, %v699_v58  ;;  %v1502_v42 = vor.u32 %v1501_v31, %v1498_v24  ;;  %v1599_v53 = vsel %vm3454_vm11, %v2915_v39, %v1598_v61  ;;  %v4242_v14 = vpop.permute.xlu0 %1689 }
  0xcc   : > { %711 = vst [vmem:[#allocation2 + $0x74] sm:$0x1] %v710_v35  ;;  %v1512_v60 = vor.u32 %v1511_v22, %v1507_v57  ;;  %v1515_v62 = vshll.u32 %v4219_v2, 16  ;;  %v1602_v16 = vsel %vm3454_vm11, %v1600_v41, %v1601_v6  ;;  %v1619_v13 = vrot.slane %v4196_v46, 5 }
  0xcd   : > { %v1236_v1 = vrot.slane %v1234_v44, 5  ;;  %v1325_v21 = vsel %vm3454_vm11, %v1323_v32, %v1324_v51  ;;  %v1503_v29 = vrot.slane %v1502_v42, 4  ;;  %v2987_v0 = vcombine.low %v1599_v53, %v1602_v16 }
  0xce   : > { %v2967_v36 = vcombine.low %v1322_v3, %v1325_v21  ;;  %v1513_v15 = vrot.slane %v1512_v60, 4  ;;  %v1517_v10 = vrot.slane %v1515_v62, 5  ;;  %v2974_v6 = vcombine.low %v4194_v30, %v4196_v46 }
  0xcf   : > { %v1237_v20 = vsel %vm3599_vm15, %v1232_v28, %v1236_v1  ;;  %v2918_v32 = vrot.slane %v1549_v40, 9  ;;  %v1508_v22 = vsel %vm3599_vm15, %v1503_v29, %v1507_v57  ;;  %v1622_v30 = vrot.slane %v4219_v2, 5  ;;  %v1816_v51 = vpop.permute.xlu0 %1815  ;;  %v3141_v2 = vld [vmem:[%s4823_s3 + $0x10] ss:$0 sps:$4 sm:$0x33]  }
  0xd0   : > { %v2959_v43 = vcombine.low %v1227_v38, %v1237_v20  ;;  %1869 = vrot.lane.b32.xlu1 %v2967_v36, %s3199_s15  ;;  %v4247_v48 = vpop.permute.xlu1 %1727  ;;  %v1518_v59 = vsel %vm3599_vm15, %v1513_v15, %v1517_v10  ;;  %v1621_v41 = vrot.slane %v1619_v13, 4  ;;  %3062 = vmatprep.subr.msk.bf16.mxu0 %vm2180_vm1, %v3141_v2  ;;  %v3143_v15 = vld [vmem:[#allocation2 + $0xc] sm:$0xf]  ;;  %vm1999_vm2 = vcmask 31744   ;;  %s3208_s15 = smov 64  }
  0xd1   : > { %v1341_v45 = vld [vmem:[#allocation2 + $0x6c] sm:$0xf]  ;;  %v2982_v21 = vcombine.low %v1508_v22, %v1518_v59  ;;  %v1620_v60 = vsel %vm3454_vm11, %v2918_v32, %v1619_v13  ;;  %3063 = vmatprep.subr.msk.bf16.mxu1 %vm2180_vm1, %v3141_v2  ;;  %v2921_v10 = vcombine.low %v3143_v15, %v3142_v33  ;;  %vm2075_vm6 = vcmask 162816  }
  0xd2   : > { %1829 = vrot.lane.b32.xlu0 %v2959_v43, %s3201_s17  ;;  %v1342_v56 = vld [vmem:[#allocation2 + $0x70] sm:$0xf]  ;;  %v1520_v39 = vshrl.u32 %v1341_v45, 16  ;;  %v1523_v61 = vshll.u32 %v1341_v45, 16  ;;  %v1550_v17 = vld [vmem:[#allocation2 + $0x6c] sm:$0xe]  ;;  %v1623_v62 = vsel %vm3454_vm11, %v1621_v41, %v1622_v30 }
  0xd3   : > { %v1350_v50 = vld [vmem:[#allocation2 + $0x74] sm:$0x1]  ;;  %v1533_v49 = vshrl.u32 %v1342_v56, 16  ;;  %v2975_v11 = vcombine.low %v1341_v45, %v1342_v56  ;;  %v1529_v27 = vshll.u32 %v1342_v56, 16  ;;  %v1626_v31 = vrot.slane %v1342_v56, 5  ;;  %v1818_v40 = vpop.permute.xlu0 %1817 }
  0xd4   : > { %v1539_v25 = vshll.u32 %v1350_v50, 16  ;;  %v1522_v18 = vrot.slane %v1520_v39, 4  ;;  %v1525_v24 = vrot.slane %v1523_v61, 5  ;;  %v2919_v3 = vrot.slane %v1550_v17, 9  ;;  %v4256_v42 = vpop.permute.xlu1 %1695  ;;  %v3147_v41 = vld [vmem:[#allocation2 + $0x34] sm:$0xf] }
  0xd5   : > { %1917 = vrot.lane.b32.xlu1 %v2975_v11, %s3197_s10  ;;  %v1531_v4 = vrot.slane %v1529_v27, 5  ;;  %v1535_v34 = vrot.slane %v1533_v49, 4  ;;  %v1628_v28 = vrot.slane %v1626_v31, 4  ;;  %v1629_v44 = vrot.slane %v1350_v50, 5  ;;  %v3144_v50 = vld [vmem:[#allocation2 + $0x4] sm:$0xf] }
  0xd6   : > { %1989 = vrot.lane.b32.xlu0 %v2987_v0, %s3203_s26  ;;  %v1526_v46 = vor.u32 %v1525_v24, %v1522_v18  ;;  %v1541_v35 = vrot.slane %v1539_v25, 5  ;;  %v1627_v20 = vsel %vm3454_vm11, %v2919_v3, %v1626_v31  ;;  %v2182_v43 = vsel %vm2180_vm1, %v3141_v2, 0  ;;  %v3145_v49 = vld [vmem:[#allocation2] sm:$0xf] }
  0xd7   : > { %v1536_v58 = vor.u32 %v1535_v34, %v1531_v4  ;;  %v1630_v53 = vsel %vm3454_vm11, %v1628_v28, %v1629_v44  ;;  %3039 = vmatpush3.bf16.msra.mxu0 %v2182_v43  ;;  %3061 = vmatpush3.bf16.msra.mxu1 %v2182_v43  ;;  %v2990_v45 = vcombine.low %v1620_v60, %v1623_v62  ;;  %v4278_v13 = vpop.permute.xlu0 %1697  ;;  %vm2092_vm7 = vcmask 195584   ;;  %v3148_v60 = vld [vmem:[#allocation2 + $0x40] sm:$0xf]  ;;  %v3149_v62 = vld [vmem:[#allocation2 + $0x3c] sm:$0xf] }
  0xd8   : > { %v1527_v38 = vrot.slane %v1526_v46, 4  ;;  %v2991_v8 = vcombine.low %v1627_v20, %v1630_v53  ;;  %v1944_v29 = vpop.permute.xlu1 %1943  ;;  %v2005_v56 = vsel %vm1999_vm2, %v2921_v10, %v4242_v14  ;;  %v2920_v11 = vcombine.low %v3145_v49, %v3144_v50 }
  0xd9   : > { %v1537_v57 = vrot.slane %v1536_v58, 4  ;;  %v2028_v39 = vsel %vm2024_vm3, %v2005_v56, %v4186_v7  ;;  %vm2109_vm8 = vcmask 228352   ;;  %vm2399_vm11 = vcmask 1041409  }
  0xda   : > { %1915 = vrot.lane.b32.xlu0 %v2974_v6, %s3197_s10  ;;  %v1532_v1 = vsel %vm3599_vm15, %v1527_v38, %v1531_v4  ;;  %v2045_v27 = vsel %vm2041_vm4, %v2028_v39, %v4104_v37  ;;  %vm2402_vm12 = vcmask 1042434   ;;  %vm2405_vm13 = vcmask 1043459  }
  0xdb   : > { %v1542_v36 = vsel %vm3599_vm15, %v1537_v57, %v1541_v35  ;;  %v2062_v25 = vsel %vm2058_vm5, %v2045_v27, %v1818_v40  ;;  %v3151_v27 = vld [vmem:[#allocation2 + $0x1c] sm:$0xf]  ;;  %vm2408_vm14 = vcmask 1044484   ;;  %vm2411_vm15 = vcmask 1045509  }
  0xdc   : > { %v2983_v16 = vcombine.low %v1532_v1, %v1542_v36  ;;  %v1824_v0 = vpop.permute.xlu1 %1823  ;;  %v2079_v7 = vsel %vm2075_vm6, %v2062_v25, %v4202_v5  ;;  %v2925_v36 = vcombine.low %v3149_v62, %v3148_v60  ;;  %v3154_v62 = vld [vmem:[#allocation2 + $0x48] sm:$0xf]  ;;  %vm2414_vm0 = vcmask 1046534  }
  0xdd   : > { %vm2417_vm1 = vcmask 1047559  }
  0xde   : > { %1957 = vrot.lane.b32.xlu1 %v2983_v16, %s3202_s23  ;;  %1955 = vrot.lane.b32.xlu0 %v2982_v21, %s3202_s23  ;;  %v2017_v40 = vsel %vm1999_vm2, %v2925_v36, %v4278_v13  ;;  %v3155_v36 = vld [vmem:[#allocation2 + $0x4c] sm:$0xf]  ;;  %s3211_s23 = smov 88  }
  0xe0   : > { %v1984_v6 = vpop.permute.xlu1 %1983 }
  0xe2   : > { %1997 = vrot.lane.b32.xlu1 %v2991_v8, %s3203_s26  ;;  %1995 = vrot.lane.b32.xlu0 %v2990_v45, %s3203_s26  ;;  %v2036_v8 = vsel %vm2024_vm3, %v2017_v40, %v4222_v23 }
  0xea   : > { %v1946_v61 = vpop.permute.xlu0 %1945 }
  0xee   : > { %v1688_v17 = vpop.permute.xlu0 %1687 }
  0xef   : > { %v2002_v18 = vsel %vm1999_vm2, %v2920_v11, %v1688_v17  ;;  %v3150_v11 = vld [vmem:[#allocation2 + $0x18] sm:$0xf] }
  0xf0   : > { %v2026_v14 = vsel %vm2024_vm3, %v2002_v18, %v4247_v48  ;;  %v2096_v48 = vsel %vm2092_vm7, %v2079_v7, %v4162_v9  ;;  %v2922_v25 = vcombine.low %v3150_v11, %v3151_v27 }
  0xf1   : > { %v2043_v24 = vsel %vm2041_vm4, %v2026_v14, %v4117_v52  ;;  %v2113_v34 = vsel %vm2109_vm8, %v2096_v48, %v1946_v61 }
  0xf2   : > { %v1826_v31 = vpop.permute.xlu1 %1825  ;;  %v2060_v37 = vsel %vm2058_vm5, %v2043_v24, %v1816_v51  ;;  %v4295_v32 = vpop.permute.xlu0 %1691 }
  0xf3   : > { %v2077_v4 = vsel %vm2075_vm6, %v2060_v37, %v4206_v63  ;;  %v2008_v14 = vsel %vm1999_vm2, %v2922_v25, %v4295_v32 }
  0xf4   : > { %v2094_v5 = vsel %vm2092_vm7, %v2077_v4, %v4125_v19  ;;  %v3146_v19 = vld [vmem:[#allocation2 + $0x30] sm:$0xf] }
  0xf5   : > { %v2111_v22 = vsel %vm2109_vm8, %v2094_v5, %v1944_v29  ;;  %v2924_v58 = vcombine.low %v3146_v19, %v3147_v41  ;;  %v2053_v29 = vsel %vm2041_vm4, %v2036_v8, %v4184_v12 }
  0xf6   : > { %v1986_v52 = vpop.permute.xlu1 %1985  ;;  %v1864_v46 = vpop.permute.xlu0 %1863  ;;  %v2128_v59 = vsel %vm2126_vm9, %v2111_v22, %v1984_v6  ;;  %v2070_v33 = vsel %vm2058_vm5, %v2053_v29, %v1826_v31 }
  0xf7   : > { %v2130_v30 = vsel %vm2126_vm9, %v2113_v34, %v1986_v52  ;;  %3040 = vmatprep.mubr.msk.bf16.mxu0 %vm2163_vm10, %v2128_v59  ;;  %v2014_v44 = vsel %vm1999_vm2, %v2924_v58, %v4256_v42  ;;  %v3153_v59 = vld [vmem:[#allocation2 + $0x28] sm:$0xf] }
  0xf8   : > { %3041 = vmatmul.mubr.msk.bf16.vlgmr.msra.gmra.mrb[0].mxu0 %vm2163_vm10, %v2130_v30  ;;  %v2034_v38 = vsel %vm2024_vm3, %v2014_v44, %v4227_v55 }
  0xf9   : > { %v2051_v57 = vsel %vm2041_vm4, %v2034_v38, %v4164_v47 }
  0xfa   : > { %v1732_v63 = vpop.permute.xlu1 %1731  ;;  %v4309_v9 = vpop.permute.xlu0 %1693  ;;  %v2068_v21 = vsel %vm2058_vm5, %v2051_v57, %v1824_v0 }
  0xfb   : > { %v2085_v20 = vsel %vm2075_vm6, %v2068_v21, %v1864_v46  ;;  %v2030_v7 = vsel %vm2024_vm3, %v2008_v14, %v1732_v63  ;;  %v3152_v46 = vld [vmem:[#allocation2 + $0x24] sm:$0xf] }
  0xfc   : > { %v2923_v63 = vcombine.low %v3152_v46, %v3153_v59 }
  0xfe   : > { %v1912_v3 = vpop.permute.xlu1 %1911  ;;  %v1866_v35 = vpop.permute.xlu0 %1865  ;;  %v2011_v41 = vsel %vm1999_vm2, %v2923_v63, %v4309_v9  ;;  %v2926_v9 = vcombine.low %v3154_v62, %v3155_v36 }
  0xff   : > { %v2102_v53 = vsel %vm2092_vm7, %v2085_v20, %v1912_v3  ;;  %v2087_v10 = vsel %vm2075_vm6, %v2070_v33, %v1866_v35 }
 0x102   : > { %v1780_v28 = vpop.permute.xlu1 %1779  ;;  %v1734_v2 = vpop.permute.xlu0 %1733 }
 0x103   : > { %v2047_v24 = vsel %vm2041_vm4, %v2030_v7, %v1780_v28  ;;  %v2032_v58 = vsel %vm2024_vm3, %v2011_v41, %v1734_v2  ;;  %v2927_v2 = vcombine.low %v3997_v54, %v3999_v26 }
 0x106   : > { %v1952_v51 = vpop.permute.xlu1 %1951 }
 0x107   : > { %v1914_v16 = vpop.permute.xlu0 %1913  ;;  %v2119_v42 = vsel %vm2109_vm8, %v2102_v53, %v1952_v51 }
 0x108   : > { %v2104_v0 = vsel %vm2092_vm7, %v2087_v10, %v1914_v16 }
 0x10a   : > { %v1820_v1 = vpop.permute.xlu1 %1819 }
 0x10b   : > { %v1782_v45 = vpop.permute.xlu0 %1781  ;;  %v2064_v37 = vsel %vm2058_vm5, %v2047_v24, %v1820_v1 }
 0x10c   : > { %v2049_v35 = vsel %vm2041_vm4, %v2032_v58, %v1782_v45 }
 0x10e   : > { %v1992_v43 = vpop.permute.xlu1 %1991 }
 0x10f   : > { %v2136_v55 = vsel %vm2126_vm9, %v2119_v42, %v1992_v43 }
 0x110   : > { %3048 = vmatprep.mubr.msk.bf16.mxu1 %vm2163_vm10, %v2136_v55 }
 0x112   : > { %v1822_v47 = vpop.permute.xlu1 %1821 }
 0x113   : > { %v2066_v51 = vsel %vm2058_vm5, %v2049_v35, %v1822_v47 }
 0x116   : > { %v1994_v15 = vpop.permute.xlu1 %1993 }
 0x117   : > { %v1954_v56 = vpop.permute.xlu0 %1953 }
 0x118   : > { %v2121_v13 = vsel %vm2109_vm8, %v2104_v0, %v1954_v56 }
 0x119   : > { %v2138_v39 = vsel %vm2126_vm9, %v2121_v13, %v1994_v15 }
 0x11a   : > { %v1740_v61 = vpop.permute.xlu1 %1739  ;;  %3049 = vmatmul.mubr.msk.bf16.vlgmr.msra.gmra.mrb[0].mxu1 %vm2163_vm10, %v2138_v39 }
 0x11b   : > { %v1700_v23 = vpop.permute.xlu0 %1699 }
 0x11c   : > { %v2020_v16 = vsel %vm1999_vm2, %v2926_v9, %v1700_v23 }
 0x11d   : > { %v2038_v43 = vsel %vm2024_vm3, %v2020_v16, %v1740_v61 }
 0x11e   : > { %v1908_v6 = vpop.permute.xlu1 %1907 }
 0x11f   : > { %v1860_v50 = vpop.permute.xlu0 %1859 }
 0x120   : > { %v2081_v48 = vsel %vm2075_vm6, %v2064_v37, %v1860_v50 }
 0x121   : > { %v2098_v5 = vsel %vm2092_vm7, %v2081_v48, %v1908_v6 }
 0x122   : > { %v1788_v49 = vpop.permute.xlu1 %1787 }
 0x123   : > { %v1702_v12 = vpop.permute.xlu0 %1701  ;;  %v2055_v40 = vsel %vm2041_vm4, %v2038_v43, %v1788_v49 }
 0x124   : > { %v2023_v42 = vsel %vm1999_vm2, %v2927_v2, %v1702_v12  ;;  %vm2318_vm2 = vcmask 57344  }
 0x126   : > { %v1948_v17 = vpop.permute.xlu1 %1947 }
 0x127   : > { %v1862_v18 = vpop.permute.xlu0 %1861  ;;  %v2115_v34 = vsel %vm2109_vm8, %v2098_v5, %v1948_v17 }
 0x128   : > { %v2083_v38 = vsel %vm2075_vm6, %v2066_v51, %v1862_v18 }
 0x12b   : > { %v1828_v31 = vpop.permute.xlu1 %1827  ;;  %v1742_v4 = vpop.permute.xlu0 %1741 }
 0x12c   : > { %v2040_v55 = vsel %vm2024_vm3, %v2023_v42, %v1742_v4  ;;  %v2072_v54 = vsel %vm2058_vm5, %v2055_v40, %v1828_v31 }
 0x12f   : > { %v1988_v52 = vpop.permute.xlu1 %1987  ;;  %v1910_v32 = vpop.permute.xlu0 %1909 }
 0x130   : > { %v2132_v22 = vsel %vm2126_vm9, %v2115_v34, %v1988_v52  ;;  %v2100_v57 = vsel %vm2092_vm7, %v2083_v38, %v1910_v32 }
 0x131   : > { %3044 = vmatprep.mubr.msk.bf16.mxu0 %vm2163_vm10, %v2132_v22 }
 0x133   : > { %v1868_v19 = vpop.permute.xlu1 %1867 }
 0x134   : > { %v2089_v29 = vsel %vm2075_vm6, %v2072_v54, %v1868_v19 }
 0x135   : > { %v1790_v30 = vpop.permute.xlu0 %1789 }
 0x136   : > { %v2057_v47 = vsel %vm2041_vm4, %v2040_v55, %v1790_v30  ;;  %vm2692_vm4 = vcmask 326656  }
 0x139   : > { %v1950_v3 = vpop.permute.xlu0 %1949 }
 0x13a   : > { %v2117_v1 = vsel %vm2109_vm8, %v2100_v57, %v1950_v3 }
 0x142   : > { %v1870_v44 = vpop.permute.xlu1 %1869 }
 0x144   : > { %v1830_v28 = vpop.permute.xlu0 %1829 }
 0x145   : > { %v2074_v26 = vsel %vm2058_vm5, %v2057_v47, %v1830_v28 }
 0x146   : > { %v2091_v33 = vsel %vm2075_vm6, %v2074_v26, %v1870_v44  ;;  %vm2695_vm6 = vcmask 392192  }
 0x147   : > { %v1918_v20 = vpop.permute.xlu1 %1917 }
 0x148   : > { %v1990_v21 = vpop.permute.xlu0 %1989  ;;  %v2108_v15 = vsel %vm2092_vm7, %v2091_v33, %v1918_v20 }
 0x149   : > { %v2134_v60 = vsel %vm2126_vm9, %v2117_v1, %v1990_v21 }
 0x14a   : > { %3045 = vmatmul.mubr.msk.bf16.gmra.mrb[4].mxu0 %vm2163_vm10, %v2134_v60 }
 0x14c   : > { %v1916_v53 = vpop.permute.xlu0 %1915 }
 0x14d   : > { %v2106_v10 = vsel %vm2092_vm7, %v2089_v29, %v1916_v53 }
 0x150   : > { %v1958_v8 = vpop.permute.xlu1 %1957  ;;  %v1956_v45 = vpop.permute.xlu0 %1955 }
 0x151   : > { %v2125_v0 = vsel %vm2109_vm8, %v2108_v15, %v1958_v8  ;;  %v2123_v56 = vsel %vm2109_vm8, %v2106_v10, %v1956_v45  ;;  %vm2698_vm8 = vcmask 457728  }
 0x154   : > { %v1998_v13 = vpop.permute.xlu1 %1997  ;;  %v1996_v39 = vpop.permute.xlu0 %1995 }
 0x155   : > { %v2142_v61 = vsel %vm2126_vm9, %v2125_v0, %v1998_v13  ;;  %v2140_v23 = vsel %vm2126_vm9, %v2123_v56, %v1996_v39 }
 0x156   : > { %3052 = vmatprep.mubr.msk.bf16.mxu1 %vm2163_vm10, %v2140_v23 }
 0x157   : > { %3053 = vmatmul.mubr.msk.bf16.gmra.mrb[4].mxu1 %vm2163_vm10, %v2142_v61  ;;  %vm2701_vm10 = vcmask 523264  }
 0x1cb   : > { %v3042_v6 = vpop.f32.mrb[0].mxu0 }
 0x1cc   : > { %v2322_v50 = vmul.f32 %v3042_v6, %v3042_v6  ;;  %v2218_v49 = vpop.f32.mrb[1].mxu0  ;;  %v2284_v12 = vsel %vm2024_vm3, %v3042_v6, 0.0 }
 0x1cd   : > { %v2320_v11 = vmul.f32 %v2218_v49, %v2218_v49  ;;  %v3043_v27 = vpop.f32.mrb[2].mxu0  ;;  %v2281_v17 = vsel %vm2024_vm3, %v2218_v49, 0.0 }
 0x1ce   : > { %v2339_v25 = vsel %vm2024_vm3, %v2322_v50, 0.0  ;;  %v2323_v18 = vmul.f32 %v3043_v27, %v3043_v27  ;;  %v2375_v14 = vpack.c.bf16 %v3043_v27, %v3042_v6  ;;  %v2221_v7 = vpop.f32.mrb[3].mxu0  ;;  %v2286_v24 = vsel %vm2024_vm3, %v3043_v27, 0.0 }
 0x1cf   : > { %v2282_v31 = vsel %vm2024_vm3, %v2221_v7, 0.0  ;;  %v2321_v37 = vmul.f32 %v2221_v7, %v2221_v7  ;;  %v2374_v4 = vpack.c.bf16 %v2221_v7, %v2218_v49  ;;  %v2336_v48 = vsel %vm2024_vm3, %v2320_v11, 0.0 }
 0x1d0   : > { %v2391_v5 = vunpack.c.l.b16 %v2375_v14  ;;  %v2540_v34 = vunpack.c.h.b16 %v2375_v14  ;;  %v2283_v52 = vadd.f32 %v2282_v31, %v2281_v17  ;;  %v2341_v22 = vsel %vm2024_vm3, %v2323_v18, 0.0 }
 0x1d1   : > { %v2337_v32 = vsel %vm2024_vm3, %v2321_v37, 0.0  ;;  %v2390_v30 = vunpack.c.l.b16 %v2374_v4  ;;  %v2539_v46 = vunpack.c.h.b16 %v2374_v4 }
 0x1d2   : > { %v2285_v59 = vadd.f32 %v2284_v12, %v2283_v52  ;;  %v2338_v63 = vadd.f32 %v2337_v32, %v2336_v48  ;;  %v2438_v3 = vrot.slane %v2391_v5, 1  ;;  %v2582_v19 = vrot.slane %v2540_v34, 1 }
 0x1d3   : > { %v2437_v41 = vrot.slane %v2390_v30, 2  ;;  %v2420_v58 = vrot.slane %v2390_v30, 1  ;;  %v2581_v35 = vrot.slane %v2539_v46, 2  ;;  %v2454_v28 = vrot.slane %v2390_v30, 3 }
 0x1d4   : > { %v2340_v44 = vadd.f32 %v2339_v25, %v2338_v63  ;;  %v4383_v51 = vadd.f32 %v2286_v24, %v2285_v59  ;;  %v2455_v38 = vrot.slane %v2391_v5, 2  ;;  %v2471_v57 = vrot.slane %v2390_v30, 4 }
 0x1d5   : > { %v4386_v1 = vsel %vm2399_vm11, %v2438_v3, %v2437_v41  ;;  %v4389_v21 = vsel %vm2399_vm11, %v2391_v5, %v2420_v58  ;;  %v4392_v60 = vsel %vm2399_vm11, %v2582_v19, %v2581_v35  ;;  %v2472_v62 = vrot.slane %v2391_v5, 3 }
 0x1d6   : > { %v4394_v36 = vadd.f32 %v2341_v22, %v2340_v44  ;;  %v4397_v9 = vsel %vm2399_vm11, %v2455_v38, %v2454_v28  ;;  %v2488_v2 = vrot.slane %v2390_v30, 5  ;;  %v2489_v20 = vrot.slane %v2391_v5, 4 }
 0x1d7   : > { %v4400_v53 = vsel %vm2399_vm11, %v2472_v62, %v2471_v57  ;;  %v2505_v16 = vrot.slane %v2390_v30, 6  ;;  %v2506_v42 = vrot.slane %v2391_v5, 5  ;;  %v2522_v43 = vrot.slane %v2390_v30, 7 }
 0x1d8   : > { %v4403_v55 = vsel %vm2399_vm11, %v2489_v20, %v2488_v2  ;;  %v2523_v40 = vrot.slane %v2391_v5, 6  ;;  %v2547_v47 = vrot.slane %v2540_v34, 7  ;;  %v2564_v8 = vrot.slane %v2539_v46, 1 }
 0x1d9   : > { %v4406_v45 = vsel %vm2399_vm11, %v2506_v42, %v2505_v16  ;;  %v2615_v54 = vrot.slane %v2539_v46, 4  ;;  %v2616_v26 = vrot.slane %v2540_v34, 3  ;;  %v2598_v29 = vrot.slane %v2539_v46, 3 }
 0x1da   : > { %v4409_v33 = vsel %vm2399_vm11, %v2523_v40, %v2522_v43  ;;  %v4412_v15 = vsel %vm2399_vm11, %v2547_v47, %v2539_v46  ;;  %v4415_v10 = vsel %vm2399_vm11, %v2540_v34, %v2564_v8  ;;  %v2599_v0 = vrot.slane %v2540_v34, 2 }
 0x1db   : > { %v4418_v56 = vsel %vm2399_vm11, %v2616_v26, %v2615_v54  ;;  %v2649_v13 = vrot.slane %v2539_v46, 6  ;;  %v2650_v39 = vrot.slane %v2540_v34, 5  ;;  %v2632_v61 = vrot.slane %v2539_v46, 5 }
 0x1dc   : > { %v4421_v23 = vsel %vm2399_vm11, %v2599_v0, %v2598_v29  ;;  %v2633_v6 = vrot.slane %v2540_v34, 4  ;;  %v2666_v50 = vrot.slane %v2539_v46, 7  ;;  %v2667_v49 = vrot.slane %v2540_v34, 6 }
 0x1dd   : > { %v4424_v12 = vsel %vm2399_vm11, %v2650_v39, %v2649_v13  ;;  %v2398_v11 = vrot.slane %v2391_v5, 7 }
 0x1de   : > { %v4427_v27 = vsel %vm2399_vm11, %v2633_v6, %v2632_v61  ;;  %v4430_v25 = vsel %vm2399_vm11, %v2667_v49, %v2666_v50 }
 0x1df   : > { %v4433_v17 = vsel %vm2399_vm11, %v2398_v11, %v2390_v30  ;;  %vm2710_vm11 = vcmask 719872  }
 0x1ed   : > { %v3050_v18 = vpop.f32.mrb[0].mxu1 }
 0x1ee   : > { %v2250_v14 = vpop.f32.mrb[1].mxu1  ;;  %v2330_v4 = vmul.f32 %v3050_v18, %v3050_v18  ;;  %v4442_v46 = vsel %vm2024_vm3, %v3050_v18, 0.0 }
 0x1ef   : > { %v3051_v7 = vpop.f32.mrb[2].mxu1  ;;  %v2328_v48 = vmul.f32 %v2250_v14, %v2250_v14  ;;  %v4450_v63 = vsel %vm2024_vm3, %v2250_v14, 0.0 }
 0x1f0   : > { %v2379_v24 = vpack.c.bf16 %v3051_v7, %v3050_v18  ;;  %v2253_v31 = vpop.f32.mrb[3].mxu1  ;;  %v2331_v34 = vmul.f32 %v3051_v7, %v3051_v7  ;;  %v4447_v59 = vsel %vm2024_vm3, %v2330_v4, 0.0  ;;  %v4456_v19 = vsel %vm2024_vm3, %v3051_v7, 0.0 }
 0x1f1   : > { %v2378_v37 = vpack.c.bf16 %v2253_v31, %v2250_v14  ;;  %v2329_v5 = vmul.f32 %v2253_v31, %v2253_v31  ;;  %v4453_v3 = vsel %vm2024_vm3, %v2328_v48, 0.0  ;;  %v4462_v58 = vsel %vm2024_vm3, %v2253_v31, 0.0 }
 0x1f2   : > { %v4435_v52 = vunpack.c.l.b16 %v2379_v24  ;;  %v4437_v22 = vunpack.c.h.b16 %v2379_v24  ;;  %v4459_v41 = vsel %vm2024_vm3, %v2331_v34, 0.0 }
 0x1f3   : > { %v4439_v32 = vunpack.c.l.b16 %v2378_v37  ;;  %v4444_v30 = vunpack.c.h.b16 %v2378_v37  ;;  %v4465_v35 = vsel %vm2024_vm3, %v2329_v5, 0.0 }
 0x1f4   : > { %v2445_v28 = vrot.slane %v4435_v52, 5  ;;  %v2428_v38 = vrot.slane %v4435_v52, 4  ;;  %v2589_v57 = vrot.slane %v4437_v22, 5  ;;  %v2462_v62 = vrot.slane %v4435_v52, 6 }
 0x1f5   : > { %v2443_v44 = vrot.slane %v4439_v32, 6  ;;  %v2426_v2 = vrot.slane %v4439_v32, 5  ;;  %v2587_v20 = vrot.slane %v4444_v30, 6  ;;  %v2460_v16 = vrot.slane %v4439_v32, 7 }
 0x1f6   : > { %v2479_v42 = vrot.slane %v4435_v52, 7  ;;  %v2495_v43 = vrot.slane %v4439_v32, 1  ;;  %v2512_v40 = vrot.slane %v4439_v32, 2  ;;  %v2514_v47 = vrot.slane %v4435_v52, 1 }
 0x21d   : > { %v3046_v13 = vpop.f32.mrb[4].mxu0 }
 0x21e   : > { %v2326_v49 = vmul.f32 %v3046_v13, %v3046_v13  ;;  %v2234_v11 = vpop.f32.mrb[5].mxu0  ;;  %v2292_v34 = vsel %vm2024_vm3, %v3046_v13, 0.0 }
 0x21f   : > { %v2288_v24 = vsel %vm2024_vm3, %v2234_v11, 0.0  ;;  %v2324_v31 = vmul.f32 %v2234_v11, %v2234_v11  ;;  %v3047_v37 = vpop.f32.mrb[6].mxu0 }
 0x220   : > { %v2289_v5 = vadd.f32 %v2288_v24, %v4383_v51  ;;  %v2327_v50 = vmul.f32 %v3047_v37, %v3047_v37  ;;  %v2237_v6 = vpop.f32.mrb[7].mxu0  ;;  %v2377_v7 = vpack.c.bf16 %v3047_v37, %v3046_v13  ;;  %v2347_v0 = vsel %vm2024_vm3, %v2326_v49, 0.0 }
 0x221   : > { %v2343_v14 = vsel %vm2024_vm3, %v2324_v31, 0.0  ;;  %v2290_v61 = vsel %vm2024_vm3, %v2237_v6, 0.0  ;;  %v2325_v39 = vmul.f32 %v2237_v6, %v2237_v6  ;;  %v2376_v29 = vpack.c.bf16 %v2237_v6, %v2234_v11 }
 0x222   : > { %v2344_v4 = vadd.f32 %v2343_v14, %v4394_v36  ;;  %v2291_v48 = vadd.f32 %v2290_v61, %v2289_v5  ;;  %v2294_v26 = vsel %vm2024_vm3, %v3047_v37, 0.0  ;;  %v4502_v51 = vunpack.c.l.b16 %v2377_v7 }
 0x223   : > { %v4504_v24 = vunpack.c.h.b16 %v2377_v7  ;;  %v2345_v18 = vsel %vm2024_vm3, %v2325_v39, 0.0  ;;  %v4507_v13 = vunpack.c.l.b16 %v2376_v29  ;;  %v4509_v8 = vunpack.c.h.b16 %v2376_v29 }
 0x224   : > { %v2293_v54 = vadd.f32 %v2292_v34, %v2291_v48  ;;  %v2346_v31 = vadd.f32 %v2345_v18, %v2344_v4  ;;  %v2349_v49 = vsel %vm2024_vm3, %v2327_v50, 0.0  ;;  %v2441_v36 = vrot.slane %v4502_v51, 7 }
 0x225   : > { %v2424_v61 = vrot.slane %v4502_v51, 6  ;;  %v2585_v6 = vrot.slane %v4504_v24, 7  ;;  %v2440_v39 = vsel %vm2402_vm12, %v4507_v13, %v4386_v1  ;;  %v2422_v18 = vrot.slane %v4507_v13, 7 }
 0x226   : > { %v2295_v11 = vadd.f32 %v2294_v26, %v2293_v54  ;;  %v2348_v14 = vadd.f32 %v2347_v0, %v2346_v31  ;;  %v2442_v7 = vsel %vm2405_vm13, %v2441_v36, %v2440_v39  ;;  %v2584_v29 = vsel %vm2402_vm12, %v4509_v8, %v4392_v60 }
 0x227   : > { %v2457_v50 = vrot.slane %v4507_v13, 1  ;;  %v2476_v37 = vrot.slane %v4502_v51, 1  ;;  %v2444_v26 = vsel %vm2408_vm14, %v2443_v44, %v2442_v7  ;;  %v2423_v1 = vsel %vm2402_vm12, %v2422_v18, %v4389_v21 }
 0x228   : > { %v2297_v4 = vadd.f32 %v4450_v63, %v2295_v11  ;;  %v2350_v54 = vadd.f32 %v2349_v49, %v2348_v14  ;;  %v2425_v0 = vsel %vm2405_vm13, %v2424_v61, %v2423_v1  ;;  %v2586_v48 = vsel %vm2405_vm13, %v2585_v6, %v2584_v29 }
 0x229   : > { %v2458_v60 = vsel %vm2402_vm12, %v2457_v50, %v4397_v9  ;;  %v2474_v34 = vrot.slane %v4507_v13, 2  ;;  %v2427_v44 = vsel %vm2408_vm14, %v2426_v2, %v2425_v0  ;;  %v2588_v21 = vsel %vm2408_vm14, %v2587_v20, %v2586_v48 }
 0x22a   : > { %v2352_v5 = vadd.f32 %v4453_v3, %v2350_v54  ;;  %v3054_v63 = vpop.f32.mrb[4].mxu1  ;;  %v2299_v31 = vadd.f32 %v4462_v58, %v2297_v4  ;;  %v2446_v9 = vsel %vm2411_vm15, %v2445_v28, %v2444_v26  ;;  %v2590_v3 = vsel %vm2411_vm15, %v2589_v57, %v2588_v21 }
 0x22b   : > { %v2308_v49 = vsel %vm2024_vm3, %v3054_v63, 0.0  ;;  %v2334_v36 = vmul.f32 %v3054_v63, %v3054_v63  ;;  %v2266_v61 = vpop.f32.mrb[5].mxu1  ;;  %v2429_v20 = vsel %vm2411_vm15, %v2428_v38, %v2427_v44 }
 0x22c   : > { %v2301_v58 = vadd.f32 %v4442_v46, %v2299_v31  ;;  %v2332_v6 = vmul.f32 %v2266_v61, %v2266_v61  ;;  %v2354_v2 = vadd.f32 %v4465_v35, %v2352_v5  ;;  %v3055_v11 = vpop.f32.mrb[6].mxu1  ;;  %v2304_v39 = vsel %vm2024_vm3, %v2266_v61, 0.0 }
 0x22d   : > { %v2363_v14 = vsel %vm2024_vm3, %v2334_v36, 0.0  ;;  %v2335_v18 = vmul.f32 %v3055_v11, %v3055_v11  ;;  %v2381_v28 = vpack.c.bf16 %v3055_v11, %v3054_v63  ;;  %v2269_v7 = vpop.f32.mrb[7].mxu1  ;;  %v2310_v35 = vsel %vm2024_vm3, %v3055_v11, 0.0 }
 0x22e   : > { %v2303_v57 = vadd.f32 %v4456_v19, %v2301_v58  ;;  %v2356_v46 = vadd.f32 %v4447_v59, %v2354_v2  ;;  %v2359_v29 = vsel %vm2024_vm3, %v2332_v6, 0.0  ;;  %v2306_v4 = vsel %vm2024_vm3, %v2269_v7, 0.0 }
 0x22f   : > { %v4562_v50 = vunpack.c.l.b16 %v2381_v28  ;;  %v4564_v38 = vunpack.c.h.b16 %v2381_v28  ;;  %v2333_v54 = vmul.f32 %v2269_v7, %v2269_v7  ;;  %v2380_v0 = vpack.c.bf16 %v2269_v7, %v2266_v61 }
 0x230   : > { %v2305_v26 = vadd.f32 %v2304_v39, %v2303_v57  ;;  %v2358_v1 = vadd.f32 %v4459_v41, %v2356_v46  ;;  %v2459_v19 = vsel %vm2405_vm13, %v4502_v51, %v2458_v60  ;;  %v2365_v59 = vsel %vm2024_vm3, %v2335_v18, 0.0 }
 0x231   : > { %v2361_v48 = vsel %vm2024_vm3, %v2333_v54, 0.0  ;;  %v2449_v5 = vrot.slane %v4562_v50, 3  ;;  %v2432_v63 = vrot.slane %v4562_v50, 2  ;;  %v4574_v21 = vunpack.c.l.b16 %v2380_v0 }
 0x232   : > { %v2360_v31 = vadd.f32 %v2359_v29, %v2358_v1  ;;  %v2307_v44 = vadd.f32 %v2306_v4, %v2305_v26  ;;  %v4576_v36 = vunpack.c.h.b16 %v2380_v0  ;;  %v2593_v41 = vrot.slane %v4564_v38, 3 }
 0x233   : > { %v2461_v60 = vsel %vm2408_vm14, %v2460_v16, %v2459_v19  ;;  %v2466_v61 = vrot.slane %v4562_v50, 4  ;;  %v2475_v58 = vsel %vm2402_vm12, %v2474_v34, %v4400_v53  ;;  %v2447_v11 = vrot.slane %v4574_v21, 4 }
 0x234   : > { %v2309_v6 = vadd.f32 %v2308_v49, %v2307_v44  ;;  %v2362_v2 = vadd.f32 %v2361_v48, %v2360_v31  ;;  %v2430_v39 = vrot.slane %v4574_v21, 3  ;;  %v2591_v18 = vrot.slane %v4576_v36, 4 }
 0x235   : > { %v2463_v28 = vsel %vm2411_vm15, %v2462_v62, %v2461_v60  ;;  %v2464_v16 = vrot.slane %v4574_v21, 5  ;;  %v2477_v53 = vsel %vm2405_vm13, %v2476_v37, %v2475_v58  ;;  %v2448_v7 = vsel %vm2414_vm0, %v2447_v11, %v2446_v9 }
 0x236   : > { %v2311_v34 = vadd.f32 %v2310_v35, %v2309_v6  ;;  %v2364_v49 = vadd.f32 %v2363_v14, %v2362_v2  ;;  %v2431_v57 = vsel %vm2414_vm0, %v2430_v39, %v2429_v20  ;;  %v2450_v46 = vsel %vm2417_vm1, %v2449_v5, %v2448_v7 }
 0x237   : > { %v2433_v29 = vsel %vm2417_vm1, %v2432_v63, %v2431_v57  ;;  %v2592_v4 = vsel %vm2414_vm0, %v2591_v18, %v2590_v3  ;;  %v2465_v62 = vsel %vm2414_vm0, %v2464_v16, %v2463_v28  ;;  %v2451_v1 = vpack.c.b16 %v2450_v46, %v2450_v46 }
 0x238   : > { %v2312_v54 = vrot.slane %v2311_v34, 4  ;;  %v2366_v26 = vadd.f32 %v2365_v59, %v2364_v49  ;;  %v2434_v37 = vpack.c.b16 %v2433_v29, %v2433_v29  ;;  %v2594_v14 = vsel %vm2417_vm1, %v2593_v41, %v2592_v4 }
 0x239   : > { %v2467_v9 = vsel %vm2417_vm1, %v2466_v61, %v2465_v62  ;;  %v2478_v20 = vsel %vm2408_vm14, %v4439_v32, %v2477_v53  ;;  %v2481_v35 = vrot.slane %v4574_v21, 6  ;;  %2452 = vrot.lane.b32.xlu1 %v2451_v1, %s3201_s17  ;;  %v2595_v19 = vpack.c.b16 %v2594_v14, %v2594_v14  ;;  %s3210_s17 = smov 96  }
 0x23a   : > { %v2313_v3 = vadd.f32 %v2312_v54, %v2311_v34  ;;  %v2367_v0 = vrot.slane %v2366_v26, 4  ;;  %2435 = vrot.lane.b32.xlu0 %v2434_v37, %s3198_s12  ;;  %v2483_v59 = vrot.slane %v4562_v50, 5  ;;  %v2468_v48 = vpack.c.b16 %v2467_v9, %v2467_v9  ;;  %s3205_s12 = smov 40  }
 0x23b   : > { %v2480_v5 = vsel %vm2411_vm15, %v2479_v42, %v2478_v20  ;;  %v2491_v63 = vrot.slane %v4507_v13, 3  ;;  %v2493_v31 = vrot.slane %v4502_v51, 2  ;;  %v2498_v61 = vrot.slane %v4574_v21, 7 }
 0x23c   : > { %v2314_v44 = vrot.slane %v2313_v3, 2  ;;  %v2368_v41 = vadd.f32 %v2367_v0, %v2366_v26  ;;  %v2482_v60 = vsel %vm2414_vm0, %v2481_v35, %v2480_v5  ;;  %v2500_v42 = vrot.slane %v4562_v50, 6 }
 0x23d   : > { %v2484_v58 = vsel %vm2417_vm1, %v2483_v59, %v2482_v60  ;;  %v2492_v6 = vsel %vm2402_vm12, %v2491_v63, %v4403_v55  ;;  %v2508_v2 = vrot.slane %v4507_v13, 4  ;;  %2596 = vrot.lane.b32.xlu1 %v2595_v19, %s3204_s18  ;;  %v2510_v28 = vrot.slane %v4502_v51, 3 }
 0x23e   : > { %v2315_v11 = vadd.f32 %v2314_v44, %v2313_v3  ;;  %v2369_v39 = vrot.slane %v2368_v41, 2  ;;  %2469 = vrot.lane.b32.xlu0 %v2468_v48, %s3197_s10  ;;  %v2494_v18 = vsel %vm2405_vm13, %v2493_v31, %v2492_v6  ;;  %v2485_v16 = vpack.c.b16 %v2484_v58, %v2484_v58 }
 0x23f   : > { %v2496_v55 = vsel %vm2408_vm14, %v2495_v43, %v2494_v18  ;;  %v2509_v53 = vsel %vm2402_vm12, %v2508_v2, %v4406_v45  ;;  %v2525_v34 = vrot.slane %v4507_v13, 5  ;;  %v2517_v46 = vrot.slane %v4562_v50, 7 }
 0x240   : > { %v2316_v49 = vrot.slane %v2315_v11, 1  ;;  %v2497_v7 = vsel %vm2411_vm15, %v4435_v52, %v2496_v55  ;;  %v2511_v57 = vsel %vm2405_vm13, %v2510_v28, %v2509_v53  ;;  %v2527_v45 = vrot.slane %v4502_v51, 4 }
 0x241   : > { %v2499_v29 = vsel %vm2414_vm0, %v2498_v61, %v2497_v7  ;;  %v2513_v4 = vsel %vm2408_vm14, %v2512_v40, %v2511_v57  ;;  %v2526_v43 = vsel %vm2402_vm12, %v2525_v34, %v4409_v33  ;;  %v4653_v54 = vadd.f32 %v2369_v39, %v2368_v41  ;;  %2486 = vrot.lane.b32.xlu1 %v2485_v16, %s3203_s26  ;;  %s3214_s26 = smov 120  }
 0x242   : > { %v2317_v62 = vadd.f32 %v2316_v49, %v2315_v11  ;;  %v2501_v26 = vsel %vm2417_vm1, %v2500_v42, %v2499_v29  ;;  %v2515_v40 = vsel %vm2411_vm15, %v2514_v47, %v2513_v4  ;;  %v2528_v37 = vsel %vm2405_vm13, %v2527_v45, %v2526_v43 }
 0x243   : > { %v2502_v33 = vpack.c.b16 %v2501_v26, %v2501_v26  ;;  %v2516_v1 = vsel %vm2414_vm0, %v4574_v21, %v2515_v40  ;;  %v2533_v14 = vrot.slane %v4574_v21, 1  ;;  %v4848_v20 = vrot.slane %v4439_v32, 3 }
 0x244   : > { %v2518_v9 = vsel %vm2417_vm1, %v2517_v46, %v2516_v1  ;;  %v2549_v3 = vrot.slane %v4509_v8, 6  ;;  %v2551_v0 = vrot.slane %v4504_v24, 5  ;;  %2319 = vst.msk [vmem:[%s4651_s11] sm:$0x1] %vm2318_vm2, %v2317_v62  ;;  %v4849_v19 = vrot.slane %v4435_v52, 2 }
 0x245   : > { %v2530_v35 = vsel %vm2408_vm14, %v4848_v20, %v2528_v37  ;;  %2503 = vrot.lane.b32.xlu0 %v2502_v33, %s3205_s12  ;;  %v2519_v47 = vpack.c.b16 %v2518_v9, %v2518_v9  ;;  %v2557_v48 = vrot.slane %v4576_v36, 2  ;;  %v2559_v5 = vrot.slane %v4564_v38, 1 }
 0x246   : > { %v2532_v59 = vsel %vm2411_vm15, %v4849_v19, %v2530_v35  ;;  %v2550_v31 = vsel %vm2402_vm12, %v2549_v3, %v4412_v15  ;;  %v2566_v44 = vrot.slane %v4509_v8, 7  ;;  %v2568_v41 = vrot.slane %v4504_v24, 6 }
 0x247   : > { %v2534_v63 = vsel %vm2414_vm0, %v2533_v14, %v2532_v59  ;;  %2520 = vrot.lane.b32.xlu1 %v2519_v47, %s3206_s13  ;;  %v2552_v61 = vsel %vm2405_vm13, %v2551_v0, %v2550_v31  ;;  %v2574_v58 = vrot.slane %v4576_v36, 3  ;;  %v2576_v6 = vrot.slane %v4564_v38, 2 }
 0x248   : > { %v2535_v60 = vsel %vm2417_vm1, %v4562_v50, %v2534_v63  ;;  %v4850_v2 = vrot.slane %v4444_v30, 4  ;;  %v2567_v11 = vsel %vm2402_vm12, %v2566_v44, %v4415_v10  ;;  %v2618_v39 = vrot.slane %v4509_v8, 2 }
 0x249   : > { %v2536_v42 = vpack.c.b16 %v2535_v60, %v2535_v60  ;;  %v4851_v18 = vrot.slane %v4437_v22, 3  ;;  %v2569_v16 = vsel %vm2405_vm13, %v2568_v41, %v2567_v11  ;;  %v2620_v55 = vrot.slane %v4504_v24, 1 }
 0x24a   : > { %v2554_v15 = vsel %vm2408_vm14, %v4850_v2, %v2552_v61  ;;  %v2625_v53 = vrot.slane %v4576_v36, 6  ;;  %v4852_v49 = vrot.slane %v4444_v30, 5  ;;  %v2619_v7 = vsel %vm2402_vm12, %v2618_v39, %v4418_v56 }
 0x24b   : > { %v2556_v28 = vsel %vm2411_vm15, %v4851_v18, %v2554_v15  ;;  %2537 = vrot.lane.b32.xlu0 %v2536_v42, %s3207_s14  ;;  %v2627_v57 = vrot.slane %v4564_v38, 5  ;;  %v4853_v29 = vrot.slane %v4437_v22, 4  ;;  %v2621_v43 = vsel %vm2405_vm13, %v2620_v55, %v2619_v7 }
 0x24c   : > { %v2558_v34 = vsel %vm2414_vm0, %v2557_v48, %v2556_v28  ;;  %v2571_v10 = vsel %vm2408_vm14, %v4852_v49, %v2569_v16  ;;  %v2601_v45 = vrot.slane %v4509_v8, 1  ;;  %v2622_v40 = vsel %vm2408_vm14, %v4444_v30, %v2621_v43 }
 0x24d   : > { %v2560_v46 = vsel %vm2417_vm1, %v2559_v5, %v2558_v34  ;;  %v2573_v4 = vsel %vm2411_vm15, %v4853_v29, %v2571_v10  ;;  %v2608_v56 = vrot.slane %v4576_v36, 5  ;;  %v4854_v1 = vrot.slane %v4437_v22, 7 }
 0x24e   : > { %v2561_v62 = vpack.c.b16 %v2560_v46, %v2560_v46  ;;  %v2575_v26 = vsel %vm2414_vm0, %v2574_v58, %v2573_v4  ;;  %v2602_v14 = vsel %vm2402_vm12, %v2601_v45, %v4421_v23  ;;  %v2610_v9 = vrot.slane %v4564_v38, 4 }
 0x24f   : > { %v2577_v33 = vsel %vm2417_vm1, %v2576_v6, %v2575_v26  ;;  %v2624_v37 = vsel %vm2411_vm15, %v4854_v1, %v2622_v40  ;;  %v2603_v3 = vsel %vm2405_vm13, %v4504_v24, %v2602_v14  ;;  %v2652_v0 = vrot.slane %v4509_v8, 4 }
 0x250   : > { %2562 = vrot.lane.b32.xlu1 %v2561_v62, %s3208_s15  ;;  %v2578_v20 = vpack.c.b16 %v2577_v33, %v2577_v33  ;;  %v2626_v35 = vsel %vm2414_vm0, %v2625_v53, %v2624_v37  ;;  %v4855_v19 = vrot.slane %v4444_v30, 7  ;;  %v2654_v23 = vrot.slane %v4504_v24, 3 }
 0x251   : > { %v2628_v47 = vsel %vm2417_vm1, %v2627_v57, %v2626_v35  ;;  %v2661_v48 = vrot.slane %v4564_v38, 7  ;;  %v4856_v63 = vrot.slane %v4437_v22, 6  ;;  %v2653_v44 = vsel %vm2402_vm12, %v2652_v0, %v4424_v12 }
 0x252   : > { %v2605_v59 = vsel %vm2408_vm14, %v4855_v19, %v2603_v3  ;;  %2579 = vrot.lane.b32.xlu0 %v2578_v20, %s3209_s16  ;;  %v2629_v5 = vpack.c.b16 %v2628_v47, %v2628_v47  ;;  %v2635_v41 = vrot.slane %v4509_v8, 3  ;;  %v2655_v61 = vsel %vm2405_vm13, %v2654_v23, %v2653_v44 }
 0x253   : > { %v2607_v31 = vsel %vm2411_vm15, %v4856_v63, %v2605_v59  ;;  %v2637_v58 = vrot.slane %v4504_v24, 2  ;;  %v2642_v6 = vrot.slane %v4576_v36, 7  ;;  %v4857_v2 = vrot.slane %v4444_v30, 2 }
 0x254   : > { %v2609_v60 = vsel %vm2414_vm0, %v2608_v56, %v2607_v31  ;;  %2630 = vrot.lane.b32.xlu1 %v2629_v5, %s3210_s17  ;;  %v2636_v12 = vsel %vm2402_vm12, %v2635_v41, %v4427_v27  ;;  %v2644_v11 = vrot.slane %v4564_v38, 6  ;;  %v4858_v18 = vrot.slane %v4437_v22, 1 }
 0x255   : > { %v2611_v42 = vsel %vm2417_vm1, %v2610_v9, %v2609_v60  ;;  %v2657_v15 = vsel %vm2408_vm14, %v4857_v2, %v2655_v61  ;;  %v2638_v16 = vsel %vm2405_vm13, %v2637_v58, %v2636_v12  ;;  %v2669_v55 = vrot.slane %v4509_v8, 5 }
 0x256   : > { %v2612_v39 = vpack.c.b16 %v2611_v42, %v2611_v42  ;;  %v2659_v28 = vsel %vm2411_vm15, %v4858_v18, %v2657_v15  ;;  %v4859_v34 = vrot.slane %v4444_v30, 1  ;;  %v2671_v27 = vrot.slane %v4504_v24, 4 }
 0x257   : > { %v2660_v53 = vsel %vm2414_vm0, %v4576_v36, %v2659_v28  ;;  %v2677_v10 = vrot.slane %v4576_v36, 1  ;;  %v2670_v8 = vsel %vm2402_vm12, %v2669_v55, %v4430_v25  ;;  %v2401_v46 = vrot.slane %v4507_v13, 6 }
 0x258   : > { %v2640_v49 = vsel %vm2408_vm14, %v4859_v34, %v2638_v16  ;;  %2613 = vrot.lane.b32.xlu0 %v2612_v39, %s3211_s23  ;;  %v2662_v7 = vsel %vm2417_vm1, %v2661_v48, %v2660_v53  ;;  %v2672_v43 = vsel %vm2405_vm13, %v2671_v27, %v2670_v8  ;;  %v2404_v24 = vrot.slane %v4502_v51, 5 }
 0x259   : > { %v2641_v57 = vsel %vm2411_vm15, %v4437_v22, %v2640_v49  ;;  %v2663_v29 = vpack.c.b16 %v2662_v7, %v2662_v7  ;;  %v4860_v45 = vrot.slane %v4444_v30, 3  ;;  %v2403_v26 = vsel %vm2402_vm12, %v2401_v46, %v4433_v17 }
 0x25a   : > { %v2643_v4 = vsel %vm2414_vm0, %v2642_v6, %v2641_v57  ;;  %v2410_v25 = vrot.slane %v4435_v52, 3  ;;  %v4861_v40 = vrot.slane %v4437_v22, 2  ;;  %v2406_v51 = vsel %vm2405_vm13, %v2404_v24, %v2403_v26 }
 0x25b   : > { %v2645_v36 = vsel %vm2417_vm1, %v2644_v11, %v2643_v4  ;;  %v2674_v62 = vsel %vm2408_vm14, %v4860_v45, %v2672_v43  ;;  %2664 = vrot.lane.b32.xlu1 %v2663_v29, %s3212_s24  ;;  %v2413_v33 = vrot.slane %v4574_v21, 2  ;;  %v2371_v30 = vrot.slane %v4653_v54, 1 }
 0x25c   : > { %v2646_v13 = vpack.c.b16 %v2645_v36, %v2645_v36  ;;  %v2676_v56 = vsel %vm2411_vm15, %v4861_v40, %v2674_v62  ;;  %v4862_v17 = vrot.slane %v4439_v32, 4  ;;  %v2416_v14 = vrot.slane %v4562_v50, 1 }
 0x25d   : > { %v2678_v1 = vsel %vm2414_vm0, %v2677_v10, %v2676_v56  ;;  %v2372_v35 = vadd.f32 %v2371_v30, %v4653_v54  ;;  %vm2719_vm12 = vcmask 916480   ;;  %vm2722_vm13 = vcmask 982016  }
 0x25e   : > { %v2409_v52 = vsel %vm2408_vm14, %v4862_v17, %v2406_v51  ;;  %2647 = vrot.lane.b32.xlu0 %v2646_v13, %s3213_s25  ;;  %v2679_v22 = vsel %vm2417_vm1, %v4564_v38, %v2678_v1 }
 0x25f   : > { %v2412_v37 = vsel %vm2411_vm15, %v2410_v25, %v2409_v52  ;;  %v2680_v21 = vpack.c.b16 %v2679_v22, %v2679_v22  ;;  %2373 = vst.msk [vmem:[%s4651_s11 + $0x1] sm:$0x1] %vm2318_vm2, %v2372_v35 }
 0x260   : > { %v2415_v9 = vsel %vm2414_vm0, %v2413_v33, %v2412_v37 }
 0x261   : > { %v2418_v20 = vsel %vm2417_vm1, %v2416_v14, %v2415_v9 }
 0x262   : > { %2681 = vrot.lane.b32.xlu0 %v2680_v21, %s3214_s26  ;;  %v2419_v38 = vpack.c.b16 %v2418_v20, %v2418_v20 }
 0x2ab   : > { %v2453_v32 = vpop.permute.xlu1 %2452 }
 0x2ac   : > { %v2436_v3 = vpop.permute.xlu0 %2435 }
 0x2ad   : > { %v2685_v19 = vsel %vm2024_vm3, %v2419_v38, %v2436_v3  ;;  %vm2704_vm3 = vcmask 588800  }
 0x2ae   : > { %v2687_v50 = vsel %vm2058_vm5, %v2685_v19, %v2453_v32  ;;  %vm2707_vm5 = vcmask 654336  }
 0x2af   : > { %v2597_v0 = vpop.permute.xlu1 %2596 }
 0x2b0   : > { %v2470_v47 = vpop.permute.xlu0 %2469 }
 0x2b1   : > { %v2689_v48 = vsel %vm2092_vm7, %v2687_v50, %v2470_v47  ;;  %vm2713_vm7 = vcmask 785408  }
 0x2b3   : > { %v2487_v59 = vpop.permute.xlu1 %2486 }
 0x2b4   : > { %v2691_v5 = vsel %vm2126_vm9, %v2689_v48, %v2487_v59  ;;  %vm2716_vm9 = vcmask 850944  }
 0x2b7   : > { %v2504_v23 = vpop.permute.xlu0 %2503 }
 0x2b8   : > { %v2694_v63 = vsel %vm2692_vm4, %v2691_v5, %v2504_v23 }
 0x2b9   : > { %v2521_v54 = vpop.permute.xlu1 %2520 }
 0x2ba   : > { %v2697_v44 = vsel %vm2695_vm6, %v2694_v63, %v2521_v54 }
 0x2bd   : > { %v2538_v31 = vpop.permute.xlu0 %2537 }
 0x2be   : > { %v2700_v41 = vsel %vm2698_vm8, %v2697_v44, %v2538_v31 }
 0x2c2   : > { %v2563_v60 = vpop.permute.xlu1 %2562 }
 0x2c3   : > { %v2703_v61 = vsel %vm2701_vm10, %v2700_v41, %v2563_v60 }
 0x2c4   : > { %v2580_v58 = vpop.permute.xlu0 %2579 }
 0x2c5   : > { %v2706_v6 = vsel %vm2704_vm3, %v2703_v61, %v2580_v58 }
 0x2c6   : > { %v2709_v42 = vsel %vm2707_vm5, %v2706_v6, %v2597_v0  ;;  %v2631_v2 = vpop.permute.xlu1 %2630 }
 0x2ca   : > { %v2614_v15 = vpop.permute.xlu0 %2613 }
 0x2cb   : > { %v2712_v12 = vsel %vm2710_vm11, %v2709_v42, %v2614_v15 }
 0x2cc   : > { %v2715_v39 = vsel %vm2713_vm7, %v2712_v12, %v2631_v2 }
 0x2cd   : > { %v2665_v18 = vpop.permute.xlu1 %2664 }
 0x2d0   : > { %v2648_v11 = vpop.permute.xlu0 %2647 }
 0x2d1   : > { %v2718_v28 = vsel %vm2716_vm9, %v2715_v39, %v2648_v11 }
 0x2d2   : > { %v2721_v55 = vsel %vm2719_vm12, %v2718_v28, %v2665_v18 }
 0x2d4   : > { %v2682_v16 = vpop.permute.xlu0 %2681 }
 0x2d5   : > { %v2724_v53 = vsel %vm2722_vm13, %v2721_v55, %v2682_v16 }
 0x2d6   : > { %2726 = vst [vmem:[%s257_s30] sm:$0xf] %v2724_v53 }
 0x2d7 PF: > { %s16_s1 = sadd.s32 1, %s3194_s1   ;;  %s4863_s18 = smov %s3186_s20 }
 0x2d8   : > { %p13_p10 = scmp.ge.s32.totalorder %s16_s1, 6   ;;  %s4864_s19 = smov %s3190_s21 }
 0x2d9   : > { %s4865_s20 = smov %s4868_s2  ;;  %s4866_s21 = smov %s4872_s22 }
 0x2da   :  { %15 = sbr.rel (!%p13_p10) target bundleno = 3 (0x3), region = 84 }

// kernel: double_conv_forward.4
= control target key start
LH: loop header
LB: loop body
LE: loop exit
PB: predicated region body
PF: predicated region fallthrough
CT: control target
= control target key end

     0   :  { %s3488_s18 = smov 0   ;;  %s3490_s19 = smov 0   ;;  %s5160_s0 = inlined_call_operand.vmem [shape: bf16[2,16,16,8], index: 0, kind: input, shape index: {}]   ;;  %s5161_s1 = inlined_call_operand.vmem [shape: f32[1,8], index: 1, kind: input, shape index: {}]   ;;  %s5162_s2 = inlined_call_operand.vmem [shape: f32[1,8], index: 2, kind: input, shape index: {}]   ;;  %s5163_s3 = inlined_call_operand.vmem [shape: bf16[72,8], index: 3, kind: input, shape index: {}]   ;;  %s5164_s4 = inlined_call_operand.vmem [shape: bf16[2,16,128], index: 4, kind: output, shape index: {0}]   ;;  %s5165_s5 = inlined_call_operand.vmem [shape: f32[2,2,2,8], index: 5, kind: output, shape index: {1}]  }
   0x1   :  { %s3492_s20 = smov 0   ;;  %s3494_s21 = smov 0  }
   0x2   :  { %s3496_s22 = smov 0  }
   0x3 LB: > { %s25_s23 = sadd.s32 1, %s3433_s20  ;;  %s28_s24 = sadd.s32 1, %s3437_s21  ;;  %s3441_s22 = sphi %s3496_s22, %s16_s22   ;;  %s3437_s21 = sphi %s3494_s21, %s5200_s21   ;;  %s3433_s20 = sphi %s3492_s20, %s5199_s20   ;;  %s3429_s19 = sphi %s3490_s19, %s5198_s19   ;;  %s3425_s18 = sphi %s3488_s18, %s5197_s18  }
   0x4   : > { %p26_p0 = scmp.ge.s32.totalorder %s25_s23, 2  ;;  %p3040_p1 = scmp.ge.s32.totalorder %s3441_s22, 1 }
   0x5   : > { %p206_p2 = scmp.lt.s32.totalorder %s3441_s22, 5 }
   0x6   : > { %s5202_s23 = smov (%p26_p0, %s25_s23), 0  ;;  %s5204_s24 = smov (!%p26_p0, %s28_s24), %s3437_s21 }
   0x7   : > { %p207_p3 = pnand %p3040_p1, %p206_p2  ;;  %p30_p4 = scmp.ge.s32.totalorder %s5204_s24, 2 }
   0x8   : > { %p245_p5 = scmp.lt.s32.totalorder (!%p207_p3), %s3429_s19, 1  ;;  %vm268_vm0 = vcmask (!%p207_p3), 57344   ;;  %vm269_vm1 = vsmask.f32 (!%p207_p3), 256  ;;  %v277_v0 = vld [vmem:[#allocation2 + $0x18] sm:$0x1] (!%p207_p3) }
   0x9   : > { %s5206_s24 = smov (%p30_p4, %s5204_s24), 0  ;;  %210 = sbr.rel (%p207_p3) target bundleno = 753 (0x2f1), region = 36 }
   0xa   : > { %vm3522_vm2 = vmand (!%p207_p3), %vm268_vm0, %vm269_vm1  ;;  %vm301_vm3 = vsmask.f32 (!%p207_p3), 7938  ;;  %s3194_s25 = sshll.u32 (!%p207_p3), %s3425_s18, 6  ;;  %v274_v4 = vld [vmem:[#allocation2 + $0xc] sm:$0x1] (!%p207_p3)  ;;  %vm689_vm6 = vcmask (!%p207_p3), 60416  }
   0xb   : > { %v278_v2 = vsel (!%p207_p3), %vm3522_vm2, 0, %v277_v0  ;;  %vm3532_vm4 = vmand (!%p207_p3), %vm268_vm0, %vm301_vm3  ;;  %v280_v5 = vld [vmem:[#allocation2 + $0x24] sm:$0x1] (!%p207_p3)  ;;  %v275_v6 = vsel (!%p207_p3), %vm3522_vm2, 0, %v274_v4  ;;  %v286_v8 = vld [vmem:[#allocation2 + $0x3c] sm:$0x1] (!%p207_p3) }
   0xc   : > { %279 = vst [vmem:[#allocation2 + $0x18] sm:$0x1] (!%p207_p3), %v278_v2  ;;  %v281_v7 = vsel (!%p207_p3), %vm3522_vm2, 0, %v280_v5  ;;  %276 = vst [vmem:[#allocation2 + $0xc] sm:$0x1] (!%p207_p3), %v275_v6  ;;  %v287_v9 = vsel (!%p207_p3), %vm3522_vm2, 0, %v286_v8 }
   0xd   : > { %282 = vst [vmem:[#allocation2 + $0x24] sm:$0x1] (!%p207_p3), %v281_v7  ;;  %v289_v10 = vld [vmem:[#allocation2 + $0x48] sm:$0x1] (!%p207_p3)  ;;  %v309_v11 = vld [vmem:[#allocation2 + $0x20] sm:$0x1] (!%p207_p3)  ;;  %vm3602_vm14 = vmand (!%p207_p3), %vm689_vm6, %vm301_vm3 }
   0xe   : > { %v3555_v12 = vld [vmem:[%s5161_s1] ss:$0 sm:$0xff] (!%p207_p3)  ;;  %288 = vst [vmem:[#allocation2 + $0x3c] sm:$0x1] (!%p207_p3), %v287_v9  ;;  %v290_v13 = vsel (!%p207_p3), %vm3522_vm2, 0, %v289_v10  ;;  %v310_v14 = vsel (!%p207_p3), %vm3532_vm4, 0, %v309_v11 }
   0xf   : > { %v306_v15 = vld [vmem:[#allocation2 + $0x14] sm:$0x1] (!%p207_p3)  ;;  %291 = vst [vmem:[#allocation2 + $0x48] sm:$0x1] (!%p207_p3), %v290_v13  ;;  %311 = vst [vmem:[#allocation2 + $0x20] sm:$0x1] (!%p207_p3), %v310_v14 }
  0x10   : > { %s5208_s19 = smov (!%p245_p5, %s3429_s19), 1  ;;  %v307_v19 = vsel %vm3532_vm4, 0, %v306_v15  ;;  %v3570_v25 = vld [vmem:[%s5162_s2] ss:$0 sm:$0xff]  ;;  %vm526_vm5 = vsmask.f32 4368 }
  0x11   : > { %s3192_s26 = sshll.u32 %s5208_s19, 7  ;;  %308 = vst [vmem:[#allocation2 + $0x14] sm:$0x1] %v307_v19  ;;  %vm3594_vm13 = vmor %vm269_vm1, %vm526_vm5  ;;  %vm1128_vm3 = vcmask 1042432   ;;  %vm1129_vm5 = vcmask 1046532   ;;  %s3443_s10 = smov 24  }
  0x12   : > { %s3545_s29 = scalar_lea.vmem %s5160_s0, %s3192_s26  ;;  %s3444_s11 = smov 48   ;;  %v3386_v7 = vld [vmem:[%s5163_s3 + $0x20] ss:$0 sps:$4 sm:$0xff]  }
  0x13   : > { %s3550_s30 = scalar_lea.vmem %s3545_s29, %s3194_s25  ;;  %v699_v0 = vld [vmem:[#allocation2 + $0x18] sm:$0xf]  ;;  %v691_v10 = vld [vmem:[#allocation2 + $0xc] sm:$0xf]  ;;  %s3047_s12 = sshll.u32 %s3425_s18, 3 }
  0x14   : > { %v3253_v16 = vld [vmem:[%s3550_s30 + $0x8] sm:$0xff]   ;;  %v3214_v17 = vld [vmem:[%s3550_s30] sm:$0xff]   ;;  %v3254_v18 = vld [vmem:[%s3550_s30 + $0x10] sm:$0xff]   ;;  %s3768_s13 = sadd.s32 4294967295, %s3047_s12  ;;  %s360_s14 = sadd.s32 8, %s3047_s12 }
  0x15   : > { %v3219_v20 = vunpack.c.l.bf16 %v3253_v16  ;;  %v3220_v21 = vunpack.c.h.bf16 %v3253_v16  ;;  %v3215_v22 = vunpack.c.l.bf16 %v3214_v17  ;;  %v3216_v23 = vunpack.c.h.bf16 %v3214_v17  ;;  %v3256_v24 = vld [vmem:[%s3550_s30 + $0x20] sm:$0xff]   ;;  %p353_p6 = scmp.gt.s32.totalorder %s3768_s13, 0  ;;  %p361_p7 = scmp.lt.s32.totalorder %s360_s14, 15 }
  0x16   : > { %v3223_v26 = vunpack.c.l.bf16 %v3254_v18  ;;  %v3224_v27 = vunpack.c.h.bf16 %v3254_v18  ;;  %v3231_v28 = vunpack.c.l.bf16 %v3256_v24  ;;  %v3232_v29 = vunpack.c.h.bf16 %v3256_v24  ;;  %s3445_s15 = smov 16   ;;  %p748_p8 = scmp.gt.s32.totalorder %s3425_s18, 0 }
  0x17   : > { %v393_v30 = vmul.f32 %v3219_v20, %v3555_v12  ;;  %v394_v31 = vmul.f32 %v3220_v21, %v3555_v12  ;;  %v391_v32 = vmul.f32 %v3215_v22, %v3555_v12  ;;  %v392_v33 = vmul.f32 %v3216_v23, %v3555_v12  ;;  %s5210_s13 = smov (!%p353_p6, %s3768_s13), 0  ;;  %s5212_s14 = smov (!%p361_p7, %s360_s14), 15 }
  0x18   : > { %v395_v34 = vmul.f32 %v3223_v26, %v3555_v12  ;;  %v396_v35 = vmul.f32 %v3224_v27, %v3555_v12  ;;  %v399_v36 = vmul.f32 %v3231_v28, %v3555_v12  ;;  %v400_v37 = vmul.f32 %v3232_v29, %v3555_v12  ;;  %s3195_s16 = sshll.u32 %s5210_s13, 3  ;;  %s3446_s17 = smov 40  }
  0x19   : > { %v416_v38 = vadd.f32 %v3570_v25, %v393_v30  ;;  %v417_v39 = vadd.f32 %v3570_v25, %v394_v31  ;;  %v414_v40 = vadd.f32 %v3570_v25, %v391_v32  ;;  %v415_v41 = vadd.f32 %v3570_v25, %v392_v33  ;;  %v3257_v32 = vld [vmem:[%s3550_s30 + $0x28] sm:$0xff]   ;;  %s3196_s25 = sshll.u32 %s5212_s14, 3  ;;  %s357_s26 = scalar_lea.vmem %s3545_s29, %s3195_s16 }
  0x1a   : > { %v418_v42 = vadd.f32 %v3570_v25, %v395_v34  ;;  %v419_v43 = vadd.f32 %v3570_v25, %v396_v35  ;;  %v3587_v44 = vadd.f32 %v3570_v25, %v399_v36  ;;  %v3590_v45 = vadd.f32 %v3570_v25, %v400_v37  ;;  %v703_v37 = vld [vmem:[#allocation2 + $0x20] sm:$0x1]  ;;  %s3851_s27 = scalar_lea.vmem %s3545_s29, %s3196_s25  ;;  %s3447_s29 = smov 8  }
  0x1b   : > { %vm432_vm7 = vcmp.gt.f32.partialorder %v416_v38, 0.0  ;;  %vm433_vm8 = vcmp.gt.f32.partialorder %v417_v39, 0.0  ;;  %v448_v46 = vmul.f32 0.01, %v416_v38  ;;  %v449_v47 = vmul.f32 0.01, %v417_v39 }
  0x1c   : > { %vm430_vm9 = vcmp.gt.f32.partialorder %v414_v40, 0.0  ;;  %vm431_vm10 = vcmp.gt.f32.partialorder %v415_v41, 0.0  ;;  %v446_v48 = vmul.f32 0.01, %v414_v40  ;;  %v447_v49 = vmul.f32 0.01, %v415_v41 }
  0x1d   : > { %v464_v50 = vsel %vm432_vm7, %v416_v38, %v448_v46  ;;  %v465_v51 = vsel %vm433_vm8, %v417_v39, %v449_v47  ;;  %vm434_vm11 = vcmp.gt.f32.partialorder %v418_v42, 0.0  ;;  %vm435_vm12 = vcmp.gt.f32.partialorder %v419_v43, 0.0  ;;  %s776_s28 = scalar_select %p748_p8, 1, 0 }
  0x1e   : > { %v3199_v52 = vpack.c.bf16 %v464_v50, %v464_v50  ;;  %v3200_v53 = vpack.c.bf16 %v465_v51, %v465_v51  ;;  %v462_v54 = vsel %vm430_vm9, %v414_v40, %v446_v48  ;;  %v463_v55 = vsel %vm431_vm10, %v415_v41, %v447_v49  ;;  %v706_v41 = vld [vmem:[#allocation2 + $0x24] sm:$0xf]  ;;  %v696_v51 = vld [vmem:[#allocation2 + $0x14] sm:$0x1]  ;;  %vm3715_vm9 = vmor %vm1128_vm3, %vm1129_vm5  ;;  %s3448_s6 = smov 32   ;;  %s3449_s7 = smov 64  }
  0x1f   : > { %v3197_v56 = vpack.c.bf16 %v462_v54, %v462_v54  ;;  %v3198_v57 = vpack.c.bf16 %v463_v55, %v463_v55  ;;  %v450_v58 = vmul.f32 0.01, %v418_v42  ;;  %v451_v59 = vmul.f32 0.01, %v419_v43  ;;  %s3450_s8 = smov 56   ;;  %p252_p9 = scmp.lt.s32.totalorder %s3425_s18, 1 }
  0x20   : > { %v546_v60 = vshrl.u32 %v3199_v52, 16  ;;  %v549_v61 = vshll.u32 %v3199_v52, 16  ;;  %v554_v62 = vshrl.u32 %v3200_v53, 16  ;;  %v557_v63 = vshll.u32 %v3200_v53, 16  ;;  %s3043_s12 = sshll.u32 %s5208_s19, 1 }
  0x21   : > { %v529_v2 = vshrl.u32 %v3197_v56, 16  ;;  %v532_v4 = vshll.u32 %v3197_v56, 16  ;;  %v537_v5 = vshrl.u32 %v3198_v57, 16  ;;  %v540_v6 = vshll.u32 %v3198_v57, 16  ;;  %s5214_s18 = smov (!%p252_p9, %s3425_s18), 1 }
  0x22   : > { %v548_v8 = vrot.slane %v546_v60, 7  ;;  %v556_v9 = vrot.slane %v554_v62, 7  ;;  %v466_v11 = vsel %vm434_vm11, %v418_v42, %v450_v58  ;;  %v467_v13 = vsel %vm435_vm12, %v419_v43, %v451_v59  ;;  %v3635_v58 = vld [vmem:[%s3550_s30 + $0x18] sm:$0xff]   ;;  %s4988_s19 = sadd.s32 %s3043_s12, %s5214_s18 }
  0x23   : > { %v531_v15 = vrot.slane %v529_v2, 7  ;;  %v539_v16 = vrot.slane %v537_v5, 7  ;;  %v3201_v17 = vpack.c.bf16 %v466_v11, %v466_v11  ;;  %v3202_v18 = vpack.c.bf16 %v467_v13, %v467_v13  ;;  %s3046_s18 = sshll.u32 %s4988_s19, 1 }
  0x24   : > { %v551_v19 = vor.u32 %v549_v61, %v548_v8  ;;  %v552_v20 = vrot.slane %v548_v8, 4  ;;  %v559_v21 = vor.u32 %v557_v63, %v556_v9  ;;  %v561_v22 = vrot.slane %v556_v9, 4  ;;  %s5019_s14 = scalar_lea.vmem %s5165_s5, %s3046_s18 }
  0x25   : > { %v534_v23 = vor.u32 %v532_v4, %v531_v15  ;;  %v535_v24 = vrot.slane %v531_v15, 4  ;;  %v542_v26 = vor.u32 %v540_v6, %v539_v16  ;;  %v544_v27 = vrot.slane %v539_v16, 4 }
  0x26   : > { %v560_v28 = vsel %vm3594_vm13, %v552_v20, %v559_v21  ;;  %v700_v29 = vsel %vm3602_vm14, %v551_v19, %v699_v0  ;;  %v563_v30 = vshrl.u32 %v3201_v17, 16  ;;  %v566_v31 = vshll.u32 %v3201_v17, 16 }
  0x27   : > { %701 = vst [vmem:[#allocation2 + $0x18] sm:$0xf] %v700_v29  ;;  %702 = vst.msk [vmem:[#allocation2 + $0x1c] sm:$0xf] %vm689_vm6, %v560_v28  ;;  %v543_v33 = vsel %vm3594_vm13, %v535_v24, %v542_v26  ;;  %v692_v34 = vsel %vm3602_vm14, %v534_v23, %v691_v10  ;;  %v571_v35 = vshrl.u32 %v3202_v18, 16  ;;  %v574_v36 = vshll.u32 %v3202_v18, 16 }
  0x28   : > { %693 = vst [vmem:[#allocation2 + $0xc] sm:$0xf] %v692_v34  ;;  %695 = vst.msk [vmem:[#allocation2 + $0x10] sm:$0xf] %vm689_vm6, %v543_v33  ;;  %v565_v38 = vrot.slane %v563_v30, 7  ;;  %vm438_vm15 = vcmp.gt.f32.partialorder %v3587_v44, 0.0  ;;  %v3235_v43 = vunpack.c.l.bf16 %v3257_v32  ;;  %v3236_v46 = vunpack.c.h.bf16 %v3257_v32 }
  0x29   : > { %vm439_vm1 = vcmp.gt.f32.partialorder %v3590_v45, 0.0  ;;  %v454_v39 = vmul.f32 0.01, %v3587_v44  ;;  %v3620_v40 = vrot.slane %v571_v35, 7  ;;  %v455_v42 = vmul.f32 0.01, %v3590_v45 }
  0x2a   : > { %v568_v47 = vor.u32 %v566_v31, %v565_v38  ;;  %v569_v48 = vrot.slane %v565_v38, 4  ;;  %v704_v50 = vsel %vm3522_vm2, %v561_v22, %v703_v37  ;;  %v401_v56 = vmul.f32 %v3235_v43, %v3555_v12  ;;  %v720_v38 = vld [vmem:[#allocation2 + $0x3c] sm:$0xf] }
  0x2b   : > { %v470_v49 = vsel %vm438_vm15, %v3587_v44, %v454_v39  ;;  %v576_v52 = vor.u32 %v574_v36, %v3620_v40  ;;  %v471_v53 = vsel %vm439_vm1, %v3590_v45, %v455_v42  ;;  %705 = vst [vmem:[#allocation2 + $0x20] sm:$0x1] %v704_v50  ;;  %v402_v57 = vmul.f32 %v3236_v46, %v3555_v12 }
  0x2c   : > { %v3628_v54 = vpack.c.bf16 %v470_v49, %v470_v49  ;;  %v707_v55 = vsel %vm3602_vm14, %v568_v47, %v706_v41  ;;  %v578_v59 = vrot.slane %v3620_v40, 4  ;;  %v3640_v60 = vpack.c.bf16 %v471_v53, %v471_v53 }
  0x2d   : > { %v577_v44 = vsel %vm3594_vm13, %v569_v48, %v576_v52  ;;  %708 = vst [vmem:[#allocation2 + $0x24] sm:$0xf] %v707_v55  ;;  %v697_v45 = vsel %vm3522_vm2, %v544_v27, %v696_v51  ;;  %v3650_v2 = vadd.f32 %v3570_v25, %v401_v56  ;;  %v3653_v4 = vadd.f32 %v3570_v25, %v402_v57 }
  0x2e   : > { %v1189_v61 = vld [vmem:[#allocation2 + $0x18] sm:$0xf]  ;;  %v3644_v62 = vld [vmem:[#allocation2 + $0x1c] sm:$0xf]  ;;  %709 = vst.msk [vmem:[#allocation2 + $0x28] sm:$0xf] %vm689_vm6, %v577_v44  ;;  %v3227_v11 = vunpack.c.l.bf16 %v3635_v58  ;;  %v3228_v18 = vunpack.c.h.bf16 %v3635_v58 }
  0x2f   : > { %v597_v63 = vshrl.u32 %v3628_v54, 16  ;;  %v600_v0 = vshll.u32 %v3628_v54, 16  ;;  %698 = vst [vmem:[#allocation2 + $0x14] sm:$0x1] %v697_v45  ;;  %v1249_v5 = vshrl.u32 %v3644_v62, 16  ;;  %v3130_v6 = vcombine.low %v1189_v61, %v3644_v62 }
  0x30   : > { %v1236_v8 = vshrl.u32 %v1189_v61, 16  ;;  %v1187_v9 = vld [vmem:[#allocation2 + $0xc] sm:$0xf]  ;;  %v1492_v10 = vld [vmem:[#allocation2 + $0x18] sm:$0xf]  ;;  %v1239_v13 = vshll.u32 %v1189_v61, 16 }
  0x31   : > { %v3658_v15 = vld [vmem:[#allocation2 + $0x10] sm:$0xf]  ;;  %v1212_v16 = vshrl.u32 %v1187_v9, 16  ;;  %v1215_v17 = vshll.u32 %v1187_v9, 16  ;;  %v1245_v19 = vshll.u32 %v3644_v62, 16  ;;  %1942 = vrot.lane.b32.xlu1 %v3130_v6, %s3443_s10  ;;  %v1517_v23 = vshrl.u32 %v1492_v10, 16 }
  0x32   : > { %v1238_v20 = vrot.slane %v1236_v8, 4  ;;  %v1225_v21 = vshrl.u32 %v3658_v15, 16  ;;  %v3664_v22 = vld [vmem:[#allocation2 + $0x1c] sm:$0xf]  ;;  %v1241_v24 = vrot.slane %v1239_v13, 5  ;;  %v3129_v26 = vcombine.low %v1187_v9, %v3658_v15 }
  0x33   : > { %v1214_v27 = vrot.slane %v1212_v16, 4  ;;  %v1217_v28 = vrot.slane %v1215_v17, 5  ;;  %v3667_v29 = vrot.slane %v1249_v5, 4  ;;  %v1221_v30 = vshll.u32 %v3658_v15, 16  ;;  %v1404_v51 = vld [vmem:[#allocation2 + $0x18] sm:$0xe] }
  0x34   : > { %v3670_v31 = vrot.slane %v1225_v21, 4  ;;  %v1520_v32 = vshll.u32 %v1492_v10, 16  ;;  %v1242_v33 = vor.u32 %v1241_v24, %v1238_v20  ;;  %1940 = vrot.lane.b32.xlu0 %v3129_v26, %s3443_s10  ;;  %v3153_v35 = vcombine.low %v1492_v10, %v3664_v22  ;;  %v1494_v36 = vld [vmem:[#allocation2 + $0x24] sm:$0xf]  ;;  %v3689_v56 = vld [vmem:[#allocation2 + $0x20] sm:$0x1] }
  0x35   : > { %v1218_v34 = vor.u32 %v1217_v28, %v1214_v27  ;;  %v599_v37 = vrot.slane %v597_v63, 7  ;;  %v3674_v39 = vrot.slane %v1517_v23, 4  ;;  %v1530_v41 = vshrl.u32 %v3664_v22, 16  ;;  %v3677_v42 = vld [vmem:[#allocation2 + $0x28] sm:$0xf] }
  0x36   : > { %v1541_v43 = vshrl.u32 %v1494_v36, 16  ;;  %v605_v46 = vshrl.u32 %v3640_v60, 16  ;;  %v3680_v47 = vrot.slane %v1242_v33, 4  ;;  %v3682_v48 = vrot.slane %v1520_v32, 5  ;;  %2068 = vrot.lane.b32.xlu1 %v3153_v35, %s3444_s11  ;;  %v3691_v57 = vld [vmem:[#allocation2 + $0x10] sm:$0xf] }
  0x37   : > { %v1544_v49 = vshll.u32 %v1494_v36, 16  ;;  %v3154_v50 = vcombine.low %v1494_v36, %v3677_v42  ;;  %v3686_v52 = vrot.slane %v1218_v34, 4  ;;  %v1554_v53 = vshrl.u32 %v3677_v42, 16  ;;  %v1097_v61 = vld [vmem:[#allocation2 + $0xc] sm:$0xe] }
  0x38   : > { %v602_v54 = vor.u32 %v600_v0, %v599_v37  ;;  %v603_v55 = vrot.slane %v599_v37, 4  ;;  %v3694_v44 = vrot.slane %v605_v46, 7  ;;  %v608_v45 = vshll.u32 %v3640_v60, 16  ;;  %v3709_v13 = vld [vmem:[#allocation2 + $0x14] sm:$0x1] }
  0x39   : > { %2070 = vrot.lane.b32.xlu0 %v3154_v50, %s3444_s11  ;;  %vm440_vm7 = vcmp.gt.f32.partialorder %v3650_v2, 0.0  ;;  %vm441_vm8 = vcmp.gt.f32.partialorder %v3653_v4, 0.0  ;;  %v3699_v63 = vrot.slane %v1541_v43, 4  ;;  %v456_v5 = vmul.f32 0.01, %v3650_v2 }
  0x3a   : > { %v721_v0 = vsel %vm3602_vm14, %v602_v54, %v720_v38  ;;  %v457_v6 = vmul.f32 0.01, %v3653_v4  ;;  %v3705_v8 = vrot.slane %v1544_v49, 5  ;;  %v610_v9 = vor.u32 %v608_v45, %v3694_v44  ;;  %v318_v32 = vld [vmem:[#allocation2 + $0x44] sm:$0x1] }
  0x3b   : > { %722 = vst [vmem:[#allocation2 + $0x3c] sm:$0xf] %v721_v0  ;;  %v3090_v60 = vrot.slane %v1404_v51, 9  ;;  %v1444_v10 = vrot.slane %v3644_v62, 5  ;;  %v472_v16 = vsel %vm440_vm7, %v3650_v2, %v456_v5  ;;  %v3082_v21 = vrot.slane %v1097_v61, 9 }
  0x3c   : > { %v473_v17 = vsel %vm441_vm8, %v3653_v4, %v457_v6  ;;  %v1140_v23 = vrot.slane %v3691_v57, 5  ;;  %v611_v24 = vsel %vm3594_vm13, %v603_v55, %v610_v9  ;;  %v3207_v26 = vpack.c.bf16 %v472_v16, %v472_v16  ;;  %v1403_v2 = vld [vmem:[#allocation2 + $0xc] sm:$0xe]  ;;  %v3730_v46 = vld [vmem:[#allocation2 + $0x14] sm:$0x1] }
  0x3d   : > { %v3208_v27 = vpack.c.bf16 %v473_v17, %v473_v17  ;;  %v1447_v28 = vrot.slane %v3689_v56, 5  ;;  %v612_v4 = vrot.slane %v3694_v44, 4  ;;  %723 = vst.msk [vmem:[#allocation2 + $0x40] sm:$0xf] %vm689_vm6, %v611_v24  ;;  %v1446_v33 = vrot.slane %v1444_v10, 4 }
  0x3e   : > { %v1142_v34 = vrot.slane %v1140_v23, 4  ;;  %v1143_v35 = vrot.slane %v3709_v13, 5  ;;  %v614_v36 = vshrl.u32 %v3207_v26, 16  ;;  %v617_v37 = vshll.u32 %v3207_v26, 16  ;;  %v727_v61 = vld [vmem:[#allocation2 + $0x48] sm:$0xf] }
  0x3f   : > { %v622_v38 = vshrl.u32 %v3208_v27, 16  ;;  %v3728_v43 = vsel %vm3715_vm9, %v3090_v60, %v1444_v10  ;;  %v625_v49 = vshll.u32 %v3208_v27, 16  ;;  %v3734_v50 = vsel %vm3715_vm9, %v3082_v21, %v1140_v23  ;;  %v283_v27 = vld [vmem:[#allocation2 + $0x30] sm:$0x1] }
  0x40   : > { %v319_v51 = vsel %vm3532_vm4, 0, %v318_v32  ;;  %v3089_v54 = vrot.slane %v1403_v2, 9  ;;  %v616_v55 = vrot.slane %v614_v36, 7  ;;  %v3742_v0 = vsel %vm3715_vm9, %v1446_v33, %v1447_v28 }
  0x41   : > { %v3738_v45 = vrot.slane %v622_v38, 7  ;;  %v3746_v5 = vsel %vm3715_vm9, %v1142_v34, %v1143_v35  ;;  %320 = vst [vmem:[#allocation2 + $0x44] sm:$0x1] %v319_v51  ;;  %v1437_v60 = vrot.slane %v3658_v15, 5  ;;  %v1440_v10 = vrot.slane %v3730_v46, 5 }
  0x42   : > { %v1195_v6 = vld [vmem:[#allocation2 + $0x3c] sm:$0xf]  ;;  %v397_v16 = vmul.f32 %v3227_v11, %v3555_v12  ;;  %v398_v17 = vmul.f32 %v3228_v18, %v3555_v12  ;;  %v619_v24 = vor.u32 %v617_v37, %v616_v55  ;;  %v620_v26 = vrot.slane %v616_v55, 4  ;;  %v315_v11 = vld [vmem:[#allocation2 + $0x38] sm:$0x1] }
  0x43   : > { %v3749_v9 = vld [vmem:[#allocation2 + $0x3c] sm:$0xe]  ;;  %v1308_v21 = vshrl.u32 %v1195_v6, 16  ;;  %v1311_v23 = vshll.u32 %v1195_v6, 16  ;;  %v627_v28 = vor.u32 %v625_v49, %v3738_v45  ;;  %v629_v32 = vrot.slane %v3738_v45, 4 }
  0x44   : > { %v3086_v2 = vrot.slane %v3749_v9, 9  ;;  %v3764_v33 = vsel %vm3715_vm9, %v3089_v54, %v1437_v60  ;;  %v3770_v58 = vld [vmem:[#allocation2 + $0x40] sm:$0xf]  ;;  %v728_v35 = vsel %vm3602_vm14, %v619_v24, %v727_v61  ;;  %v420_v37 = vadd.f32 %v3570_v25, %v397_v16 }
  0x45   : > { %v3772_v18 = vrot.slane %v1308_v21, 4  ;;  %v3774_v34 = vrot.slane %v1311_v23, 5  ;;  %v3778_v36 = vld [vmem:[#allocation2 + $0x40] sm:$0xf]  ;;  %v1321_v38 = vshrl.u32 %v3770_v58, 16  ;;  %v3133_v49 = vcombine.low %v1195_v6, %v3770_v58 }
  0x46   : > { %v628_v51 = vsel %vm3594_vm13, %v620_v26, %v627_v28  ;;  %729 = vst [vmem:[#allocation2 + $0x48] sm:$0xf] %v728_v35  ;;  %v1168_v54 = vrot.slane %v3778_v36, 5  ;;  %v1439_v55 = vrot.slane %v1437_v60, 4  ;;  %v284_v61 = vsel %vm3522_vm2, 0, %v283_v27 }
  0x47   : > { %730 = vst.msk [vmem:[#allocation2 + $0x4c] sm:$0xf] %vm689_vm6, %v628_v51  ;;  %v316_v21 = vsel %vm3532_vm4, 0, %v315_v11  ;;  %v421_v16 = vadd.f32 %v3570_v25, %v398_v17  ;;  %v879_v23 = vld [vmem:[#allocation2 + $0xc] sm:$0xf]  ;;  %1948 = vrot.lane.b32.xlu1 %v3133_v49, %s3443_s10  ;;  %v3122_v6 = vcombine.low %v3734_v50, %v3746_v5  ;;  %vm436_vm10 = vcmp.gt.f32.partialorder %v420_v37, 0.0 }
  0x48   : > { %v724_v24 = vld [vmem:[#allocation2 + $0x44] sm:$0x1]  ;;  %v3796_v26 = vrot.slane %v1168_v54, 4  ;;  %285 = vst [vmem:[#allocation2 + $0x30] sm:$0x1] %v284_v61  ;;  %v1441_v27 = vsel %vm3715_vm9, %v1439_v55, %v1440_v10  ;;  %v929_v35 = vshrl.u32 %v879_v23, 16 }
  0x49   : > { %317 = vst [vmem:[#allocation2 + $0x38] sm:$0x1] %v316_v21  ;;  %v452_v60 = vmul.f32 0.01, %v420_v37  ;;  %v725_v17 = vsel %vm3522_vm2, %v612_v4, %v724_v24  ;;  %vm437_vm11 = vcmp.gt.f32.partialorder %v421_v16, 0.0  ;;  %v3145_v50 = vcombine.low %v3764_v33, %v1441_v27 }
  0x4a   : > { %v453_v28 = vmul.f32 0.01, %v421_v16  ;;  %726 = vst [vmem:[#allocation2 + $0x44] sm:$0x1] %v725_v17  ;;  %vm901_vm12 = vsmask.f32 3328 }
  0x4b   : > { %v468_v5 = vsel %vm436_vm10, %v420_v37, %v452_v60  ;;  %vm902_vm15 = vsmask.f32 7440  ;;  %v932_v49 = vshll.u32 %v879_v23, 16  ;;  %1894 = vrot.lane.b32.xlu1 %v3122_v6, %s3445_s15  ;;  %v938_v10 = vshll.u32 %v3691_v57, 16 }
  0x4c   : > { %v469_v44 = vsel %vm437_vm11, %v421_v16, %v453_v28  ;;  %v3203_v11 = vpack.c.bf16 %v468_v5, %v468_v5  ;;  %v942_v51 = vshrl.u32 %v3691_v57, 16  ;;  %v948_v33 = vshll.u32 %v3709_v13, 16  ;;  %v1708_v5 = vld [vmem:[#allocation2 + $0x18] sm:$0xe]  ;;  %vm3845_vm1 = vmor %vm901_vm12, %vm902_vm15 }
  0x4d   : > { %v3204_v4 = vpack.c.bf16 %v469_v44, %v469_v44  ;;  %v3818_v37 = vld [vmem:[#allocation2 + $0x48] sm:$0xf]  ;;  %v931_v21 = vrot.slane %v929_v35, 4  ;;  %v934_v16 = vrot.slane %v932_v49, 5  ;;  %v3146_v44 = vcombine.low %v3728_v43, %v3742_v0 }
  0x4e   : > { %v580_v55 = vshrl.u32 %v3203_v11, 16  ;;  %v583_v61 = vshll.u32 %v3203_v11, 16  ;;  %v3820_v23 = vld [vmem:[#allocation2 + $0x4c] sm:$0xf]  ;;  %v1332_v6 = vshrl.u32 %v3818_v37, 16  ;;  %v1335_v24 = vshll.u32 %v3818_v37, 16 }
  0x4f   : > { %v588_v60 = vshrl.u32 %v3204_v4, 16  ;;  %v591_v57 = vshll.u32 %v3204_v4, 16  ;;  %v1345_v13 = vshrl.u32 %v3820_v23, 16  ;;  %v3134_v17 = vcombine.low %v3818_v37, %v3820_v23  ;;  %2020 = vrot.lane.b32.xlu1 %v3145_v50, %s3446_s17  ;;  %v713_v49 = vld [vmem:[#allocation2 + $0x30] sm:$0xf] }
  0x50   : > { %v582_v27 = vrot.slane %v580_v55, 7  ;;  %v935_v28 = vor.u32 %v934_v16, %v931_v21  ;;  %v1169_v11 = vsel %vm3715_vm9, %v3086_v2, %v1168_v54  ;;  %v717_v4 = vld [vmem:[#allocation2 + $0x38] sm:$0x1]  ;;  %v940_v37 = vrot.slane %v938_v10, 5 }
  0x51   : > { %v590_v35 = vrot.slane %v588_v60, 7  ;;  %1950 = vrot.lane.b32.xlu0 %v3134_v17, %s3443_s10  ;;  %v3837_v55 = vld [vmem:[#allocation2 + $0x44] sm:$0x1]  ;;  %v944_v9 = vrot.slane %v942_v51, 4  ;;  %v3840_v16 = vrot.slane %v1332_v6, 4  ;;  %v3097_v17 = vrot.slane %v1708_v5, 9 }
  0x52   : > { %v585_v21 = vor.u32 %v583_v61, %v582_v27  ;;  %v586_v43 = vrot.slane %v582_v27, 4  ;;  %v936_v0 = vrot.slane %v935_v28, 4  ;;  %v1171_v2 = vrot.slane %v3837_v55, 5  ;;  %v3855_v6 = vld [vmem:[#allocation2 + $0x20] sm:$0x1] }
  0x53   : > { %v593_v54 = vor.u32 %v591_v57, %v590_v35  ;;  %v595_v50 = vrot.slane %v590_v35, 4  ;;  %v945_v51 = vor.u32 %v944_v9, %v940_v37  ;;  %v950_v61 = vrot.slane %v948_v33, 5  ;;  %v271_v57 = vld [vmem:[#allocation2] sm:$0x1] }
  0x54   : > { %v714_v10 = vsel %vm3602_vm14, %v585_v21, %v713_v49  ;;  %v1172_v27 = vsel %vm3715_vm9, %v3796_v26, %v1171_v2  ;;  %v1742_v49 = vrot.slane %v3664_v22, 5  ;;  %v303_v21 = vld [vmem:[#allocation2 + $0x8] sm:$0x1]  ;;  %v941_v5 = vsel %vm3845_vm1, %v936_v0, %v940_v37  ;;  %v3246_v9 = vld [vmem:[%s357_s26] sm:$0xff]  }
  0x55   : > { %v594_v28 = vsel %vm3594_vm13, %v586_v43, %v593_v54  ;;  %715 = vst [vmem:[#allocation2 + $0x30] sm:$0xf] %v714_v10  ;;  %v718_v35 = vsel %vm3522_vm2, %v595_v50, %v717_v4  ;;  %2022 = vrot.lane.b32.xlu0 %v3146_v44, %s3446_s17  ;;  %v3126_v33 = vcombine.low %v1169_v11, %v1172_v27  ;;  %v946_v26 = vrot.slane %v945_v51, 4  ;;  %v887_v10 = vld [vmem:[#allocation2 + $0x3c] sm:$0xf] }
  0x56   : > { %716 = vst.msk [vmem:[#allocation2 + $0x34] sm:$0xf] %vm689_vm6, %v594_v28  ;;  %719 = vst [vmem:[#allocation2 + $0x38] sm:$0x1] %v718_v35  ;;  %v1223_v43 = vrot.slane %v1221_v30, 5  ;;  %v1744_v4 = vrot.slane %v1742_v49, 4  ;;  %v3886_v30 = vsel %vm3715_vm9, %v3097_v17, %v1742_v49 }
  0x57   : > { %v1745_v2 = vrot.slane %v3855_v6, 5  ;;  %v1231_v54 = vshll.u32 %v3730_v46, 16  ;;  %v272_v44 = vsel %vm3522_vm2, 0, %v271_v57  ;;  %v3877_v11 = vrot.slane %v1335_v24, 5 }
  0x58   : > { %v951_v37 = vsel %vm3845_vm1, %v946_v26, %v950_v61  ;;  %v1228_v0 = vor.u32 %v3670_v31, %v1223_v43  ;;  %273 = vst [vmem:[#allocation2] sm:$0x1] %v272_v44  ;;  %v304_v15 = vsel %vm3532_vm4, 0, %v303_v21  ;;  %v1224_v46 = vsel %vm3845_vm1, %v3686_v52, %v1223_v43 }
  0x59   : > { %v1233_v50 = vrot.slane %v1231_v54, 5  ;;  %305 = vst [vmem:[#allocation2 + $0x8] sm:$0x1] %v304_v15  ;;  %v3247_v24 = vunpack.c.l.bf16 %v3246_v9  ;;  %1902 = vrot.lane.b32.xlu0 %v3126_v33, %s3445_s15  ;;  %v3114_v51 = vcombine.low %v941_v5, %v951_v37  ;;  %v3248_v61 = vunpack.c.h.bf16 %v3246_v9 }
  0x5a   : > { %v1229_v31 = vrot.slane %v1228_v0, 4  ;;  %v777_v57 = vstv %s776_s28  ;;  %v3894_v27 = vsel %vm3715_vm9, %v1744_v4, %v1745_v2  ;;  %v1247_v28 = vrot.slane %v1245_v19, 5 }
  0x5b   : > { %v758_v17 = vmul.f32 %v3247_v24, %v3555_v12  ;;  %v1255_v52 = vshll.u32 %v3689_v56, 16  ;;  %v759_v21 = vmul.f32 %v3248_v61, %v3555_v12  ;;  %vm3903_vm3 = vcmp.eq.s32.totalorder %v777_v57, 1 }
  0x5c   : > { %v1100_v35 = vld [vmem:[#allocation2 + $0x30] sm:$0xe]  ;;  %v1234_v49 = vsel %vm3845_vm1, %v1229_v31, %v1233_v50  ;;  %v1025_v5 = vshrl.u32 %v887_v10, 16  ;;  %v1028_v19 = vshll.u32 %v887_v10, 16  ;;  %v1252_v54 = vor.u32 %v3667_v29, %v1247_v28 }
  0x5d   : > { %v886_v26 = vld [vmem:[#allocation2 + $0x34] sm:$0xf]  ;;  %v3907_v43 = vld [vmem:[#allocation2 + $0x38] sm:$0x1]  ;;  %v3085_v9 = vrot.slane %v1100_v35, 9  ;;  %v3137_v4 = vcombine.low %v1224_v46, %v1234_v49  ;;  %v767_v62 = vadd.f32 %v3570_v25, %v758_v17  ;;  %1854 = vrot.lane.b32.xlu0 %v3114_v51, %s3447_s29  ;;  %v768_v12 = vadd.f32 %v3570_v25, %v759_v21 }
  0x5e   : > { %v1161_v56 = vrot.slane %v886_v26, 5  ;;  %v1164_v2 = vrot.slane %v3907_v43, 5  ;;  %v885_v44 = vld [vmem:[#allocation2 + $0x30] sm:$0xf]  ;;  %v1248_v0 = vsel %vm3845_vm1, %v3680_v47, %v1247_v28  ;;  %v1257_v15 = vrot.slane %v1255_v52, 5 }
  0x5f   : > { %vm769_vm5 = vcmp.gt.f32.partialorder %v767_v62, 0.0  ;;  %v771_v37 = vmul.f32 0.01, %v767_v62  ;;  %vm770_vm7 = vcmp.gt.f32.partialorder %v768_v12, 0.0  ;;  %v772_v24 = vmul.f32 0.01, %v768_v12 }
  0x60   : > { %v1162_v46 = vsel %vm3715_vm9, %v3085_v9, %v1161_v56  ;;  %v1163_v50 = vrot.slane %v1161_v56, 4  ;;  %v1253_v51 = vrot.slane %v1252_v54, 4  ;;  %v1001_v31 = vshrl.u32 %v885_v44, 16 }
  0x61   : > { %v773_v10 = vsel %vm769_vm5, %v767_v62, %v771_v37  ;;  %v1004_v25 = vshll.u32 %v885_v44, 16  ;;  %1980 = vrot.lane.b32.xlu0 %v3137_v4, %s3448_s6  ;;  %v774_v61 = vsel %vm770_vm7, %v768_v12, %v772_v24  ;;  %v1010_v57 = vshll.u32 %v886_v26, 16 }
  0x62   : > { %v1165_v29 = vsel %vm3715_vm9, %v1163_v50, %v1164_v2  ;;  %v1014_v47 = vshrl.u32 %v886_v26, 16  ;;  %v775_v28 = vpack.c.bf16 %v774_v61, %v773_v10  ;;  %v1258_v52 = vsel %vm3845_vm1, %v1253_v51, %v1257_v15  ;;  %v809_v61 = vld [vmem:[#allocation2 + $0x8] sm:$0x1] }
  0x63   : > { %v3125_v17 = vcombine.low %v1162_v46, %v1165_v29  ;;  %v1003_v35 = vrot.slane %v1001_v31, 4  ;;  %v3138_v49 = vcombine.low %v1248_v0, %v1258_v52  ;;  %v1006_v21 = vrot.slane %v1004_v25, 5 }
  0x64   : > { %v3924_v9 = vrot.slane %v1010_v57, 5  ;;  %v1016_v62 = vrot.slane %v1014_v47, 4  ;;  %v3169_v56 = vcombine.low %v3886_v30, %v3894_v27  ;;  %v779_v4 = vsel %vm3903_vm3, %v775_v28, 0 }
  0x65   : > { %1900 = vrot.lane.b32.xlu1 %v3125_v17, %s3445_s15  ;;  %v1027_v26 = vrot.slane %v1025_v5, 4  ;;  %v1030_v2 = vrot.slane %v1028_v19, 5  ;;  %v3075_v12 = vcombine.low %v779_v4, %v779_v4  ;;  %v3076_v54 = vcombine.high %v779_v4, %v779_v4  ;;  %1982 = vrot.lane.b32.xlu0 %v3138_v49, %s3448_s6  ;;  %v312_v49 = vld [vmem:[#allocation2 + $0x2c] sm:$0x1] }
  0x66   : > { %v1007_v44 = vor.u32 %v1006_v21, %v1003_v35  ;;  %v1020_v37 = vshll.u32 %v3907_v43, 16  ;;  %v1017_v0 = vor.u32 %v1016_v62, %v3924_v9  ;;  %v1034_v46 = vshll.u32 %v3778_v36, 16 }
  0x67   : > { %v1031_v15 = vor.u32 %v1030_v2, %v1027_v26  ;;  %v1038_v50 = vshrl.u32 %v3778_v36, 16  ;;  %v786_v30 = vshrl.u32 %v3075_v12, 16  ;;  %v789_v27 = vshll.u32 %v3075_v12, 16  ;;  %v805_v36 = vld [vmem:[#allocation2] sm:$0xf] }
  0x68   : > { %v794_v33 = vshrl.u32 %v3076_v54, 16  ;;  %v797_v24 = vshll.u32 %v3076_v54, 16  ;;  %v3937_v5 = vrot.slane %v1007_v44, 4  ;;  %v1036_v10 = vrot.slane %v1034_v46, 5 }
  0x69   : > { %2148 = vrot.lane.b32.xlu1 %v3169_v56, %s3449_s7  ;;  %v1032_v19 = vrot.slane %v1031_v15, 4  ;;  %v1523_v43 = vor.u32 %v3682_v48, %v3674_v39  ;;  %v788_v51 = vrot.slane %v786_v30, 7  ;;  %v1040_v25 = vrot.slane %v1038_v50, 4 }
  0x6a   : > { %v796_v31 = vrot.slane %v794_v33, 7  ;;  %v1044_v29 = vshll.u32 %v3837_v55, 16  ;;  %v1013_v57 = vsel %vm3845_vm1, %v3937_v5, %v3924_v9  ;;  %v1018_v47 = vrot.slane %v1017_v0, 4  ;;  %v881_v33 = vld [vmem:[#allocation2 + $0x18] sm:$0xf] }
  0x6b   : > { %v1022_v17 = vrot.slane %v1020_v37, 5  ;;  %v1037_v28 = vsel %vm3845_vm1, %v1032_v19, %v1036_v10  ;;  %v791_v52 = vor.u32 %v789_v27, %v788_v51  ;;  %v792_v35 = vrot.slane %v788_v51, 4  ;;  %v3980_v5 = vld [vmem:[#allocation2 + $0x1c] sm:$0xf] }
  0x6c   : > { %v799_v39 = vor.u32 %v797_v24, %v796_v31  ;;  %v801_v48 = vrot.slane %v796_v31, 4  ;;  %v1041_v21 = vor.u32 %v1040_v25, %v1036_v10  ;;  %v1046_v62 = vrot.slane %v1044_v29, 5 }
  0x6d   : > { %v1524_v55 = vrot.slane %v1523_v43, 4  ;;  %v1526_v56 = vshll.u32 %v3664_v22, 16  ;;  %v806_v9 = vsel %vm3602_vm14, %v791_v52, %v805_v36  ;;  %v1532_v2 = vrot.slane %v1530_v41, 4  ;;  %v3966_v41 = vld [vmem:[#allocation2 + $0x44] sm:$0x1] }
  0x6e   : > { %v800_v4 = vsel %vm3594_vm13, %v792_v35, %v799_v39  ;;  %v810_v26 = vsel %vm3522_vm2, %v801_v48, %v809_v61  ;;  %807 = vst [vmem:[#allocation2] sm:$0xf] %v806_v9  ;;  %v1042_v12 = vrot.slane %v1041_v21, 4  ;;  %v1536_v44 = vshll.u32 %v3855_v6, 16  ;;  %v3986_v43 = vld [vmem:[#allocation2 + $0x48] sm:$0xf] }
  0x6f   : > { %808 = vst.msk [vmem:[#allocation2 + $0x4] sm:$0xf] %vm689_vm6, %v800_v4  ;;  %811 = vst [vmem:[#allocation2 + $0x8] sm:$0x1] %v810_v26  ;;  %v1528_v54 = vrot.slane %v1526_v56, 5  ;;  %v313_v37 = vsel %vm3532_vm4, 0, %v312_v49  ;;  %v1547_v0 = vor.u32 %v3705_v8, %v3699_v63  ;;  %v1314_v46 = vor.u32 %v3774_v34, %v3772_v18 }
  0x70   : > { %314 = vst [vmem:[#allocation2 + $0x2c] sm:$0x1] %v313_v37  ;;  %v1550_v15 = vshll.u32 %v3677_v42, 16  ;;  %v1556_v22 = vrot.slane %v1554_v53, 4  ;;  %v1047_v6 = vsel %vm3845_vm1, %v1042_v12, %v1046_v62  ;;  %v1538_v27 = vrot.slane %v1536_v44, 5 }
  0x71   : > { %v1529_v50 = vsel %vm3845_vm1, %v1524_v55, %v1528_v54  ;;  %v1533_v30 = vor.u32 %v1532_v2, %v1528_v54  ;;  %v1023_v63 = vsel %vm3845_vm1, %v1018_v47, %v1022_v17  ;;  %v3118_v8 = vcombine.low %v1037_v28, %v1047_v6  ;;  %v3992_v36 = vld [vmem:[#allocation2 + $0x4c] sm:$0xf]  ;;  %v3996_v28 = vld [vmem:[#allocation2 + $0x20] sm:$0x1]  ;;  %v321_v35 = vld [vmem:[#allocation2 + $0x50] sm:$0x1] }
  0x72   : > { %v3976_v24 = vrot.slane %v1547_v0, 4  ;;  %v3978_v53 = vrot.slane %v1550_v15, 5  ;;  %v3982_v34 = vrot.slane %v1314_v46, 4  ;;  %v1317_v19 = vshll.u32 %v3770_v58, 16 }
  0x73   : > { %v1534_v18 = vrot.slane %v1533_v30, 4  ;;  %v1327_v10 = vshll.u32 %v3966_v41, 16  ;;  %1862 = vrot.lane.b32.xlu0 %v3118_v8, %s3447_s29  ;;  %v1323_v31 = vrot.slane %v1321_v38, 4  ;;  %v953_v25 = vshrl.u32 %v881_v33, 16 }
  0x74   : > { %v1557_v51 = vor.u32 %v1556_v22, %v3978_v53  ;;  %v956_v29 = vshll.u32 %v881_v33, 16  ;;  %v1319_v47 = vrot.slane %v1317_v19, 5  ;;  %v962_v52 = vshll.u32 %v3980_v5, 16  ;;  %v1709_v19 = vld [vmem:[#allocation2 + $0x24] sm:$0xe] }
  0x75   : > { %v1539_v61 = vsel %vm3845_vm1, %v1534_v18, %v1538_v27  ;;  %v1329_v17 = vrot.slane %v1327_v10, 5  ;;  %v1096_v49 = vld [vmem:[#allocation2] sm:$0xe]  ;;  %v3117_v38 = vcombine.low %v1013_v57, %v1023_v63  ;;  %v1553_v62 = vsel %vm3845_vm1, %v3976_v24, %v3978_v53  ;;  %v1407_v27 = vld [vmem:[#allocation2 + $0x3c] sm:$0xe] }
  0x76   : > { %v3999_v39 = vld [vmem:[#allocation2 + $0x4] sm:$0xf]  ;;  %v4001_v48 = vld [vmem:[#allocation2 + $0x8] sm:$0x1]  ;;  %v4003_v21 = vcombine.low %v1529_v50, %v1539_v61  ;;  %v1338_v55 = vor.u32 %v3877_v11, %v3840_v16  ;;  %v3081_v56 = vrot.slane %v1096_v49, 9  ;;  %v3157_v2 = vcombine.low %v3986_v43, %v3992_v36 }
  0x77   : > { %v1133_v4 = vrot.slane %v3999_v39, 5  ;;  %v1136_v9 = vrot.slane %v4001_v48, 5  ;;  %v710_v26 = vld [vmem:[#allocation2 + $0x2c] sm:$0x1]  ;;  %v4019_v12 = vrot.slane %v1557_v51, 4  ;;  %v1324_v54 = vor.u32 %v1323_v31, %v1319_v47 }
  0x78   : > { %v711_v57 = vsel %vm3522_vm2, %v578_v59, %v710_v26  ;;  %v955_v44 = vrot.slane %v953_v25, 4  ;;  %v958_v37 = vrot.slane %v956_v29, 5  ;;  %v964_v0 = vrot.slane %v962_v52, 5  ;;  %v3394_v60 = vld [vmem:[#allocation2] sm:$0xf] }
  0x79   : > { %v1134_v16 = vsel %vm3715_vm9, %v3081_v56, %v1133_v4  ;;  %v1135_v11 = vrot.slane %v1133_v4, 4  ;;  %712 = vst [vmem:[#allocation2 + $0x2c] sm:$0x1] %v711_v57  ;;  %v1325_v15 = vrot.slane %v1324_v54, 4  ;;  %v966_v22 = vshrl.u32 %v3980_v5, 16 }
  0x7a   : > { %v972_v46 = vshll.u32 %v3996_v28, 16  ;;  %v322_v40 = vsel %vm3532_vm4, 0, %v321_v35  ;;  %v1320_v6 = vsel %vm3845_vm1, %v3982_v34, %v1319_v47  ;;  %v959_v50 = vor.u32 %v958_v37, %v955_v44 }
  0x7b   : > { %v1137_v59 = vsel %vm3715_vm9, %v1135_v11, %v1136_v9  ;;  %323 = vst [vmem:[#allocation2 + $0x50] sm:$0x1] %v322_v40  ;;  %v1341_v30 = vshll.u32 %v3820_v23, 16  ;;  %v1330_v63 = vsel %vm3845_vm1, %v1325_v15, %v1329_v17  ;;  %v968_v8 = vrot.slane %v966_v22, 4  ;;  %v877_v17 = vld [vmem:[#allocation2] sm:$0xf] }
  0x7c   : > { %v3121_v33 = vcombine.low %v1134_v16, %v1137_v59  ;;  %v4035_v18 = vrot.slane %v1338_v55, 4  ;;  %v960_v10 = vrot.slane %v959_v50, 4  ;;  %v974_v51 = vrot.slane %v972_v46, 5  ;;  %v1098_v46 = vld [vmem:[#allocation2 + $0x18] sm:$0xe] }
  0x7d   : > { %v4037_v31 = vrot.slane %v1341_v30, 5  ;;  %v1347_v34 = vrot.slane %v1345_v13, 4  ;;  %v969_v25 = vor.u32 %v968_v8, %v964_v0  ;;  %v3093_v29 = vrot.slane %v1407_v27, 9 }
  0x7e   : > { %1892 = vrot.lane.b32.xlu1 %v3121_v33, %s3445_s15  ;;  %v1465_v61 = vrot.slane %v3770_v58, 5  ;;  %v1468_v47 = vrot.slane %v3966_v41, 5  ;;  %v3141_v52 = vcombine.low %v1320_v6, %v1330_v63  ;;  %v965_v35 = vsel %vm3845_vm1, %v960_v10, %v964_v0  ;;  %v883_v33 = vld [vmem:[#allocation2 + $0x24] sm:$0xf]  ;;  %v4085_v63 = vld [vmem:[#allocation2 + $0x28] sm:$0xf] }
  0x7f   : > { %v1348_v49 = vor.u32 %v1347_v34, %v4037_v31  ;;  %v3098_v55 = vrot.slane %v1709_v19, 9  ;;  %v970_v4 = vrot.slane %v969_v25, 4  ;;  %v1344_v13 = vsel %vm3845_vm1, %v4035_v18, %v4037_v31  ;;  %v3382_v25 = vld [vmem:[%s5163_s3] sm:$0xff]  }
  0x80   : > { %v1509_v56 = vld [vmem:[#allocation2 + $0x2c] sm:$0x1]  ;;  %v1467_v9 = vrot.slane %v1465_v61, 4  ;;  %v1749_v58 = vrot.slane %v3677_v42, 5  ;;  %v4054_v41 = vsel %vm3715_vm9, %v3093_v29, %v1465_v61  ;;  %v905_v54 = vshrl.u32 %v877_v17, 16  ;;  %3273 = vmatprep.subr.bf16.mxu0 %v3382_v25  ;;  %3299 = vmatprep.subr.bf16.mxu1 %v3382_v25 }
  0x81   : > { %v1560_v26 = vshll.u32 %v1509_v56, 16  ;;  %v1752_v57 = vrot.slane %v1509_v56, 5  ;;  %v975_v44 = vsel %vm3845_vm1, %v970_v4, %v974_v51  ;;  %v4059_v11 = vrot.slane %v1348_v49, 4  ;;  %v4103_v53 = vld [vmem:[#allocation2 + $0x2c] sm:$0x1]  ;;  %3274 = vmatpush3.bf16.msra.mxu0 %v3382_v25  ;;  %3304 = vmatpush3.bf16.msra.mxu1 %v3382_v25 }
  0x82   : > { %1860 = vrot.lane.b32.xlu1 %v3117_v38, %s3447_s29  ;;  %v731_v16 = vld [vmem:[#allocation2 + $0x50] sm:$0x1]  ;;  %v4063_v37 = vsel %vm3715_vm9, %v1467_v9, %v1468_v47  ;;  %v1751_v42 = vrot.slane %v1749_v58, 4  ;;  %v3115_v15 = vcombine.low %v965_v35, %v975_v44  ;;  %v4071_v38 = vsel %vm3715_vm9, %v3098_v55, %v1749_v58  ;;  %v1099_v25 = vld [vmem:[#allocation2 + $0x24] sm:$0xe] }
  0x83   : > { %v1562_v0 = vrot.slane %v1560_v26, 5  ;;  %v732_v22 = vsel %vm3522_vm2, %v629_v32, %v731_v16  ;;  %v3149_v40 = vcombine.low %v4054_v41, %v4063_v37  ;;  %v907_v59 = vrot.slane %v905_v54, 4  ;;  %v3384_v54 = vld [vmem:[%s5163_s3 + $0x10] sm:$0xff]  }
  0x84   : > { %733 = vst [vmem:[#allocation2 + $0x50] sm:$0x1] %v732_v22  ;;  %v908_v6 = vshll.u32 %v877_v17, 16  ;;  %v914_v50 = vshll.u32 %v3999_v39, 16  ;;  %v4081_v32 = vsel %vm3715_vm9, %v1751_v42, %v1752_v57  ;;  %v918_v30 = vshrl.u32 %v3999_v39, 16 }
  0x85   : > { %v1563_v45 = vsel %vm3845_vm1, %v4019_v12, %v1562_v0  ;;  %v924_v27 = vshll.u32 %v4001_v48, 16  ;;  %v3083_v10 = vrot.slane %v1098_v46, 9  ;;  %v1147_v48 = vrot.slane %v3980_v5, 5  ;;  %v1408_v0 = vld [vmem:[#allocation2 + $0x48] sm:$0xe] }
  0x86   : > { %2108 = vrot.lane.b32.xlu1 %v4003_v21, %s3450_s8  ;;  %v3162_v12 = vcombine.low %v1553_v62, %v1563_v45  ;;  %v910_v8 = vrot.slane %v908_v6, 5  ;;  %v916_v19 = vrot.slane %v914_v50, 5  ;;  %v920_v51 = vrot.slane %v918_v30, 4  ;;  %v3383_v21 = vld [vmem:[%s5163_s3 + $0x8] sm:$0xff]   ;;  %v292_v37 = vld [vmem:[#allocation2 + $0x54] sm:$0x1] }
  0x87   : > { %v926_v39 = vrot.slane %v924_v27, 5  ;;  %v1150_v34 = vrot.slane %v3996_v28, 5  ;;  %v977_v62 = vshrl.u32 %v883_v33, 16  ;;  %v980_v29 = vshll.u32 %v883_v33, 16  ;;  %3275 = vmatprep.subr.bf16.mxu0 %v3383_v21  ;;  %3300 = vmatprep.subr.bf16.mxu1 %v3383_v21  ;;  %v4131_v27 = vld [vmem:[#allocation2 + $0x24] sm:$0xf] }
  0x88   : > { %2110 = vrot.lane.b32.xlu0 %v3162_v12, %s3450_s8  ;;  %v911_v24 = vor.u32 %v910_v8, %v907_v59  ;;  %v986_v61 = vshll.u32 %v4085_v63, 16  ;;  %v921_v5 = vor.u32 %v920_v51, %v916_v19  ;;  %v4108_v28 = vsel %vm3715_vm9, %v3083_v10, %v1147_v48  ;;  %3276 = vmatpush3.bf16.msra.mxu0 %v3383_v21  ;;  %v3385_v10 = vld [vmem:[%s5163_s3 + $0x18] sm:$0xff]  }
  0x89   : > { %v1149_v47 = vrot.slane %v1147_v48, 4  ;;  %v990_v17 = vshrl.u32 %v4085_v63, 16  ;;  %v979_v49 = vrot.slane %v977_v62, 4  ;;  %v982_v55 = vrot.slane %v980_v29, 5  ;;  %3277 = vmatprep.subr.bf16.mxu0 %v3384_v54  ;;  %3305 = vmatpush3.bf16.msra.mxu1 %v3383_v21 }
  0x8a   : > { %1988 = vrot.lane.b32.xlu1 %v3141_v52, %s3448_s6  ;;  %v912_v35 = vrot.slane %v911_v24, 4  ;;  %v988_v56 = vrot.slane %v986_v61, 5  ;;  %v922_v9 = vrot.slane %v921_v5, 4  ;;  %v996_v57 = vshll.u32 %v4103_v53, 16  ;;  %3301 = vmatprep.subr.bf16.mxu1 %v3384_v54 }
  0x8b   : > { %v1208_v4 = vld [vmem:[#allocation2 + $0x50] sm:$0x1]  ;;  %v4114_v58 = vsel %vm3715_vm9, %v1149_v47, %v1150_v34  ;;  %v992_v26 = vrot.slane %v990_v17, 4  ;;  %v3170_v44 = vcombine.low %v4071_v38, %v4081_v32  ;;  %v983_v42 = vor.u32 %v982_v55, %v979_v49 }
  0x8c   : > { %1856 = vrot.lane.b32.xlu0 %v3115_v15, %s3447_s29  ;;  %v1351_v52 = vshll.u32 %v1208_v4, 16  ;;  %v917_v16 = vsel %vm3845_vm1, %v912_v35, %v916_v19  ;;  %v927_v22 = vsel %vm3845_vm1, %v922_v9, %v926_v39  ;;  %v998_v59 = vrot.slane %v996_v57, 5  ;;  %3278 = vmatpush3.bf16.msra.mxu0 %v3384_v54  ;;  %v4162_v47 = vld [vmem:[#allocation2 + $0x50] sm:$0x1] }
  0x8d   : > { %v993_v46 = vor.u32 %v992_v26, %v988_v56  ;;  %v1613_v6 = vshrl.u32 %v3986_v43, 16  ;;  %v3123_v15 = vcombine.low %v4108_v28, %v4114_v58  ;;  %v984_v45 = vrot.slane %v983_v42, 4  ;;  %3279 = vmatprep.subr.bf16.mxu0 %v3385_v10  ;;  %3306 = vmatpush3.bf16.msra.mxu1 %v3384_v54 }
  0x8e   : > { %v1353_v50 = vrot.slane %v1351_v52, 5  ;;  %v1616_v30 = vshll.u32 %v3986_v43, 16  ;;  %v3113_v33 = vcombine.low %v917_v16, %v927_v22  ;;  %v3094_v19 = vrot.slane %v1408_v0, 9  ;;  %3302 = vmatprep.subr.bf16.mxu1 %v3385_v10 }
  0x8f   : > { %v994_v12 = vrot.slane %v993_v46, 4  ;;  %v1615_v8 = vrot.slane %v1613_v6, 4  ;;  %v989_v39 = vsel %vm3845_vm1, %v984_v45, %v988_v56  ;;  %v1472_v34 = vrot.slane %v3820_v23, 5  ;;  %v4155_v23 = vld [vmem:[#allocation2 + $0x28] sm:$0xf]  ;;  %v3258_v56 = vld [vmem:[%s3550_s30 + $0x30] sm:$0xff]  }
  0x90   : > { %v1354_v51 = vsel %vm3845_vm1, %v4059_v11, %v1353_v50  ;;  %2028 = vrot.lane.b32.xlu0 %v3149_v40, %s3446_s17  ;;  %v1618_v48 = vrot.slane %v1616_v30, 5  ;;  %v1475_v24 = vrot.slane %v1208_v4, 5  ;;  %v1260_v41 = vshrl.u32 %v4131_v27, 16  ;;  %3280 = vmatpush3.bf16.msra.mxu0 %v3385_v10  ;;  %v4182_v46 = vld [vmem:[#allocation2 + $0x2c] sm:$0x1] }
  0x91   : > { %v3142_v21 = vcombine.low %v1344_v13, %v1354_v51  ;;  %v999_v11 = vsel %vm3845_vm1, %v994_v12, %v998_v59  ;;  %v1626_v62 = vshrl.u32 %v3992_v36, 16  ;;  %v1474_v29 = vrot.slane %v1472_v34, 4  ;;  %v4186_v30 = vld [vmem:[#allocation2 + $0x30] sm:$0xf]  ;;  %3307 = vmatpush3.bf16.msra.mxu1 %v3385_v10 }
  0x92   : > { %v3116_v40 = vcombine.low %v989_v39, %v999_v11  ;;  %v1263_v61 = vshll.u32 %v4131_v27, 16  ;;  %v1473_v18 = vsel %vm3715_vm9, %v3094_v19, %v1472_v34  ;;  %v1262_v31 = vrot.slane %v1260_v41, 4 }
  0x93   : > { %1990 = vrot.lane.b32.xlu1 %v3142_v21, %s3448_s6  ;;  %v3084_v13 = vrot.slane %v1099_v25, 9  ;;  %v1154_v5 = vrot.slane %v4085_v63, 5  ;;  %v1476_v17 = vsel %vm3715_vm9, %v1474_v29, %v1475_v24  ;;  %v1157_v49 = vrot.slane %v4103_v53, 5 }
  0x94   : > { %1852 = vrot.lane.b32.xlu0 %v3113_v33, %s3447_s29  ;;  %v1265_v35 = vrot.slane %v1263_v61, 5  ;;  %v1619_v55 = vor.u32 %v1618_v48, %v1615_v8  ;;  %v1273_v4 = vshrl.u32 %v4155_v23, 16  ;;  %v1622_v26 = vshll.u32 %v3992_v36, 16  ;;  %v4203_v48 = vld [vmem:[%s5162_s2] ss:$0 sm:$0xff] }
  0x95   : > { %v1155_v9 = vsel %vm3715_vm9, %v3084_v13, %v1154_v5  ;;  %v1156_v63 = vrot.slane %v1154_v5, 4  ;;  %v3150_v57 = vcombine.low %v1473_v18, %v1476_v17  ;;  %v1628_v52 = vrot.slane %v1626_v62, 4  ;;  %v1712_v61 = vld [vmem:[#allocation2 + $0x48] sm:$0xe]  ;;  %v324_v17 = vld [vmem:[#allocation2 + $0x5c] sm:$0x1] }
  0x96   : > { %v1632_v16 = vshll.u32 %v4162_v47, 16  ;;  %v293_v42 = vsel %vm3522_vm2, 0, %v292_v37  ;;  %v1624_v54 = vrot.slane %v1622_v26, 5  ;;  %v3239_v0 = vunpack.c.l.bf16 %v3258_v56  ;;  %v4214_v37 = vld [vmem:[#allocation2 + $0x34] sm:$0xf] }
  0x97   : > { %2150 = vrot.lane.b32.xlu1 %v3170_v44, %s3449_s7  ;;  %v1158_v53 = vsel %vm3715_vm9, %v1156_v63, %v1157_v49  ;;  %294 = vst [vmem:[#allocation2 + $0x54] sm:$0x1] %v293_v42  ;;  %v3240_v22 = vunpack.c.h.bf16 %v3258_v56  ;;  %v1620_v6 = vrot.slane %v1619_v55, 4  ;;  %v1266_v50 = vor.u32 %v1265_v35, %v1262_v31  ;;  %v4191_v44 = vld [vmem:[%s5161_s1] ss:$0 sm:$0xff] }
  0x98   : > { %1858 = vrot.lane.b32.xlu0 %v3116_v40, %s3447_s29  ;;  %v3124_v59 = vcombine.low %v1155_v9, %v1158_v53  ;;  %v1269_v45 = vshll.u32 %v4155_v23, 16  ;;  %v1629_v38 = vor.u32 %v1628_v52, %v1624_v54  ;;  %v1634_v32 = vrot.slane %v1632_v16, 5  ;;  %v889_v9 = vld [vmem:[#allocation2 + $0x48] sm:$0xf]  ;;  %v4232_v16 = vld [vmem:[#allocation2 + $0x38] sm:$0x1] }
  0x99   : > { %v403_v33 = vmul.f32 %v4191_v44, %v3239_v0  ;;  %v404_v12 = vmul.f32 %v4191_v44, %v3240_v22  ;;  %v1267_v8 = vrot.slane %v1266_v50, 4  ;;  %v1275_v51 = vrot.slane %v1273_v4, 4 }
  0x9a   : > { %v1271_v19 = vrot.slane %v1269_v45, 5  ;;  %v1279_v39 = vshll.u32 %v4182_v46, 16  ;;  %v1630_v10 = vrot.slane %v1629_v38, 4  ;;  %v1284_v21 = vshrl.u32 %v4186_v30, 16 }
  0x9b   : > { %1896 = vrot.lane.b32.xlu1 %v3123_v15, %s3445_s15  ;;  %v426_v34 = vadd.f32 %v4203_v48, %v403_v33  ;;  %v427_v25 = vadd.f32 %v4203_v48, %v404_v12  ;;  %v1625_v11 = vsel %vm3845_vm1, %v1620_v6, %v1624_v54  ;;  %v1287_v58 = vshll.u32 %v4186_v30, 16 }
  0x9c   : > { %2030 = vrot.lane.b32.xlu0 %v3150_v57, %s3446_s17  ;;  %v1276_v24 = vor.u32 %v1275_v51, %v1271_v19  ;;  %v1281_v28 = vrot.slane %v1279_v39, 5  ;;  %v1635_v15 = vsel %vm3845_vm1, %v1630_v10, %v1634_v32  ;;  %v3131_v40 = vcombine.low %v4131_v27, %v4155_v23  ;;  %v4241_v51 = vld [vmem:[#allocation2 + $0x4c] sm:$0xf] }
  0x9d   : > { %vm442_vm8 = vcmp.gt.f32.partialorder %v426_v34, 0.0  ;;  %vm443_vm10 = vcmp.gt.f32.partialorder %v427_v25, 0.0  ;;  %v458_v41 = vmul.f32 0.01, %v426_v34  ;;  %v459_v62 = vmul.f32 0.01, %v427_v25 }
  0x9e   : > { %v1277_v29 = vrot.slane %v1276_v24, 4  ;;  %v1272_v31 = vsel %vm3845_vm1, %v1267_v8, %v1271_v19  ;;  %v1286_v13 = vrot.slane %v1284_v21, 4  ;;  %v1289_v5 = vrot.slane %v1287_v58, 5  ;;  %v734_v45 = vld [vmem:[#allocation2 + $0x54] sm:$0xf] }
  0x9f   : > { %2076 = vrot.lane.b32.xlu1 %v3157_v2, %s3444_s11  ;;  %v474_v18 = vsel %vm442_vm8, %v426_v34, %v458_v41  ;;  %v3165_v35 = vcombine.low %v1625_v11, %v1635_v15  ;;  %v475_v49 = vsel %vm443_vm10, %v427_v25, %v459_v62  ;;  %v1297_v55 = vshrl.u32 %v4214_v37, 16  ;;  %v4244_v21 = vld [vmem:[#allocation2 + $0x50] sm:$0x1] }
  0xa0   : > { %1898 = vrot.lane.b32.xlu0 %v3124_v59, %s3445_s15  ;;  %v3209_v27 = vpack.c.bf16 %v474_v18, %v474_v18  ;;  %v3210_v56 = vpack.c.bf16 %v475_v49, %v475_v49  ;;  %v1282_v4 = vsel %vm3845_vm1, %v1277_v29, %v1281_v28  ;;  %v3101_v43 = vrot.slane %v1712_v61, 9  ;;  %v1405_v29 = vld [vmem:[#allocation2 + $0x24] sm:$0xe] }
  0xa1   : > { %v1770_v2 = vrot.slane %v3992_v36, 5  ;;  %v1773_v57 = vrot.slane %v4162_v47, 5  ;;  %v325_v52 = vsel %vm3532_vm4, 0, %v324_v17  ;;  %v1290_v0 = vor.u32 %v1289_v5, %v1286_v13 }
  0xa2   : > { %v631_v63 = vshrl.u32 %v3209_v27, 16  ;;  %v634_v26 = vshll.u32 %v3209_v27, 16  ;;  %v639_v42 = vshrl.u32 %v3210_v56, 16  ;;  %v642_v53 = vshll.u32 %v3210_v56, 16  ;;  %326 = vst [vmem:[#allocation2 + $0x5c] sm:$0x1] %v325_v52 }
  0xa3   : > { %1944 = vrot.lane.b32.xlu1 %v3131_v40, %s3443_s10  ;;  %v1772_v54 = vrot.slane %v1770_v2, 4  ;;  %v3139_v59 = vcombine.low %v1272_v31, %v1282_v4  ;;  %v1293_v36 = vshll.u32 %v4214_v37, 16  ;;  %v1299_v6 = vrot.slane %v1297_v55, 4 }
  0xa4   : > { %v633_v22 = vrot.slane %v631_v63, 7  ;;  %v641_v50 = vrot.slane %v639_v42, 7  ;;  %v1771_v47 = vsel %vm3715_vm9, %v3101_v43, %v1770_v2  ;;  %v1303_v38 = vshll.u32 %v4232_v16, 16  ;;  %v1102_v2 = vld [vmem:[#allocation2 + $0x48] sm:$0xe] }
  0xa5   : > { %v1049_v32 = vshrl.u32 %v889_v9, 16  ;;  %v1774_v8 = vsel %vm3715_vm9, %v1772_v54, %v1773_v57  ;;  %v1295_v19 = vrot.slane %v1293_v36, 5  ;;  %v1291_v34 = vrot.slane %v1290_v0, 4  ;;  %v4270_v57 = vld [vmem:[#allocation2 + $0x34] sm:$0xf] }
  0xa6   : > { %v636_v33 = vor.u32 %v634_v26, %v633_v22  ;;  %v637_v12 = vrot.slane %v633_v22, 4  ;;  %v644_v39 = vor.u32 %v642_v53, %v641_v50  ;;  %v646_v10 = vrot.slane %v641_v50, 4 }
  0xa7   : > { %2116 = vrot.lane.b32.xlu1 %v3165_v35, %s3450_s8  ;;  %v1305_v25 = vrot.slane %v1303_v38, 5  ;;  %v1300_v24 = vor.u32 %v1299_v6, %v1295_v19  ;;  %v1051_v28 = vrot.slane %v1049_v32, 4  ;;  %v1052_v58 = vshll.u32 %v889_v9, 16 }
  0xa8   : > { %v735_v11 = vsel %vm3602_vm14, %v636_v33, %v734_v45  ;;  %v645_v15 = vsel %vm3594_vm13, %v637_v12, %v644_v39  ;;  %v3173_v41 = vcombine.low %v1771_v47, %v1774_v8  ;;  %v1058_v40 = vshll.u32 %v4241_v51, 16 }
  0xa9   : > { %736 = vst [vmem:[#allocation2 + $0x54] sm:$0xf] %v735_v11  ;;  %v1062_v62 = vshrl.u32 %v4241_v51, 16  ;;  %737 = vst.msk [vmem:[#allocation2 + $0x58] sm:$0xf] %vm689_vm6, %v645_v15  ;;  %v1301_v18 = vrot.slane %v1300_v24, 4  ;;  %v1296_v35 = vsel %vm3845_vm1, %v1291_v34, %v1295_v19  ;;  %v3132_v9 = vcombine.low %v4186_v30, %v4214_v37 }
  0xaa   : > { %v738_v61 = vld [vmem:[#allocation2 + $0x5c] sm:$0x1]  ;;  %v1054_v31 = vrot.slane %v1052_v58, 5  ;;  %v1068_v13 = vshll.u32 %v4244_v21, 16  ;;  %v1451_v5 = vrot.slane %v4155_v23, 5  ;;  %v4260_v49 = vrot.slane %v1058_v40, 5 }
  0xab   : > { %1984 = vrot.lane.b32.xlu1 %v3139_v59, %s3448_s6  ;;  %v739_v17 = vsel %vm3522_vm2, %v646_v10, %v738_v61  ;;  %v1064_v27 = vrot.slane %v1062_v62, 4  ;;  %v1306_v55 = vsel %vm3845_vm1, %v1301_v18, %v1305_v25  ;;  %v3091_v4 = vrot.slane %v1405_v29, 9  ;;  %v4264_v23 = vld [vmem:[#allocation2 + $0x30] sm:$0xf] }
  0xac   : > { %740 = vst [vmem:[#allocation2 + $0x5c] sm:$0x1] %v739_v17  ;;  %v1055_v56 = vor.u32 %v1054_v31, %v1051_v28  ;;  %v1453_v43 = vrot.slane %v1451_v5, 4  ;;  %v1454_v26 = vrot.slane %v4182_v46, 5  ;;  %v3140_v52 = vcombine.low %v1296_v35, %v1306_v55 }
  0xad   : > { %v1065_v63 = vor.u32 %v1064_v27, %v4260_v49  ;;  %v4274_v53 = vrot.slane %v1068_v13, 5  ;;  %v1175_v54 = vrot.slane %v4241_v51, 5  ;;  %v3087_v22 = vrot.slane %v1102_v2, 9 }
  0xae   : > { %v4272_v42 = vrot.slane %v1055_v56, 4  ;;  %v1178_v30 = vrot.slane %v4244_v21, 5  ;;  %v1565_v59 = vshrl.u32 %v4264_v23, 16  ;;  %v4284_v6 = vsel %vm3715_vm9, %v3091_v4, %v1451_v5 }
  0xaf   : > { %2156 = vrot.lane.b32.xlu1 %v3173_v41, %s3449_s7  ;;  %v4278_v0 = vrot.slane %v1065_v63, 4  ;;  %v4288_v50 = vsel %vm3715_vm9, %v1453_v43, %v1454_v26  ;;  %v1568_v45 = vshll.u32 %v4264_v23, 16  ;;  %v1578_v47 = vshrl.u32 %v4270_v57, 16 }
  0xb0   : > { %v1502_v36 = vld [vmem:[#allocation2 + $0x54] sm:$0xf]  ;;  %v1503_v38 = vld [vmem:[#allocation2 + $0x58] sm:$0xf]  ;;  %v1177_v8 = vrot.slane %v1175_v54, 4  ;;  %v1061_v10 = vsel %vm3845_vm1, %v4272_v42, %v4260_v49  ;;  %v1176_v28 = vsel %vm3715_vm9, %v3087_v22, %v1175_v54  ;;  %vm2164_vm5 = vcmask 64512  }
  0xb1   : > { %v1713_v46 = vld [vmem:[#allocation2 + $0x54] sm:$0xe]  ;;  %v1637_v32 = vshrl.u32 %v1502_v36, 16  ;;  %v1640_v33 = vshll.u32 %v1502_v36, 16  ;;  %v1650_v19 = vshrl.u32 %v1503_v38, 16  ;;  %v3158_v51 = vcombine.low %v1502_v36, %v1503_v38 }
  0xb2   : > { %v3102_v12 = vrot.slane %v1713_v46, 9  ;;  %v1646_v39 = vshll.u32 %v1503_v38, 16  ;;  %v4296_v34 = vld [vmem:[#allocation2 + $0x54] sm:$0xf]  ;;  %v1777_v24 = vrot.slane %v1503_v38, 5  ;;  %v1179_v31 = vsel %vm3715_vm9, %v1177_v8, %v1178_v30 }
  0xb3   : > { %v1639_v25 = vrot.slane %v1637_v32, 4  ;;  %v1642_v21 = vrot.slane %v1640_v33, 5  ;;  %v1513_v11 = vld [vmem:[#allocation2 + $0x5c] sm:$0x1]  ;;  %1986 = vrot.lane.b32.xlu1 %v3140_v52, %s3448_s6  ;;  %2078 = vrot.lane.b32.xlu0 %v3158_v51, %s3444_s11  ;;  %v1652_v15 = vrot.slane %v1650_v19, 4  ;;  %v1073_v35 = vshrl.u32 %v4296_v34, 16 }
  0xb4   : > { %v1648_v58 = vrot.slane %v1646_v39, 5  ;;  %v1656_v41 = vshll.u32 %v1513_v11, 16  ;;  %v1780_v40 = vrot.slane %v1513_v11, 5  ;;  %v4302_v62 = vld [vmem:[#allocation2 + $0x58] sm:$0xf]  ;;  %v1778_v61 = vsel %vm3715_vm9, %v3102_v12, %v1777_v24 }
  0xb5   : > { %v1643_v29 = vor.u32 %v1642_v21, %v1639_v25  ;;  %v1779_v18 = vrot.slane %v1777_v24, 4  ;;  %v4308_v17 = vld [vmem:[#allocation2 + $0x5c] sm:$0x1]  ;;  %v1076_v49 = vshll.u32 %v4296_v34, 16  ;;  %v1082_v56 = vshll.u32 %v4302_v62, 16 }
  0xb6   : > { %v1653_v13 = vor.u32 %v1652_v15, %v1648_v58  ;;  %v1658_v5 = vrot.slane %v1656_v41, 5  ;;  %v1086_v4 = vshrl.u32 %v4302_v62, 16  ;;  %v1075_v63 = vrot.slane %v1073_v35, 4  ;;  %v1406_v30 = vld [vmem:[#allocation2 + $0x30] sm:$0xe] }
  0xb7   : > { %v1644_v27 = vrot.slane %v1643_v29, 4  ;;  %v1781_v55 = vsel %vm3715_vm9, %v1779_v18, %v1780_v40  ;;  %1946 = vrot.lane.b32.xlu0 %v3132_v9, %s3443_s10  ;;  %v1078_v26 = vrot.slane %v1076_v49, 5  ;;  %v1084_v42 = vrot.slane %v1082_v56, 5  ;;  %v1199_v19 = vld [vmem:[#allocation2 + $0x54] sm:$0xf] }
  0xb8   : > { %v1654_v43 = vrot.slane %v1653_v13, 4  ;;  %v3174_v2 = vcombine.low %v1778_v61, %v1781_v55  ;;  %v1088_v54 = vrot.slane %v1086_v4, 4  ;;  %v1092_v22 = vshll.u32 %v4308_v17, 16  ;;  %v4331_v11 = vld [vmem:[#allocation2 + $0x58] sm:$0xf] }
  0xb9   : > { %v1649_v52 = vsel %vm3845_vm1, %v1644_v27, %v1648_v58  ;;  %v1071_v9 = vsel %vm3845_vm1, %v4278_v0, %v4274_v53  ;;  %v3127_v46 = vcombine.low %v1176_v28, %v1179_v31  ;;  %v1079_v38 = vor.u32 %v1078_v26, %v1075_v63  ;;  %v4338_v28 = vpop.permute.xlu0 %1940  ;;  %v4351_v40 = vld [vmem:[#allocation2 + $0x38] sm:$0x1]  ;;  %v4360_v31 = vld [vmem:[#allocation2 + $0x3c] sm:$0xf]  ;;  %v4367_v27 = vld [vmem:[#allocation2 + $0x40] sm:$0xf] }
  0xba   : > { %v1659_v36 = vsel %vm3845_vm1, %v1654_v43, %v1658_v5  ;;  %2158 = vrot.lane.b32.xlu1 %v3174_v2, %s3449_s7  ;;  %v3147_v33 = vcombine.low %v4284_v6, %v4288_v50  ;;  %v1089_v12 = vor.u32 %v1088_v54, %v1084_v42  ;;  %v1094_v8 = vrot.slane %v1092_v22, 5  ;;  %v1103_v50 = vld [vmem:[#allocation2 + $0x54] sm:$0xe] }
  0xbb   : > { %v3166_v32 = vcombine.low %v1649_v52, %v1659_v36  ;;  %v1080_v51 = vrot.slane %v1079_v38, 4  ;;  %v3092_v39 = vrot.slane %v1406_v30, 9  ;;  %v1458_v25 = vrot.slane %v4214_v37, 5  ;;  %v4373_v52 = vld [vmem:[#allocation2 + $0x5c] sm:$0x1] }
  0xbc   : > { %v1461_v21 = vrot.slane %v4232_v16, 5  ;;  %v3119_v53 = vcombine.low %v1061_v10, %v1071_v9  ;;  %v1090_v0 = vrot.slane %v1089_v12, 4  ;;  %v1567_v24 = vrot.slane %v1565_v59, 4  ;;  %v295_v36 = vld [vmem:[#allocation2 + $0x60] sm:$0x1]  ;;  %v3259_v9 = vld [vmem:[%s3550_s30 + $0x38] sm:$0xff]  }
  0xbd   : > { %2118 = vrot.lane.b32.xlu0 %v3166_v32, %s3450_s8  ;;  %v1570_v6 = vrot.slane %v1568_v45, 5  ;;  %v3155_v37 = vcombine.low %v4264_v23, %v4270_v57  ;;  %v1460_v16 = vrot.slane %v1458_v25, 4  ;;  %v1356_v58 = vshrl.u32 %v1199_v19, 16  ;;  %s3044_s30 = sshll.u32 %s4988_s19, 2 }
  0xbe   : > { %1904 = vrot.lane.b32.xlu1 %v3127_v46, %s3445_s15  ;;  %v1359_v15 = vshll.u32 %v1199_v19, 16  ;;  %v1085_v10 = vsel %vm3845_vm1, %v1080_v51, %v1084_v42  ;;  %v4347_v59 = vsel %vm3715_vm9, %v3092_v39, %v1458_v25  ;;  %v1369_v45 = vshrl.u32 %v4331_v11, 16  ;;  %v4375_v42 = vpop.permute.xlu0 %2070  ;;  %v4393_v25 = vpop.permute.xlu1 %1942  ;;  %s257_s25 = scalar_lea.vmem %s5164_s4, %s3044_s30 }
  0xbf   : > { %v3135_v41 = vcombine.low %v1199_v19, %v4331_v11  ;;  %v1095_v29 = vsel %vm3845_vm1, %v1090_v0, %v1094_v8  ;;  %v4357_v23 = vsel %vm3715_vm9, %v1460_v16, %v1461_v21  ;;  %v3088_v61 = vrot.slane %v1103_v50, 9 }
  0xc0   : > { %v1182_v18 = vrot.slane %v4302_v62, 5  ;;  %v1185_v13 = vrot.slane %v4308_v17, 5  ;;  %v1571_v5 = vor.u32 %v1570_v6, %v1567_v24  ;;  %v1574_v35 = vshll.u32 %v4270_v57, 16  ;;  %v1710_v24 = vld [vmem:[#allocation2 + $0x30] sm:$0xe] }
  0xc1   : > { %1864 = vrot.lane.b32.xlu0 %v3119_v53, %s3447_s29  ;;  %v1580_v49 = vrot.slane %v1578_v47, 4  ;;  %v1358_v55 = vrot.slane %v1356_v58, 4  ;;  %v1361_v56 = vrot.slane %v1359_v15, 5  ;;  %v1584_v43 = vshll.u32 %v4351_v40, 16 }
  0xc2   : > { %2072 = vrot.lane.b32.xlu1 %v3155_v37, %s3444_s11  ;;  %v1184_v4 = vrot.slane %v1182_v18, 4  ;;  %v3120_v2 = vcombine.low %v1085_v10, %v1095_v29  ;;  %v3148_v17 = vcombine.low %v4347_v59, %v4357_v23  ;;  %v1572_v63 = vrot.slane %v1571_v5, 4 }
  0xc3   : > { %v1576_v26 = vrot.slane %v1574_v35, 5  ;;  %v4379_v47 = vsel %vm3715_vm9, %v3088_v61, %v1182_v18  ;;  %v1589_v54 = vshrl.u32 %v4360_v31, 16  ;;  %v1592_v22 = vshll.u32 %v4360_v31, 16 }
  0xc4   : > { %v1602_v30 = vshrl.u32 %v4367_v27, 16  ;;  %v1186_v46 = vsel %vm3715_vm9, %v1184_v4, %v1185_v13  ;;  %v1586_v12 = vrot.slane %v1584_v43, 5  ;;  %v1362_v8 = vor.u32 %v1361_v56, %v1358_v55  ;;  %v4415_v56 = vpop.permute.xlu1 %2068 }
  0xc5   : > { %2024 = vrot.lane.b32.xlu0 %v3147_v33, %s3446_s17  ;;  %v1577_v38 = vsel %vm3845_vm1, %v1572_v63, %v1576_v26  ;;  %v1581_v32 = vor.u32 %v1580_v49, %v1576_v26  ;;  %v1365_v19 = vshll.u32 %v4331_v11, 16  ;;  %v1371_v51 = vrot.slane %v1369_v45, 4  ;;  %v4405_v45 = vpop.permute.xlu0 %1950  ;;  %v1409_v26 = vld [vmem:[#allocation2 + $0x54] sm:$0xe] }
  0xc6   : > { %1952 = vrot.lane.b32.xlu1 %v3135_v41, %s3443_s10  ;;  %v1375_v39 = vshll.u32 %v4373_v52, 16  ;;  %v296_v33 = vsel %vm3522_vm2, 0, %v295_v36  ;;  %v3243_v53 = vunpack.c.l.bf16 %v3259_v9  ;;  %v3244_v0 = vunpack.c.h.bf16 %v3259_v9 }
  0xc7   : > { %v1582_v21 = vrot.slane %v1581_v32, 4  ;;  %v4397_v6 = vrot.slane %v1589_v54, 4  ;;  %v1363_v50 = vrot.slane %v1362_v8, 4  ;;  %v1367_v37 = vrot.slane %v1365_v19, 5  ;;  %297 = vst [vmem:[#allocation2 + $0x60] sm:$0x1] %v296_v33 }
  0xc8   : > { %v1377_v16 = vrot.slane %v1375_v39, 5  ;;  %v405_v15 = vmul.f32 %v4191_v44, %v3243_v53  ;;  %v406_v10 = vmul.f32 %v4191_v44, %v3244_v0  ;;  %v1756_v59 = vrot.slane %v4270_v57, 5  ;;  %v327_v19 = vld [vmem:[#allocation2 + $0x68] sm:$0x1]  ;;  %v4434_v53 = vld [vmem:[#allocation2 + $0x44] sm:$0x1] }
  0xc9   : > { %1866 = vrot.lane.b32.xlu0 %v3120_v2, %s3447_s29  ;;  %v1587_v58 = vsel %vm3845_vm1, %v1582_v21, %v1586_v12  ;;  %v1372_v29 = vor.u32 %v1371_v51, %v1367_v37  ;;  %v3099_v23 = vrot.slane %v1710_v24, 9  ;;  %v1759_v61 = vrot.slane %v4351_v40, 5 }
  0xca   : > { %v3163_v41 = vcombine.low %v1577_v38, %v1587_v58  ;;  %v3128_v18 = vcombine.low %v4379_v47, %v1186_v46  ;;  %v428_v13 = vadd.f32 %v4203_v48, %v405_v15  ;;  %v429_v5 = vadd.f32 %v4203_v48, %v406_v10  ;;  %v298_v10 = vld [vmem:[#allocation2 + $0x6c] sm:$0x1] }
  0xcb   : > { %v1758_v35 = vrot.slane %v1756_v59, 4  ;;  %v1594_v49 = vrot.slane %v1592_v22, 5  ;;  %v1368_v44 = vsel %vm3845_vm1, %v1363_v50, %v1367_v37  ;;  %v1373_v57 = vrot.slane %v1372_v29, 4 }
  0xcc   : > { %2112 = vrot.lane.b32.xlu1 %v3163_v41, %s3450_s8  ;;  %v1598_v55 = vshll.u32 %v4367_v27, 16  ;;  %vm444_vm11 = vcmp.gt.f32.partialorder %v428_v13, 0.0  ;;  %vm445_vm12 = vcmp.gt.f32.partialorder %v429_v5, 0.0  ;;  %v460_v40 = vmul.f32 0.01, %v428_v13 }
  0xcd   : > { %2026 = vrot.lane.b32.xlu0 %v3148_v17, %s3446_s17  ;;  %v461_v4 = vmul.f32 0.01, %v429_v5  ;;  %v1378_v48 = vsel %vm3845_vm1, %v1373_v57, %v1377_v16  ;;  %v1757_v43 = vsel %vm3715_vm9, %v3099_v23, %v1756_v59  ;;  %v1760_v2 = vsel %vm3715_vm9, %v1758_v35, %v1759_v61  ;;  %v4426_v17 = vpop.permute.xlu0 %2022  ;;  %v3250_v59 = vld [vmem:[%s3851_s27] sm:$0xff]   ;;  %s4465_s27 = scalar_select %p252_p9, 1, 0 }
  0xce   : > { %v1604_v63 = vrot.slane %v1602_v30, 4  ;;  %v3143_v47 = vcombine.low %v1368_v44, %v1378_v48  ;;  %v476_v54 = vsel %vm444_vm11, %v428_v13, %v460_v40  ;;  %v4424_v36 = vrot.slane %v1598_v55, 5  ;;  %v741_v58 = vld [vmem:[#allocation2 + $0x60] sm:$0xf]  ;;  %v1711_v40 = vld [vmem:[#allocation2 + $0x3c] sm:$0xe] }
  0xcf   : > { %v477_v22 = vsel %vm445_vm12, %v429_v5, %v461_v4  ;;  %v3156_v9 = vcombine.low %v4360_v31, %v4367_v27  ;;  %v3211_v46 = vpack.c.bf16 %v476_v54, %v476_v54  ;;  %v3171_v32 = vcombine.low %v1757_v43, %v1760_v2  ;;  %v4436_v31 = vpop.permute.xlu1 %1948  ;;  %v3077_v44 = vld [vmem:[%s5161_s1] ss:$0 sm:$0xff] }
  0xd0   : > { %v3212_v38 = vpack.c.bf16 %v477_v22, %v477_v22  ;;  %1992 = vrot.lane.b32.xlu1 %v3143_v47, %s3448_s6  ;;  %v3095_v12 = vrot.slane %v1409_v26, 9  ;;  %v1479_v30 = vrot.slane %v4331_v11, 5  ;;  %v1482_v8 = vrot.slane %v4373_v52, 5  ;;  %v3078_v26 = vld [vmem:[%s5162_s2] ss:$0 sm:$0xff] }
  0xd1   : > { %1906 = vrot.lane.b32.xlu0 %v3128_v18, %s3445_s15  ;;  %v648_v51 = vshrl.u32 %v3211_v46, 16  ;;  %v651_v39 = vshll.u32 %v3211_v46, 16  ;;  %v1595_v0 = vor.u32 %v1594_v49, %v4397_v6  ;;  %v1605_v24 = vor.u32 %v1604_v63, %v4424_v36  ;;  %v4451_v41 = vpop.permute.xlu0 %1902  ;;  %v330_v18 = vld [vmem:[#allocation2 + $0x74] sm:$0x1] }
  0xd2   : > { %v656_v21 = vshrl.u32 %v3212_v38, 16  ;;  %v659_v33 = vshll.u32 %v3212_v38, 16  ;;  %v1481_v50 = vrot.slane %v1479_v30, 4  ;;  %v1480_v52 = vsel %vm3715_vm9, %v3095_v12, %v1479_v30 }
  0xd3   : > { %v650_v37 = vrot.slane %v648_v51, 7  ;;  %v328_v16 = vsel %vm3532_vm4, 0, %v327_v19  ;;  %v1608_v15 = vshll.u32 %v4434_v53, 16  ;;  %v1596_v13 = vrot.slane %v1595_v0, 4  ;;  %v4467_v43 = vpop.permute.xlu1 %1894 }
  0xd4   : > { %v658_v11 = vrot.slane %v656_v21, 7  ;;  %2152 = vrot.lane.b32.xlu1 %v3171_v32, %s3449_s7  ;;  %v1483_v6 = vsel %vm3715_vm9, %v1481_v50, %v1482_v8  ;;  %329 = vst [vmem:[#allocation2 + $0x68] sm:$0x1] %v328_v16  ;;  %v1606_v5 = vrot.slane %v1605_v24, 4  ;;  %v1763_v49 = vrot.slane %v4367_v27, 5 }
  0xd5   : > { %2074 = vrot.lane.b32.xlu0 %v3156_v9, %s3444_s11  ;;  %v653_v29 = vor.u32 %v651_v39, %v650_v37  ;;  %v654_v23 = vrot.slane %v650_v37, 4  ;;  %v3151_v35 = vcombine.low %v1480_v52, %v1483_v6  ;;  %v299_v4 = vsel %vm3522_vm2, 0, %v298_v10  ;;  %v4476_v46 = vpop.permute.xlu0 %1854 }
  0xd6   : > { %v661_v61 = vor.u32 %v659_v33, %v658_v11  ;;  %v3251_v48 = vunpack.c.l.bf16 %v3250_v59  ;;  %v663_v27 = vrot.slane %v658_v11, 4  ;;  %v1610_v2 = vrot.slane %v1608_v15, 5  ;;  %300 = vst [vmem:[#allocation2 + $0x6c] sm:$0x1] %v299_v4 }
  0xd7   : > { %v742_v55 = vsel %vm3602_vm14, %v653_v29, %v741_v58  ;;  %v3252_v63 = vunpack.c.h.bf16 %v3250_v59  ;;  %v331_v47 = vsel %vm3532_vm4, 0, %v330_v18  ;;  %v3100_v22 = vrot.slane %v1711_v40, 9  ;;  %v4487_v33 = vpop.permute.xlu1 %2020 }
  0xd8   : > { %v662_v57 = vsel %vm3594_vm13, %v654_v23, %v661_v61  ;;  %743 = vst [vmem:[#allocation2 + $0x60] sm:$0xf] %v742_v55  ;;  %2032 = vrot.lane.b32.xlu1 %v3151_v35, %s3446_s17  ;;  %v822_v54 = vmul.f32 %v3251_v48, %v3077_v44  ;;  %332 = vst [vmem:[#allocation2 + $0x74] sm:$0x1] %v331_v47  ;;  %v1765_v32 = vrot.slane %v1763_v49, 4  ;;  %v1766_v12 = vrot.slane %v4434_v53, 5 }
  0xd9   : > { %744 = vst.msk [vmem:[#allocation2 + $0x64] sm:$0xf] %vm689_vm6, %v662_v57  ;;  %v823_v9 = vmul.f32 %v3252_v63, %v3077_v44  ;;  %v841_v8 = vstv %s4465_s27  ;;  %v1601_v19 = vsel %vm3845_vm1, %v1596_v13, %v4424_v36  ;;  %v1611_v3 = vsel %vm3845_vm1, %v1606_v5, %v1610_v2  ;;  %v4501_v59 = vpop.permute.xlu0 %1980 }
  0xda   : > { %v831_v30 = vadd.f32 %v3078_v26, %v822_v54  ;;  %vm4489_vm3 = vcmp.eq.s32.totalorder %v841_v8, 1  ;;  %v3164_v50 = vcombine.low %v1601_v19, %v1611_v3  ;;  %v4495_v11 = vsel %vm3715_vm9, %v3100_v22, %v1763_v49 }
  0xdb   : > { %v745_v38 = vld [vmem:[#allocation2 + $0x68] sm:$0x1]  ;;  %v832_v39 = vadd.f32 %v3078_v26, %v823_v9  ;;  %v4499_v52 = vsel %vm3715_vm9, %v1765_v32, %v1766_v12  ;;  %vm2189_vm7 = vcmask 130048   ;;  %vm2291_vm8 = vcmask 523264  }
  0xdc   : > { %v746_v51 = vsel %vm3522_vm2, %v663_v27, %v745_v38  ;;  %vm833_vm4 = vcmp.gt.f32.partialorder %v831_v30, 0.0  ;;  %v835_v21 = vmul.f32 0.01, %v831_v30  ;;  %v4512_v27 = vpop.permute.xlu1 %1900  ;;  %vm2344_vm10 = vcmask 588800  }
  0xdd   : > { %747 = vst [vmem:[#allocation2 + $0x68] sm:$0x1] %v746_v51  ;;  %vm834_vm15 = vcmp.gt.f32.partialorder %v832_v39, 0.0  ;;  %v836_v53 = vmul.f32 0.01, %v832_v39  ;;  %v4519_v3 = vpop.permute.xlu0 %1982  ;;  %vm2580_vm11 = vcmask 1041409  }
  0xde   : > { %v837_v16 = vsel %vm833_vm4, %v831_v30, %v835_v21  ;;  %vm2583_vm12 = vcmask 1042434   ;;  %vm2586_vm4 = vcmask 1043459  }
  0xdf   : > { %v1201_v24 = vld [vmem:[#allocation2 + $0x60] sm:$0xf]  ;;  %v838_v18 = vsel %vm834_vm15, %v832_v39, %v836_v53  ;;  %vm2589_vm15 = vcmask 1044484  }
  0xe0   : > { %v1202_v36 = vld [vmem:[#allocation2 + $0x64] sm:$0xf]  ;;  %v1410_v37 = vld [vmem:[#allocation2 + $0x60] sm:$0xe]  ;;  %v1380_v58 = vshrl.u32 %v1201_v24, 16  ;;  %v1383_v15 = vshll.u32 %v1201_v24, 16  ;;  %v839_v44 = vpack.c.bf16 %v838_v18, %v837_v16 }
  0xe1   : > { %v1393_v6 = vshrl.u32 %v1202_v36, 16  ;;  %v3136_v10 = vcombine.low %v1201_v24, %v1202_v36  ;;  %v1389_v29 = vshll.u32 %v1202_v36, 16  ;;  %v3096_v23 = vrot.slane %v1410_v37, 9  ;;  %v4504_v13 = vld [vmem:[#allocation2 + $0x60] sm:$0xf] }
  0xe2   : > { %v1486_v61 = vrot.slane %v1202_v36, 5  ;;  %v1382_v5 = vrot.slane %v1380_v58, 4  ;;  %v1385_v35 = vrot.slane %v1383_v15, 5  ;;  %v4507_v57 = vld [vmem:[#allocation2 + $0x64] sm:$0xf]  ;;  %v1661_v48 = vshrl.u32 %v4504_v13, 16 }
  0xe3   : > { %1954 = vrot.lane.b32.xlu0 %v3136_v10, %s3443_s10  ;;  %v1395_v49 = vrot.slane %v1393_v6, 4  ;;  %v1391_v55 = vrot.slane %v1389_v29, 5  ;;  %v843_v26 = vsel %vm4489_vm3, %v839_v44, 0  ;;  %v1664_v47 = vshll.u32 %v4504_v13, 16  ;;  %v4529_v6 = vpop.permute.xlu1 %2148  ;;  %v3389_v10 = vld [vmem:[#allocation2 + $0x40] sm:$0xf] }
  0xe4   : > { %v1487_v40 = vsel %vm3715_vm9, %v3096_v23, %v1486_v61  ;;  %v1488_v4 = vrot.slane %v1486_v61, 4  ;;  %v1210_v2 = vld [vmem:[#allocation2 + $0x68] sm:$0x1]  ;;  %v1386_v63 = vor.u32 %v1385_v35, %v1382_v5  ;;  %v1674_v54 = vshrl.u32 %v4507_v57, 16  ;;  %v3390_v29 = vld [vmem:[#allocation2 + $0x3c] sm:$0xf] }
  0xe5   : > { %v1396_v22 = vor.u32 %v1395_v49, %v1391_v55  ;;  %v1399_v9 = vshll.u32 %v1210_v2, 16  ;;  %v1489_v38 = vrot.slane %v1210_v2, 5  ;;  %v3079_v32 = vcombine.low %v843_v26, %v843_v26  ;;  %v4525_v16 = vld [vmem:[#allocation2 + $0x68] sm:$0x1]  ;;  %v870_v5 = vld [vmem:[#allocation2 + $0x6c] sm:$0xf] }
  0xe6   : > { %v1387_v12 = vrot.slane %v1386_v63, 4  ;;  %v3080_v30 = vcombine.high %v843_v26, %v843_v26  ;;  %v1663_v8 = vrot.slane %v1661_v48, 4  ;;  %v1666_v19 = vrot.slane %v1664_v47, 5 }
  0xe7   : > { %2114 = vrot.lane.b32.xlu0 %v3164_v50, %s3450_s8  ;;  %v1397_v51 = vrot.slane %v1396_v22, 4  ;;  %v1401_v39 = vrot.slane %v1399_v9, 5  ;;  %v1490_v21 = vsel %vm3715_vm9, %v1488_v4, %v1489_v38  ;;  %v850_v53 = vshrl.u32 %v3079_v32, 16  ;;  %v1863_v22 = vpop.permute.xlu0 %1862 }
  0xe8   : > { %v1392_v0 = vsel %vm3845_vm1, %v1387_v12, %v1391_v55  ;;  %v3152_v24 = vcombine.low %v1487_v40, %v1490_v21  ;;  %v853_v36 = vshll.u32 %v3079_v32, 16  ;;  %v858_v37 = vshrl.u32 %v3080_v30, 16  ;;  %v874_v40 = vld [vmem:[#allocation2 + $0x74] sm:$0x1]  ;;  %v1714_v32 = vld [vmem:[#allocation2 + $0x60] sm:$0xe] }
  0xe9   : > { %v1402_v50 = vsel %vm3845_vm1, %v1397_v51, %v1401_v39  ;;  %v852_v58 = vrot.slane %v850_v53, 7  ;;  %v861_v15 = vshll.u32 %v3080_v30, 16  ;;  %v3110_v23 = vcombine.low %v3390_v29, %v3389_v10 }
  0xea   : > { %v3144_v61 = vcombine.low %v1392_v0, %v1402_v50  ;;  %2034 = vrot.lane.b32.xlu1 %v3152_v24, %s3446_s17  ;;  %v860_v18 = vrot.slane %v858_v37, 7  ;;  %v1667_v35 = vor.u32 %v1666_v19, %v1663_v8  ;;  %v1670_v49 = vshll.u32 %v4507_v57, 16 }
  0xeb   : > { %v855_v44 = vor.u32 %v853_v36, %v852_v58  ;;  %v856_v55 = vrot.slane %v852_v58, 4  ;;  %v1676_v4 = vrot.slane %v1674_v54, 4  ;;  %v1680_v48 = vshll.u32 %v4525_v16, 16 }
  0xec   : > { %1994 = vrot.lane.b32.xlu0 %v3144_v61, %s3448_s6  ;;  %v3172_v2 = vcombine.low %v4495_v11, %v4499_v52  ;;  %v863_v63 = vor.u32 %v861_v15, %v860_v18  ;;  %v865_v26 = vrot.slane %v860_v18, 4  ;;  %v1672_v47 = vrot.slane %v1670_v49, 5 }
  0xed   : > { %v871_v9 = vsel %vm3602_vm14, %v855_v44, %v870_v5  ;;  %v1668_v38 = vrot.slane %v1667_v35, 4  ;;  %v1784_v12 = vrot.slane %v4507_v57, 5  ;;  %v1682_v52 = vrot.slane %v1680_v48, 5 }
  0xee   : > { %v864_v54 = vsel %vm3594_vm13, %v856_v55, %v863_v63  ;;  %872 = vst [vmem:[#allocation2 + $0x6c] sm:$0xf] %v871_v9  ;;  %v875_v30 = vsel %vm3522_vm2, %v865_v26, %v874_v40  ;;  %v1677_v11 = vor.u32 %v1676_v4, %v1672_v47  ;;  %vm2206_vm14 = vcmask 195584   ;;  %v3392_v9 = vld [vmem:[#allocation2 + $0xc] sm:$0xf] }
  0xef   : > { %873 = vst.msk [vmem:[#allocation2 + $0x70] sm:$0xf] %vm689_vm6, %v864_v54  ;;  %876 = vst [vmem:[#allocation2 + $0x74] sm:$0x1] %v875_v30  ;;  %v2182_v8 = vsel %vm2164_vm5, %v3110_v23, %v1863_v22  ;;  %v3159_v1 = vcombine.low %v4504_v13, %v4507_v57  ;;  %v3103_v51 = vrot.slane %v1714_v32, 9  ;;  %v1673_v21 = vsel %vm3845_vm1, %v1668_v38, %v1672_v47 }
  0xf0   : > { %v4545_v14 = vpop.permute.xlu1 %1892  ;;  %2154 = vrot.lane.b32.xlu0 %v3172_v2, %s3449_s7  ;;  %v1678_v19 = vrot.slane %v1677_v11, 4  ;;  %v2201_v39 = vsel %vm2189_vm7, %v2182_v8, %v4451_v41  ;;  %v1786_v53 = vrot.slane %v1784_v12, 4  ;;  %v1787_v0 = vrot.slane %v4525_v16, 5  ;;  %v3391_v22 = vld [vmem:[#allocation2 + $0x10] sm:$0xf] }
  0xf1   : > { %v4561_v24 = vsel %vm2206_vm14, %v2201_v39, %v4405_v45  ;;  %vm2361_vm2 = vcmask 1043456   ;;  %v3112_v41 = vcombine.low %v4296_v34, %v4302_v62  ;;  %v1785_v45 = vsel %vm3715_vm9, %v3103_v51, %v1784_v12 }
  0xf2   : > { %v1683_v36 = vsel %vm3845_vm1, %v1678_v19, %v1682_v52  ;;  %3309 = vmatprep.subr.msk.bf16.mxu0 %vm2361_vm2, %v3386_v7  ;;  %v2363_v57 = vsel %vm2361_vm2, %v3386_v7, 0  ;;  %3310 = vmatprep.subr.msk.bf16.mxu1 %vm2361_vm2, %v3386_v7  ;;  %v1788_v50 = vsel %vm3715_vm9, %v1786_v53, %v1787_v0  ;;  %v3106_v38 = vcombine.low %v3392_v9, %v3391_v22 }
  0xf3   : > { %v3167_v37 = vcombine.low %v1673_v21, %v1683_v36  ;;  %3282 = vmatpush3.bf16.msra.mxu0 %v2363_v57  ;;  %3308 = vmatpush3.bf16.msra.mxu1 %v2363_v57  ;;  %v3175_v40 = vcombine.low %v1785_v45, %v1788_v50  ;;  %vm2223_vm6 = vcmask 261120   ;;  %vm2240_vm13 = vcmask 326656  }
  0xf4   : > { %v4565_v13 = vpop.permute.xlu1 %1860  ;;  %2080 = vrot.lane.b32.xlu0 %v3159_v1, %s3444_s11  ;;  %v2170_v21 = vsel %vm2164_vm5, %v3106_v38, %v4476_v46  ;;  %vm2592_vm3 = vcmask 1045509   ;;  %vm2595_vm2 = vcmask 1046534  }
  0xf5   : > { %v1506_v16 = vld [vmem:[#allocation2 + $0x6c] sm:$0xf]  ;;  %v2193_v57 = vsel %vm2189_vm7, %v2170_v21, %v4467_v43 }
  0xf6   : > { %v1507_v58 = vld [vmem:[#allocation2 + $0x70] sm:$0xf]  ;;  %v1685_v15 = vshrl.u32 %v1506_v16, 16  ;;  %v1688_v10 = vshll.u32 %v1506_v16, 16  ;;  %v1515_v29 = vld [vmem:[#allocation2 + $0x74] sm:$0x1]  ;;  %v2210_v20 = vsel %vm2206_vm14, %v2193_v57, %v4393_v25 }
  0xf7   : > { %v1698_v23 = vshrl.u32 %v1507_v58, 16  ;;  %v3160_v61 = vcombine.low %v1506_v16, %v1507_v58  ;;  %v1694_v18 = vshll.u32 %v1507_v58, 16  ;;  %v1704_v5 = vshll.u32 %v1515_v29, 16  ;;  %v1715_v35 = vld [vmem:[#allocation2 + $0x6c] sm:$0xe] }
  0xf8   : > { %v1687_v49 = vrot.slane %v1685_v15, 4  ;;  %v1690_v44 = vrot.slane %v1688_v10, 5  ;;  %2120 = vrot.lane.b32.xlu0 %v3167_v37, %s3450_s8  ;;  %v1791_v55 = vrot.slane %v1507_v58, 5  ;;  %v2109_v4 = vpop.permute.xlu1 %2108  ;;  %v3104_v47 = vrot.slane %v1715_v35, 9  ;;  %v3393_v37 = vld [vmem:[#allocation2 + $0x4] sm:$0xf] }
  0xf9   : > { %2082 = vrot.lane.b32.xlu1 %v3160_v61, %s3444_s11  ;;  %v1696_v48 = vrot.slane %v1694_v18, 5  ;;  %v1700_v2 = vrot.slane %v1698_v23, 4  ;;  %v1706_v12 = vrot.slane %v1704_v5, 5  ;;  %v1794_v30 = vrot.slane %v1515_v29, 5  ;;  %v3396_v5 = vld [vmem:[#allocation2 + $0x30] sm:$0xf] }
  0xfa   : > { %v2111_v63 = vpop.permute.xlu0 %2110  ;;  %v1691_v26 = vor.u32 %v1690_v44, %v1687_v49  ;;  %v1793_v54 = vrot.slane %v1791_v55, 4  ;;  %v1792_v51 = vsel %vm3715_vm9, %v3104_v47, %v1791_v55  ;;  %v3105_v16 = vcombine.low %v3394_v60, %v3393_v37 }
  0xfb   : > { %v1701_v32 = vor.u32 %v1700_v2, %v1696_v48  ;;  %v2227_v46 = vsel %vm2223_vm6, %v2210_v20, %v4519_v3 }
  0xfc   : > { %v1692_v11 = vrot.slane %v1691_v26, 4  ;;  %2160 = vrot.lane.b32.xlu0 %v3175_v40, %s3449_s7  ;;  %v1989_v1 = vpop.permute.xlu1 %1988  ;;  %v1795_v39 = vsel %vm3715_vm9, %v1793_v54, %v1794_v30  ;;  %v2244_v29 = vsel %vm2240_vm13, %v2227_v46, %v4426_v17  ;;  %vm2257_vm9 = vcmask 392192  }
  0xfd   : > { %v1702_v52 = vrot.slane %v1701_v32, 4  ;;  %v3176_v36 = vcombine.low %v1792_v51, %v1795_v39 }
  0xfe   : > { %v4577_v8 = vpop.permute.xlu0 %1856  ;;  %v1697_v7 = vsel %vm3845_vm1, %v1692_v11, %v1696_v48 }
  0xff   : > { %v1707_v19 = vsel %vm3845_vm1, %v1702_v52, %v1706_v12  ;;  %vm2274_vm1 = vcmask 457728  }
 0x100   : > { %v3168_v53 = vcombine.low %v1697_v7, %v1707_v19 }
 0x102   : > { %v2029_v0 = vpop.permute.xlu0 %2028  ;;  %2122 = vrot.lane.b32.xlu1 %v3168_v53, %s3450_s8  ;;  %v3397_v53 = vld [vmem:[#allocation2 + $0x18] sm:$0xf] }
 0x105   : > { %v1991_v45 = vpop.permute.xlu1 %1990 }
 0x106   : > { %v1853_v50 = vpop.permute.xlu0 %1852  ;;  %2162 = vrot.lane.b32.xlu1 %v3176_v36, %s3449_s7 }
 0x107   : > { %v2167_v58 = vsel %vm2164_vm5, %v3105_v16, %v1853_v50 }
 0x108   : > { %v2191_v43 = vsel %vm2189_vm7, %v2167_v58, %v4545_v14  ;;  %v2261_v14 = vsel %vm2257_vm9, %v2244_v29, %v4375_v42 }
 0x109   : > { %v2151_v15 = vpop.permute.xlu1 %2150  ;;  %v2208_v10 = vsel %vm2206_vm14, %v2191_v43, %v4338_v28  ;;  %v2278_v17 = vsel %vm2274_vm1, %v2261_v14, %v2111_v63 }
 0x10a   : > { %v2225_v25 = vsel %vm2223_vm6, %v2208_v10, %v4501_v59  ;;  %v2295_v18 = vsel %vm2291_vm8, %v2278_v17, %v2151_v15  ;;  %v1859_v49 = vpop.permute.xlu0 %1858 }
 0x10b   : > { %v2242_v3 = vsel %vm2240_vm13, %v2225_v25, %v4487_v33 }
 0x10c   : > { %v2259_v23 = vsel %vm2257_vm9, %v2242_v3, %v4415_v56  ;;  %v3395_v56 = vld [vmem:[#allocation2 + $0x34] sm:$0xf]  ;;  %v3399_v3 = vld [vmem:[#allocation2 + $0x24] sm:$0xf] }
 0x10d   : > { %v1897_v28 = vpop.permute.xlu1 %1896  ;;  %v2276_v61 = vsel %vm2274_vm1, %v2259_v23, %v2109_v4  ;;  %v3109_v35 = vcombine.low %v3396_v5, %v3395_v56  ;;  %v3400_v23 = vld [vmem:[#allocation2 + $0x28] sm:$0xf] }
 0x10e   : > { %v2293_v59 = vsel %vm2291_vm8, %v2276_v61, %v4529_v6  ;;  %v2031_v6 = vpop.permute.xlu0 %2030  ;;  %v3108_v14 = vcombine.low %v3399_v3, %v3400_v23 }
 0x10f   : > { %3283 = vmatprep.mubr.msk.bf16.mxu0 %vm2344_vm10, %v2293_v59  ;;  %v2179_v44 = vsel %vm2164_vm5, %v3109_v35, %v4565_v13 }
 0x110   : > { %3284 = vmatmul.mubr.msk.bf16.vlgmr.msra.gmra.mrb[0].mxu0 %vm2344_vm10, %v2295_v18  ;;  %v2199_v40 = vsel %vm2189_vm7, %v2179_v44, %v4512_v27  ;;  %v2176_v61 = vsel %vm2164_vm5, %v3108_v14, %v1859_v49 }
 0x111   : > { %v2077_v33 = vpop.permute.xlu1 %2076  ;;  %v2216_v4 = vsel %vm2206_vm14, %v2199_v40, %v4436_v31  ;;  %v2235_v31 = vsel %vm2223_vm6, %v4561_v24, %v1991_v45  ;;  %v3401_v40 = vld [vmem:[#allocation2 + $0x48] sm:$0xf] }
 0x112   : > { %v2233_v2 = vsel %vm2223_vm6, %v2216_v4, %v1989_v1  ;;  %v1899_v47 = vpop.permute.xlu0 %1898  ;;  %v2252_v54 = vsel %vm2240_vm13, %v2235_v31, %v2031_v6  ;;  %v3402_v6 = vld [vmem:[#allocation2 + $0x4c] sm:$0xf] }
 0x113   : > { %v2250_v63 = vsel %vm2240_vm13, %v2233_v2, %v2029_v0  ;;  %v3398_v0 = vld [vmem:[#allocation2 + $0x1c] sm:$0xf]  ;;  %v2197_v17 = vsel %vm2189_vm7, %v2176_v61, %v1899_v47  ;;  %v3111_v49 = vcombine.low %v3401_v40, %v3402_v6 }
 0x114   : > { %v2267_v26 = vsel %vm2257_vm9, %v2250_v63, %v2077_v33  ;;  %v3107_v36 = vcombine.low %v3397_v53, %v3398_v0 }
 0x115   : > { %v1945_v42 = vpop.permute.xlu1 %1944 }
 0x116   : > { %v2173_v37 = vsel %vm2164_vm5, %v3107_v36, %v4577_v8 }
 0x117   : > { %v2195_v60 = vsel %vm2189_vm7, %v2173_v37, %v1897_v28 }
 0x118   : > { %v2212_v16 = vsel %vm2206_vm14, %v2195_v60, %v1945_v42 }
 0x119   : > { %v2117_v55 = vpop.permute.xlu1 %2116 }
 0x11a   : > { %v2284_v22 = vsel %vm2274_vm1, %v2267_v26, %v2117_v55 }
 0x11d   : > { %v1985_v48 = vpop.permute.xlu1 %1984 }
 0x11e   : > { %v2229_v50 = vsel %vm2223_vm6, %v2212_v16, %v1985_v48 }
 0x121   : > { %v2157_v9 = vpop.permute.xlu1 %2156 }
 0x122   : > { %v2301_v13 = vsel %vm2291_vm8, %v2284_v22, %v2157_v9 }
 0x123   : > { %3291 = vmatprep.mubr.msk.bf16.mxu1 %vm2344_vm10, %v2301_v13 }
 0x125   : > { %v2079_v27 = vpop.permute.xlu0 %2078  ;;  %v1987_v38 = vpop.permute.xlu1 %1986 }
 0x126   : > { %v2269_v30 = vsel %vm2257_vm9, %v2252_v54, %v2079_v27 }
 0x129   : > { %v1947_v32 = vpop.permute.xlu0 %1946 }
 0x12a   : > { %v2214_v59 = vsel %vm2206_vm14, %v2197_v17, %v1947_v32 }
 0x12b   : > { %v2231_v33 = vsel %vm2223_vm6, %v2214_v59, %v1987_v38 }
 0x12c   : > { %v2159_v12 = vpop.permute.xlu1 %2158 }
 0x12f   : > { %v2119_v11 = vpop.permute.xlu0 %2118 }
 0x130   : > { %v2286_v52 = vsel %vm2274_vm1, %v2269_v30, %v2119_v11  ;;  %v1905_v7 = vpop.permute.xlu1 %1904 }
 0x131   : > { %v2303_v1 = vsel %vm2291_vm8, %v2286_v52, %v2159_v12 }
 0x132   : > { %3292 = vmatmul.mubr.msk.bf16.vlgmr.msra.gmra.mrb[0].mxu1 %vm2344_vm10, %v2303_v1 }
 0x133   : > { %v1865_v19 = vpop.permute.xlu0 %1864 }
 0x134   : > { %v2073_v51 = vpop.permute.xlu1 %2072  ;;  %v2185_v48 = vsel %vm2164_vm5, %v3111_v49, %v1865_v19 }
 0x135   : > { %v2203_v63 = vsel %vm2189_vm7, %v2185_v48, %v1905_v7 }
 0x137   : > { %v2025_v39 = vpop.permute.xlu0 %2024 }
 0x138   : > { %v1953_v21 = vpop.permute.xlu1 %1952  ;;  %v2246_v46 = vsel %vm2240_vm13, %v2229_v50, %v2025_v39 }
 0x139   : > { %v2263_v58 = vsel %vm2257_vm9, %v2246_v46, %v2073_v51  ;;  %v2220_v26 = vsel %vm2206_vm14, %v2203_v63, %v1953_v21 }
 0x13b   : > { %v1867_v24 = vpop.permute.xlu0 %1866 }
 0x13c   : > { %v2188_v31 = vsel %vm2164_vm5, %v3112_v41, %v1867_v24 }
 0x13e   : > { %v2113_v57 = vpop.permute.xlu1 %2112 }
 0x13f   : > { %v2027_v45 = vpop.permute.xlu0 %2026  ;;  %v2280_v43 = vsel %vm2274_vm1, %v2263_v58, %v2113_v57 }
 0x140   : > { %v2248_v56 = vsel %vm2240_vm13, %v2231_v33, %v2027_v45 }
 0x142   : > { %v1993_v20 = vpop.permute.xlu1 %1992 }
 0x143   : > { %v1907_v29 = vpop.permute.xlu0 %1906  ;;  %v2237_v22 = vsel %vm2223_vm6, %v2220_v26, %v1993_v20 }
 0x144   : > { %v2205_v54 = vsel %vm2189_vm7, %v2188_v31, %v1907_v29 }
 0x146   : > { %v2153_v15 = vpop.permute.xlu1 %2152 }
 0x147   : > { %v2297_v10 = vsel %vm2291_vm8, %v2280_v43, %v2153_v15  ;;  %v2075_v8 = vpop.permute.xlu0 %2074 }
 0x148   : > { %3287 = vmatprep.mubr.msk.bf16.mxu0 %vm2344_vm10, %v2297_v10  ;;  %v2265_v5 = vsel %vm2257_vm9, %v2248_v56, %v2075_v8 }
 0x14a   : > { %v2033_v42 = vpop.permute.xlu1 %2032 }
 0x14b   : > { %v2254_v9 = vsel %vm2240_vm13, %v2237_v22, %v2033_v42 }
 0x155   : > { %v1955_v25 = vpop.permute.xlu0 %1954 }
 0x156   : > { %v2222_v30 = vsel %vm2206_vm14, %v2205_v54, %v1955_v25 }
 0x159   : > { %v2115_v28 = vpop.permute.xlu0 %2114 }
 0x15a   : > { %v2282_v35 = vsel %vm2274_vm1, %v2265_v5, %v2115_v28 }
 0x15c   : > { %v2035_v2 = vpop.permute.xlu1 %2034 }
 0x15e   : > { %v1995_v18 = vpop.permute.xlu0 %1994 }
 0x15f   : > { %v2239_v52 = vsel %vm2223_vm6, %v2222_v30, %v1995_v18 }
 0x160   : > { %v2256_v7 = vsel %vm2240_vm13, %v2239_v52, %v2035_v2 }
 0x162   : > { %v2155_v44 = vpop.permute.xlu0 %2154 }
 0x163   : > { %v2299_v55 = vsel %vm2291_vm8, %v2282_v35, %v2155_v44 }
 0x164   : > { %3288 = vmatmul.mubr.msk.bf16.gmra.mrb[4].mxu0 %vm2344_vm10, %v2299_v55 }
 0x166   : > { %v2081_v4 = vpop.permute.xlu0 %2080 }
 0x167   : > { %v2271_v13 = vsel %vm2257_vm9, %v2254_v9, %v2081_v4 }
 0x16a   : > { %v2121_v47 = vpop.permute.xlu0 %2120 }
 0x16b   : > { %v2083_v27 = vpop.permute.xlu1 %2082  ;;  %v2288_v38 = vsel %vm2274_vm1, %v2271_v13, %v2121_v47 }
 0x16c   : > { %v2273_v1 = vsel %vm2257_vm9, %v2256_v7, %v2083_v27 }
 0x16e   : > { %v2161_v32 = vpop.permute.xlu0 %2160 }
 0x16f   : > { %v2305_v12 = vsel %vm2291_vm8, %v2288_v38, %v2161_v32 }
 0x170   : > { %3295 = vmatprep.mubr.msk.bf16.mxu1 %vm2344_vm10, %v2305_v12 }
 0x174   : > { %v2123_v11 = vpop.permute.xlu1 %2122 }
 0x175   : > { %v2290_v19 = vsel %vm2274_vm1, %v2273_v1, %v2123_v11 }
 0x178   : > { %v2163_v51 = vpop.permute.xlu1 %2162 }
 0x179   : > { %v2307_v39 = vsel %vm2291_vm8, %v2290_v19, %v2163_v51 }
 0x17a   : > { %3296 = vmatmul.mubr.msk.bf16.gmra.mrb[4].mxu1 %vm2344_vm10, %v2307_v39 }
 0x1e3   : > { %v3285_v34 = vpop.f32.mrb[0].mxu0 }
 0x1e4   : > { %v2503_v62 = vmul.f32 %v3285_v34, %v3285_v34  ;;  %v2399_v41 = vpop.f32.mrb[1].mxu0  ;;  %v2465_v21 = vsel %vm2164_vm5, %v3285_v34, 0.0 }
 0x1e5   : > { %v2501_v53 = vmul.f32 %v2399_v41, %v2399_v41  ;;  %v3286_v0 = vpop.f32.mrb[2].mxu0  ;;  %v2462_v24 = vsel %vm2164_vm5, %v2399_v41, 0.0 }
 0x1e6   : > { %v2520_v36 = vsel %vm2164_vm5, %v2503_v62, 0.0  ;;  %v2504_v57 = vmul.f32 %v3286_v0, %v3286_v0  ;;  %v2556_v37 = vpack.c.bf16 %v3286_v0, %v3285_v34  ;;  %v2402_v60 = vpop.f32.mrb[3].mxu0  ;;  %v2467_v16 = vsel %vm2164_vm5, %v3286_v0, 0.0 }
 0x1e7   : > { %v2463_v45 = vsel %vm2164_vm5, %v2402_v60, 0.0  ;;  %v2502_v20 = vmul.f32 %v2402_v60, %v2402_v60  ;;  %v2555_v50 = vpack.c.bf16 %v2402_v60, %v2399_v41  ;;  %v2517_v46 = vsel %vm2164_vm5, %v2501_v53, 0.0 }
 0x1e8   : > { %v2572_v58 = vunpack.c.l.b16 %v2556_v37  ;;  %v2721_v43 = vunpack.c.h.b16 %v2556_v37  ;;  %v2464_v15 = vadd.f32 %v2463_v45, %v2462_v24  ;;  %v2522_v10 = vsel %vm2164_vm5, %v2504_v57, 0.0 }
 0x1e9   : > { %v2518_v29 = vsel %vm2164_vm5, %v2502_v20, 0.0  ;;  %v2571_v8 = vunpack.c.l.b16 %v2555_v50  ;;  %v2720_v25 = vunpack.c.h.b16 %v2555_v50 }
 0x1ea   : > { %v2466_v3 = vadd.f32 %v2465_v21, %v2464_v15  ;;  %v2519_v23 = vadd.f32 %v2518_v29, %v2517_v46  ;;  %v2619_v14 = vrot.slane %v2572_v58, 1  ;;  %v2763_v28 = vrot.slane %v2721_v43, 1 }
 0x1eb   : > { %v2618_v61 = vrot.slane %v2571_v8, 2  ;;  %v2601_v17 = vrot.slane %v2571_v8, 1  ;;  %v2762_v59 = vrot.slane %v2720_v25, 2  ;;  %v2635_v18 = vrot.slane %v2571_v8, 3 }
 0x1ec   : > { %v2521_v33 = vadd.f32 %v2520_v36, %v2519_v23  ;;  %v4686_v56 = vadd.f32 %v2467_v16, %v2466_v3  ;;  %v2636_v5 = vrot.slane %v2572_v58, 2  ;;  %v2652_v35 = vrot.slane %v2571_v8, 4 }
 0x1ed   : > { %v4689_v42 = vsel %vm2580_vm11, %v2619_v14, %v2618_v61  ;;  %v4692_v44 = vsel %vm2580_vm11, %v2572_v58, %v2601_v17  ;;  %v4695_v55 = vsel %vm2580_vm11, %v2763_v28, %v2762_v59  ;;  %v2653_v40 = vrot.slane %v2572_v58, 3 }
 0x1ee   : > { %v4697_v6 = vadd.f32 %v2522_v10, %v2521_v33  ;;  %v4700_v49 = vsel %vm2580_vm11, %v2636_v5, %v2635_v18  ;;  %v2669_v4 = vrot.slane %v2571_v8, 5  ;;  %v2670_v48 = vrot.slane %v2572_v58, 4 }
 0x1ef   : > { %v4703_v2 = vsel %vm2580_vm11, %v2653_v40, %v2652_v35  ;;  %v2686_v63 = vrot.slane %v2571_v8, 6  ;;  %v2687_v26 = vrot.slane %v2572_v58, 5  ;;  %v2703_v47 = vrot.slane %v2571_v8, 7 }
 0x1f0   : > { %v4706_v22 = vsel %vm2580_vm11, %v2670_v48, %v2669_v4  ;;  %v2704_v9 = vrot.slane %v2572_v58, 6  ;;  %v2728_v13 = vrot.slane %v2721_v43, 7  ;;  %v2745_v27 = vrot.slane %v2720_v25, 1 }
 0x1f1   : > { %v4709_v38 = vsel %vm2580_vm11, %v2687_v26, %v2686_v63  ;;  %v2796_v32 = vrot.slane %v2720_v25, 4  ;;  %v2797_v12 = vrot.slane %v2721_v43, 3  ;;  %v2779_v31 = vrot.slane %v2720_v25, 3 }
 0x1f2   : > { %v4712_v54 = vsel %vm2580_vm11, %v2704_v9, %v2703_v47  ;;  %v4715_v30 = vsel %vm2580_vm11, %v2728_v13, %v2720_v25  ;;  %v4718_v11 = vsel %vm2580_vm11, %v2721_v43, %v2745_v27  ;;  %v2780_v52 = vrot.slane %v2721_v43, 2 }
 0x1f3   : > { %v4721_v7 = vsel %vm2580_vm11, %v2797_v12, %v2796_v32  ;;  %v2830_v1 = vrot.slane %v2720_v25, 6  ;;  %v2831_v19 = vrot.slane %v2721_v43, 5  ;;  %v2813_v51 = vrot.slane %v2720_v25, 5 }
 0x1f4   : > { %v4724_v39 = vsel %vm2580_vm11, %v2780_v52, %v2779_v31  ;;  %v2814_v34 = vrot.slane %v2721_v43, 4  ;;  %v2847_v62 = vrot.slane %v2720_v25, 7  ;;  %v2848_v41 = vrot.slane %v2721_v43, 6 }
 0x1f5   : > { %v4727_v21 = vsel %vm2580_vm11, %v2831_v19, %v2830_v1  ;;  %v2579_v53 = vrot.slane %v2572_v58, 7 }
 0x1f6   : > { %v4730_v0 = vsel %vm2580_vm11, %v2814_v34, %v2813_v51  ;;  %v4733_v36 = vsel %vm2580_vm11, %v2848_v41, %v2847_v62 }
 0x1f7   : > { %v4736_v24 = vsel %vm2580_vm11, %v2579_v53, %v2571_v8  ;;  %vm2598_vm11 = vcmask 1047559  }
 0x205   : > { %v3293_v57 = vpop.f32.mrb[0].mxu1 }
 0x206   : > { %v2431_v37 = vpop.f32.mrb[1].mxu1  ;;  %v2511_v50 = vmul.f32 %v3293_v57, %v3293_v57  ;;  %v4745_v25 = vsel %vm2164_vm5, %v3293_v57, 0.0 }
 0x207   : > { %v3294_v60 = vpop.f32.mrb[2].mxu1  ;;  %v2509_v46 = vmul.f32 %v2431_v37, %v2431_v37  ;;  %v4753_v23 = vsel %vm2164_vm5, %v2431_v37, 0.0 }
 0x208   : > { %v2560_v16 = vpack.c.bf16 %v3294_v60, %v3293_v57  ;;  %v2434_v45 = vpop.f32.mrb[3].mxu1  ;;  %v2512_v43 = vmul.f32 %v3294_v60, %v3294_v60  ;;  %v4750_v3 = vsel %vm2164_vm5, %v2511_v50, 0.0  ;;  %v4759_v28 = vsel %vm2164_vm5, %v3294_v60, 0.0 }
 0x209   : > { %v2559_v20 = vpack.c.bf16 %v2434_v45, %v2431_v37  ;;  %v2510_v58 = vmul.f32 %v2434_v45, %v2434_v45  ;;  %v4756_v14 = vsel %vm2164_vm5, %v2509_v46, 0.0  ;;  %v4765_v17 = vsel %vm2164_vm5, %v2434_v45, 0.0 }
 0x20a   : > { %v4738_v15 = vunpack.c.l.b16 %v2560_v16  ;;  %v4740_v10 = vunpack.c.h.b16 %v2560_v16  ;;  %v4762_v61 = vsel %vm2164_vm5, %v2512_v43, 0.0 }
 0x20b   : > { %v4742_v29 = vunpack.c.l.b16 %v2559_v20  ;;  %v4747_v8 = vunpack.c.h.b16 %v2559_v20  ;;  %v4768_v59 = vsel %vm2164_vm5, %v2510_v58, 0.0 }
 0x20c   : > { %v2626_v18 = vrot.slane %v4738_v15, 5  ;;  %v2609_v5 = vrot.slane %v4738_v15, 4  ;;  %v2770_v35 = vrot.slane %v4740_v10, 5  ;;  %v2643_v40 = vrot.slane %v4738_v15, 6 }
 0x20d   : > { %v2624_v33 = vrot.slane %v4742_v29, 6  ;;  %v2607_v4 = vrot.slane %v4742_v29, 5  ;;  %v2768_v48 = vrot.slane %v4747_v8, 6  ;;  %v2641_v63 = vrot.slane %v4742_v29, 7 }
 0x20e   : > { %v2660_v26 = vrot.slane %v4738_v15, 7  ;;  %v2676_v47 = vrot.slane %v4742_v29, 1  ;;  %v2693_v9 = vrot.slane %v4742_v29, 2  ;;  %v2710_v27 = vrot.slane %v4742_v29, 3 }
 0x237   : > { %v3289_v1 = vpop.f32.mrb[4].mxu0 }
 0x238   : > { %v2507_v41 = vmul.f32 %v3289_v1, %v3289_v1  ;;  %v2415_v53 = vpop.f32.mrb[5].mxu0  ;;  %v2473_v43 = vsel %vm2164_vm5, %v3289_v1, 0.0 }
 0x239   : > { %v2469_v16 = vsel %vm2164_vm5, %v2415_v53, 0.0  ;;  %v2505_v45 = vmul.f32 %v2415_v53, %v2415_v53  ;;  %v3290_v20 = vpop.f32.mrb[6].mxu0 }
 0x23a   : > { %v2470_v58 = vadd.f32 %v2469_v16, %v4686_v56  ;;  %v2508_v62 = vmul.f32 %v3290_v20, %v3290_v20  ;;  %v2418_v34 = vpop.f32.mrb[7].mxu0  ;;  %v2558_v60 = vpack.c.bf16 %v3290_v20, %v3289_v1  ;;  %v2528_v52 = vsel %vm2164_vm5, %v2507_v41, 0.0 }
 0x23b   : > { %v2524_v37 = vsel %vm2164_vm5, %v2505_v45, 0.0  ;;  %v2471_v51 = vsel %vm2164_vm5, %v2418_v34, 0.0  ;;  %v2506_v19 = vmul.f32 %v2418_v34, %v2418_v34  ;;  %v2557_v32 = vpack.c.bf16 %v2418_v34, %v2415_v53 }
 0x23c   : > { %v2525_v50 = vadd.f32 %v2524_v37, %v4697_v6  ;;  %v2472_v46 = vadd.f32 %v2471_v51, %v2470_v58  ;;  %v2475_v31 = vsel %vm2164_vm5, %v3290_v20, 0.0  ;;  %v4805_v56 = vunpack.c.l.b16 %v2558_v60 }
 0x23d   : > { %v4807_v16 = vunpack.c.h.b16 %v2558_v60  ;;  %v2526_v57 = vsel %vm2164_vm5, %v2506_v19, 0.0  ;;  %v4810_v1 = vunpack.c.l.b16 %v2557_v32  ;;  %v4812_v13 = vunpack.c.h.b16 %v2557_v32 }
 0x23e   : > { %v2474_v12 = vadd.f32 %v2473_v43, %v2472_v46  ;;  %v2527_v45 = vadd.f32 %v2526_v57, %v2525_v50  ;;  %v2530_v41 = vsel %vm2164_vm5, %v2508_v62, 0.0  ;;  %v2622_v6 = vrot.slane %v4805_v56, 7 }
 0x23f   : > { %v2605_v51 = vrot.slane %v4805_v56, 6  ;;  %v2766_v34 = vrot.slane %v4807_v16, 7  ;;  %v2621_v19 = vsel %vm2583_vm12, %v4810_v1, %v4689_v42  ;;  %v2603_v57 = vrot.slane %v4810_v1, 7 }
 0x240   : > { %v2476_v53 = vadd.f32 %v2475_v31, %v2474_v12  ;;  %v2529_v37 = vadd.f32 %v2528_v52, %v2527_v45  ;;  %v2623_v60 = vsel %vm2586_vm4, %v2622_v6, %v2621_v19  ;;  %v2765_v32 = vsel %vm2583_vm12, %v4812_v13, %v4695_v55 }
 0x241   : > { %v2638_v62 = vrot.slane %v4810_v1, 1  ;;  %v2655_v20 = vrot.slane %v4810_v1, 2  ;;  %v2625_v31 = vsel %vm2589_vm15, %v2624_v33, %v2623_v60  ;;  %v2604_v42 = vsel %vm2583_vm12, %v2603_v57, %v4692_v44 }
 0x242   : > { %v2478_v50 = vadd.f32 %v4753_v23, %v2476_v53  ;;  %v2531_v12 = vadd.f32 %v2530_v41, %v2529_v37  ;;  %v2606_v52 = vsel %vm2586_vm4, %v2605_v51, %v2604_v42  ;;  %v2767_v46 = vsel %vm2586_vm4, %v2766_v34, %v2765_v32 }
 0x243   : > { %v2639_v55 = vsel %vm2583_vm12, %v2638_v62, %v4700_v49  ;;  %v2657_v43 = vrot.slane %v4805_v56, 1  ;;  %v2608_v33 = vsel %vm2589_vm15, %v2607_v4, %v2606_v52  ;;  %v2769_v44 = vsel %vm2589_vm15, %v2768_v48, %v2767_v46 }
 0x244   : > { %v2533_v58 = vadd.f32 %v4756_v14, %v2531_v12  ;;  %v2480_v23 = vadd.f32 %v4765_v17, %v2478_v50  ;;  %v4850_v45 = vsel %vm2592_vm3, %v2626_v18, %v2625_v31  ;;  %v4855_v49 = vsel %vm2592_vm3, %v2770_v35, %v2769_v44 }
 0x245   : > { %v2640_v14 = vsel %vm2586_vm4, %v4805_v56, %v2639_v55  ;;  %v2656_v17 = vsel %vm2583_vm12, %v2655_v20, %v4703_v2  ;;  %v4870_v35 = vsel %vm2592_vm3, %v2609_v5, %v2608_v33  ;;  %v2674_v51 = vrot.slane %v4805_v56, 2 }
 0x246   : > { %v2482_v4 = vadd.f32 %v4745_v25, %v2480_v23  ;;  %v2535_v48 = vadd.f32 %v4768_v59, %v2533_v58  ;;  %v2642_v18 = vsel %vm2589_vm15, %v2641_v63, %v2640_v14  ;;  %v2658_v41 = vsel %vm2586_vm4, %v2657_v43, %v2656_v17 }
 0x247   : > { %v4875_v6 = vsel %vm2592_vm3, %v2643_v40, %v2642_v18  ;;  %v2659_v2 = vsel %vm2589_vm15, %v4742_v29, %v2658_v41  ;;  %v2672_v25 = vrot.slane %v4810_v1, 3  ;;  %v2689_v34 = vrot.slane %v4810_v1, 4 }
 0x248   : > { %v2484_v59 = vadd.f32 %v4759_v28, %v2482_v4  ;;  %v2537_v63 = vadd.f32 %v4750_v3, %v2535_v48  ;;  %v2691_v53 = vrot.slane %v4805_v56, 3  ;;  %v2706_v40 = vrot.slane %v4810_v1, 5 }
 0x249   : > { %v2673_v5 = vsel %vm2583_vm12, %v2672_v25, %v4706_v22  ;;  %v2708_v37 = vrot.slane %v4805_v56, 4  ;;  %v2690_v3 = vsel %vm2583_vm12, %v2689_v34, %v4709_v38  ;;  %v2730_v28 = vrot.slane %v4812_v13, 6 }
 0x24a   : > { %v2539_v19 = vadd.f32 %v4762_v61, %v2537_v63  ;;  %v2675_v57 = vsel %vm2586_vm4, %v2674_v51, %v2673_v5  ;;  %v2692_v22 = vsel %vm2586_vm4, %v2691_v53, %v2690_v3  ;;  %v2707_v32 = vsel %vm2583_vm12, %v2706_v40, %v4712_v54 }
 0x24b   : > { %v2677_v60 = vsel %vm2589_vm15, %v2676_v47, %v2675_v57  ;;  %v2732_v62 = vrot.slane %v4807_v16, 5  ;;  %v4904_v61 = vsel %vm2592_vm3, %v2660_v26, %v2659_v2  ;;  %v2694_v38 = vsel %vm2589_vm15, %v2693_v9, %v2692_v22 }
 0x24c   : > { %v2709_v20 = vsel %vm2586_vm4, %v2708_v37, %v2707_v32  ;;  %v2731_v47 = vsel %vm2583_vm12, %v2730_v28, %v4715_v30  ;;  %v4914_v54 = vsel %vm2592_vm3, %v4738_v15, %v2677_v60  ;;  %v2747_v31 = vrot.slane %v4812_v13, 7 }
 0x24d   : > { %v3297_v50 = vpop.f32.mrb[4].mxu1  ;;  %v2711_v12 = vsel %vm2589_vm15, %v2710_v27, %v2709_v20  ;;  %v2733_v26 = vsel %vm2586_vm4, %v2732_v62, %v2731_v47  ;;  %v5182_v46 = vrot.slane %v4738_v15, 1  ;;  %v5183_v55 = vrot.slane %v4747_v8, 4 }
 0x24e   : > { %v2489_v9 = vsel %vm2164_vm5, %v3297_v50, 0.0  ;;  %v2515_v42 = vmul.f32 %v3297_v50, %v3297_v50  ;;  %v2447_v52 = vpop.f32.mrb[5].mxu1  ;;  %v5184_v33 = vrot.slane %v4740_v10, 3  ;;  %v4938_v14 = vsel %vm2583_vm12, %v2747_v31, %v4718_v11 }
 0x24f   : > { %v4925_v30 = vsel %vm2592_vm3, %v5182_v46, %v2694_v38  ;;  %v2735_v43 = vsel %vm2589_vm15, %v5183_v55, %v2733_v26  ;;  %v2485_v58 = vsel %vm2164_vm5, %v2447_v52, 0.0  ;;  %v2513_v27 = vmul.f32 %v2447_v52, %v2447_v52  ;;  %v3298_v23 = vpop.f32.mrb[6].mxu1 }
 0x250   : > { %v4934_v44 = vsel %vm2592_vm3, %v5184_v33, %v2735_v43  ;;  %v2544_v17 = vsel %vm2164_vm5, %v2515_v42, 0.0  ;;  %v2486_v4 = vadd.f32 %v2485_v58, %v2484_v59  ;;  %v2516_v48 = vmul.f32 %v3298_v23, %v3298_v23  ;;  %v2450_v18 = vpop.f32.mrb[7].mxu1 }
 0x251   : > { %v5185_v41 = vrot.slane %v4738_v15, 2  ;;  %v2540_v25 = vsel %vm2164_vm5, %v2513_v27, 0.0  ;;  %v2562_v63 = vpack.c.bf16 %v3298_v23, %v3297_v50  ;;  %v2487_v51 = vsel %vm2164_vm5, %v2450_v18, 0.0 }
 0x252   : > { %v2514_v34 = vmul.f32 %v2450_v18, %v2450_v18  ;;  %v2541_v5 = vadd.f32 %v2540_v25, %v2539_v19  ;;  %v2491_v11 = vsel %vm2164_vm5, %v3298_v23, 0.0  ;;  %v2488_v53 = vadd.f32 %v2487_v51, %v2486_v4 }
 0x253   : > { %v4944_v2 = vsel %vm2592_vm3, %v5185_v41, %v2711_v12  ;;  %v2561_v40 = vpack.c.bf16 %v2450_v18, %v2447_v52  ;;  %v2546_v59 = vsel %vm2164_vm5, %v2516_v48, 0.0  ;;  %v4950_v37 = vunpack.c.l.b16 %v2562_v63 }
 0x254   : > { %v4952_v57 = vunpack.c.h.b16 %v2562_v63  ;;  %v2542_v3 = vsel %vm2164_vm5, %v2514_v34, 0.0  ;;  %v2490_v28 = vadd.f32 %v2489_v9, %v2488_v53  ;;  %v2749_v34 = vrot.slane %v4807_v16, 6 }
 0x255   : > { %v2543_v60 = vadd.f32 %v2542_v3, %v2541_v5  ;;  %v4955_v22 = vunpack.c.l.b16 %v2561_v40  ;;  %v4957_v32 = vunpack.c.h.b16 %v2561_v40  ;;  %v2630_v19 = vrot.slane %v4950_v37, 3 }
 0x256   : > { %v2613_v62 = vrot.slane %v4950_v37, 2  ;;  %v2774_v38 = vrot.slane %v4952_v57, 3  ;;  %v2647_v20 = vrot.slane %v4950_v37, 4  ;;  %v2492_v47 = vadd.f32 %v2491_v11, %v2490_v28 }
 0x257   : > { %v2545_v50 = vadd.f32 %v2544_v17, %v2543_v60  ;;  %v2628_v12 = vrot.slane %v4955_v22, 4  ;;  %v2611_v26 = vrot.slane %v4955_v22, 3  ;;  %v2772_v31 = vrot.slane %v4957_v32, 4 }
 0x258   : > { %v2645_v9 = vrot.slane %v4955_v22, 5  ;;  %v2662_v42 = vrot.slane %v4955_v22, 6  ;;  %v2664_v52 = vrot.slane %v4950_v37, 5  ;;  %v2493_v46 = vrot.slane %v2492_v47, 4 }
 0x259   : > { %v2547_v55 = vadd.f32 %v2546_v59, %v2545_v50  ;;  %v2629_v43 = vsel %vm2595_vm2, %v2628_v12, %v4850_v45  ;;  %v2612_v58 = vsel %vm2595_vm2, %v2611_v26, %v4870_v35  ;;  %v2773_v33 = vsel %vm2595_vm2, %v2772_v31, %v4855_v49 }
 0x25a   : > { %v2631_v27 = vsel %vm2598_vm11, %v2630_v19, %v2629_v43  ;;  %v2614_v23 = vsel %vm2598_vm11, %v2613_v62, %v2612_v58  ;;  %v2646_v17 = vsel %vm2595_vm2, %v2645_v9, %v4875_v6  ;;  %v2494_v4 = vadd.f32 %v2493_v46, %v2492_v47 }
 0x25b   : > { %v2548_v48 = vrot.slane %v2547_v55, 4  ;;  %v2632_v18 = vpack.c.b16 %v2631_v27, %v2631_v27  ;;  %v2615_v41 = vpack.c.b16 %v2614_v23, %v2614_v23  ;;  %v2775_v45 = vsel %vm2598_vm11, %v2774_v38, %v2773_v33 }
 0x25c   : > { %v2648_v25 = vsel %vm2598_vm11, %v2647_v20, %v2646_v17  ;;  %v2663_v35 = vsel %vm2595_vm2, %v2662_v42, %v4904_v61  ;;  %v2679_v63 = vrot.slane %v4955_v22, 7  ;;  %v2495_v49 = vrot.slane %v2494_v4, 2 }
 0x25d   : > { %v2549_v51 = vadd.f32 %v2548_v48, %v2547_v55  ;;  %2633 = vrot.lane.b32.xlu1 %v2632_v18, %s3445_s15  ;;  %2616 = vrot.lane.b32.xlu0 %v2615_v41, %s3447_s29  ;;  %v2776_v6 = vpack.c.b16 %v2775_v45, %v2775_v45  ;;  %v2665_v5 = vsel %vm2598_vm11, %v2664_v52, %v2663_v35  ;;  %v2681_v61 = vrot.slane %v4950_v37, 6  ;;  %s3451_s15 = smov 80  }
 0x25e   : > { %v2680_v11 = vsel %vm2595_vm2, %v2679_v63, %v4914_v54  ;;  %v2697_v53 = vsel %vm2595_vm2, %v4955_v22, %v4925_v30  ;;  %v2496_v40 = vadd.f32 %v2495_v49, %v2494_v4  ;;  %v2649_v3 = vpack.c.b16 %v2648_v25, %v2648_v25 }
 0x25f   : > { %v2550_v59 = vrot.slane %v2549_v51, 2  ;;  %v2698_v28 = vrot.slane %v4950_v37, 7  ;;  %v2666_v60 = vpack.c.b16 %v2665_v5, %v2665_v5  ;;  %v2682_v19 = vsel %vm2598_vm11, %v2681_v61, %v2680_v11 }
 0x260   : > { %v2714_v62 = vrot.slane %v4955_v22, 1  ;;  %v2738_v38 = vrot.slane %v4957_v32, 2  ;;  %v2497_v54 = vrot.slane %v2496_v40, 1  ;;  %v2740_v47 = vrot.slane %v4952_v57, 1 }
 0x261   : > { %v5005_v20 = vadd.f32 %v2550_v59, %v2549_v51  ;;  %2777 = vrot.lane.b32.xlu1 %v2776_v6, %s3451_s15  ;;  %2650 = vrot.lane.b32.xlu0 %v2649_v3, %s3443_s10  ;;  %v2699_v30 = vsel %vm2598_vm11, %v2698_v28, %v2697_v53  ;;  %v2683_v50 = vpack.c.b16 %v2682_v19, %v2682_v19  ;;  %v5187_v58 = vrot.slane %v4740_v10, 4  ;;  %s3452_s10 = smov 72  }
 0x262   : > { %v2715_v12 = vsel %vm2595_vm2, %v2714_v62, %v4944_v2  ;;  %v2739_v26 = vsel %vm2595_vm2, %v2738_v38, %v4934_v44  ;;  %v2750_v31 = vsel %vm2586_vm4, %v2749_v34, %v4938_v14  ;;  %v2498_v9 = vadd.f32 %v2497_v54, %v2496_v40 }
 0x263   : > { %v2700_v42 = vpack.c.b16 %v2699_v30, %v2699_v30  ;;  %v2716_v52 = vsel %vm2598_vm11, %v4950_v37, %v2715_v12  ;;  %v2741_v46 = vsel %vm2598_vm11, %v2740_v47, %v2739_v26  ;;  %v5186_v44 = vrot.slane %v4747_v8, 5 }
 0x264   : > { %v2717_v2 = vpack.c.b16 %v2716_v52, %v2716_v52  ;;  %v2742_v55 = vpack.c.b16 %v2741_v46, %v2741_v46  ;;  %v2755_v14 = vrot.slane %v4957_v32, 3  ;;  %v2757_v23 = vrot.slane %v4952_v57, 2  ;;  %2500 = vst.msk [vmem:[%s5019_s14] sm:$0x1] %vm268_vm0, %v2498_v9 }
 0x265   : > { %v2752_v43 = vsel %vm2589_vm15, %v5186_v44, %v2750_v31  ;;  %2667 = vrot.lane.b32.xlu1 %v2666_v60, %s3448_s6  ;;  %2684 = vrot.lane.b32.xlu0 %v2683_v50, %s3446_s17  ;;  %v2799_v33 = vrot.slane %v4812_v13, 2  ;;  %v2801_v17 = vrot.slane %v4807_v16, 1  ;;  %v2806_v48 = vrot.slane %v4957_v32, 6  ;;  %s3454_s17 = smov 88   ;;  %s3455_s6 = smov 112  }
 0x266   : > { %v2754_v27 = vsel %vm2592_vm3, %v5187_v58, %v2752_v43  ;;  %v2808_v18 = vrot.slane %v4952_v57, 5  ;;  %v2782_v41 = vrot.slane %v4812_v13, 1  ;;  %v2789_v35 = vrot.slane %v4957_v32, 5 }
 0x267   : > { %v2756_v4 = vsel %vm2595_vm2, %v2755_v14, %v2754_v27  ;;  %v2800_v25 = vsel %vm2583_vm12, %v2799_v33, %v4721_v7  ;;  %v2791_v63 = vrot.slane %v4952_v57, 4  ;;  %v2833_v34 = vrot.slane %v4812_v13, 4 }
 0x268   : > { %v2758_v45 = vsel %vm2598_vm11, %v2757_v23, %v2756_v4  ;;  %v2802_v51 = vsel %vm2586_vm4, %v2801_v17, %v2800_v25  ;;  %v2783_v6 = vsel %vm2583_vm12, %v2782_v41, %v4724_v39  ;;  %v2835_v11 = vrot.slane %v4807_v16, 3 }
 0x269   : > { %v2759_v49 = vpack.c.b16 %v2758_v45, %v2758_v45  ;;  %2701 = vrot.lane.b32.xlu1 %v2700_v42, %s3444_s11  ;;  %2718 = vrot.lane.b32.xlu0 %v2717_v2, %s3450_s8  ;;  %v2803_v5 = vsel %vm2589_vm15, %v4747_v8, %v2802_v51  ;;  %v2784_v7 = vsel %vm2586_vm4, %v4807_v16, %v2783_v6  ;;  %v2842_v61 = vrot.slane %v4952_v57, 7  ;;  %s3453_s11 = smov 96   ;;  %s3457_s8 = smov 120  }
 0x26a   : > { %v5188_v53 = vrot.slane %v4740_v10, 7  ;;  %v5189_v40 = vrot.slane %v4747_v8, 7  ;;  %v2834_v3 = vsel %vm2583_vm12, %v2833_v34, %v4727_v21  ;;  %v2816_v28 = vrot.slane %v4812_v13, 3 }
 0x26b   : > { %v5190_v19 = vrot.slane %v4740_v10, 6  ;;  %v2836_v38 = vsel %vm2586_vm4, %v2835_v11, %v2834_v3  ;;  %v2818_v54 = vrot.slane %v4807_v16, 2  ;;  %v5191_v50 = vrot.slane %v4747_v8, 2 }
 0x26c   : > { %v2805_v39 = vsel %vm2592_vm3, %v5188_v53, %v2803_v5  ;;  %v2786_v59 = vsel %vm2589_vm15, %v5189_v40, %v2784_v7  ;;  %v2817_v12 = vsel %vm2583_vm12, %v2816_v28, %v4730_v0  ;;  %v5192_v31 = vrot.slane %v4740_v10, 1 }
 0x26d   : > { %v2807_v60 = vsel %vm2595_vm2, %v2806_v48, %v2805_v39  ;;  %v2788_v62 = vsel %vm2592_vm3, %v5190_v19, %v2786_v59  ;;  %v2838_v21 = vsel %vm2589_vm15, %v5191_v50, %v2836_v38  ;;  %2743 = vrot.lane.b32.xlu1 %v2742_v55, %s3449_s7  ;;  %2760 = vrot.lane.b32.xlu0 %v2759_v49, %s3452_s10  ;;  %v2823_v42 = vrot.slane %v4957_v32, 7  ;;  %s3456_s7 = smov 104  }
 0x26e   : > { %v2809_v30 = vsel %vm2598_vm11, %v2808_v18, %v2807_v60  ;;  %v2790_v47 = vsel %vm2595_vm2, %v2789_v35, %v2788_v62  ;;  %v2840_v9 = vsel %vm2592_vm3, %v5192_v31, %v2838_v21  ;;  %v2591_v52 = vrot.slane %v4738_v15, 3 }
 0x26f   : > { %v2792_v26 = vsel %vm2598_vm11, %v2791_v63, %v2790_v47  ;;  %v2552_v46 = vrot.slane %v5005_v20, 1  ;;  %v2810_v2 = vpack.c.b16 %v2809_v30, %v2809_v30  ;;  %v2841_v0 = vsel %vm2595_vm2, %v4957_v32, %v2840_v9 }
 0x270   : > { %v2819_v55 = vsel %vm2586_vm4, %v2818_v54, %v2817_v12  ;;  %v2793_v44 = vpack.c.b16 %v2792_v26, %v2792_v26  ;;  %v2843_v43 = vsel %vm2598_vm11, %v2842_v61, %v2841_v0  ;;  %v5193_v14 = vrot.slane %v4747_v8, 1 }
 0x271   : > { %v2850_v27 = vrot.slane %v4812_v13, 5  ;;  %v2825_v23 = vrot.slane %v4952_v57, 6  ;;  %v2852_v33 = vrot.slane %v4807_v16, 4  ;;  %v2582_v17 = vrot.slane %v4810_v1, 6  ;;  %2811 = vrot.lane.b32.xlu1 %v2810_v2, %s3453_s11 }
 0x272   : > { %v2821_v58 = vsel %vm2589_vm15, %v5193_v14, %v2819_v55  ;;  %2794 = vrot.lane.b32.xlu0 %v2793_v44, %s3454_s17  ;;  %v2858_v13 = vrot.slane %v4957_v32, 1  ;;  %v2585_v18 = vrot.slane %v4805_v56, 5  ;;  %v2594_v1 = vrot.slane %v4955_v22, 2 }
 0x273   : > { %v2822_v15 = vsel %vm2592_vm3, %v4740_v10, %v2821_v58  ;;  %v2851_v48 = vsel %vm2583_vm12, %v2850_v27, %v4733_v36  ;;  %v2584_v16 = vsel %vm2583_vm12, %v2582_v17, %v4736_v24  ;;  %v2844_v25 = vpack.c.b16 %v2843_v43, %v2843_v43 }
 0x274   : > { %v2824_v4 = vsel %vm2595_vm2, %v2823_v42, %v2822_v15  ;;  %v2853_v45 = vsel %vm2586_vm4, %v2852_v33, %v2851_v48  ;;  %v5194_v63 = vrot.slane %v4747_v8, 3  ;;  %v2587_v36 = vsel %vm2586_vm4, %v2585_v18, %v2584_v16 }
 0x275   : > { %v2826_v41 = vsel %vm2598_vm11, %v2825_v23, %v2824_v4  ;;  %v5195_v56 = vrot.slane %v4740_v10, 2  ;;  %v5196_v51 = vrot.slane %v4742_v29, 4  ;;  %2845 = vrot.lane.b32.xlu1 %v2844_v25, %s3455_s6  ;;  %v2597_v22 = vrot.slane %v4950_v37, 1 }
 0x276   : > { %v2827_v35 = vpack.c.b16 %v2826_v41, %v2826_v41  ;;  %v2855_v49 = vsel %vm2589_vm15, %v5194_v63, %v2853_v45  ;;  %v2553_v5 = vadd.f32 %v2552_v46, %v5005_v20 }
 0x277   : > { %v2857_v32 = vsel %vm2592_vm3, %v5195_v56, %v2855_v49  ;;  %v2590_v6 = vsel %vm2589_vm15, %v5196_v51, %v2587_v36 }
 0x278   : > { %2828 = vrot.lane.b32.xlu0 %v2827_v35, %s3456_s7  ;;  %v2859_v24 = vsel %vm2595_vm2, %v2858_v13, %v2857_v32  ;;  %v2593_v8 = vsel %vm2592_vm3, %v2591_v52, %v2590_v6  ;;  %2554 = vst.msk [vmem:[%s5019_s14 + $0x1] sm:$0x1] %vm268_vm0, %v2553_v5  ;;  %vm2883_vm0 = vcmask 654336  }
 0x279   : > { %v2860_v34 = vsel %vm2598_vm11, %v4952_v57, %v2859_v24  ;;  %v2596_v10 = vsel %vm2595_vm2, %v2594_v1, %v2593_v8 }
 0x27a   : > { %v2861_v29 = vpack.c.b16 %v2860_v34, %v2860_v34  ;;  %v2599_v7 = vsel %vm2598_vm11, %v2597_v22, %v2596_v10 }
 0x27b   : > { %v2600_v53 = vpack.c.b16 %v2599_v7, %v2599_v7 }
 0x27c   : > { %2862 = vrot.lane.b32.xlu0 %v2861_v29, %s3457_s8 }
 0x2cf   : > { %v2634_v11 = vpop.permute.xlu1 %2633  ;;  %v2617_v61 = vpop.permute.xlu0 %2616 }
 0x2d0   : > { %v2866_v39 = vsel %vm2164_vm5, %v2600_v53, %v2617_v61  ;;  %vm2886_vm5 = vcmask 719872  }
 0x2d1   : > { %v2868_v57 = vsel %vm2189_vm7, %v2866_v39, %v2634_v11  ;;  %vm2889_vm7 = vcmask 785408  }
 0x2d3   : > { %v2778_v37 = vpop.permute.xlu1 %2777  ;;  %v2651_v40 = vpop.permute.xlu0 %2650 }
 0x2d4   : > { %v2870_v59 = vsel %vm2206_vm14, %v2868_v57, %v2651_v40  ;;  %vm2892_vm14 = vcmask 850944  }
 0x2d7   : > { %v2668_v3 = vpop.permute.xlu1 %2667  ;;  %v2685_v20 = vpop.permute.xlu0 %2684 }
 0x2d8   : > { %v2872_v28 = vsel %vm2223_vm6, %v2870_v59, %v2668_v3  ;;  %vm2895_vm6 = vcmask 916480  }
 0x2d9   : > { %v2874_v60 = vsel %vm2240_vm13, %v2872_v28, %v2685_v20  ;;  %vm2898_vm13 = vcmask 982016  }
 0x2db   : > { %v2702_v19 = vpop.permute.xlu1 %2701  ;;  %v2719_v62 = vpop.permute.xlu0 %2718 }
 0x2dc   : > { %v2876_v38 = vsel %vm2257_vm9, %v2874_v60, %v2702_v19 }
 0x2dd   : > { %v2878_v54 = vsel %vm2274_vm1, %v2876_v38, %v2719_v62 }
 0x2df   : > { %v2744_v30 = vpop.permute.xlu1 %2743  ;;  %v2761_v47 = vpop.permute.xlu0 %2760 }
 0x2e0   : > { %v2880_v50 = vsel %vm2291_vm8, %v2878_v54, %v2744_v30 }
 0x2e1   : > { %v2882_v21 = vsel %vm2344_vm10, %v2880_v50, %v2761_v47 }
 0x2e2   : > { %v2885_v12 = vsel %vm2883_vm0, %v2882_v21, %v2778_v37 }
 0x2e3   : > { %v2812_v26 = vpop.permute.xlu1 %2811 }
 0x2e4   : > { %v2795_v31 = vpop.permute.xlu0 %2794 }
 0x2e5   : > { %v2888_v9 = vsel %vm2886_vm5, %v2885_v12, %v2795_v31 }
 0x2e6   : > { %v2891_v52 = vsel %vm2889_vm7, %v2888_v9, %v2812_v26 }
 0x2e7   : > { %v2846_v46 = vpop.permute.xlu1 %2845 }
 0x2ea   : > { %v2829_v42 = vpop.permute.xlu0 %2828 }
 0x2eb   : > { %v2894_v2 = vsel %vm2892_vm14, %v2891_v52, %v2829_v42 }
 0x2ec   : > { %v2897_v55 = vsel %vm2895_vm6, %v2894_v2, %v2846_v46 }
 0x2ee   : > { %v2863_v0 = vpop.permute.xlu0 %2862 }
 0x2ef   : > { %v2900_v44 = vsel %vm2898_vm13, %v2897_v55, %v2863_v0 }
 0x2f0   : > { %2902 = vst [vmem:[%s257_s25] sm:$0xf] %v2900_v44 }
 0x2f1 PF: > { %s16_s22 = sadd.s32 1, %s3441_s22   ;;  %s5197_s18 = smov %s3433_s20 }
 0x2f2   : > { %p13_p10 = scmp.ge.s32.totalorder %s16_s22, 6   ;;  %s5198_s19 = smov %s3437_s21 }
 0x2f3   : > { %s5199_s20 = smov %s5202_s23  ;;  %s5200_s21 = smov %s5206_s24 }
 0x2f4   :  { %15 = sbr.rel (!%p13_p10) target bundleno = 3 (0x3), region = 84 }

</bundles_post_ra>
